<compile_context>
chip_gen: v7x
topology: tpu7x:2x2x1
jax: 0.10.0
libtpu: 0.0.40
codegen_flags: <defaults>
</compile_context>

<pallas_src>
import jax
import jax.numpy as jnp
from jax.experimental import pallas as pl
from jax.experimental.pallas import tpu as pltpu

# Logical layer dimensions of the module, and the (8,128)-aligned padded ones
# actually used by the kernel (layer-0 fan-in 784->896, final fan-out 10->128).
LOGICAL_LAYER_DIMS = [(28 * 28, 512), (512, 512), (512, 512), (512, 10)]
PADDED_LAYER_DIMS = [(896, 512), (512, 512), (512, 512), (512, 128)]
NUM_LAYERS = len(LOGICAL_LAYER_DIMS)
PARAMS_PER_LAYER = 6  # w_mu, w_sigma, w_eps, b_mu, b_sigma, b_eps


def bnn_kernel(*refs):
    """Fused forward pass: sample Bayesian weights (FMA), 4 matmuls, 3 ReLUs.

    refs = (x_ref, [w_mu, w_sigma, w_eps, b_mu, b_sigma, b_eps] * 4, out_ref)
    Parameters are bf16; activations / bias math / matmul accumulation are f32.
    Everything is VMEM-resident (~7 MB of bf16 params).
    """
    x_ref = refs[0]
    out_ref = refs[-1]
    param_refs = refs[1:-1]

    h = x_ref[...]  # f32 [B, 896]
    for layer in range(NUM_LAYERS):
        wm, ws, we, bm, bs, be = param_refs[
            PARAMS_PER_LAYER * layer : PARAMS_PER_LAYER * (layer + 1)
        ]
        # Reparameterization sample.  Weights sampled directly in bf16 (inputs are
        # already bf16-rounded; the extra rounding is <0.2% rel and it avoids
        # materializing f32 [896,512] temporaries).  Bias math in f32.
        w = wm[...] + ws[...] * we[...]                       # bf16 [din, dout]
        b = (bm[...].astype(jnp.float32)
             + bs[...].astype(jnp.float32) * be[...].astype(jnp.float32))  # f32 [1, dout]
        # MXU matmul: bf16 operands, f32 accumulation.
        h = jnp.dot(h.astype(jnp.bfloat16), w,
                    preferred_element_type=jnp.float32) + b   # f32 [B, dout]
        if layer < NUM_LAYERS - 1:  # ReLU on all but the final (logits) layer
            h = jnp.maximum(h, 0.0)
    out_ref[...] = h.astype(out_ref.dtype)


def init_params(key):
    """Deterministic synthetic Bayesian parameters (mu, rho, sampled eps), f32,
    logical shapes, weights stored [in, out] (pre-transposed vs torch)."""
    params = []
    for (din, dout) in LOGICAL_LAYER_DIMS:
        key, k_wmu, k_weps, k_bmu, k_beps = jax.random.split(key, 5)
        bound = 1.0 / (din ** 0.5)
        w_mu = jax.random.uniform(k_wmu, (din, dout), jnp.float32, -bound, bound)
        w_rho = jnp.full((din, dout), -5.0, jnp.float32)
        w_eps = jax.random.normal(k_weps, (din, dout), jnp.float32)
        b_mu = jax.random.uniform(k_bmu, (1, dout), jnp.float32, -bound, bound)
        b_rho = jnp.full((1, dout), -5.0, jnp.float32)
        b_eps = jax.random.normal(k_beps, (1, dout), jnp.float32)
        params.append((w_mu, w_rho, w_eps, b_mu, b_rho, b_eps))
    return params


def prepare_params(params):
    """Kernel-side param prep: sigma = softplus(rho) (stable, done once here),
    zero-pad to (8,128)-aligned shapes, cast everything to bf16."""
    prepped = []
    for layer, (w_mu, w_rho, w_eps, b_mu, b_rho, b_eps) in enumerate(params):
        din, dout = w_mu.shape
        din_p, dout_p = PADDED_LAYER_DIMS[layer]

        def pad_w(a):
            return jnp.pad(a, ((0, din_p - din), (0, dout_p - dout)))

        def pad_b(a):
            return jnp.pad(a, ((0, 0), (0, dout_p - dout)))

        w_sigma = jax.nn.softplus(w_rho)
        b_sigma = jax.nn.softplus(b_rho)
        prepped.append(tuple(
            a.astype(jnp.bfloat16)
            for a in (pad_w(w_mu), pad_w(w_sigma), pad_w(w_eps),
                      pad_b(b_mu), pad_b(b_sigma), pad_b(b_eps))
        ))
    return prepped


def bayesian_nn_forward(x, prepped_params):
    """Wrapper: flatten + pad NCHW input, call the fused Pallas kernel, slice logits."""
    batch = x.shape[0]
    x_flat = x.reshape(batch, -1).astype(jnp.float32)          # nn.Flatten()
    pad_in = PADDED_LAYER_DIMS[0][0] - x_flat.shape[1]          # 784 -> 896
    x_flat = jnp.pad(x_flat, ((0, 0), (0, pad_in)))

    flat_params = [p for layer in prepped_params for p in layer]
    n_inputs = 1 + len(flat_params)
    vmem_spec = pl.BlockSpec(memory_space=pltpu.MemorySpace.VMEM)

    out_pad = PADDED_LAYER_DIMS[-1][1]
    flops = 2 * batch * sum(di * do for di, do in PADDED_LAYER_DIMS)
    bytes_accessed = (
        x_flat.size * x_flat.dtype.itemsize
        + sum(int(p.size) * p.dtype.itemsize for p in flat_params)
        + batch * out_pad * 4
    )

    out = pl.pallas_call(
        bnn_kernel,
        out_shape=jax.ShapeDtypeStruct((batch, out_pad), jnp.float32),
        in_specs=[vmem_spec] * n_inputs,
        out_specs=vmem_spec,
        compiler_params=pltpu.CompilerParams(vmem_limit_bytes=32 << 20),
        cost_estimate=pl.CostEstimate(flops=flops, transcendentals=0,
                                      bytes_accessed=bytes_accessed),
    )(x_flat, *flat_params)
    return out[:, : LOGICAL_LAYER_DIMS[-1][1]]                  # drop lane padding


def bayesian_nn_reference(x, params):
    """Pure-JAX f32 reference (identical math, unpadded) for correctness check."""
    h = x.reshape(x.shape[0], -1).astype(jnp.float32)
    for layer, (wm, wr, we, bm, br, be) in enumerate(params):
        w = wm + jax.nn.softplus(wr) * we
        b = bm + jax.nn.softplus(br) * be
        h = h @ w + b
        if layer < NUM_LAYERS - 1:
            h = jnp.maximum(h, 0.0)
    return h


if __name__ == "__main__":
    key = jax.random.PRNGKey(0)
    key, k_x, k_p = jax.random.split(key, 3)

    # Small MNIST-like batch: NCHW [8, 1, 28, 28].
    x = jax.random.normal(k_x, (8, 1, 28, 28), jnp.float32)
    params = init_params(k_p)
    prepped = prepare_params(params)

    logits = bayesian_nn_forward(x, prepped)
    logits = jax.block_until_ready(logits)

    ref = bayesian_nn_reference(x, params)
    assert logits.shape == (8, 10), logits.shape
    # Kernel uses bf16 params / bf16 matmul operands with f32 accumulation;
    # reference is full f32, so allow bf16-level tolerance.
    assert jnp.allclose(logits, ref, atol=1e-2, rtol=1e-2), "mismatch vs reference"

    print("KERNEL_OK")
</pallas_src>

<mosaic_0001>
module attributes {stable_mosaic.version = 11 : i64} {
  func.func @bnn_kernel(%arg0: memref<8x896xf32, #tpu.memory_space<vmem>>, %arg1: memref<896x512xbf16, #tpu.memory_space<vmem>>, %arg2: memref<896x512xbf16, #tpu.memory_space<vmem>>, %arg3: memref<896x512xbf16, #tpu.memory_space<vmem>>, %arg4: memref<1x512xbf16, #tpu.memory_space<vmem>>, %arg5: memref<1x512xbf16, #tpu.memory_space<vmem>>, %arg6: memref<1x512xbf16, #tpu.memory_space<vmem>>, %arg7: memref<512x512xbf16, #tpu.memory_space<vmem>>, %arg8: memref<512x512xbf16, #tpu.memory_space<vmem>>, %arg9: memref<512x512xbf16, #tpu.memory_space<vmem>>, %arg10: memref<1x512xbf16, #tpu.memory_space<vmem>>, %arg11: memref<1x512xbf16, #tpu.memory_space<vmem>>, %arg12: memref<1x512xbf16, #tpu.memory_space<vmem>>, %arg13: memref<512x512xbf16, #tpu.memory_space<vmem>>, %arg14: memref<512x512xbf16, #tpu.memory_space<vmem>>, %arg15: memref<512x512xbf16, #tpu.memory_space<vmem>>, %arg16: memref<1x512xbf16, #tpu.memory_space<vmem>>, %arg17: memref<1x512xbf16, #tpu.memory_space<vmem>>, %arg18: memref<1x512xbf16, #tpu.memory_space<vmem>>, %arg19: memref<512x128xbf16, #tpu.memory_space<vmem>>, %arg20: memref<512x128xbf16, #tpu.memory_space<vmem>>, %arg21: memref<512x128xbf16, #tpu.memory_space<vmem>>, %arg22: memref<1x128xbf16, #tpu.memory_space<vmem>>, %arg23: memref<1x128xbf16, #tpu.memory_space<vmem>>, %arg24: memref<1x128xbf16, #tpu.memory_space<vmem>>, %arg25: memref<8x128xf32, #tpu.memory_space<vmem>>) attributes {dimension_semantics = [], scalar_prefetch = 0 : i64, scratch_operands = 0 : i64, tpu.core_type = #tpu.core_type<tc>} {
    %c0 = arith.constant 0 : index
    %c0_0 = arith.constant 0 : index
    %0 = vector.load %arg0[%c0, %c0_0] : memref<8x896xf32, #tpu.memory_space<vmem>>, vector<8x896xf32>
    %c0_1 = arith.constant 0 : index
    %c0_2 = arith.constant 0 : index
    %1 = vector.load %arg1[%c0_1, %c0_2] : memref<896x512xbf16, #tpu.memory_space<vmem>>, vector<896x512xbf16>
    %c0_3 = arith.constant 0 : index
    %c0_4 = arith.constant 0 : index
    %2 = vector.load %arg2[%c0_3, %c0_4] : memref<896x512xbf16, #tpu.memory_space<vmem>>, vector<896x512xbf16>
    %c0_5 = arith.constant 0 : index
    %c0_6 = arith.constant 0 : index
    %3 = vector.load %arg3[%c0_5, %c0_6] : memref<896x512xbf16, #tpu.memory_space<vmem>>, vector<896x512xbf16>
    %4 = arith.mulf %2, %3 : vector<896x512xbf16>
    %5 = arith.addf %1, %4 : vector<896x512xbf16>
    %c0_7 = arith.constant 0 : index
    %c0_8 = arith.constant 0 : index
    %6 = vector.load %arg4[%c0_7, %c0_8] : memref<1x512xbf16, #tpu.memory_space<vmem>>, vector<1x512xbf16>
    %7 = arith.extf %6 : vector<1x512xbf16> to vector<1x512xf32>
    %c0_9 = arith.constant 0 : index
    %c0_10 = arith.constant 0 : index
    %8 = vector.load %arg5[%c0_9, %c0_10] : memref<1x512xbf16, #tpu.memory_space<vmem>>, vector<1x512xbf16>
    %9 = arith.extf %8 : vector<1x512xbf16> to vector<1x512xf32>
    %c0_11 = arith.constant 0 : index
    %c0_12 = arith.constant 0 : index
    %10 = vector.load %arg6[%c0_11, %c0_12] : memref<1x512xbf16, #tpu.memory_space<vmem>>, vector<1x512xbf16>
    %11 = arith.extf %10 : vector<1x512xbf16> to vector<1x512xf32>
    %12 = arith.mulf %9, %11 : vector<1x512xf32>
    %13 = arith.addf %7, %12 : vector<1x512xf32>
    %14 = arith.truncf %0 : vector<8x896xf32> to vector<8x896xbf16>
    %cst = arith.constant dense<0.000000e+00> : vector<8x512xf32>
    %15 = tpu.matmul %14, %5, %cst {dimension_numbers = #tpu.dot_dimension_numbers<[1], [0], [0], [1], [0, 0, 1, 1], [], []>} : vector<8x896xbf16>, vector<896x512xbf16>, vector<8x512xf32> -> vector<8x512xf32>
    %16 = vector.broadcast %13 : vector<1x512xf32> to vector<8x512xf32>
    %17 = arith.addf %15, %16 : vector<8x512xf32>
    %cst_13 = arith.constant 0.000000e+00 : f32
    %18 = vector.broadcast %cst_13 : f32 to vector<8x512xf32>
    %19 = arith.maximumf %17, %18 : vector<8x512xf32>
    %c0_14 = arith.constant 0 : index
    %c0_15 = arith.constant 0 : index
    %20 = vector.load %arg7[%c0_14, %c0_15] : memref<512x512xbf16, #tpu.memory_space<vmem>>, vector<512x512xbf16>
    %c0_16 = arith.constant 0 : index
    %c0_17 = arith.constant 0 : index
    %21 = vector.load %arg8[%c0_16, %c0_17] : memref<512x512xbf16, #tpu.memory_space<vmem>>, vector<512x512xbf16>
    %c0_18 = arith.constant 0 : index
    %c0_19 = arith.constant 0 : index
    %22 = vector.load %arg9[%c0_18, %c0_19] : memref<512x512xbf16, #tpu.memory_space<vmem>>, vector<512x512xbf16>
    %23 = arith.mulf %21, %22 : vector<512x512xbf16>
    %24 = arith.addf %20, %23 : vector<512x512xbf16>
    %c0_20 = arith.constant 0 : index
    %c0_21 = arith.constant 0 : index
    %25 = vector.load %arg10[%c0_20, %c0_21] : memref<1x512xbf16, #tpu.memory_space<vmem>>, vector<1x512xbf16>
    %26 = arith.extf %25 : vector<1x512xbf16> to vector<1x512xf32>
    %c0_22 = arith.constant 0 : index
    %c0_23 = arith.constant 0 : index
    %27 = vector.load %arg11[%c0_22, %c0_23] : memref<1x512xbf16, #tpu.memory_space<vmem>>, vector<1x512xbf16>
    %28 = arith.extf %27 : vector<1x512xbf16> to vector<1x512xf32>
    %c0_24 = arith.constant 0 : index
    %c0_25 = arith.constant 0 : index
    %29 = vector.load %arg12[%c0_24, %c0_25] : memref<1x512xbf16, #tpu.memory_space<vmem>>, vector<1x512xbf16>
    %30 = arith.extf %29 : vector<1x512xbf16> to vector<1x512xf32>
    %31 = arith.mulf %28, %30 : vector<1x512xf32>
    %32 = arith.addf %26, %31 : vector<1x512xf32>
    %33 = arith.truncf %19 : vector<8x512xf32> to vector<8x512xbf16>
    %cst_26 = arith.constant dense<0.000000e+00> : vector<8x512xf32>
    %34 = tpu.matmul %33, %24, %cst_26 {dimension_numbers = #tpu.dot_dimension_numbers<[1], [0], [0], [1], [0, 0, 1, 1], [], []>} : vector<8x512xbf16>, vector<512x512xbf16>, vector<8x512xf32> -> vector<8x512xf32>
    %35 = vector.broadcast %32 : vector<1x512xf32> to vector<8x512xf32>
    %36 = arith.addf %34, %35 : vector<8x512xf32>
    %cst_27 = arith.constant 0.000000e+00 : f32
    %37 = vector.broadcast %cst_27 : f32 to vector<8x512xf32>
    %38 = arith.maximumf %36, %37 : vector<8x512xf32>
    %c0_28 = arith.constant 0 : index
    %c0_29 = arith.constant 0 : index
    %39 = vector.load %arg13[%c0_28, %c0_29] : memref<512x512xbf16, #tpu.memory_space<vmem>>, vector<512x512xbf16>
    %c0_30 = arith.constant 0 : index
    %c0_31 = arith.constant 0 : index
    %40 = vector.load %arg14[%c0_30, %c0_31] : memref<512x512xbf16, #tpu.memory_space<vmem>>, vector<512x512xbf16>
    %c0_32 = arith.constant 0 : index
    %c0_33 = arith.constant 0 : index
    %41 = vector.load %arg15[%c0_32, %c0_33] : memref<512x512xbf16, #tpu.memory_space<vmem>>, vector<512x512xbf16>
    %42 = arith.mulf %40, %41 : vector<512x512xbf16>
    %43 = arith.addf %39, %42 : vector<512x512xbf16>
    %c0_34 = arith.constant 0 : index
    %c0_35 = arith.constant 0 : index
    %44 = vector.load %arg16[%c0_34, %c0_35] : memref<1x512xbf16, #tpu.memory_space<vmem>>, vector<1x512xbf16>
    %45 = arith.extf %44 : vector<1x512xbf16> to vector<1x512xf32>
    %c0_36 = arith.constant 0 : index
    %c0_37 = arith.constant 0 : index
    %46 = vector.load %arg17[%c0_36, %c0_37] : memref<1x512xbf16, #tpu.memory_space<vmem>>, vector<1x512xbf16>
    %47 = arith.extf %46 : vector<1x512xbf16> to vector<1x512xf32>
    %c0_38 = arith.constant 0 : index
    %c0_39 = arith.constant 0 : index
    %48 = vector.load %arg18[%c0_38, %c0_39] : memref<1x512xbf16, #tpu.memory_space<vmem>>, vector<1x512xbf16>
    %49 = arith.extf %48 : vector<1x512xbf16> to vector<1x512xf32>
    %50 = arith.mulf %47, %49 : vector<1x512xf32>
    %51 = arith.addf %45, %50 : vector<1x512xf32>
    %52 = arith.truncf %38 : vector<8x512xf32> to vector<8x512xbf16>
    %cst_40 = arith.constant dense<0.000000e+00> : vector<8x512xf32>
    %53 = tpu.matmul %52, %43, %cst_40 {dimension_numbers = #tpu.dot_dimension_numbers<[1], [0], [0], [1], [0, 0, 1, 1], [], []>} : vector<8x512xbf16>, vector<512x512xbf16>, vector<8x512xf32> -> vector<8x512xf32>
    %54 = vector.broadcast %51 : vector<1x512xf32> to vector<8x512xf32>
    %55 = arith.addf %53, %54 : vector<8x512xf32>
    %cst_41 = arith.constant 0.000000e+00 : f32
    %56 = vector.broadcast %cst_41 : f32 to vector<8x512xf32>
    %57 = arith.maximumf %55, %56 : vector<8x512xf32>
    %c0_42 = arith.constant 0 : index
    %c0_43 = arith.constant 0 : index
    %58 = vector.load %arg19[%c0_42, %c0_43] : memref<512x128xbf16, #tpu.memory_space<vmem>>, vector<512x128xbf16>
    %c0_44 = arith.constant 0 : index
    %c0_45 = arith.constant 0 : index
    %59 = vector.load %arg20[%c0_44, %c0_45] : memref<512x128xbf16, #tpu.memory_space<vmem>>, vector<512x128xbf16>
    %c0_46 = arith.constant 0 : index
    %c0_47 = arith.constant 0 : index
    %60 = vector.load %arg21[%c0_46, %c0_47] : memref<512x128xbf16, #tpu.memory_space<vmem>>, vector<512x128xbf16>
    %61 = arith.mulf %59, %60 : vector<512x128xbf16>
    %62 = arith.addf %58, %61 : vector<512x128xbf16>
    %c0_48 = arith.constant 0 : index
    %c0_49 = arith.constant 0 : index
    %63 = vector.load %arg22[%c0_48, %c0_49] : memref<1x128xbf16, #tpu.memory_space<vmem>>, vector<1x128xbf16>
    %64 = arith.extf %63 : vector<1x128xbf16> to vector<1x128xf32>
    %c0_50 = arith.constant 0 : index
    %c0_51 = arith.constant 0 : index
    %65 = vector.load %arg23[%c0_50, %c0_51] : memref<1x128xbf16, #tpu.memory_space<vmem>>, vector<1x128xbf16>
    %66 = arith.extf %65 : vector<1x128xbf16> to vector<1x128xf32>
    %c0_52 = arith.constant 0 : index
    %c0_53 = arith.constant 0 : index
    %67 = vector.load %arg24[%c0_52, %c0_53] : memref<1x128xbf16, #tpu.memory_space<vmem>>, vector<1x128xbf16>
    %68 = arith.extf %67 : vector<1x128xbf16> to vector<1x128xf32>
    %69 = arith.mulf %66, %68 : vector<1x128xf32>
    %70 = arith.addf %64, %69 : vector<1x128xf32>
    %71 = arith.truncf %57 : vector<8x512xf32> to vector<8x512xbf16>
    %cst_54 = arith.constant dense<0.000000e+00> : vector<8x128xf32>
    %72 = tpu.matmul %71, %62, %cst_54 {dimension_numbers = #tpu.dot_dimension_numbers<[1], [0], [0], [1], [0, 0, 1, 1], [], []>} : vector<8x512xbf16>, vector<512x128xbf16>, vector<8x128xf32> -> vector<8x128xf32>
    %73 = vector.broadcast %70 : vector<1x128xf32> to vector<8x128xf32>
    %74 = arith.addf %72, %73 : vector<8x128xf32>
    %c0_55 = arith.constant 0 : index
    %c0_56 = arith.constant 0 : index
    %75 = vector.load %arg25[%c0_55, %c0_56] : memref<8x128xf32, #tpu.memory_space<vmem>>, vector<8x128xf32>
    tpu.vector_store %arg25[%c0_55, %c0_56], %74 {strides = array<i32>} : memref<8x128xf32, #tpu.memory_space<vmem>>, vector<8x128xf32>,
    return
  }
}

</mosaic_0001>

<bundles_post_ra>
// kernel: tpu_custom_call.1
= control target key start
LH: loop header
LB: loop body
LE: loop exit
PB: predicated region body
PF: predicated region fallthrough
CT: control target
= control target key end

     0   :  { %s9114_s0 = inlined_call_operand.hbm [shape: f32[8,896], index: 0, kind: input, shape index: {}]   ;;  %s9115_s1 = inlined_call_operand.hbm [shape: bf16[896,512], index: 1, kind: input, shape index: {}]   ;;  %s9116_s2 = inlined_call_operand.hbm [shape: bf16[896,512], index: 2, kind: input, shape index: {}]   ;;  %s9117_s3 = inlined_call_operand.hbm [shape: bf16[896,512], index: 3, kind: input, shape index: {}]   ;;  %s9118_s4 = inlined_call_operand.vmem [shape: bf16[1,512], index: 4, kind: input, shape index: {}]   ;;  %s9119_s5 = inlined_call_operand.vmem [shape: bf16[1,512], index: 5, kind: input, shape index: {}]   ;;  %s9120_s6 = inlined_call_operand.vmem [shape: bf16[1,512], index: 6, kind: input, shape index: {}]   ;;  %s9121_s7 = inlined_call_operand.hbm [shape: bf16[512,512], index: 7, kind: input, shape index: {}]   ;;  %s9122_s8 = inlined_call_operand.hbm [shape: bf16[512,512], index: 8, kind: input, shape index: {}]   ;;  %s9123_s9 = inlined_call_operand.hbm [shape: bf16[512,512], index: 9, kind: input, shape index: {}]   ;;  %s9124_s10 = inlined_call_operand.vmem [shape: bf16[1,512], index: 10, kind: input, shape index: {}]   ;;  %s9125_s11 = inlined_call_operand.vmem [shape: bf16[1,512], index: 11, kind: input, shape index: {}]   ;;  %s9126_s12 = inlined_call_operand.vmem [shape: bf16[1,512], index: 12, kind: input, shape index: {}]   ;;  %s9127_s13 = inlined_call_operand.hbm [shape: bf16[512,512], index: 13, kind: input, shape index: {}]   ;;  %s9128_s14 = inlined_call_operand.hbm [shape: bf16[512,512], index: 14, kind: input, shape index: {}]   ;;  %s9129_s15 = inlined_call_operand.hbm [shape: bf16[512,512], index: 15, kind: input, shape index: {}]   ;;  %s9130_s16 = inlined_call_operand.vmem [shape: bf16[1,512], index: 16, kind: input, shape index: {}]   ;;  %s9131_s17 = inlined_call_operand.vmem [shape: bf16[1,512], index: 17, kind: input, shape index: {}]   ;;  %s9132_s18 = inlined_call_operand.vmem [shape: bf16[1,512], index: 18, kind: input, shape index: {}]   ;;  %s9133_s19 = inlined_call_operand.hbm [shape: bf16[512,128], index: 19, kind: input, shape index: {}]   ;;  %s9134_s20 = inlined_call_operand.hbm [shape: bf16[512,128], index: 20, kind: input, shape index: {}]   ;;  %s9135_s21 = inlined_call_operand.hbm [shape: bf16[512,128], index: 21, kind: input, shape index: {}]   ;;  %s9136_s22 = inlined_call_operand.vmem [shape: bf16[1,128], index: 22, kind: input, shape index: {}]   ;;  %s9137_s23 = inlined_call_operand.vmem [shape: bf16[1,128], index: 23, kind: input, shape index: {}]   ;;  %s9138_s24 = inlined_call_operand.vmem [shape: bf16[1,128], index: 24, kind: input, shape index: {}]   ;;  %s9139_s25 = inlined_call_operand.hbm [shape: f32[8,128], index: 25, kind: output, shape index: {}]  }
   0x1   :  { %9151 = sst [smem:[#allocation35_spill]] %s9114_s0 }
   0x2   :  { %9152 = sst [smem:[#allocation36_spill]] %s9115_s1 }
   0x3   :  { %9153 = sst [smem:[#allocation37_spill]] %s9116_s2 }
   0x4   :  { %9154 = sst [smem:[#allocation38_spill]] %s9117_s3 }
   0x5   :  { %9155 = sst [smem:[#allocation39_spill]] %s9118_s4 }
   0x6   :  { %9156 = sst [smem:[#allocation40_spill]] %s9119_s5 }
   0x7   :  { %9157 = sst [smem:[#allocation41_spill]] %s9120_s6 }
   0x8   :  { %9158 = sst [smem:[#allocation42_spill]] %s9121_s7 }
   0x9   :  { %9159 = sst [smem:[#allocation43_spill]] %s9122_s8 }
   0xa   :  { %9160 = sst [smem:[#allocation44_spill]] %s9123_s9 }
   0xb   :  { %9161 = sst [smem:[#allocation45_spill]] %s9136_s22 }
   0xc   :  { %9162 = sst [smem:[#allocation46_spill]] %s9138_s24 }
   0xd   :  { %9163 = sst [smem:[#allocation47_spill]] %s9139_s25 }
   0xe   :  { %30 = vsyncpa [#allocation3], 0 }
   0xf   :  { %31 = vsyncpa [#allocation6], 0 }
  0x10   :  { %32 = vsyncpa [#allocation9], 0 }
  0x11   :  { %33 = vsyncpa [#allocation12], 0 }
  0x12   :  { %34 = vsyncpa [#allocation15], 0 }
  0x13   :  { %35 = vsyncpa [#allocation18], 0 }
  0x14   :  { %36 = vsyncpa [#allocation21], 0 }
  0x15   :  { %37 = vsyncpa [#allocation4], 0  ;;  %s7462_s29 = smov [#allocation5]   ;;  %s9164_s7 = sld [smem:[#allocation36_spill]] }
  0x16   :  { %s53_s2 = sshll.u32 %s7462_s29, 4  ;;  %s54_s2 = int_to_ptr.vmem [resolvable:$true] %s53_s2 }
  0x1b   :  { %s7138_s3 = scalar_lea.hbm %s9164_s7, 28672 }
  0x1c   :  { %p7139_p0 = scmp.ne.s32.totalorder %s9164_s7, %s7138_s3  ;;  %p7142_p1 = scmp.lt.u32.totalorder %s7138_s3, %s9164_s7 }
  0x1e   :  { %p7144_p2 = pnand %p7142_p1, %p7139_p0 }
  0x20   :  { %7147 = shalt.err (!%p7144_p2)
}
  0x21   :  { %s7148_s4 = scalar_lea.vmem %s54_s2, 28672  ;;  %p7153_p4 = scmp.lt.s32.totalorder %s54_s2, %s54_s2 }
  0x22   :  { %p7149_p3 = scmp.ne.s32.totalorder %s54_s2, %s7148_s4  ;;  %p7154_p5 = scmp.lt.s32.totalorder %s7148_s4, %s7148_s4 }
  0x24   :  { %p7155_p6 = por %p7154_p5, %p7153_p4 }
  0x26   :  { %p7156_p7 = pnand %p7155_p6, %p7149_p3 }
  0x28   :  { %7159 = shalt.err (!%p7156_p7)
}
  0x29   :  { %s7463_s28 = smov 256   ;;  %s7464_s9 = smov 16  }
  0x2a   :  { %59 = dma.hbm_to_vmem [thread:$0]  %s9164_s7, 28672, %s54_s2, [#allocation6], %s7463_s28, %s7463_s28, %s7464_s9  }
  0x2b   :  { %s7465_s29 = smov [#allocation8]   ;;  %s7466_s30 = smov [#allocation11]  }
  0x2c   :  { %s77_s6 = sshll.u32 %s7465_s29, 4  ;;  %s107_s3 = sshll.u32 %s7466_s30, 4  ;;  %s78_s6 = int_to_ptr.vmem [resolvable:$true] %s77_s6  ;;  %s108_s3 = int_to_ptr.vmem [resolvable:$true] %s107_s3 }
  0x2d   :  { %s9165_s8 = sld [smem:[#allocation38_spill]] }
  0x33   :  { %s7160_s27 = scalar_lea.hbm %s9165_s8, 28672 }
  0x34   :  { %p7161_p8 = scmp.ne.s32.totalorder %s9165_s8, %s7160_s27  ;;  %p7164_p9 = scmp.lt.u32.totalorder %s7160_s27, %s9165_s8 }
  0x36   :  { %p7166_p10 = pnand %p7164_p9, %p7161_p8 }
  0x38   :  { %7169 = shalt.err (!%p7166_p10)
}
  0x39   :  { %s7170_s2 = scalar_lea.vmem %s78_s6, 28672  ;;  %p7175_p12 = scmp.lt.s32.totalorder %s78_s6, %s78_s6 }
  0x3a   :  { %p7171_p11 = scmp.ne.s32.totalorder %s78_s6, %s7170_s2  ;;  %p7176_p13 = scmp.lt.s32.totalorder %s7170_s2, %s7170_s2 }
  0x3c   :  { %p7177_p0 = por %p7176_p13, %p7175_p12 }
  0x3e   :  { %p7178_p1 = pnand %p7177_p0, %p7171_p11 }
  0x40   :  { %7181 = shalt.err (!%p7178_p1)
}
  0x41   :  { %83 = dma.hbm_to_vmem [thread:$0]  %s9165_s8, 28672, %s78_s6, [#allocation9], %s7463_s28, %s7463_s28, %s7464_s9  }
  0x42   :  { %s9166_s24 = sld [smem:[#allocation43_spill]] }
  0x48   :  { %s7182_s0 = scalar_lea.hbm %s9166_s24, 16384 }
  0x49   :  { %p7183_p2 = scmp.ne.s32.totalorder %s9166_s24, %s7182_s0  ;;  %p7186_p3 = scmp.lt.u32.totalorder %s7182_s0, %s9166_s24 }
  0x4b   :  { %p7188_p4 = pnand %p7186_p3, %p7183_p2 }
  0x4d   :  { %7191 = shalt.err (!%p7188_p4)
}
  0x4e   :  { %s7192_s27 = scalar_lea.vmem %s108_s3, 16384  ;;  %p7197_p6 = scmp.lt.s32.totalorder %s108_s3, %s108_s3 }
  0x4f   :  { %p7193_p5 = scmp.ne.s32.totalorder %s108_s3, %s7192_s27  ;;  %p7198_p7 = scmp.lt.s32.totalorder %s7192_s27, %s7192_s27 }
  0x51   :  { %p7199_p8 = por %p7198_p7, %p7197_p6 }
  0x53   :  { %p7200_p9 = pnand %p7199_p8, %p7193_p5 }
  0x55   :  { %7203 = shalt.err (!%p7200_p9)
}
  0x56   :  { %113 = dma.hbm_to_vmem [thread:$0]  %s9166_s24, 16384, %s108_s3, [#allocation12], %s7463_s28, %s7463_s28, %s7464_s9  }
  0x57   :  { %s7467_s4 = smov [#allocation14]   ;;  %s7468_s7 = smov [#allocation17]  }
  0x58   :  { %s137_s2 = sshll.u32 %s7467_s4, 4  ;;  %s161_s5 = sshll.u32 %s7468_s7, 4  ;;  %s138_s2 = int_to_ptr.vmem [resolvable:$true] %s137_s2  ;;  %s162_s5 = int_to_ptr.vmem [resolvable:$true] %s161_s5 }
  0x59   :  { %s7204_s0 = scalar_lea.hbm %s9127_s13, 16384 }
  0x5a   :  { %p7205_p10 = scmp.ne.s32.totalorder %s9127_s13, %s7204_s0  ;;  %p7208_p11 = scmp.lt.u32.totalorder %s7204_s0, %s9127_s13 }
  0x5c   :  { %p7210_p12 = pnand %p7208_p11, %p7205_p10 }
  0x5e   :  { %7213 = shalt.err (!%p7210_p12)
}
  0x5f   :  { %s7214_s3 = scalar_lea.vmem %s138_s2, 16384  ;;  %p7219_p0 = scmp.lt.s32.totalorder %s138_s2, %s138_s2 }
  0x60   :  { %p7215_p13 = scmp.ne.s32.totalorder %s138_s2, %s7214_s3  ;;  %p7220_p1 = scmp.lt.s32.totalorder %s7214_s3, %s7214_s3 }
  0x62   :  { %p7221_p2 = por %p7220_p1, %p7219_p0 }
  0x64   :  { %p7222_p3 = pnand %p7221_p2, %p7215_p13 }
  0x66   :  { %7225 = shalt.err (!%p7222_p3)
}
  0x67   :  { %143 = dma.hbm_to_vmem [thread:$0]  %s9127_s13, 16384, %s138_s2, [#allocation15], %s7463_s28, %s7463_s28, %s7464_s9  }
  0x68   :  { %s7226_s4 = scalar_lea.hbm %s9129_s15, 16384 }
  0x69   :  { %p7227_p4 = scmp.ne.s32.totalorder %s9129_s15, %s7226_s4  ;;  %p7230_p5 = scmp.lt.u32.totalorder %s7226_s4, %s9129_s15 }
  0x6b   :  { %p7232_p6 = pnand %p7230_p5, %p7227_p4 }
  0x6d   :  { %7235 = shalt.err (!%p7232_p6)
}
  0x6e   :  { %s7236_s29 = scalar_lea.vmem %s162_s5, 16384  ;;  %p7241_p8 = scmp.lt.s32.totalorder %s162_s5, %s162_s5 }
  0x6f   :  { %p7237_p7 = scmp.ne.s32.totalorder %s162_s5, %s7236_s29  ;;  %p7242_p9 = scmp.lt.s32.totalorder %s7236_s29, %s7236_s29 }
  0x71   :  { %p7243_p10 = por %p7242_p9, %p7241_p8 }
  0x73   :  { %p7244_p11 = pnand %p7243_p10, %p7237_p7 }
  0x75   :  { %7247 = shalt.err (!%p7244_p11)
}
  0x76   :  { %167 = dma.hbm_to_vmem [thread:$0]  %s9129_s15, 16384, %s162_s5, [#allocation18], %s7463_s28, %s7463_s28, %s7464_s9  }
  0x77   :  { %s7469_s30 = smov [#allocation20]   ;;  %s7470_s1 = smov [#allocation2]  }
  0x78   :  { %s191_s26 = sshll.u32 %s7469_s30, 4  ;;  %s44_s3 = sshll.u32 %s7470_s1, 4  ;;  %s192_s26 = int_to_ptr.vmem [resolvable:$true] %s191_s26  ;;  %s45_s3 = int_to_ptr.vmem [resolvable:$true] %s44_s3 }
  0x79   :  { %s7248_s6 = scalar_lea.hbm %s9134_s20, 4096 }
  0x7a   :  { %p7249_p12 = scmp.ne.s32.totalorder %s9134_s20, %s7248_s6  ;;  %p7252_p13 = scmp.lt.u32.totalorder %s7248_s6, %s9134_s20 }
  0x7c   :  { %p7254_p0 = pnand %p7252_p13, %p7249_p12 }
  0x7e   :  { %7257 = shalt.err (!%p7254_p0)
}
  0x7f   :  { %s7258_s15 = scalar_lea.vmem %s192_s26, 4096  ;;  %p7263_p2 = scmp.lt.s32.totalorder %s192_s26, %s192_s26 }
  0x80   :  { %p7259_p1 = scmp.ne.s32.totalorder %s192_s26, %s7258_s15  ;;  %p7264_p3 = scmp.lt.s32.totalorder %s7258_s15, %s7258_s15 }
  0x82   :  { %p7265_p4 = por %p7264_p3, %p7263_p2 }
  0x84   :  { %p7266_p5 = pnand %p7265_p4, %p7259_p1 }
  0x86   :  { %7269 = shalt.err (!%p7266_p5)
}
  0x87   :  { %s7471_s5 = smov 64   ;;  %s7472_s22 = smov 4  }
  0x88   :  { %197 = dma.hbm_to_vmem [thread:$0]  %s9134_s20, 4096, %s192_s26, [#allocation21], %s7471_s5, %s7471_s5, %s7472_s22  }
  0x89   :  { %s9167_s30 = sld [smem:[#allocation35_spill]] }
  0x8f   :  { %s7270_s1 = scalar_lea.hbm %s9167_s30, 896 }
  0x90   :  { %p7271_p6 = scmp.ne.s32.totalorder %s9167_s30, %s7270_s1  ;;  %p7274_p7 = scmp.lt.u32.totalorder %s7270_s1, %s9167_s30 }
  0x92   :  { %p7276_p8 = pnand %p7274_p7, %p7271_p6 }
  0x94   :  { %7279 = shalt.err (!%p7276_p8)
}
  0x95   :  { %s7280_s4 = scalar_lea.vmem %s45_s3, 896  ;;  %p7285_p10 = scmp.lt.s32.totalorder %s45_s3, %s45_s3 }
  0x96   :  { %p7281_p9 = scmp.ne.s32.totalorder %s45_s3, %s7280_s4  ;;  %p7286_p11 = scmp.lt.s32.totalorder %s7280_s4, %s7280_s4 }
  0x98   :  { %p7287_p12 = por %p7286_p11, %p7285_p10 }
  0x9a   :  { %p7288_p13 = pnand %p7287_p12, %p7281_p9 }
  0x9c   :  { %7291 = shalt.err (!%p7288_p13)
}
  0x9d   :  { %47 = dma.hbm_to_vmem [thread:$0]  %s9167_s30, 896, %s45_s3, [#allocation3]  }
  0x9e   :  { %s7473_s7 = smov [#allocation7]   ;;  %s7474_s15 = smov [#allocation10]  }
  0x9f   :  { %s65_s25 = sshll.u32 %s7473_s7, 4  ;;  %s95_s0 = sshll.u32 %s7474_s15, 4  ;;  %s66_s25 = int_to_ptr.vmem [resolvable:$true] %s65_s25  ;;  %s96_s0 = int_to_ptr.vmem [resolvable:$true] %s95_s0 }
  0xa0   :  { %s9168_s2 = sld [smem:[#allocation37_spill]] }
  0xa6   :  { %s7292_s1 = scalar_lea.hbm %s9168_s2, 28672 }
  0xa7   :  { %p7293_p0 = scmp.ne.s32.totalorder %s9168_s2, %s7292_s1  ;;  %p7296_p1 = scmp.lt.u32.totalorder %s7292_s1, %s9168_s2 }
  0xa9   :  { %p7298_p2 = pnand %p7296_p1, %p7293_p0 }
  0xab   :  { %7301 = shalt.err (!%p7298_p2)
}
  0xac   :  { %s7302_s3 = scalar_lea.vmem %s66_s25, 28672  ;;  %p7307_p4 = scmp.lt.s32.totalorder %s66_s25, %s66_s25 }
  0xad   :  { %p7303_p3 = scmp.ne.s32.totalorder %s66_s25, %s7302_s3  ;;  %p7308_p5 = scmp.lt.s32.totalorder %s7302_s3, %s7302_s3 }
  0xaf   :  { %p7309_p6 = por %p7308_p5, %p7307_p4 }
  0xb1   :  { %p7310_p7 = pnand %p7309_p6, %p7303_p3 }
  0xb3   :  { %7313 = shalt.err (!%p7310_p7)
}
  0xb4   :  { %71 = dma.hbm_to_vmem [thread:$0]  %s9168_s2, 28672, %s66_s25, [#allocation6], %s7463_s28, %s7463_s28, %s7464_s9  }
  0xb5   :  { %s9169_s7 = sld [smem:[#allocation42_spill]] }
  0xbb   :  { %s7314_s15 = scalar_lea.hbm %s9169_s7, 16384 }
  0xbc   :  { %p7315_p8 = scmp.ne.s32.totalorder %s9169_s7, %s7314_s15  ;;  %p7318_p9 = scmp.lt.u32.totalorder %s7314_s15, %s9169_s7 }
  0xbe   :  { %p7320_p10 = pnand %p7318_p9, %p7315_p8 }
  0xc0   :  { %7323 = shalt.err (!%p7320_p10)
}
  0xc1   :  { %s7324_s27 = scalar_lea.vmem %s96_s0, 16384  ;;  %p7329_p12 = scmp.lt.s32.totalorder %s96_s0, %s96_s0 }
  0xc2   :  { %p7325_p11 = scmp.ne.s32.totalorder %s96_s0, %s7324_s27  ;;  %p7330_p13 = scmp.lt.s32.totalorder %s7324_s27, %s7324_s27 }
  0xc4   :  { %p7331_p0 = por %p7330_p13, %p7329_p12 }
  0xc6   :  { %p7332_p1 = pnand %p7331_p0, %p7325_p11 }
  0xc8   :  { %7335 = shalt.err (!%p7332_p1)
}
  0xc9   :  { %101 = dma.hbm_to_vmem [thread:$0]  %s9169_s7, 16384, %s96_s0, [#allocation9], %s7463_s28, %s7463_s28, %s7464_s9  }
  0xca   :  { %s7475_s6 = smov [#allocation13]   ;;  %s7476_s3 = smov [#allocation16]  }
  0xcb   :  { %s119_s8 = sshll.u32 %s7475_s6, 4  ;;  %s149_s30 = sshll.u32 %s7476_s3, 4  ;;  %s120_s8 = int_to_ptr.vmem [resolvable:$true] %s119_s8  ;;  %s150_s30 = int_to_ptr.vmem [resolvable:$true] %s149_s30 }
  0xcc   :  { %s9170_s26 = sld [smem:[#allocation44_spill]] }
  0xd2   :  { %s7336_s15 = scalar_lea.hbm %s9170_s26, 16384 }
  0xd3   :  { %p7337_p2 = scmp.ne.s32.totalorder %s9170_s26, %s7336_s15  ;;  %p7340_p3 = scmp.lt.u32.totalorder %s7336_s15, %s9170_s26 }
  0xd5   :  { %p7342_p4 = pnand %p7340_p3, %p7337_p2 }
  0xd7   :  { %7345 = shalt.err (!%p7342_p4)
}
  0xd8   :  { %s7346_s0 = scalar_lea.vmem %s120_s8, 16384  ;;  %p7351_p6 = scmp.lt.s32.totalorder %s120_s8, %s120_s8 }
  0xd9   :  { %p7347_p5 = scmp.ne.s32.totalorder %s120_s8, %s7346_s0  ;;  %p7352_p7 = scmp.lt.s32.totalorder %s7346_s0, %s7346_s0 }
  0xdb   :  { %p7353_p8 = por %p7352_p7, %p7351_p6 }
  0xdd   :  { %p7354_p9 = pnand %p7353_p8, %p7347_p5 }
  0xdf   :  { %7357 = shalt.err (!%p7354_p9)
}
  0xe0   :  { %125 = dma.hbm_to_vmem [thread:$0]  %s9170_s26, 16384, %s120_s8, [#allocation12], %s7463_s28, %s7463_s28, %s7464_s9  }
  0xe1   :  { %s7358_s6 = scalar_lea.hbm %s9128_s14, 16384 }
  0xe2   :  { %p7359_p10 = scmp.ne.s32.totalorder %s9128_s14, %s7358_s6  ;;  %p7362_p11 = scmp.lt.u32.totalorder %s7358_s6, %s9128_s14 }
  0xe4   :  { %p7364_p12 = pnand %p7362_p11, %p7359_p10 }
  0xe6   :  { %7367 = shalt.err (!%p7364_p12)
}
  0xe7   :  { %s7368_s29 = scalar_lea.vmem %s150_s30, 16384  ;;  %p7373_p0 = scmp.lt.s32.totalorder %s150_s30, %s150_s30 }
  0xe8   :  { %p7369_p13 = scmp.ne.s32.totalorder %s150_s30, %s7368_s29  ;;  %p7374_p1 = scmp.lt.s32.totalorder %s7368_s29, %s7368_s29 }
  0xea   :  { %p7375_p2 = por %p7374_p1, %p7373_p0 }
  0xec   :  { %p7376_p3 = pnand %p7375_p2, %p7369_p13 }
  0xee   :  { %7379 = shalt.err (!%p7376_p3)
}
  0xef   :  { %155 = dma.hbm_to_vmem [thread:$0]  %s9128_s14, 16384, %s150_s30, [#allocation15], %s7463_s28, %s7463_s28, %s7464_s9  }
  0xf0   :  { %s7477_s13 = smov [#allocation19]   ;;  %s7478_s24 = smov [#allocation22]  }
  0xf1   :  { %s179_s1 = sshll.u32 %s7477_s13, 4  ;;  %s203_s0 = sshll.u32 %s7478_s24, 4  ;;  %s180_s1 = int_to_ptr.vmem [resolvable:$true] %s179_s1  ;;  %s204_s0 = int_to_ptr.vmem [resolvable:$true] %s203_s0 }
  0xf2   :  { %s7380_s25 = scalar_lea.hbm %s9133_s19, 4096 }
  0xf3   :  { %p7381_p4 = scmp.ne.s32.totalorder %s9133_s19, %s7380_s25  ;;  %p7384_p5 = scmp.lt.u32.totalorder %s7380_s25, %s9133_s19 }
  0xf5   :  { %p7386_p6 = pnand %p7384_p5, %p7381_p4 }
  0xf7   :  { %7389 = shalt.err (!%p7386_p6)
}
  0xf8   :  { %s7390_s14 = scalar_lea.vmem %s180_s1, 4096  ;;  %p7395_p8 = scmp.lt.s32.totalorder %s180_s1, %s180_s1 }
  0xf9   :  { %p7391_p7 = scmp.ne.s32.totalorder %s180_s1, %s7390_s14  ;;  %p7396_p9 = scmp.lt.s32.totalorder %s7390_s14, %s7390_s14 }
  0xfb   :  { %p7397_p10 = por %p7396_p9, %p7395_p8 }
  0xfd   :  { %p7398_p11 = pnand %p7397_p10, %p7391_p7 }
  0xff   :  { %7401 = shalt.err (!%p7398_p11)
}
 0x100   :  { %185 = dma.hbm_to_vmem [thread:$0]  %s9133_s19, 4096, %s180_s1, [#allocation18], %s7471_s5, %s7471_s5, %s7472_s22  }
 0x101   :  { %s7402_s15 = scalar_lea.hbm %s9135_s21, 4096 }
 0x102   :  { %p7403_p12 = scmp.ne.s32.totalorder %s9135_s21, %s7402_s15  ;;  %p7406_p13 = scmp.lt.u32.totalorder %s7402_s15, %s9135_s21 }
 0x104   :  { %p7408_p0 = pnand %p7406_p13, %p7403_p12 }
 0x106   :  { %7411 = shalt.err (!%p7408_p0)
}
 0x107   :  { %s7412_s24 = scalar_lea.vmem %s204_s0, 4096  ;;  %p7417_p2 = scmp.lt.s32.totalorder %s204_s0, %s204_s0 }
 0x108   :  { %p7413_p1 = scmp.ne.s32.totalorder %s204_s0, %s7412_s24  ;;  %p7418_p3 = scmp.lt.s32.totalorder %s7412_s24, %s7412_s24 }
 0x10a   :  { %p7419_p4 = por %p7418_p3, %p7417_p2 }
 0x10c   :  { %p7420_p5 = pnand %p7419_p4, %p7413_p1 }
 0x10e   :  { %7423 = shalt.err (!%p7420_p5)
}
 0x10f   :  { %209 = dma.hbm_to_vmem [thread:$0]  %s9135_s21, 4096, %s204_s0, [#allocation21], %s7471_s5, %s7471_s5, %s7472_s22  }
 0x110   :  { %7446 = dma.done.wait [#allocation3], 896  }
 0x111   :  { %7447 = vsyncadd [#allocation3], 4294966400 }
 0x112   :  { %7448 = dma.done.wait [#allocation6], 57344  }
 0x113   :  { %7449 = vsyncadd [#allocation6], 4294909952 }
 0x114   :  { %7450 = dma.done.wait [#allocation9], 45056  }
 0x115   :  { %7451 = vsyncadd [#allocation9], 4294922240 }
 0x116   :  { %7452 = dma.done.wait [#allocation12], 32768  }
 0x117   :  { %7453 = vsyncadd [#allocation12], 4294934528 }
 0x118   :  { %7454 = dma.done.wait [#allocation15], 32768  }
 0x119   :  { %7455 = vsyncadd [#allocation15], 4294934528 }
 0x11a   :  { %7456 = dma.done.wait [#allocation18], 20480  }
 0x11b   :  { %7457 = vsyncadd [#allocation18], 4294946816 }
 0x11c   :  { %7458 = dma.done.wait [#allocation21], 8192  }
 0x11d   :  { %7459 = vsyncadd [#allocation21], 4294959104  ;;  %v263_v0 = vld [vmem:[#allocation5] sm:$0xff]  ;;  %v265_v1 = vld [vmem:[#allocation5 + $0x10] sm:$0xff]  ;;  %s9171_s22 = sld [smem:[#allocation40_spill]]  ;;  %s9172_s27 = sld [smem:[#allocation41_spill]] }
 0x11e   :  { %v487_v2 = vld [vmem:[#allocation7] sm:$0xff]  ;;  %v489_v3 = vld [vmem:[#allocation7 + $0x10] sm:$0xff]  ;;  %v264_v8 = vld [vmem:[#allocation5 + $0x8] sm:$0xff]  ;;  %s9173_s6 = sld [smem:[#allocation39_spill]]  ;;  %s9214_s26 = sld [smem:[#allocation46_spill]] }
 0x11f   :  { %v711_v4 = vld [vmem:[#allocation8] sm:$0xff]  ;;  %v713_v5 = vld [vmem:[#allocation8 + $0x10] sm:$0xff]  ;;  %v266_v9 = vld [vmem:[#allocation5 + $0x18] sm:$0xff]  ;;  %s9215_s19 = sld [smem:[#allocation45_spill]] }
 0x120   :  { %v935_v6 = vmul.bf16 %v711_v4, %v487_v2  ;;  %v937_v7 = vmul.bf16 %v713_v5, %v489_v3  ;;  %v488_v10 = vld [vmem:[#allocation7 + $0x8] sm:$0xff]  ;;  %v490_v11 = vld [vmem:[#allocation7 + $0x18] sm:$0xff]  ;;  %v267_v18 = vld [vmem:[#allocation5 + $0x20] sm:$0xff] }
 0x121   :  { %v712_v12 = vld [vmem:[#allocation8 + $0x8] sm:$0xff]  ;;  %v714_v13 = vld [vmem:[#allocation8 + $0x18] sm:$0xff]  ;;  %v269_v19 = vld [vmem:[#allocation5 + $0x30] sm:$0xff] }
 0x122   :  { %v1159_v14 = vadd.bf16 %v935_v6, %v263_v0  ;;  %v1161_v15 = vadd.bf16 %v937_v7, %v265_v1  ;;  %v936_v16 = vmul.bf16 %v712_v12, %v488_v10  ;;  %v938_v17 = vmul.bf16 %v714_v13, %v490_v11  ;;  %v491_v20 = vld [vmem:[#allocation7 + $0x20] sm:$0xff]  ;;  %v493_v21 = vld [vmem:[#allocation7 + $0x30] sm:$0xff]  ;;  %v268_v28 = vld [vmem:[#allocation5 + $0x28] sm:$0xff] }
 0x123   :  { %v715_v22 = vld [vmem:[#allocation8 + $0x20] sm:$0xff]  ;;  %v717_v23 = vld [vmem:[#allocation8 + $0x30] sm:$0xff]  ;;  %v270_v29 = vld [vmem:[#allocation5 + $0x38] sm:$0xff] }
 0x124   :  { %v6512_v24 = vcombine.high %v1159_v14, %v1161_v15  ;;  %v1160_v25 = vadd.bf16 %v936_v16, %v264_v8  ;;  %v1162_v26 = vadd.bf16 %v938_v17, %v266_v9  ;;  %v6511_v27 = vcombine.low %v1159_v14, %v1161_v15  ;;  %v492_v30 = vld [vmem:[#allocation7 + $0x28] sm:$0xff]  ;;  %v494_v33 = vld [vmem:[#allocation7 + $0x38] sm:$0xff]  ;;  %v271_v40 = vld [vmem:[#allocation5 + $0x40] sm:$0xff] }
 0x125   :  { %v939_v31 = vmul.bf16 %v715_v22, %v491_v20  ;;  %v941_v32 = vmul.bf16 %v717_v23, %v493_v21  ;;  %v716_v34 = vld [vmem:[#allocation8 + $0x28] sm:$0xff]  ;;  %v718_v35 = vld [vmem:[#allocation8 + $0x38] sm:$0xff]  ;;  %v273_v41 = vld [vmem:[#allocation5 + $0x50] sm:$0xff] }
 0x126   :  { %2555 = vmatprep.subr.bf16.mxu0 %v6512_v24  ;;  %v6514_v36 = vcombine.high %v1160_v25, %v1162_v26  ;;  %v6513_v37 = vcombine.low %v1160_v25, %v1162_v26  ;;  %v940_v38 = vmul.bf16 %v716_v34, %v492_v30  ;;  %v942_v39 = vmul.bf16 %v718_v35, %v494_v33  ;;  %v495_v42 = vld [vmem:[#allocation7 + $0x40] sm:$0xff]  ;;  %v497_v45 = vld [vmem:[#allocation7 + $0x50] sm:$0xff]  ;;  %v272_v52 = vld [vmem:[#allocation5 + $0x48] sm:$0xff] }
 0x127   :  { %2556 = vmatpush1.bf16.msra.mxu0 %v6511_v27  ;;  %v1163_v43 = vadd.bf16 %v939_v31, %v267_v18  ;;  %v1165_v44 = vadd.bf16 %v941_v32, %v269_v19  ;;  %v719_v46 = vld [vmem:[#allocation8 + $0x40] sm:$0xff]  ;;  %v721_v47 = vld [vmem:[#allocation8 + $0x50] sm:$0xff]  ;;  %v274_v53 = vld [vmem:[#allocation5 + $0x58] sm:$0xff] }
 0x128   :  { %2719 = vmatprep.subr.bf16.mxu1 %v6514_v36  ;;  %v1164_v48 = vadd.bf16 %v940_v38, %v268_v28  ;;  %v1166_v49 = vadd.bf16 %v942_v39, %v270_v29  ;;  %v943_v50 = vmul.bf16 %v719_v46, %v495_v42  ;;  %v945_v51 = vmul.bf16 %v721_v47, %v497_v45  ;;  %v496_v54 = vld [vmem:[#allocation7 + $0x48] sm:$0xff]  ;;  %v498_v57 = vld [vmem:[#allocation7 + $0x58] sm:$0xff]  ;;  %v275_v0 = vld [vmem:[#allocation5 + $0x60] sm:$0xff] }
 0x129   :  { %2720 = vmatpush1.bf16.msra.mxu1 %v6513_v37  ;;  %v6516_v55 = vcombine.high %v1163_v43, %v1165_v44  ;;  %v6515_v56 = vcombine.low %v1163_v43, %v1165_v44  ;;  %v720_v58 = vld [vmem:[#allocation8 + $0x48] sm:$0xff]  ;;  %v722_v59 = vld [vmem:[#allocation8 + $0x58] sm:$0xff]  ;;  %v277_v1 = vld [vmem:[#allocation5 + $0x70] sm:$0xff] }
 0x12a   :  { %v6518_v60 = vcombine.high %v1164_v48, %v1166_v49  ;;  %v6517_v61 = vcombine.low %v1164_v48, %v1166_v49  ;;  %v1167_v62 = vadd.bf16 %v943_v50, %v271_v40  ;;  %v1169_v63 = vadd.bf16 %v945_v51, %v273_v41  ;;  %v499_v2 = vld [vmem:[#allocation7 + $0x60] sm:$0xff]  ;;  %v501_v5 = vld [vmem:[#allocation7 + $0x70] sm:$0xff]  ;;  %v276_v11 = vld [vmem:[#allocation5 + $0x68] sm:$0xff] }
 0x12b   :  { %2557 = vmatprep.subr.bf16.mxu0 %v6516_v55  ;;  %v944_v3 = vmul.bf16 %v720_v58, %v496_v54  ;;  %v946_v4 = vmul.bf16 %v722_v59, %v498_v57  ;;  %v723_v6 = vld [vmem:[#allocation8 + $0x60] sm:$0xff]  ;;  %v725_v7 = vld [vmem:[#allocation8 + $0x70] sm:$0xff]  ;;  %v278_v12 = vld [vmem:[#allocation5 + $0x78] sm:$0xff] }
 0x12c   :  { %2721 = vmatprep.subr.bf16.mxu1 %v6518_v60  ;;  %2558 = vmatpush1.bf16.msra.mxu0 %v6515_v56  ;;  %v6520_v8 = vcombine.high %v1167_v62, %v1169_v63  ;;  %v6519_v9 = vcombine.low %v1167_v62, %v1169_v63  ;;  %v947_v10 = vmul.bf16 %v723_v6, %v499_v2  ;;  %v500_v13 = vld [vmem:[#allocation7 + $0x68] sm:$0xff]  ;;  %v502_v17 = vld [vmem:[#allocation7 + $0x78] sm:$0xff]  ;;  %v279_v23 = vld [vmem:[#allocation5 + $0x80] sm:$0xff] }
 0x12d   :  { %2722 = vmatpush1.bf16.msra.mxu1 %v6517_v61  ;;  %v1168_v14 = vadd.bf16 %v944_v3, %v272_v52  ;;  %v1170_v15 = vadd.bf16 %v946_v4, %v274_v53  ;;  %v949_v16 = vmul.bf16 %v725_v7, %v501_v5  ;;  %v724_v18 = vld [vmem:[#allocation8 + $0x68] sm:$0xff]  ;;  %v726_v19 = vld [vmem:[#allocation8 + $0x78] sm:$0xff]  ;;  %v281_v24 = vld [vmem:[#allocation5 + $0x90] sm:$0xff] }
 0x12e   :  { %2559 = vmatprep.subr.bf16.mxu0 %v6520_v8  ;;  %v1171_v20 = vadd.bf16 %v947_v10, %v275_v0  ;;  %v948_v21 = vmul.bf16 %v724_v18, %v500_v13  ;;  %v950_v22 = vmul.bf16 %v726_v19, %v502_v17  ;;  %v503_v25 = vld [vmem:[#allocation7 + $0x80] sm:$0xff]  ;;  %v505_v29 = vld [vmem:[#allocation7 + $0x90] sm:$0xff]  ;;  %v280_v36 = vld [vmem:[#allocation5 + $0x88] sm:$0xff] }
 0x12f   :  { %v6522_v26 = vcombine.high %v1168_v14, %v1170_v15  ;;  %v6521_v27 = vcombine.low %v1168_v14, %v1170_v15  ;;  %v1173_v28 = vadd.bf16 %v949_v16, %v277_v1  ;;  %v727_v30 = vld [vmem:[#allocation8 + $0x80] sm:$0xff]  ;;  %v729_v31 = vld [vmem:[#allocation8 + $0x90] sm:$0xff]  ;;  %v282_v37 = vld [vmem:[#allocation5 + $0x98] sm:$0xff] }
 0x130   :  { %2560 = vmatpush1.bf16.msra.mxu0 %v6519_v9  ;;  %v1172_v32 = vadd.bf16 %v948_v21, %v276_v11  ;;  %v1174_v33 = vadd.bf16 %v950_v22, %v278_v12  ;;  %v951_v34 = vmul.bf16 %v727_v30, %v503_v25  ;;  %v953_v35 = vmul.bf16 %v729_v31, %v505_v29  ;;  %v504_v38 = vld [vmem:[#allocation7 + $0x88] sm:$0xff]  ;;  %v506_v41 = vld [vmem:[#allocation7 + $0x98] sm:$0xff]  ;;  %v283_v48 = vld [vmem:[#allocation5 + $0xa0] sm:$0xff] }
 0x131   :  { %2723 = vmatprep.subr.bf16.mxu1 %v6522_v26  ;;  %v6524_v39 = vcombine.high %v1171_v20, %v1173_v28  ;;  %v6523_v40 = vcombine.low %v1171_v20, %v1173_v28  ;;  %v728_v42 = vld [vmem:[#allocation8 + $0x88] sm:$0xff]  ;;  %v730_v43 = vld [vmem:[#allocation8 + $0x98] sm:$0xff]  ;;  %v285_v49 = vld [vmem:[#allocation5 + $0xb0] sm:$0xff] }
 0x132   :  { %2724 = vmatpush1.bf16.msra.mxu1 %v6521_v27  ;;  %v6526_v44 = vcombine.high %v1172_v32, %v1174_v33  ;;  %v6525_v45 = vcombine.low %v1172_v32, %v1174_v33  ;;  %v1175_v46 = vadd.bf16 %v951_v34, %v279_v23  ;;  %v1177_v47 = vadd.bf16 %v953_v35, %v281_v24  ;;  %v507_v50 = vld [vmem:[#allocation7 + $0xa0] sm:$0xff]  ;;  %v509_v53 = vld [vmem:[#allocation7 + $0xb0] sm:$0xff]  ;;  %v284_v59 = vld [vmem:[#allocation5 + $0xa8] sm:$0xff] }
 0x133   :  { %2561 = vmatprep.subr.bf16.mxu0 %v6524_v39  ;;  %v952_v51 = vmul.bf16 %v728_v42, %v504_v38  ;;  %v954_v52 = vmul.bf16 %v730_v43, %v506_v41  ;;  %v731_v54 = vld [vmem:[#allocation8 + $0xa0] sm:$0xff]  ;;  %v733_v55 = vld [vmem:[#allocation8 + $0xb0] sm:$0xff]  ;;  %v286_v60 = vld [vmem:[#allocation5 + $0xb8] sm:$0xff] }
 0x134   :  { %2725 = vmatprep.subr.bf16.mxu1 %v6526_v44  ;;  %2562 = vmatpush1.bf16.msra.mxu0 %v6523_v40  ;;  %v6528_v56 = vcombine.high %v1175_v46, %v1177_v47  ;;  %v6527_v57 = vcombine.low %v1175_v46, %v1177_v47  ;;  %v955_v58 = vmul.bf16 %v731_v54, %v507_v50  ;;  %v508_v61 = vld [vmem:[#allocation7 + $0xa8] sm:$0xff]  ;;  %v510_v1 = vld [vmem:[#allocation7 + $0xb8] sm:$0xff]  ;;  %v287_v7 = vld [vmem:[#allocation5 + $0xc0] sm:$0xff] }
 0x135   :  { %v1176_v62 = vadd.bf16 %v952_v51, %v280_v36  ;;  %v1178_v63 = vadd.bf16 %v954_v52, %v282_v37  ;;  %v957_v0 = vmul.bf16 %v733_v55, %v509_v53  ;;  %v732_v2 = vld [vmem:[#allocation8 + $0xa8] sm:$0xff]  ;;  %v734_v3 = vld [vmem:[#allocation8 + $0xb8] sm:$0xff]  ;;  %v289_v8 = vld [vmem:[#allocation5 + $0xd0] sm:$0xff] }
 0x136   :  { %2726 = vmatpush1.bf16.msra.mxu1 %v6525_v45  ;;  %2563 = vmatprep.subr.bf16.mxu0 %v6528_v56  ;;  %v1179_v4 = vadd.bf16 %v955_v58, %v283_v48  ;;  %v956_v5 = vmul.bf16 %v732_v2, %v508_v61  ;;  %v958_v6 = vmul.bf16 %v734_v3, %v510_v1  ;;  %v511_v9 = vld [vmem:[#allocation7 + $0xc0] sm:$0xff]  ;;  %v513_v13 = vld [vmem:[#allocation7 + $0xd0] sm:$0xff]  ;;  %v288_v20 = vld [vmem:[#allocation5 + $0xc8] sm:$0xff] }
 0x137   :  { %v6530_v10 = vcombine.high %v1176_v62, %v1178_v63  ;;  %v6529_v11 = vcombine.low %v1176_v62, %v1178_v63  ;;  %v1181_v12 = vadd.bf16 %v957_v0, %v285_v49  ;;  %v735_v14 = vld [vmem:[#allocation8 + $0xc0] sm:$0xff]  ;;  %v737_v15 = vld [vmem:[#allocation8 + $0xd0] sm:$0xff]  ;;  %v290_v21 = vld [vmem:[#allocation5 + $0xd8] sm:$0xff] }
 0x138   :  { %2564 = vmatpush1.bf16.msra.mxu0 %v6527_v57  ;;  %v1180_v16 = vadd.bf16 %v956_v5, %v284_v59  ;;  %v1182_v17 = vadd.bf16 %v958_v6, %v286_v60  ;;  %v959_v18 = vmul.bf16 %v735_v14, %v511_v9  ;;  %v961_v19 = vmul.bf16 %v737_v15, %v513_v13  ;;  %v512_v22 = vld [vmem:[#allocation7 + $0xc8] sm:$0xff]  ;;  %v514_v25 = vld [vmem:[#allocation7 + $0xd8] sm:$0xff]  ;;  %v291_v32 = vld [vmem:[#allocation5 + $0xe0] sm:$0xff] }
 0x139   :  { %2727 = vmatprep.subr.bf16.mxu1 %v6530_v10  ;;  %v6532_v23 = vcombine.high %v1179_v4, %v1181_v12  ;;  %v6531_v24 = vcombine.low %v1179_v4, %v1181_v12  ;;  %v736_v26 = vld [vmem:[#allocation8 + $0xc8] sm:$0xff]  ;;  %v738_v27 = vld [vmem:[#allocation8 + $0xd8] sm:$0xff]  ;;  %v293_v33 = vld [vmem:[#allocation5 + $0xf0] sm:$0xff] }
 0x13a   :  { %2728 = vmatpush1.bf16.msra.mxu1 %v6529_v11  ;;  %v6534_v28 = vcombine.high %v1180_v16, %v1182_v17  ;;  %v6533_v29 = vcombine.low %v1180_v16, %v1182_v17  ;;  %v1183_v30 = vadd.bf16 %v959_v18, %v287_v7  ;;  %v1185_v31 = vadd.bf16 %v961_v19, %v289_v8  ;;  %v515_v34 = vld [vmem:[#allocation7 + $0xe0] sm:$0xff]  ;;  %v517_v37 = vld [vmem:[#allocation7 + $0xf0] sm:$0xff]  ;;  %v292_v43 = vld [vmem:[#allocation5 + $0xe8] sm:$0xff] }
 0x13b   :  { %2565 = vmatprep.subr.bf16.mxu0 %v6532_v23  ;;  %v960_v35 = vmul.bf16 %v736_v26, %v512_v22  ;;  %v962_v36 = vmul.bf16 %v738_v27, %v514_v25  ;;  %v739_v38 = vld [vmem:[#allocation8 + $0xe0] sm:$0xff]  ;;  %v741_v39 = vld [vmem:[#allocation8 + $0xf0] sm:$0xff]  ;;  %v294_v44 = vld [vmem:[#allocation5 + $0xf8] sm:$0xff] }
 0x13c   :  { %2729 = vmatprep.subr.bf16.mxu1 %v6534_v28  ;;  %2566 = vmatpush1.bf16.msra.mxu0 %v6531_v24  ;;  %v6536_v40 = vcombine.high %v1183_v30, %v1185_v31  ;;  %v6535_v41 = vcombine.low %v1183_v30, %v1185_v31  ;;  %v963_v42 = vmul.bf16 %v739_v38, %v515_v34  ;;  %v516_v45 = vld [vmem:[#allocation7 + $0xe8] sm:$0xff]  ;;  %v518_v49 = vld [vmem:[#allocation7 + $0xf8] sm:$0xff]  ;;  %v295_v55 = vld [vmem:[#allocation5 + $0x100] sm:$0xff] }
 0x13d   :  { %v1184_v46 = vadd.bf16 %v960_v35, %v288_v20  ;;  %v1186_v47 = vadd.bf16 %v962_v36, %v290_v21  ;;  %v965_v48 = vmul.bf16 %v741_v39, %v517_v37  ;;  %v740_v50 = vld [vmem:[#allocation8 + $0xe8] sm:$0xff]  ;;  %v742_v51 = vld [vmem:[#allocation8 + $0xf8] sm:$0xff]  ;;  %v297_v56 = vld [vmem:[#allocation5 + $0x110] sm:$0xff] }
 0x13e   :  { %2730 = vmatpush1.bf16.msra.mxu1 %v6533_v29  ;;  %2567 = vmatprep.subr.bf16.mxu0 %v6536_v40  ;;  %v1187_v52 = vadd.bf16 %v963_v42, %v291_v32  ;;  %v964_v53 = vmul.bf16 %v740_v50, %v516_v45  ;;  %v966_v54 = vmul.bf16 %v742_v51, %v518_v49  ;;  %v519_v57 = vld [vmem:[#allocation7 + $0x100] sm:$0xff]  ;;  %v521_v61 = vld [vmem:[#allocation7 + $0x110] sm:$0xff]  ;;  %v296_v4 = vld [vmem:[#allocation5 + $0x108] sm:$0xff] }
 0x13f   :  { %v6538_v58 = vcombine.high %v1184_v46, %v1186_v47  ;;  %v6537_v59 = vcombine.low %v1184_v46, %v1186_v47  ;;  %v1189_v60 = vadd.bf16 %v965_v48, %v293_v33  ;;  %v743_v62 = vld [vmem:[#allocation8 + $0x100] sm:$0xff]  ;;  %v745_v63 = vld [vmem:[#allocation8 + $0x110] sm:$0xff]  ;;  %v298_v5 = vld [vmem:[#allocation5 + $0x118] sm:$0xff] }
 0x140   :  { %2568 = vmatpush1.bf16.msra.mxu0 %v6535_v41  ;;  %v1188_v0 = vadd.bf16 %v964_v53, %v292_v43  ;;  %v1190_v1 = vadd.bf16 %v966_v54, %v294_v44  ;;  %v967_v2 = vmul.bf16 %v743_v62, %v519_v57  ;;  %v969_v3 = vmul.bf16 %v745_v63, %v521_v61  ;;  %v520_v6 = vld [vmem:[#allocation7 + $0x108] sm:$0xff]  ;;  %v522_v9 = vld [vmem:[#allocation7 + $0x118] sm:$0xff]  ;;  %v299_v16 = vld [vmem:[#allocation5 + $0x120] sm:$0xff] }
 0x141   :  { %2731 = vmatprep.subr.bf16.mxu1 %v6538_v58  ;;  %v6540_v7 = vcombine.high %v1187_v52, %v1189_v60  ;;  %v6539_v8 = vcombine.low %v1187_v52, %v1189_v60  ;;  %v744_v10 = vld [vmem:[#allocation8 + $0x108] sm:$0xff]  ;;  %v746_v11 = vld [vmem:[#allocation8 + $0x118] sm:$0xff]  ;;  %v301_v17 = vld [vmem:[#allocation5 + $0x130] sm:$0xff] }
 0x142   :  { %2732 = vmatpush1.bf16.msra.mxu1 %v6537_v59  ;;  %v6542_v12 = vcombine.high %v1188_v0, %v1190_v1  ;;  %v6541_v13 = vcombine.low %v1188_v0, %v1190_v1  ;;  %v1191_v14 = vadd.bf16 %v967_v2, %v295_v55  ;;  %v1193_v15 = vadd.bf16 %v969_v3, %v297_v56  ;;  %v523_v18 = vld [vmem:[#allocation7 + $0x120] sm:$0xff]  ;;  %v525_v21 = vld [vmem:[#allocation7 + $0x130] sm:$0xff]  ;;  %v300_v27 = vld [vmem:[#allocation5 + $0x128] sm:$0xff] }
 0x143   :  { %2569 = vmatprep.subr.bf16.mxu0 %v6540_v7  ;;  %v968_v19 = vmul.bf16 %v744_v10, %v520_v6  ;;  %v970_v20 = vmul.bf16 %v746_v11, %v522_v9  ;;  %v747_v22 = vld [vmem:[#allocation8 + $0x120] sm:$0xff]  ;;  %v749_v23 = vld [vmem:[#allocation8 + $0x130] sm:$0xff]  ;;  %v302_v28 = vld [vmem:[#allocation5 + $0x138] sm:$0xff] }
 0x144   :  { %2733 = vmatprep.subr.bf16.mxu1 %v6542_v12  ;;  %2570 = vmatpush1.bf16.msra.mxu0 %v6539_v8  ;;  %v6544_v24 = vcombine.high %v1191_v14, %v1193_v15  ;;  %v6543_v25 = vcombine.low %v1191_v14, %v1193_v15  ;;  %v971_v26 = vmul.bf16 %v747_v22, %v523_v18  ;;  %v524_v29 = vld [vmem:[#allocation7 + $0x128] sm:$0xff]  ;;  %v526_v33 = vld [vmem:[#allocation7 + $0x138] sm:$0xff]  ;;  %v303_v39 = vld [vmem:[#allocation5 + $0x140] sm:$0xff] }
 0x145   :  { %v1192_v30 = vadd.bf16 %v968_v19, %v296_v4  ;;  %v1194_v31 = vadd.bf16 %v970_v20, %v298_v5  ;;  %v973_v32 = vmul.bf16 %v749_v23, %v525_v21  ;;  %v748_v34 = vld [vmem:[#allocation8 + $0x128] sm:$0xff]  ;;  %v750_v35 = vld [vmem:[#allocation8 + $0x138] sm:$0xff]  ;;  %v305_v40 = vld [vmem:[#allocation5 + $0x150] sm:$0xff] }
 0x146   :  { %2734 = vmatpush1.bf16.msra.mxu1 %v6541_v13  ;;  %2571 = vmatprep.subr.bf16.mxu0 %v6544_v24  ;;  %v1195_v36 = vadd.bf16 %v971_v26, %v299_v16  ;;  %v972_v37 = vmul.bf16 %v748_v34, %v524_v29  ;;  %v974_v38 = vmul.bf16 %v750_v35, %v526_v33  ;;  %v527_v41 = vld [vmem:[#allocation7 + $0x140] sm:$0xff]  ;;  %v529_v45 = vld [vmem:[#allocation7 + $0x150] sm:$0xff]  ;;  %v304_v52 = vld [vmem:[#allocation5 + $0x148] sm:$0xff] }
 0x147   :  { %v6546_v42 = vcombine.high %v1192_v30, %v1194_v31  ;;  %v6545_v43 = vcombine.low %v1192_v30, %v1194_v31  ;;  %v1197_v44 = vadd.bf16 %v973_v32, %v301_v17  ;;  %v751_v46 = vld [vmem:[#allocation8 + $0x140] sm:$0xff]  ;;  %v753_v47 = vld [vmem:[#allocation8 + $0x150] sm:$0xff]  ;;  %v306_v53 = vld [vmem:[#allocation5 + $0x158] sm:$0xff] }
 0x148   :  { %2572 = vmatpush1.bf16.msra.mxu0 %v6543_v25  ;;  %v1196_v48 = vadd.bf16 %v972_v37, %v300_v27  ;;  %v1198_v49 = vadd.bf16 %v974_v38, %v302_v28  ;;  %v975_v50 = vmul.bf16 %v751_v46, %v527_v41  ;;  %v977_v51 = vmul.bf16 %v753_v47, %v529_v45  ;;  %v528_v54 = vld [vmem:[#allocation7 + $0x148] sm:$0xff]  ;;  %v530_v57 = vld [vmem:[#allocation7 + $0x158] sm:$0xff]  ;;  %v307_v0 = vld [vmem:[#allocation5 + $0x160] sm:$0xff] }
 0x149   :  { %2735 = vmatprep.subr.bf16.mxu1 %v6546_v42  ;;  %v6548_v55 = vcombine.high %v1195_v36, %v1197_v44  ;;  %v6547_v56 = vcombine.low %v1195_v36, %v1197_v44  ;;  %v752_v58 = vld [vmem:[#allocation8 + $0x148] sm:$0xff]  ;;  %v754_v59 = vld [vmem:[#allocation8 + $0x158] sm:$0xff]  ;;  %v309_v1 = vld [vmem:[#allocation5 + $0x170] sm:$0xff] }
 0x14a   :  { %2736 = vmatpush1.bf16.msra.mxu1 %v6545_v43  ;;  %v6550_v60 = vcombine.high %v1196_v48, %v1198_v49  ;;  %v6549_v61 = vcombine.low %v1196_v48, %v1198_v49  ;;  %v1199_v62 = vadd.bf16 %v975_v50, %v303_v39  ;;  %v1201_v63 = vadd.bf16 %v977_v51, %v305_v40  ;;  %v531_v2 = vld [vmem:[#allocation7 + $0x160] sm:$0xff]  ;;  %v533_v5 = vld [vmem:[#allocation7 + $0x170] sm:$0xff]  ;;  %v308_v11 = vld [vmem:[#allocation5 + $0x168] sm:$0xff] }
 0x14b   :  { %2573 = vmatprep.subr.bf16.mxu0 %v6548_v55  ;;  %v976_v3 = vmul.bf16 %v752_v58, %v528_v54  ;;  %v978_v4 = vmul.bf16 %v754_v59, %v530_v57  ;;  %v755_v6 = vld [vmem:[#allocation8 + $0x160] sm:$0xff]  ;;  %v757_v7 = vld [vmem:[#allocation8 + $0x170] sm:$0xff]  ;;  %v310_v12 = vld [vmem:[#allocation5 + $0x178] sm:$0xff] }
 0x14c   :  { %2737 = vmatprep.subr.bf16.mxu1 %v6550_v60  ;;  %2574 = vmatpush1.bf16.msra.mxu0 %v6547_v56  ;;  %v6552_v8 = vcombine.high %v1199_v62, %v1201_v63  ;;  %v6551_v9 = vcombine.low %v1199_v62, %v1201_v63  ;;  %v979_v10 = vmul.bf16 %v755_v6, %v531_v2  ;;  %v532_v13 = vld [vmem:[#allocation7 + $0x168] sm:$0xff]  ;;  %v534_v17 = vld [vmem:[#allocation7 + $0x178] sm:$0xff]  ;;  %v311_v23 = vld [vmem:[#allocation5 + $0x180] sm:$0xff] }
 0x14d   :  { %v1200_v14 = vadd.bf16 %v976_v3, %v304_v52  ;;  %v1202_v15 = vadd.bf16 %v978_v4, %v306_v53  ;;  %v981_v16 = vmul.bf16 %v757_v7, %v533_v5  ;;  %v756_v18 = vld [vmem:[#allocation8 + $0x168] sm:$0xff]  ;;  %v758_v19 = vld [vmem:[#allocation8 + $0x178] sm:$0xff]  ;;  %v313_v24 = vld [vmem:[#allocation5 + $0x190] sm:$0xff] }
 0x14e   :  { %2738 = vmatpush1.bf16.msra.mxu1 %v6549_v61  ;;  %2575 = vmatprep.subr.bf16.mxu0 %v6552_v8  ;;  %v1203_v20 = vadd.bf16 %v979_v10, %v307_v0  ;;  %v980_v21 = vmul.bf16 %v756_v18, %v532_v13  ;;  %v982_v22 = vmul.bf16 %v758_v19, %v534_v17  ;;  %v535_v25 = vld [vmem:[#allocation7 + $0x180] sm:$0xff]  ;;  %v537_v29 = vld [vmem:[#allocation7 + $0x190] sm:$0xff]  ;;  %v312_v36 = vld [vmem:[#allocation5 + $0x188] sm:$0xff] }
 0x14f   :  { %v6554_v26 = vcombine.high %v1200_v14, %v1202_v15  ;;  %v6553_v27 = vcombine.low %v1200_v14, %v1202_v15  ;;  %v1205_v28 = vadd.bf16 %v981_v16, %v309_v1  ;;  %v759_v30 = vld [vmem:[#allocation8 + $0x180] sm:$0xff]  ;;  %v761_v31 = vld [vmem:[#allocation8 + $0x190] sm:$0xff]  ;;  %v314_v37 = vld [vmem:[#allocation5 + $0x198] sm:$0xff] }
 0x150   :  { %2576 = vmatpush1.bf16.msra.mxu0 %v6551_v9  ;;  %v1204_v32 = vadd.bf16 %v980_v21, %v308_v11  ;;  %v1206_v33 = vadd.bf16 %v982_v22, %v310_v12  ;;  %v983_v34 = vmul.bf16 %v759_v30, %v535_v25  ;;  %v985_v35 = vmul.bf16 %v761_v31, %v537_v29  ;;  %v536_v38 = vld [vmem:[#allocation7 + $0x188] sm:$0xff]  ;;  %v538_v41 = vld [vmem:[#allocation7 + $0x198] sm:$0xff]  ;;  %v315_v48 = vld [vmem:[#allocation5 + $0x1a0] sm:$0xff] }
 0x151   :  { %2739 = vmatprep.subr.bf16.mxu1 %v6554_v26  ;;  %v6556_v39 = vcombine.high %v1203_v20, %v1205_v28  ;;  %v6555_v40 = vcombine.low %v1203_v20, %v1205_v28  ;;  %v760_v42 = vld [vmem:[#allocation8 + $0x188] sm:$0xff]  ;;  %v762_v43 = vld [vmem:[#allocation8 + $0x198] sm:$0xff]  ;;  %v317_v49 = vld [vmem:[#allocation5 + $0x1b0] sm:$0xff] }
 0x152   :  { %2740 = vmatpush1.bf16.msra.mxu1 %v6553_v27  ;;  %v6558_v44 = vcombine.high %v1204_v32, %v1206_v33  ;;  %v6557_v45 = vcombine.low %v1204_v32, %v1206_v33  ;;  %v1207_v46 = vadd.bf16 %v983_v34, %v311_v23  ;;  %v1209_v47 = vadd.bf16 %v985_v35, %v313_v24  ;;  %v539_v50 = vld [vmem:[#allocation7 + $0x1a0] sm:$0xff]  ;;  %v541_v53 = vld [vmem:[#allocation7 + $0x1b0] sm:$0xff]  ;;  %v316_v59 = vld [vmem:[#allocation5 + $0x1a8] sm:$0xff] }
 0x153   :  { %2577 = vmatprep.subr.bf16.mxu0 %v6556_v39  ;;  %v984_v51 = vmul.bf16 %v760_v42, %v536_v38  ;;  %v986_v52 = vmul.bf16 %v762_v43, %v538_v41  ;;  %v763_v54 = vld [vmem:[#allocation8 + $0x1a0] sm:$0xff]  ;;  %v765_v55 = vld [vmem:[#allocation8 + $0x1b0] sm:$0xff]  ;;  %v318_v60 = vld [vmem:[#allocation5 + $0x1b8] sm:$0xff] }
 0x154   :  { %2741 = vmatprep.subr.bf16.mxu1 %v6558_v44  ;;  %2578 = vmatpush1.bf16.msra.mxu0 %v6555_v40  ;;  %v6560_v56 = vcombine.high %v1207_v46, %v1209_v47  ;;  %v6559_v57 = vcombine.low %v1207_v46, %v1209_v47  ;;  %v987_v58 = vmul.bf16 %v763_v54, %v539_v50  ;;  %v540_v61 = vld [vmem:[#allocation7 + $0x1a8] sm:$0xff]  ;;  %v542_v1 = vld [vmem:[#allocation7 + $0x1b8] sm:$0xff]  ;;  %v319_v7 = vld [vmem:[#allocation5 + $0x1c0] sm:$0xff] }
 0x155   :  { %v1208_v62 = vadd.bf16 %v984_v51, %v312_v36  ;;  %v1210_v63 = vadd.bf16 %v986_v52, %v314_v37  ;;  %v989_v0 = vmul.bf16 %v765_v55, %v541_v53  ;;  %v764_v2 = vld [vmem:[#allocation8 + $0x1a8] sm:$0xff]  ;;  %v766_v3 = vld [vmem:[#allocation8 + $0x1b8] sm:$0xff]  ;;  %v321_v8 = vld [vmem:[#allocation5 + $0x1d0] sm:$0xff] }
 0x156   :  { %2742 = vmatpush1.bf16.msra.mxu1 %v6557_v45  ;;  %2579 = vmatprep.subr.bf16.mxu0 %v6560_v56  ;;  %v1211_v4 = vadd.bf16 %v987_v58, %v315_v48  ;;  %v988_v5 = vmul.bf16 %v764_v2, %v540_v61  ;;  %v990_v6 = vmul.bf16 %v766_v3, %v542_v1  ;;  %v543_v9 = vld [vmem:[#allocation7 + $0x1c0] sm:$0xff]  ;;  %v545_v13 = vld [vmem:[#allocation7 + $0x1d0] sm:$0xff]  ;;  %v320_v20 = vld [vmem:[#allocation5 + $0x1c8] sm:$0xff] }
 0x157   :  { %v6562_v10 = vcombine.high %v1208_v62, %v1210_v63  ;;  %v6561_v11 = vcombine.low %v1208_v62, %v1210_v63  ;;  %v1213_v12 = vadd.bf16 %v989_v0, %v317_v49  ;;  %v767_v14 = vld [vmem:[#allocation8 + $0x1c0] sm:$0xff]  ;;  %v769_v15 = vld [vmem:[#allocation8 + $0x1d0] sm:$0xff]  ;;  %v322_v21 = vld [vmem:[#allocation5 + $0x1d8] sm:$0xff] }
 0x158   :  { %2580 = vmatpush1.bf16.msra.mxu0 %v6559_v57  ;;  %v1212_v16 = vadd.bf16 %v988_v5, %v316_v59  ;;  %v1214_v17 = vadd.bf16 %v990_v6, %v318_v60  ;;  %v991_v18 = vmul.bf16 %v767_v14, %v543_v9  ;;  %v993_v19 = vmul.bf16 %v769_v15, %v545_v13  ;;  %v544_v22 = vld [vmem:[#allocation7 + $0x1c8] sm:$0xff]  ;;  %v546_v25 = vld [vmem:[#allocation7 + $0x1d8] sm:$0xff]  ;;  %v323_v32 = vld [vmem:[#allocation5 + $0x1e0] sm:$0xff] }
 0x159   :  { %2743 = vmatprep.subr.bf16.mxu1 %v6562_v10  ;;  %v6564_v23 = vcombine.high %v1211_v4, %v1213_v12  ;;  %v6563_v24 = vcombine.low %v1211_v4, %v1213_v12  ;;  %v768_v26 = vld [vmem:[#allocation8 + $0x1c8] sm:$0xff]  ;;  %v770_v27 = vld [vmem:[#allocation8 + $0x1d8] sm:$0xff]  ;;  %v325_v33 = vld [vmem:[#allocation5 + $0x1f0] sm:$0xff] }
 0x15a   :  { %2744 = vmatpush1.bf16.msra.mxu1 %v6561_v11  ;;  %v6566_v28 = vcombine.high %v1212_v16, %v1214_v17  ;;  %v6565_v29 = vcombine.low %v1212_v16, %v1214_v17  ;;  %v1215_v30 = vadd.bf16 %v991_v18, %v319_v7  ;;  %v1217_v31 = vadd.bf16 %v993_v19, %v321_v8  ;;  %v547_v34 = vld [vmem:[#allocation7 + $0x1e0] sm:$0xff]  ;;  %v549_v37 = vld [vmem:[#allocation7 + $0x1f0] sm:$0xff]  ;;  %v324_v43 = vld [vmem:[#allocation5 + $0x1e8] sm:$0xff] }
 0x15b   :  { %2581 = vmatprep.subr.bf16.mxu0 %v6564_v23  ;;  %v992_v35 = vmul.bf16 %v768_v26, %v544_v22  ;;  %v994_v36 = vmul.bf16 %v770_v27, %v546_v25  ;;  %v771_v38 = vld [vmem:[#allocation8 + $0x1e0] sm:$0xff]  ;;  %v773_v39 = vld [vmem:[#allocation8 + $0x1f0] sm:$0xff]  ;;  %v326_v44 = vld [vmem:[#allocation5 + $0x1f8] sm:$0xff] }
 0x15c   :  { %2745 = vmatprep.subr.bf16.mxu1 %v6566_v28  ;;  %2582 = vmatpush1.bf16.msra.mxu0 %v6563_v24  ;;  %v6568_v40 = vcombine.high %v1215_v30, %v1217_v31  ;;  %v6567_v41 = vcombine.low %v1215_v30, %v1217_v31  ;;  %v995_v42 = vmul.bf16 %v771_v38, %v547_v34  ;;  %v548_v45 = vld [vmem:[#allocation7 + $0x1e8] sm:$0xff]  ;;  %v550_v49 = vld [vmem:[#allocation7 + $0x1f8] sm:$0xff]  ;;  %v257_v55 = vld [vmem:[#allocation2 + $0x8] sm:$0xff] }
 0x15d   :  { %v1216_v46 = vadd.bf16 %v992_v35, %v320_v20  ;;  %v1218_v47 = vadd.bf16 %v994_v36, %v322_v21  ;;  %v997_v48 = vmul.bf16 %v773_v39, %v549_v37  ;;  %v772_v50 = vld [vmem:[#allocation8 + $0x1e8] sm:$0xff]  ;;  %v774_v51 = vld [vmem:[#allocation8 + $0x1f8] sm:$0xff]  ;;  %v327_v56 = vld [vmem:[#allocation5 + $0x200] sm:$0xff]  ;;  %v1392_v60 = vpack.c.bf16 %v257_v55, %v257_v55 }
 0x15e   :  { %2746 = vmatpush1.bf16.msra.mxu1 %v6565_v29  ;;  %2583 = vmatprep.subr.bf16.mxu0 %v6568_v40  ;;  %v1219_v52 = vadd.bf16 %v995_v42, %v323_v32  ;;  %v996_v53 = vmul.bf16 %v772_v50, %v548_v45  ;;  %v998_v54 = vmul.bf16 %v774_v51, %v550_v49  ;;  %v551_v61 = vld [vmem:[#allocation7 + $0x200] sm:$0xff]  ;;  %v553_v62 = vld [vmem:[#allocation7 + $0x210] sm:$0xff]  ;;  %v328_v5 = vld [vmem:[#allocation5 + $0x208] sm:$0xff] }
 0x15f   :  { %v6570_v57 = vcombine.high %v1216_v46, %v1218_v47  ;;  %v6569_v58 = vcombine.low %v1216_v46, %v1218_v47  ;;  %v1221_v59 = vadd.bf16 %v997_v48, %v325_v33  ;;  %v775_v63 = vld [vmem:[#allocation8 + $0x200] sm:$0xff]  ;;  %v329_v2 = vld [vmem:[#allocation5 + $0x210] sm:$0xff]  ;;  %2587 = vmatprep.mubr.bf16.mxu0 %v1392_v60  ;;  %v552_v9 = vld [vmem:[#allocation7 + $0x208] sm:$0xff]  ;;  %2751 = vmatprep.mubr.bf16.mxu1 %v1392_v60 }
 0x160   :  { %2584 = vmatpush1.bf16.msra.mxu0 %v6567_v41  ;;  %v1220_v0 = vadd.bf16 %v996_v53, %v324_v43  ;;  %v1222_v1 = vadd.bf16 %v998_v54, %v326_v44  ;;  %v777_v3 = vld [vmem:[#allocation8 + $0x210] sm:$0xff]  ;;  %v999_v4 = vmul.bf16 %v775_v63, %v551_v61  ;;  %v554_v10 = vld [vmem:[#allocation7 + $0x218] sm:$0xff]  ;;  %v776_v11 = vld [vmem:[#allocation8 + $0x208] sm:$0xff] }
 0x161   :  { %2747 = vmatprep.subr.bf16.mxu1 %v6570_v57  ;;  %v6572_v6 = vcombine.high %v1219_v52, %v1221_v59  ;;  %v6571_v7 = vcombine.low %v1219_v52, %v1221_v59  ;;  %v1001_v8 = vmul.bf16 %v777_v3, %v553_v62  ;;  %v330_v15 = vld [vmem:[#allocation5 + $0x218] sm:$0xff]  ;;  %v256_v17 = vld [vmem:[#allocation2] sm:$0xff]  ;;  %v1000_v19 = vmul.bf16 %v776_v11, %v552_v9  ;;  %v331_v22 = vld [vmem:[#allocation5 + $0x220] sm:$0xff] }
 0x162   :  { %2748 = vmatpush1.bf16.msra.mxu1 %v6569_v58  ;;  %v6574_v12 = vcombine.high %v1220_v0, %v1222_v1  ;;  %v6573_v13 = vcombine.low %v1220_v0, %v1222_v1  ;;  %v1223_v14 = vadd.bf16 %v999_v4, %v327_v56  ;;  %v778_v16 = vld [vmem:[#allocation8 + $0x218] sm:$0xff]  ;;  %v1391_v21 = vpack.c.bf16 %v256_v17, %v256_v17  ;;  %v555_v23 = vld [vmem:[#allocation7 + $0x220] sm:$0xff]  ;;  %v557_v24 = vld [vmem:[#allocation7 + $0x230] sm:$0xff] }
 0x163   :  { %2585 = vmatprep.subr.bf16.mxu0 %v6572_v6  ;;  %v1225_v18 = vadd.bf16 %v1001_v8, %v329_v2  ;;  %v1002_v20 = vmul.bf16 %v778_v16, %v554_v10  ;;  %v333_v25 = vld [vmem:[#allocation5 + $0x230] sm:$0xff]  ;;  %v779_v26 = vld [vmem:[#allocation8 + $0x220] sm:$0xff]  ;;  %v1224_v29 = vadd.bf16 %v1000_v19, %v328_v5  ;;  %v332_v32 = vld [vmem:[#allocation5 + $0x228] sm:$0xff] }
 0x164   :  { %2749 = vmatprep.subr.bf16.mxu1 %v6574_v12  ;;  %2586 = vmatpush1.bf16.msra.mxu0 %v6571_v7  ;;  %v781_v27 = vld [vmem:[#allocation8 + $0x230] sm:$0xff]  ;;  %v556_v33 = vld [vmem:[#allocation7 + $0x228] sm:$0xff]  ;;  %v558_v34 = vld [vmem:[#allocation7 + $0x238] sm:$0xff]  ;;  %v1003_v35 = vmul.bf16 %v779_v26, %v555_v23 }
 0x165   :  { %v6576_v28 = vcombine.high %v1223_v14, %v1225_v18  ;;  %v1226_v30 = vadd.bf16 %v1002_v20, %v330_v15  ;;  %v6575_v31 = vcombine.low %v1223_v14, %v1225_v18  ;;  %v1005_v36 = vmul.bf16 %v781_v27, %v557_v24  ;;  %v334_v37 = vld [vmem:[#allocation5 + $0x238] sm:$0xff]  ;;  %v780_v38 = vld [vmem:[#allocation8 + $0x228] sm:$0xff]  ;;  %v335_v43 = vld [vmem:[#allocation5 + $0x240] sm:$0xff] }
 0x166   :  { %2750 = vmatpush1.bf16.msra.mxu1 %v6573_v13  ;;  %v782_v39 = vld [vmem:[#allocation8 + $0x238] sm:$0xff]  ;;  %v1004_v42 = vmul.bf16 %v780_v38, %v556_v33  ;;  %v559_v44 = vld [vmem:[#allocation7 + $0x240] sm:$0xff]  ;;  %v561_v45 = vld [vmem:[#allocation7 + $0x250] sm:$0xff]  ;;  %v1227_v46 = vadd.bf16 %v1003_v35, %v331_v22 }
 0x167   :  { %2596 = vmatprep.subr.bf16.mxu0 %v6576_v28  ;;  %v6578_v40 = vcombine.high %v1224_v29, %v1226_v30  ;;  %2588 = vmatmul.mubr.bf16.vlgmr.msra.gmra.mrb[0].mxu0 %v1391_v21  ;;  %v6577_v41 = vcombine.low %v1224_v29, %v1226_v30  ;;  %v1229_v47 = vadd.bf16 %v1005_v36, %v333_v25  ;;  %v337_v49 = vld [vmem:[#allocation5 + $0x250] sm:$0xff]  ;;  %v783_v50 = vld [vmem:[#allocation8 + $0x240] sm:$0xff]  ;;  %v336_v55 = vld [vmem:[#allocation5 + $0x248] sm:$0xff] }
 0x168   :  { %2597 = vmatpush1.bf16.msra.mxu0 %v6575_v31  ;;  %v1006_v48 = vmul.bf16 %v782_v39, %v558_v34  ;;  %v785_v51 = vld [vmem:[#allocation8 + $0x250] sm:$0xff]  ;;  %v1228_v52 = vadd.bf16 %v1004_v42, %v332_v32  ;;  %v1007_v53 = vmul.bf16 %v783_v50, %v559_v44  ;;  %v560_v56 = vld [vmem:[#allocation7 + $0x248] sm:$0xff]  ;;  %v562_v57 = vld [vmem:[#allocation7 + $0x258] sm:$0xff] }
 0x169   :  { %2760 = vmatprep.subr.bf16.mxu1 %v6578_v40  ;;  %2752 = vmatmul.mubr.bf16.vlgmr.msra.gmra.mrb[0].mxu1 %v1391_v21  ;;  %v1009_v54 = vmul.bf16 %v785_v51, %v561_v45  ;;  %v6580_v58 = vcombine.high %v1227_v46, %v1229_v47  ;;  %v6579_v60 = vcombine.low %v1227_v46, %v1229_v47  ;;  %v338_v61 = vld [vmem:[#allocation5 + $0x258] sm:$0xff]  ;;  %v784_v62 = vld [vmem:[#allocation8 + $0x248] sm:$0xff]  ;;  %v339_v4 = vld [vmem:[#allocation5 + $0x260] sm:$0xff] }
 0x16a   :  { %2761 = vmatpush1.bf16.msra.mxu1 %v6577_v41  ;;  %v1230_v59 = vadd.bf16 %v1006_v48, %v334_v37  ;;  %v786_v63 = vld [vmem:[#allocation8 + $0x258] sm:$0xff]  ;;  %v1231_v0 = vadd.bf16 %v1007_v53, %v335_v43  ;;  %v1008_v2 = vmul.bf16 %v784_v62, %v560_v56  ;;  %v563_v5 = vld [vmem:[#allocation7 + $0x260] sm:$0xff]  ;;  %v565_v6 = vld [vmem:[#allocation7 + $0x270] sm:$0xff] }
 0x16b   :  { %v1233_v1 = vadd.bf16 %v1009_v54, %v337_v49  ;;  %v1010_v3 = vmul.bf16 %v786_v63, %v562_v57  ;;  %2598 = vmatprep.subr.bf16.mxu0 %v6580_v58  ;;  %v341_v9 = vld [vmem:[#allocation5 + $0x270] sm:$0xff]  ;;  %v787_v10 = vld [vmem:[#allocation8 + $0x260] sm:$0xff]  ;;  %v340_v16 = vld [vmem:[#allocation5 + $0x268] sm:$0xff] }
 0x16c   :  { %v6582_v7 = vcombine.high %v1228_v52, %v1230_v59  ;;  %v6581_v8 = vcombine.low %v1228_v52, %v1230_v59  ;;  %v789_v11 = vld [vmem:[#allocation8 + $0x270] sm:$0xff]  ;;  %2599 = vmatpush1.bf16.msra.mxu0 %v6579_v60  ;;  %v1232_v13 = vadd.bf16 %v1008_v2, %v336_v55  ;;  %v564_v17 = vld [vmem:[#allocation7 + $0x268] sm:$0xff]  ;;  %v566_v18 = vld [vmem:[#allocation7 + $0x278] sm:$0xff]  ;;  %v1011_v19 = vmul.bf16 %v787_v10, %v563_v5 }
 0x16d   :  { %v6584_v12 = vcombine.high %v1231_v0, %v1233_v1  ;;  %v1234_v14 = vadd.bf16 %v1010_v3, %v338_v61  ;;  %v6583_v15 = vcombine.low %v1231_v0, %v1233_v1  ;;  %v1013_v20 = vmul.bf16 %v789_v11, %v565_v6  ;;  %v342_v21 = vld [vmem:[#allocation5 + $0x278] sm:$0xff]  ;;  %v788_v22 = vld [vmem:[#allocation8 + $0x268] sm:$0xff]  ;;  %v343_v27 = vld [vmem:[#allocation5 + $0x280] sm:$0xff] }
 0x16e   :  { %2762 = vmatprep.subr.bf16.mxu1 %v6582_v7  ;;  %v790_v23 = vld [vmem:[#allocation8 + $0x278] sm:$0xff]  ;;  %v1012_v26 = vmul.bf16 %v788_v22, %v564_v17  ;;  %v567_v28 = vld [vmem:[#allocation7 + $0x280] sm:$0xff]  ;;  %v569_v29 = vld [vmem:[#allocation7 + $0x290] sm:$0xff]  ;;  %v1235_v30 = vadd.bf16 %v1011_v19, %v339_v4 }
 0x16f   :  { %2763 = vmatpush1.bf16.msra.mxu1 %v6581_v8  ;;  %2600 = vmatprep.subr.bf16.mxu0 %v6584_v12  ;;  %v6586_v24 = vcombine.high %v1232_v13, %v1234_v14  ;;  %v6585_v25 = vcombine.low %v1232_v13, %v1234_v14  ;;  %v1237_v31 = vadd.bf16 %v1013_v20, %v341_v9  ;;  %v345_v33 = vld [vmem:[#allocation5 + $0x290] sm:$0xff]  ;;  %v791_v34 = vld [vmem:[#allocation8 + $0x280] sm:$0xff]  ;;  %v344_v39 = vld [vmem:[#allocation5 + $0x288] sm:$0xff] }
 0x170   :  { %v1014_v32 = vmul.bf16 %v790_v23, %v566_v18  ;;  %v793_v35 = vld [vmem:[#allocation8 + $0x290] sm:$0xff]  ;;  %2601 = vmatpush1.bf16.msra.mxu0 %v6583_v15  ;;  %v1236_v36 = vadd.bf16 %v1012_v26, %v340_v16  ;;  %v1015_v37 = vmul.bf16 %v791_v34, %v567_v28  ;;  %v568_v40 = vld [vmem:[#allocation7 + $0x288] sm:$0xff]  ;;  %v570_v41 = vld [vmem:[#allocation7 + $0x298] sm:$0xff] }
 0x171   :  { %2764 = vmatprep.subr.bf16.mxu1 %v6586_v24  ;;  %v1017_v38 = vmul.bf16 %v793_v35, %v569_v29  ;;  %v6588_v42 = vcombine.high %v1235_v30, %v1237_v31  ;;  %v6587_v44 = vcombine.low %v1235_v30, %v1237_v31  ;;  %v346_v45 = vld [vmem:[#allocation5 + $0x298] sm:$0xff]  ;;  %v792_v46 = vld [vmem:[#allocation8 + $0x288] sm:$0xff]  ;;  %v347_v52 = vld [vmem:[#allocation5 + $0x2a0] sm:$0xff] }
 0x172   :  { %v1238_v43 = vadd.bf16 %v1014_v32, %v342_v21  ;;  %v794_v47 = vld [vmem:[#allocation8 + $0x298] sm:$0xff]  ;;  %v1239_v48 = vadd.bf16 %v1015_v37, %v343_v27  ;;  %v1016_v50 = vmul.bf16 %v792_v46, %v568_v40  ;;  %v571_v53 = vld [vmem:[#allocation7 + $0x2a0] sm:$0xff]  ;;  %v573_v54 = vld [vmem:[#allocation7 + $0x2b0] sm:$0xff] }
 0x173   :  { %2765 = vmatpush1.bf16.msra.mxu1 %v6585_v25  ;;  %v1241_v49 = vadd.bf16 %v1017_v38, %v345_v33  ;;  %v1018_v51 = vmul.bf16 %v794_v47, %v570_v41  ;;  %2602 = vmatprep.subr.bf16.mxu0 %v6588_v42  ;;  %v349_v57 = vld [vmem:[#allocation5 + $0x2b0] sm:$0xff]  ;;  %v795_v58 = vld [vmem:[#allocation8 + $0x2a0] sm:$0xff]  ;;  %v348_v0 = vld [vmem:[#allocation5 + $0x2a8] sm:$0xff] }
 0x174   :  { %v6590_v55 = vcombine.high %v1236_v36, %v1238_v43  ;;  %v6589_v56 = vcombine.low %v1236_v36, %v1238_v43  ;;  %v797_v59 = vld [vmem:[#allocation8 + $0x2b0] sm:$0xff]  ;;  %2603 = vmatpush1.bf16.msra.mxu0 %v6587_v44  ;;  %v1240_v61 = vadd.bf16 %v1016_v50, %v344_v39  ;;  %v572_v1 = vld [vmem:[#allocation7 + $0x2a8] sm:$0xff]  ;;  %v574_v2 = vld [vmem:[#allocation7 + $0x2b8] sm:$0xff]  ;;  %v1019_v3 = vmul.bf16 %v795_v58, %v571_v53 }
 0x175   :  { %v6592_v60 = vcombine.high %v1239_v48, %v1241_v49  ;;  %v1242_v62 = vadd.bf16 %v1018_v51, %v346_v45  ;;  %v6591_v63 = vcombine.low %v1239_v48, %v1241_v49  ;;  %v1021_v4 = vmul.bf16 %v797_v59, %v573_v54  ;;  %v350_v5 = vld [vmem:[#allocation5 + $0x2b8] sm:$0xff]  ;;  %v796_v6 = vld [vmem:[#allocation8 + $0x2a8] sm:$0xff]  ;;  %v351_v11 = vld [vmem:[#allocation5 + $0x2c0] sm:$0xff] }
 0x176   :  { %2766 = vmatprep.subr.bf16.mxu1 %v6590_v55  ;;  %v798_v7 = vld [vmem:[#allocation8 + $0x2b8] sm:$0xff]  ;;  %v1020_v10 = vmul.bf16 %v796_v6, %v572_v1  ;;  %v575_v12 = vld [vmem:[#allocation7 + $0x2c0] sm:$0xff]  ;;  %v577_v13 = vld [vmem:[#allocation7 + $0x2d0] sm:$0xff]  ;;  %v1243_v14 = vadd.bf16 %v1019_v3, %v347_v52 }
 0x177   :  { %2767 = vmatpush1.bf16.msra.mxu1 %v6589_v56  ;;  %2604 = vmatprep.subr.bf16.mxu0 %v6592_v60  ;;  %v6594_v8 = vcombine.high %v1240_v61, %v1242_v62  ;;  %v6593_v9 = vcombine.low %v1240_v61, %v1242_v62  ;;  %v1245_v15 = vadd.bf16 %v1021_v4, %v349_v57  ;;  %v353_v17 = vld [vmem:[#allocation5 + $0x2d0] sm:$0xff]  ;;  %v799_v18 = vld [vmem:[#allocation8 + $0x2c0] sm:$0xff]  ;;  %v352_v23 = vld [vmem:[#allocation5 + $0x2c8] sm:$0xff] }
 0x178   :  { %v1022_v16 = vmul.bf16 %v798_v7, %v574_v2  ;;  %v801_v19 = vld [vmem:[#allocation8 + $0x2d0] sm:$0xff]  ;;  %2605 = vmatpush1.bf16.msra.mxu0 %v6591_v63  ;;  %v1244_v20 = vadd.bf16 %v1020_v10, %v348_v0  ;;  %v1023_v21 = vmul.bf16 %v799_v18, %v575_v12  ;;  %v576_v24 = vld [vmem:[#allocation7 + $0x2c8] sm:$0xff]  ;;  %v578_v25 = vld [vmem:[#allocation7 + $0x2d8] sm:$0xff] }
 0x179   :  { %2768 = vmatprep.subr.bf16.mxu1 %v6594_v8  ;;  %v1025_v22 = vmul.bf16 %v801_v19, %v577_v13  ;;  %v6596_v26 = vcombine.high %v1243_v14, %v1245_v15  ;;  %v6595_v28 = vcombine.low %v1243_v14, %v1245_v15  ;;  %v354_v29 = vld [vmem:[#allocation5 + $0x2d8] sm:$0xff]  ;;  %v800_v30 = vld [vmem:[#allocation8 + $0x2c8] sm:$0xff]  ;;  %v355_v36 = vld [vmem:[#allocation5 + $0x2e0] sm:$0xff] }
 0x17a   :  { %v1246_v27 = vadd.bf16 %v1022_v16, %v350_v5  ;;  %v802_v31 = vld [vmem:[#allocation8 + $0x2d8] sm:$0xff]  ;;  %v1247_v32 = vadd.bf16 %v1023_v21, %v351_v11  ;;  %v1024_v34 = vmul.bf16 %v800_v30, %v576_v24  ;;  %v579_v37 = vld [vmem:[#allocation7 + $0x2e0] sm:$0xff]  ;;  %v581_v38 = vld [vmem:[#allocation7 + $0x2f0] sm:$0xff] }
 0x17b   :  { %2769 = vmatpush1.bf16.msra.mxu1 %v6593_v9  ;;  %v1249_v33 = vadd.bf16 %v1025_v22, %v353_v17  ;;  %v1026_v35 = vmul.bf16 %v802_v31, %v578_v25  ;;  %2606 = vmatprep.subr.bf16.mxu0 %v6596_v26  ;;  %v357_v41 = vld [vmem:[#allocation5 + $0x2f0] sm:$0xff]  ;;  %v803_v42 = vld [vmem:[#allocation8 + $0x2e0] sm:$0xff]  ;;  %v356_v48 = vld [vmem:[#allocation5 + $0x2e8] sm:$0xff] }
 0x17c   :  { %v6598_v39 = vcombine.high %v1244_v20, %v1246_v27  ;;  %v6597_v40 = vcombine.low %v1244_v20, %v1246_v27  ;;  %v805_v43 = vld [vmem:[#allocation8 + $0x2f0] sm:$0xff]  ;;  %2607 = vmatpush1.bf16.msra.mxu0 %v6595_v28  ;;  %v1248_v45 = vadd.bf16 %v1024_v34, %v352_v23  ;;  %v580_v49 = vld [vmem:[#allocation7 + $0x2e8] sm:$0xff]  ;;  %v582_v50 = vld [vmem:[#allocation7 + $0x2f8] sm:$0xff]  ;;  %v1027_v51 = vmul.bf16 %v803_v42, %v579_v37 }
 0x17d   :  { %v6600_v44 = vcombine.high %v1247_v32, %v1249_v33  ;;  %v1250_v46 = vadd.bf16 %v1026_v35, %v354_v29  ;;  %v6599_v47 = vcombine.low %v1247_v32, %v1249_v33  ;;  %v1029_v52 = vmul.bf16 %v805_v43, %v581_v38  ;;  %v358_v53 = vld [vmem:[#allocation5 + $0x2f8] sm:$0xff]  ;;  %v804_v54 = vld [vmem:[#allocation8 + $0x2e8] sm:$0xff]  ;;  %v359_v59 = vld [vmem:[#allocation5 + $0x300] sm:$0xff] }
 0x17e   :  { %2770 = vmatprep.subr.bf16.mxu1 %v6598_v39  ;;  %v806_v55 = vld [vmem:[#allocation8 + $0x2f8] sm:$0xff]  ;;  %v1028_v58 = vmul.bf16 %v804_v54, %v580_v49  ;;  %v583_v60 = vld [vmem:[#allocation7 + $0x300] sm:$0xff]  ;;  %v585_v61 = vld [vmem:[#allocation7 + $0x310] sm:$0xff]  ;;  %v1251_v62 = vadd.bf16 %v1027_v51, %v355_v36 }
 0x17f   :  { %2771 = vmatpush1.bf16.msra.mxu1 %v6597_v40  ;;  %2608 = vmatprep.subr.bf16.mxu0 %v6600_v44  ;;  %v6602_v56 = vcombine.high %v1248_v45, %v1250_v46  ;;  %v6601_v57 = vcombine.low %v1248_v45, %v1250_v46  ;;  %v1253_v63 = vadd.bf16 %v1029_v52, %v357_v41  ;;  %v361_v1 = vld [vmem:[#allocation5 + $0x310] sm:$0xff]  ;;  %v807_v2 = vld [vmem:[#allocation8 + $0x300] sm:$0xff]  ;;  %v360_v7 = vld [vmem:[#allocation5 + $0x308] sm:$0xff] }
 0x180   :  { %v1030_v0 = vmul.bf16 %v806_v55, %v582_v50  ;;  %v809_v3 = vld [vmem:[#allocation8 + $0x310] sm:$0xff]  ;;  %2609 = vmatpush1.bf16.msra.mxu0 %v6599_v47  ;;  %v1252_v4 = vadd.bf16 %v1028_v58, %v356_v48  ;;  %v1031_v5 = vmul.bf16 %v807_v2, %v583_v60  ;;  %v584_v8 = vld [vmem:[#allocation7 + $0x308] sm:$0xff]  ;;  %v586_v9 = vld [vmem:[#allocation7 + $0x318] sm:$0xff] }
 0x181   :  { %2772 = vmatprep.subr.bf16.mxu1 %v6602_v56  ;;  %v1033_v6 = vmul.bf16 %v809_v3, %v585_v61  ;;  %v6604_v10 = vcombine.high %v1251_v62, %v1253_v63  ;;  %v6603_v12 = vcombine.low %v1251_v62, %v1253_v63  ;;  %v362_v13 = vld [vmem:[#allocation5 + $0x318] sm:$0xff]  ;;  %v808_v14 = vld [vmem:[#allocation8 + $0x308] sm:$0xff]  ;;  %v363_v20 = vld [vmem:[#allocation5 + $0x320] sm:$0xff] }
 0x182   :  { %v1254_v11 = vadd.bf16 %v1030_v0, %v358_v53  ;;  %v810_v15 = vld [vmem:[#allocation8 + $0x318] sm:$0xff]  ;;  %v1255_v16 = vadd.bf16 %v1031_v5, %v359_v59  ;;  %v1032_v18 = vmul.bf16 %v808_v14, %v584_v8  ;;  %v587_v21 = vld [vmem:[#allocation7 + $0x320] sm:$0xff]  ;;  %v589_v22 = vld [vmem:[#allocation7 + $0x330] sm:$0xff] }
 0x183   :  { %2773 = vmatpush1.bf16.msra.mxu1 %v6601_v57  ;;  %v1257_v17 = vadd.bf16 %v1033_v6, %v361_v1  ;;  %v1034_v19 = vmul.bf16 %v810_v15, %v586_v9  ;;  %2610 = vmatprep.subr.bf16.mxu0 %v6604_v10  ;;  %v365_v25 = vld [vmem:[#allocation5 + $0x330] sm:$0xff]  ;;  %v811_v26 = vld [vmem:[#allocation8 + $0x320] sm:$0xff]  ;;  %v364_v32 = vld [vmem:[#allocation5 + $0x328] sm:$0xff] }
 0x184   :  { %v6606_v23 = vcombine.high %v1252_v4, %v1254_v11  ;;  %v6605_v24 = vcombine.low %v1252_v4, %v1254_v11  ;;  %v813_v27 = vld [vmem:[#allocation8 + $0x330] sm:$0xff]  ;;  %2611 = vmatpush1.bf16.msra.mxu0 %v6603_v12  ;;  %v1256_v29 = vadd.bf16 %v1032_v18, %v360_v7  ;;  %v588_v33 = vld [vmem:[#allocation7 + $0x328] sm:$0xff]  ;;  %v590_v34 = vld [vmem:[#allocation7 + $0x338] sm:$0xff]  ;;  %v1035_v35 = vmul.bf16 %v811_v26, %v587_v21 }
 0x185   :  { %v6608_v28 = vcombine.high %v1255_v16, %v1257_v17  ;;  %v1258_v30 = vadd.bf16 %v1034_v19, %v362_v13  ;;  %v6607_v31 = vcombine.low %v1255_v16, %v1257_v17  ;;  %v1037_v36 = vmul.bf16 %v813_v27, %v589_v22  ;;  %v366_v37 = vld [vmem:[#allocation5 + $0x338] sm:$0xff]  ;;  %v812_v38 = vld [vmem:[#allocation8 + $0x328] sm:$0xff]  ;;  %v367_v43 = vld [vmem:[#allocation5 + $0x340] sm:$0xff] }
 0x186   :  { %2774 = vmatprep.subr.bf16.mxu1 %v6606_v23  ;;  %v814_v39 = vld [vmem:[#allocation8 + $0x338] sm:$0xff]  ;;  %v1036_v42 = vmul.bf16 %v812_v38, %v588_v33  ;;  %v591_v44 = vld [vmem:[#allocation7 + $0x340] sm:$0xff]  ;;  %v593_v45 = vld [vmem:[#allocation7 + $0x350] sm:$0xff]  ;;  %v1259_v46 = vadd.bf16 %v1035_v35, %v363_v20 }
 0x187   :  { %2775 = vmatpush1.bf16.msra.mxu1 %v6605_v24  ;;  %2612 = vmatprep.subr.bf16.mxu0 %v6608_v28  ;;  %v6610_v40 = vcombine.high %v1256_v29, %v1258_v30  ;;  %v6609_v41 = vcombine.low %v1256_v29, %v1258_v30  ;;  %v1261_v47 = vadd.bf16 %v1037_v36, %v365_v25  ;;  %v369_v49 = vld [vmem:[#allocation5 + $0x350] sm:$0xff]  ;;  %v815_v50 = vld [vmem:[#allocation8 + $0x340] sm:$0xff]  ;;  %v368_v55 = vld [vmem:[#allocation5 + $0x348] sm:$0xff] }
 0x188   :  { %v1038_v48 = vmul.bf16 %v814_v39, %v590_v34  ;;  %v817_v51 = vld [vmem:[#allocation8 + $0x350] sm:$0xff]  ;;  %2613 = vmatpush1.bf16.msra.mxu0 %v6607_v31  ;;  %v1260_v52 = vadd.bf16 %v1036_v42, %v364_v32  ;;  %v1039_v53 = vmul.bf16 %v815_v50, %v591_v44  ;;  %v592_v56 = vld [vmem:[#allocation7 + $0x348] sm:$0xff]  ;;  %v594_v57 = vld [vmem:[#allocation7 + $0x358] sm:$0xff] }
 0x189   :  { %2776 = vmatprep.subr.bf16.mxu1 %v6610_v40  ;;  %v1041_v54 = vmul.bf16 %v817_v51, %v593_v45  ;;  %v6612_v58 = vcombine.high %v1259_v46, %v1261_v47  ;;  %v6611_v60 = vcombine.low %v1259_v46, %v1261_v47  ;;  %v370_v61 = vld [vmem:[#allocation5 + $0x358] sm:$0xff]  ;;  %v816_v62 = vld [vmem:[#allocation8 + $0x348] sm:$0xff]  ;;  %v371_v4 = vld [vmem:[#allocation5 + $0x360] sm:$0xff] }
 0x18a   :  { %v1262_v59 = vadd.bf16 %v1038_v48, %v366_v37  ;;  %v818_v63 = vld [vmem:[#allocation8 + $0x358] sm:$0xff]  ;;  %v1263_v0 = vadd.bf16 %v1039_v53, %v367_v43  ;;  %v1040_v2 = vmul.bf16 %v816_v62, %v592_v56  ;;  %v595_v5 = vld [vmem:[#allocation7 + $0x360] sm:$0xff]  ;;  %v597_v6 = vld [vmem:[#allocation7 + $0x370] sm:$0xff] }
 0x18b   :  { %2777 = vmatpush1.bf16.msra.mxu1 %v6609_v41  ;;  %v1265_v1 = vadd.bf16 %v1041_v54, %v369_v49  ;;  %v1042_v3 = vmul.bf16 %v818_v63, %v594_v57  ;;  %2614 = vmatprep.subr.bf16.mxu0 %v6612_v58  ;;  %v373_v9 = vld [vmem:[#allocation5 + $0x370] sm:$0xff]  ;;  %v819_v10 = vld [vmem:[#allocation8 + $0x360] sm:$0xff]  ;;  %v372_v16 = vld [vmem:[#allocation5 + $0x368] sm:$0xff] }
 0x18c   :  { %v6614_v7 = vcombine.high %v1260_v52, %v1262_v59  ;;  %v6613_v8 = vcombine.low %v1260_v52, %v1262_v59  ;;  %v821_v11 = vld [vmem:[#allocation8 + $0x370] sm:$0xff]  ;;  %2615 = vmatpush1.bf16.msra.mxu0 %v6611_v60  ;;  %v1264_v13 = vadd.bf16 %v1040_v2, %v368_v55  ;;  %v596_v17 = vld [vmem:[#allocation7 + $0x368] sm:$0xff]  ;;  %v598_v18 = vld [vmem:[#allocation7 + $0x378] sm:$0xff]  ;;  %v1043_v19 = vmul.bf16 %v819_v10, %v595_v5 }
 0x18d   :  { %v6616_v12 = vcombine.high %v1263_v0, %v1265_v1  ;;  %v1266_v14 = vadd.bf16 %v1042_v3, %v370_v61  ;;  %v6615_v15 = vcombine.low %v1263_v0, %v1265_v1  ;;  %v1045_v20 = vmul.bf16 %v821_v11, %v597_v6  ;;  %v374_v21 = vld [vmem:[#allocation5 + $0x378] sm:$0xff]  ;;  %v820_v22 = vld [vmem:[#allocation8 + $0x368] sm:$0xff]  ;;  %v375_v27 = vld [vmem:[#allocation5 + $0x380] sm:$0xff] }
 0x18e   :  { %2778 = vmatprep.subr.bf16.mxu1 %v6614_v7  ;;  %v822_v23 = vld [vmem:[#allocation8 + $0x378] sm:$0xff]  ;;  %v1044_v26 = vmul.bf16 %v820_v22, %v596_v17  ;;  %v599_v28 = vld [vmem:[#allocation7 + $0x380] sm:$0xff]  ;;  %v601_v29 = vld [vmem:[#allocation7 + $0x390] sm:$0xff]  ;;  %v1267_v30 = vadd.bf16 %v1043_v19, %v371_v4 }
 0x18f   :  { %2779 = vmatpush1.bf16.msra.mxu1 %v6613_v8  ;;  %2616 = vmatprep.subr.bf16.mxu0 %v6616_v12  ;;  %v6618_v24 = vcombine.high %v1264_v13, %v1266_v14  ;;  %v6617_v25 = vcombine.low %v1264_v13, %v1266_v14  ;;  %v1269_v31 = vadd.bf16 %v1045_v20, %v373_v9  ;;  %v377_v33 = vld [vmem:[#allocation5 + $0x390] sm:$0xff]  ;;  %v823_v34 = vld [vmem:[#allocation8 + $0x380] sm:$0xff]  ;;  %v376_v39 = vld [vmem:[#allocation5 + $0x388] sm:$0xff] }
 0x190   :  { %v1046_v32 = vmul.bf16 %v822_v23, %v598_v18  ;;  %v825_v35 = vld [vmem:[#allocation8 + $0x390] sm:$0xff]  ;;  %2617 = vmatpush1.bf16.msra.mxu0 %v6615_v15  ;;  %v1268_v36 = vadd.bf16 %v1044_v26, %v372_v16  ;;  %v1047_v37 = vmul.bf16 %v823_v34, %v599_v28  ;;  %v600_v40 = vld [vmem:[#allocation7 + $0x388] sm:$0xff]  ;;  %v602_v41 = vld [vmem:[#allocation7 + $0x398] sm:$0xff] }
 0x191   :  { %2780 = vmatprep.subr.bf16.mxu1 %v6618_v24  ;;  %v1049_v38 = vmul.bf16 %v825_v35, %v601_v29  ;;  %v6620_v42 = vcombine.high %v1267_v30, %v1269_v31  ;;  %v6619_v44 = vcombine.low %v1267_v30, %v1269_v31  ;;  %v378_v45 = vld [vmem:[#allocation5 + $0x398] sm:$0xff]  ;;  %v824_v46 = vld [vmem:[#allocation8 + $0x388] sm:$0xff]  ;;  %v379_v52 = vld [vmem:[#allocation5 + $0x3a0] sm:$0xff] }
 0x192   :  { %v1270_v43 = vadd.bf16 %v1046_v32, %v374_v21  ;;  %v826_v47 = vld [vmem:[#allocation8 + $0x398] sm:$0xff]  ;;  %v1271_v48 = vadd.bf16 %v1047_v37, %v375_v27  ;;  %v1048_v50 = vmul.bf16 %v824_v46, %v600_v40  ;;  %v603_v53 = vld [vmem:[#allocation7 + $0x3a0] sm:$0xff]  ;;  %v605_v54 = vld [vmem:[#allocation7 + $0x3b0] sm:$0xff] }
 0x193   :  { %2781 = vmatpush1.bf16.msra.mxu1 %v6617_v25  ;;  %v1273_v49 = vadd.bf16 %v1049_v38, %v377_v33  ;;  %v1050_v51 = vmul.bf16 %v826_v47, %v602_v41  ;;  %2618 = vmatprep.subr.bf16.mxu0 %v6620_v42  ;;  %v381_v57 = vld [vmem:[#allocation5 + $0x3b0] sm:$0xff]  ;;  %v827_v58 = vld [vmem:[#allocation8 + $0x3a0] sm:$0xff]  ;;  %v380_v0 = vld [vmem:[#allocation5 + $0x3a8] sm:$0xff] }
 0x194   :  { %v6622_v55 = vcombine.high %v1268_v36, %v1270_v43  ;;  %v6621_v56 = vcombine.low %v1268_v36, %v1270_v43  ;;  %v829_v59 = vld [vmem:[#allocation8 + $0x3b0] sm:$0xff]  ;;  %2619 = vmatpush1.bf16.msra.mxu0 %v6619_v44  ;;  %v1272_v61 = vadd.bf16 %v1048_v50, %v376_v39  ;;  %v604_v1 = vld [vmem:[#allocation7 + $0x3a8] sm:$0xff]  ;;  %v606_v2 = vld [vmem:[#allocation7 + $0x3b8] sm:$0xff]  ;;  %v1051_v3 = vmul.bf16 %v827_v58, %v603_v53 }
 0x195   :  { %v6624_v60 = vcombine.high %v1271_v48, %v1273_v49  ;;  %v1274_v62 = vadd.bf16 %v1050_v51, %v378_v45  ;;  %v6623_v63 = vcombine.low %v1271_v48, %v1273_v49  ;;  %v1053_v4 = vmul.bf16 %v829_v59, %v605_v54  ;;  %v382_v5 = vld [vmem:[#allocation5 + $0x3b8] sm:$0xff]  ;;  %v828_v6 = vld [vmem:[#allocation8 + $0x3a8] sm:$0xff]  ;;  %v383_v11 = vld [vmem:[#allocation5 + $0x3c0] sm:$0xff] }
 0x196   :  { %2782 = vmatprep.subr.bf16.mxu1 %v6622_v55  ;;  %v830_v7 = vld [vmem:[#allocation8 + $0x3b8] sm:$0xff]  ;;  %v1052_v10 = vmul.bf16 %v828_v6, %v604_v1  ;;  %v607_v12 = vld [vmem:[#allocation7 + $0x3c0] sm:$0xff]  ;;  %v609_v13 = vld [vmem:[#allocation7 + $0x3d0] sm:$0xff]  ;;  %v1275_v14 = vadd.bf16 %v1051_v3, %v379_v52 }
 0x197   :  { %2783 = vmatpush1.bf16.msra.mxu1 %v6621_v56  ;;  %2620 = vmatprep.subr.bf16.mxu0 %v6624_v60  ;;  %v6626_v8 = vcombine.high %v1272_v61, %v1274_v62  ;;  %v6625_v9 = vcombine.low %v1272_v61, %v1274_v62  ;;  %v1277_v15 = vadd.bf16 %v1053_v4, %v381_v57  ;;  %v385_v17 = vld [vmem:[#allocation5 + $0x3d0] sm:$0xff]  ;;  %v831_v18 = vld [vmem:[#allocation8 + $0x3c0] sm:$0xff]  ;;  %v384_v23 = vld [vmem:[#allocation5 + $0x3c8] sm:$0xff] }
 0x198   :  { %v1054_v16 = vmul.bf16 %v830_v7, %v606_v2  ;;  %v833_v19 = vld [vmem:[#allocation8 + $0x3d0] sm:$0xff]  ;;  %2621 = vmatpush1.bf16.msra.mxu0 %v6623_v63  ;;  %v1276_v20 = vadd.bf16 %v1052_v10, %v380_v0  ;;  %v1055_v21 = vmul.bf16 %v831_v18, %v607_v12  ;;  %v608_v24 = vld [vmem:[#allocation7 + $0x3c8] sm:$0xff]  ;;  %v610_v25 = vld [vmem:[#allocation7 + $0x3d8] sm:$0xff] }
 0x199   :  { %2784 = vmatprep.subr.bf16.mxu1 %v6626_v8  ;;  %v1057_v22 = vmul.bf16 %v833_v19, %v609_v13  ;;  %v6628_v26 = vcombine.high %v1275_v14, %v1277_v15  ;;  %v6627_v28 = vcombine.low %v1275_v14, %v1277_v15  ;;  %v386_v29 = vld [vmem:[#allocation5 + $0x3d8] sm:$0xff]  ;;  %v832_v30 = vld [vmem:[#allocation8 + $0x3c8] sm:$0xff]  ;;  %v387_v36 = vld [vmem:[#allocation5 + $0x3e0] sm:$0xff] }
 0x19a   :  { %v1278_v27 = vadd.bf16 %v1054_v16, %v382_v5  ;;  %v834_v31 = vld [vmem:[#allocation8 + $0x3d8] sm:$0xff]  ;;  %v1279_v32 = vadd.bf16 %v1055_v21, %v383_v11  ;;  %v1056_v34 = vmul.bf16 %v832_v30, %v608_v24  ;;  %v389_v37 = vld [vmem:[#allocation5 + $0x3f0] sm:$0xff]  ;;  %v611_v38 = vld [vmem:[#allocation7 + $0x3e0] sm:$0xff] }
 0x19b   :  { %2785 = vmatpush1.bf16.msra.mxu1 %v6625_v9  ;;  %v1281_v33 = vadd.bf16 %v1057_v22, %v385_v17  ;;  %v1058_v35 = vmul.bf16 %v834_v31, %v610_v25  ;;  %v613_v39 = vld [vmem:[#allocation7 + $0x3f0] sm:$0xff]  ;;  %2622 = vmatprep.subr.bf16.mxu0 %v6628_v26  ;;  %v835_v42 = vld [vmem:[#allocation8 + $0x3e0] sm:$0xff]  ;;  %v388_v44 = vld [vmem:[#allocation5 + $0x3e8] sm:$0xff] }
 0x19c   :  { %v6630_v40 = vcombine.high %v1276_v20, %v1278_v27  ;;  %v6629_v41 = vcombine.low %v1276_v20, %v1278_v27  ;;  %v837_v43 = vld [vmem:[#allocation8 + $0x3f0] sm:$0xff]  ;;  %2623 = vmatpush1.bf16.msra.mxu0 %v6627_v28  ;;  %v1280_v46 = vadd.bf16 %v1056_v34, %v384_v23  ;;  %v390_v49 = vld [vmem:[#allocation5 + $0x3f8] sm:$0xff]  ;;  %v612_v50 = vld [vmem:[#allocation7 + $0x3e8] sm:$0xff]  ;;  %v1059_v52 = vmul.bf16 %v835_v42, %v611_v38 }
 0x19d   :  { %v6632_v45 = vcombine.high %v1279_v32, %v1281_v33  ;;  %v1282_v47 = vadd.bf16 %v1058_v35, %v386_v29  ;;  %v6631_v48 = vcombine.low %v1279_v32, %v1281_v33  ;;  %v614_v51 = vld [vmem:[#allocation7 + $0x3f8] sm:$0xff]  ;;  %v1061_v53 = vmul.bf16 %v837_v43, %v613_v39  ;;  %v836_v54 = vld [vmem:[#allocation8 + $0x3e8] sm:$0xff]  ;;  %v259_v56 = vld [vmem:[#allocation2 + $0x18] sm:$0xff] }
 0x19e   :  { %2786 = vmatprep.subr.bf16.mxu1 %v6630_v40  ;;  %v838_v55 = vld [vmem:[#allocation8 + $0x3f8] sm:$0xff]  ;;  %v1060_v59 = vmul.bf16 %v836_v54, %v612_v50  ;;  %v391_v60 = vld [vmem:[#allocation5 + $0x400] sm:$0xff]  ;;  %v393_v61 = vld [vmem:[#allocation5 + $0x410] sm:$0xff]  ;;  %v1283_v63 = vadd.bf16 %v1059_v52, %v387_v36  ;;  %v1394_v2 = vpack.c.bf16 %v259_v56, %v259_v56 }
 0x19f   :  { %2787 = vmatpush1.bf16.msra.mxu1 %v6629_v41  ;;  %2624 = vmatprep.subr.bf16.mxu0 %v6632_v45  ;;  %v6634_v57 = vcombine.high %v1280_v46, %v1282_v47  ;;  %v6633_v58 = vcombine.low %v1280_v46, %v1282_v47  ;;  %v615_v62 = vld [vmem:[#allocation7 + $0x400] sm:$0xff]  ;;  %v1285_v0 = vadd.bf16 %v1061_v53, %v389_v37  ;;  %v617_v3 = vld [vmem:[#allocation7 + $0x410] sm:$0xff]  ;;  %v392_v9 = vld [vmem:[#allocation5 + $0x408] sm:$0xff] }
 0x1a0   :  { %v1062_v1 = vmul.bf16 %v838_v55, %v614_v51  ;;  %v839_v4 = vld [vmem:[#allocation8 + $0x400] sm:$0xff]  ;;  %v841_v5 = vld [vmem:[#allocation8 + $0x410] sm:$0xff]  ;;  %2625 = vmatpush1.bf16.msra.mxu0 %v6631_v48  ;;  %v1284_v6 = vadd.bf16 %v1060_v59, %v388_v44  ;;  %v394_v10 = vld [vmem:[#allocation5 + $0x418] sm:$0xff]  ;;  %2628 = vmatprep.mubr.bf16.mxu0 %v1394_v2 }
 0x1a1   :  { %2788 = vmatprep.subr.bf16.mxu1 %v6634_v57  ;;  %v1063_v7 = vmul.bf16 %v839_v4, %v615_v62  ;;  %v1065_v8 = vmul.bf16 %v841_v5, %v617_v3  ;;  %v616_v11 = vld [vmem:[#allocation7 + $0x408] sm:$0xff]  ;;  %v6636_v12 = vcombine.high %v1283_v63, %v1285_v0  ;;  %v6635_v14 = vcombine.low %v1283_v63, %v1285_v0  ;;  %v618_v15 = vld [vmem:[#allocation7 + $0x418] sm:$0xff]  ;;  %v395_v23 = vld [vmem:[#allocation5 + $0x420] sm:$0xff] }
 0x1a2   :  { %v1286_v13 = vadd.bf16 %v1062_v1, %v390_v49  ;;  %2792 = vmatprep.mubr.bf16.mxu1 %v1394_v2  ;;  %v840_v16 = vld [vmem:[#allocation8 + $0x408] sm:$0xff]  ;;  %v842_v17 = vld [vmem:[#allocation8 + $0x418] sm:$0xff]  ;;  %v619_v27 = vld [vmem:[#allocation7 + $0x420] sm:$0xff] }
 0x1a3   :  { %2789 = vmatpush1.bf16.msra.mxu1 %v6633_v58  ;;  %v1287_v18 = vadd.bf16 %v1063_v7, %v391_v60  ;;  %v1289_v19 = vadd.bf16 %v1065_v8, %v393_v61  ;;  %v1064_v20 = vmul.bf16 %v840_v16, %v616_v11  ;;  %v1066_v21 = vmul.bf16 %v842_v17, %v618_v15  ;;  %v258_v22 = vld [vmem:[#allocation2 + $0x10] sm:$0xff]  ;;  %v621_v28 = vld [vmem:[#allocation7 + $0x430] sm:$0xff]  ;;  %v843_v29 = vld [vmem:[#allocation8 + $0x420] sm:$0xff] }
 0x1a4   :  { %2626 = vmatprep.subr.bf16.mxu0 %v6636_v12  ;;  %v6638_v24 = vcombine.high %v1284_v6, %v1286_v13  ;;  %v6637_v25 = vcombine.low %v1284_v6, %v1286_v13  ;;  %v1393_v26 = vpack.c.bf16 %v258_v22, %v258_v22  ;;  %v397_v34 = vld [vmem:[#allocation5 + $0x430] sm:$0xff]  ;;  %v396_v36 = vld [vmem:[#allocation5 + $0x428] sm:$0xff]  ;;  %v1067_v37 = vmul.bf16 %v843_v29, %v619_v27  ;;  %v622_v40 = vld [vmem:[#allocation7 + $0x438] sm:$0xff] }
 0x1a5   :  { %2627 = vmatpush1.bf16.msra.mxu0 %v6635_v14  ;;  %v6640_v30 = vcombine.high %v1287_v18, %v1289_v19  ;;  %v1288_v31 = vadd.bf16 %v1064_v20, %v392_v9  ;;  %v1290_v32 = vadd.bf16 %v1066_v21, %v394_v10  ;;  %v6639_v33 = vcombine.low %v1287_v18, %v1289_v19  ;;  %v845_v35 = vld [vmem:[#allocation8 + $0x430] sm:$0xff]  ;;  %v620_v39 = vld [vmem:[#allocation7 + $0x428] sm:$0xff]  ;;  %v398_v44 = vld [vmem:[#allocation5 + $0x438] sm:$0xff] }
 0x1a6   :  { %2790 = vmatprep.subr.bf16.mxu1 %v6638_v24  ;;  %v1069_v38 = vmul.bf16 %v845_v35, %v621_v28  ;;  %v844_v41 = vld [vmem:[#allocation8 + $0x428] sm:$0xff]  ;;  %v846_v45 = vld [vmem:[#allocation8 + $0x438] sm:$0xff]  ;;  %v399_v47 = vld [vmem:[#allocation5 + $0x440] sm:$0xff]  ;;  %v1291_v48 = vadd.bf16 %v1067_v37, %v395_v23 }
 0x1a7   :  { %2791 = vmatpush1.bf16.msra.mxu1 %v6637_v25  ;;  %2637 = vmatprep.subr.bf16.mxu0 %v6640_v30  ;;  %v6642_v42 = vcombine.high %v1288_v31, %v1290_v32  ;;  %v6641_v43 = vcombine.low %v1288_v31, %v1290_v32  ;;  %v1068_v46 = vmul.bf16 %v844_v41, %v620_v39  ;;  %v623_v51 = vld [vmem:[#allocation7 + $0x440] sm:$0xff]  ;;  %v625_v52 = vld [vmem:[#allocation7 + $0x450] sm:$0xff]  ;;  %v400_v58 = vld [vmem:[#allocation5 + $0x448] sm:$0xff] }
 0x1a8   :  { %2629 = vmatmul.mubr.bf16.vlgmr.msra.gmra.mrb[0].mxu0 %v1393_v26  ;;  %v1293_v49 = vadd.bf16 %v1069_v38, %v397_v34  ;;  %v1070_v50 = vmul.bf16 %v846_v45, %v622_v40  ;;  %v847_v53 = vld [vmem:[#allocation8 + $0x440] sm:$0xff]  ;;  %v401_v55 = vld [vmem:[#allocation5 + $0x450] sm:$0xff]  ;;  %v624_v63 = vld [vmem:[#allocation7 + $0x448] sm:$0xff] }
 0x1a9   :  { %2801 = vmatprep.subr.bf16.mxu1 %v6642_v42  ;;  %2638 = vmatpush1.bf16.msra.mxu0 %v6639_v33  ;;  %v1292_v54 = vadd.bf16 %v1068_v46, %v396_v36  ;;  %v849_v56 = vld [vmem:[#allocation8 + $0x450] sm:$0xff]  ;;  %v1071_v57 = vmul.bf16 %v847_v53, %v623_v51  ;;  %v626_v0 = vld [vmem:[#allocation7 + $0x458] sm:$0xff]  ;;  %v848_v1 = vld [vmem:[#allocation8 + $0x448] sm:$0xff] }
 0x1aa   :  { %2793 = vmatmul.mubr.bf16.vlgmr.msra.gmra.mrb[0].mxu1 %v1393_v26  ;;  %v6644_v59 = vcombine.high %v1291_v48, %v1293_v49  ;;  %v1294_v60 = vadd.bf16 %v1070_v50, %v398_v44  ;;  %v6643_v61 = vcombine.low %v1291_v48, %v1293_v49  ;;  %v1073_v62 = vmul.bf16 %v849_v56, %v625_v52  ;;  %v402_v3 = vld [vmem:[#allocation5 + $0x458] sm:$0xff]  ;;  %v403_v6 = vld [vmem:[#allocation5 + $0x460] sm:$0xff]  ;;  %v629_v12 = vld [vmem:[#allocation7 + $0x470] sm:$0xff] }
 0x1ab   :  { %2802 = vmatpush1.bf16.msra.mxu1 %v6641_v43  ;;  %v1295_v2 = vadd.bf16 %v1071_v57, %v399_v47  ;;  %v850_v4 = vld [vmem:[#allocation8 + $0x458] sm:$0xff]  ;;  %v1072_v5 = vmul.bf16 %v848_v1, %v624_v63  ;;  %v627_v11 = vld [vmem:[#allocation7 + $0x460] sm:$0xff]  ;;  %v405_v15 = vld [vmem:[#allocation5 + $0x470] sm:$0xff] }
 0x1ac   :  { %2639 = vmatprep.subr.bf16.mxu0 %v6644_v59  ;;  %v6646_v7 = vcombine.high %v1292_v54, %v1294_v60  ;;  %v6645_v8 = vcombine.low %v1292_v54, %v1294_v60  ;;  %v1297_v9 = vadd.bf16 %v1073_v62, %v401_v55  ;;  %v1074_v10 = vmul.bf16 %v850_v4, %v626_v0  ;;  %v851_v13 = vld [vmem:[#allocation8 + $0x460] sm:$0xff]  ;;  %v853_v16 = vld [vmem:[#allocation8 + $0x470] sm:$0xff]  ;;  %v404_v18 = vld [vmem:[#allocation5 + $0x468] sm:$0xff] }
 0x1ad   :  { %2640 = vmatpush1.bf16.msra.mxu0 %v6643_v61  ;;  %v1296_v14 = vadd.bf16 %v1072_v5, %v400_v58  ;;  %v1075_v17 = vmul.bf16 %v851_v13, %v627_v11  ;;  %v1077_v22 = vmul.bf16 %v853_v16, %v629_v12  ;;  %v628_v23 = vld [vmem:[#allocation7 + $0x468] sm:$0xff]  ;;  %v630_v24 = vld [vmem:[#allocation7 + $0x478] sm:$0xff]  ;;  %v407_v30 = vld [vmem:[#allocation5 + $0x480] sm:$0xff] }
 0x1ae   :  { %2803 = vmatprep.subr.bf16.mxu1 %v6646_v7  ;;  %v6648_v19 = vcombine.high %v1295_v2, %v1297_v9  ;;  %v1298_v20 = vadd.bf16 %v1074_v10, %v402_v3  ;;  %v6647_v21 = vcombine.low %v1295_v2, %v1297_v9  ;;  %v852_v25 = vld [vmem:[#allocation8 + $0x468] sm:$0xff]  ;;  %v406_v27 = vld [vmem:[#allocation5 + $0x478] sm:$0xff]  ;;  %v631_v35 = vld [vmem:[#allocation7 + $0x480] sm:$0xff] }
 0x1af   :  { %2804 = vmatpush1.bf16.msra.mxu1 %v6645_v8  ;;  %v1299_v26 = vadd.bf16 %v1075_v17, %v403_v6  ;;  %v854_v28 = vld [vmem:[#allocation8 + $0x478] sm:$0xff]  ;;  %v1076_v29 = vmul.bf16 %v852_v25, %v628_v23  ;;  %v1301_v33 = vadd.bf16 %v1077_v22, %v405_v15  ;;  %v633_v36 = vld [vmem:[#allocation7 + $0x490] sm:$0xff]  ;;  %v855_v37 = vld [vmem:[#allocation8 + $0x480] sm:$0xff] }
 0x1b0   :  { %2641 = vmatprep.subr.bf16.mxu0 %v6648_v19  ;;  %v6650_v31 = vcombine.high %v1296_v14, %v1298_v20  ;;  %v6649_v32 = vcombine.low %v1296_v14, %v1298_v20  ;;  %v1078_v34 = vmul.bf16 %v854_v28, %v630_v24  ;;  %v409_v39 = vld [vmem:[#allocation5 + $0x490] sm:$0xff]  ;;  %v1079_v41 = vmul.bf16 %v855_v37, %v631_v35  ;;  %v408_v42 = vld [vmem:[#allocation5 + $0x488] sm:$0xff]  ;;  %v634_v48 = vld [vmem:[#allocation7 + $0x498] sm:$0xff] }
 0x1b1   :  { %2642 = vmatpush1.bf16.msra.mxu0 %v6647_v21  ;;  %v1300_v38 = vadd.bf16 %v1076_v29, %v404_v18  ;;  %v857_v40 = vld [vmem:[#allocation8 + $0x490] sm:$0xff]  ;;  %v6652_v43 = vcombine.high %v1299_v26, %v1301_v33  ;;  %v6651_v45 = vcombine.low %v1299_v26, %v1301_v33  ;;  %v632_v47 = vld [vmem:[#allocation7 + $0x488] sm:$0xff]  ;;  %v410_v51 = vld [vmem:[#allocation5 + $0x498] sm:$0xff] }
 0x1b2   :  { %2805 = vmatprep.subr.bf16.mxu1 %v6650_v31  ;;  %v1302_v44 = vadd.bf16 %v1078_v34, %v406_v27  ;;  %v1081_v46 = vmul.bf16 %v857_v40, %v633_v36  ;;  %v856_v49 = vld [vmem:[#allocation8 + $0x488] sm:$0xff]  ;;  %v1303_v50 = vadd.bf16 %v1079_v41, %v407_v30  ;;  %v858_v52 = vld [vmem:[#allocation8 + $0x498] sm:$0xff]  ;;  %v411_v54 = vld [vmem:[#allocation5 + $0x4a0] sm:$0xff] }
 0x1b3   :  { %2806 = vmatpush1.bf16.msra.mxu1 %v6649_v32  ;;  %v1080_v53 = vmul.bf16 %v856_v49, %v632_v47  ;;  %2643 = vmatprep.subr.bf16.mxu0 %v6652_v43  ;;  %v1082_v58 = vmul.bf16 %v858_v52, %v634_v48  ;;  %v635_v59 = vld [vmem:[#allocation7 + $0x4a0] sm:$0xff]  ;;  %v637_v60 = vld [vmem:[#allocation7 + $0x4b0] sm:$0xff]  ;;  %v412_v2 = vld [vmem:[#allocation5 + $0x4a8] sm:$0xff] }
 0x1b4   :  { %v6654_v55 = vcombine.high %v1300_v38, %v1302_v44  ;;  %v6653_v56 = vcombine.low %v1300_v38, %v1302_v44  ;;  %v1305_v57 = vadd.bf16 %v1081_v46, %v409_v39  ;;  %v859_v61 = vld [vmem:[#allocation8 + $0x4a0] sm:$0xff]  ;;  %v413_v63 = vld [vmem:[#allocation5 + $0x4b0] sm:$0xff]  ;;  %v636_v7 = vld [vmem:[#allocation7 + $0x4a8] sm:$0xff] }
 0x1b5   :  { %2644 = vmatpush1.bf16.msra.mxu0 %v6651_v45  ;;  %v1304_v62 = vadd.bf16 %v1080_v53, %v408_v42  ;;  %v861_v0 = vld [vmem:[#allocation8 + $0x4b0] sm:$0xff]  ;;  %v1083_v1 = vmul.bf16 %v859_v61, %v635_v59  ;;  %v1306_v4 = vadd.bf16 %v1082_v58, %v410_v51  ;;  %v638_v8 = vld [vmem:[#allocation7 + $0x4b8] sm:$0xff]  ;;  %v860_v9 = vld [vmem:[#allocation8 + $0x4a8] sm:$0xff] }
 0x1b6   :  { %2807 = vmatprep.subr.bf16.mxu1 %v6654_v55  ;;  %v6656_v3 = vcombine.high %v1303_v50, %v1305_v57  ;;  %v6655_v5 = vcombine.low %v1303_v50, %v1305_v57  ;;  %v1085_v6 = vmul.bf16 %v861_v0, %v637_v60  ;;  %v414_v11 = vld [vmem:[#allocation5 + $0x4b8] sm:$0xff]  ;;  %v1084_v13 = vmul.bf16 %v860_v9, %v636_v7  ;;  %v415_v14 = vld [vmem:[#allocation5 + $0x4c0] sm:$0xff]  ;;  %v641_v20 = vld [vmem:[#allocation7 + $0x4d0] sm:$0xff] }
 0x1b7   :  { %2808 = vmatpush1.bf16.msra.mxu1 %v6653_v56  ;;  %v1307_v10 = vadd.bf16 %v1083_v1, %v411_v54  ;;  %v862_v12 = vld [vmem:[#allocation8 + $0x4b8] sm:$0xff]  ;;  %v6658_v15 = vcombine.high %v1304_v62, %v1306_v4  ;;  %v6657_v16 = vcombine.low %v1304_v62, %v1306_v4  ;;  %v639_v19 = vld [vmem:[#allocation7 + $0x4c0] sm:$0xff]  ;;  %v417_v23 = vld [vmem:[#allocation5 + $0x4d0] sm:$0xff] }
 0x1b8   :  { %2645 = vmatprep.subr.bf16.mxu0 %v6656_v3  ;;  %v1309_v17 = vadd.bf16 %v1085_v6, %v413_v63  ;;  %v1086_v18 = vmul.bf16 %v862_v12, %v638_v8  ;;  %v863_v21 = vld [vmem:[#allocation8 + $0x4c0] sm:$0xff]  ;;  %v1308_v22 = vadd.bf16 %v1084_v13, %v412_v2  ;;  %v865_v24 = vld [vmem:[#allocation8 + $0x4d0] sm:$0xff]  ;;  %v416_v26 = vld [vmem:[#allocation5 + $0x4c8] sm:$0xff] }
 0x1b9   :  { %2646 = vmatpush1.bf16.msra.mxu0 %v6655_v5  ;;  %v1087_v25 = vmul.bf16 %v863_v21, %v639_v19  ;;  %2809 = vmatprep.subr.bf16.mxu1 %v6658_v15  ;;  %v1089_v30 = vmul.bf16 %v865_v24, %v641_v20  ;;  %v640_v31 = vld [vmem:[#allocation7 + $0x4c8] sm:$0xff]  ;;  %v642_v32 = vld [vmem:[#allocation7 + $0x4d8] sm:$0xff]  ;;  %v419_v38 = vld [vmem:[#allocation5 + $0x4e0] sm:$0xff] }
 0x1ba   :  { %v6660_v27 = vcombine.high %v1307_v10, %v1309_v17  ;;  %v1310_v28 = vadd.bf16 %v1086_v18, %v414_v11  ;;  %v6659_v29 = vcombine.low %v1307_v10, %v1309_v17  ;;  %v864_v33 = vld [vmem:[#allocation8 + $0x4c8] sm:$0xff]  ;;  %v418_v35 = vld [vmem:[#allocation5 + $0x4d8] sm:$0xff]  ;;  %v643_v43 = vld [vmem:[#allocation7 + $0x4e0] sm:$0xff] }
 0x1bb   :  { %2810 = vmatpush1.bf16.msra.mxu1 %v6657_v16  ;;  %v1311_v34 = vadd.bf16 %v1087_v25, %v415_v14  ;;  %v866_v36 = vld [vmem:[#allocation8 + $0x4d8] sm:$0xff]  ;;  %v1088_v37 = vmul.bf16 %v864_v33, %v640_v31  ;;  %v1313_v41 = vadd.bf16 %v1089_v30, %v417_v23  ;;  %v645_v44 = vld [vmem:[#allocation7 + $0x4f0] sm:$0xff]  ;;  %v867_v45 = vld [vmem:[#allocation8 + $0x4e0] sm:$0xff] }
 0x1bc   :  { %2647 = vmatprep.subr.bf16.mxu0 %v6660_v27  ;;  %v6662_v39 = vcombine.high %v1308_v22, %v1310_v28  ;;  %v6661_v40 = vcombine.low %v1308_v22, %v1310_v28  ;;  %v1090_v42 = vmul.bf16 %v866_v36, %v642_v32  ;;  %v421_v47 = vld [vmem:[#allocation5 + $0x4f0] sm:$0xff]  ;;  %v1091_v49 = vmul.bf16 %v867_v45, %v643_v43  ;;  %v420_v50 = vld [vmem:[#allocation5 + $0x4e8] sm:$0xff]  ;;  %v646_v56 = vld [vmem:[#allocation7 + $0x4f8] sm:$0xff] }
 0x1bd   :  { %2648 = vmatpush1.bf16.msra.mxu0 %v6659_v29  ;;  %v1312_v46 = vadd.bf16 %v1088_v37, %v416_v26  ;;  %v869_v48 = vld [vmem:[#allocation8 + $0x4f0] sm:$0xff]  ;;  %v6664_v51 = vcombine.high %v1311_v34, %v1313_v41  ;;  %v6663_v53 = vcombine.low %v1311_v34, %v1313_v41  ;;  %v644_v55 = vld [vmem:[#allocation7 + $0x4e8] sm:$0xff]  ;;  %v422_v59 = vld [vmem:[#allocation5 + $0x4f8] sm:$0xff] }
 0x1be   :  { %2811 = vmatprep.subr.bf16.mxu1 %v6662_v39  ;;  %v1314_v52 = vadd.bf16 %v1090_v42, %v418_v35  ;;  %v1093_v54 = vmul.bf16 %v869_v48, %v645_v44  ;;  %v868_v57 = vld [vmem:[#allocation8 + $0x4e8] sm:$0xff]  ;;  %v1315_v58 = vadd.bf16 %v1091_v49, %v419_v38  ;;  %v870_v60 = vld [vmem:[#allocation8 + $0x4f8] sm:$0xff]  ;;  %v423_v62 = vld [vmem:[#allocation5 + $0x500] sm:$0xff] }
 0x1bf   :  { %2812 = vmatpush1.bf16.msra.mxu1 %v6661_v40  ;;  %v1092_v61 = vmul.bf16 %v868_v57, %v644_v55  ;;  %2649 = vmatprep.subr.bf16.mxu0 %v6664_v51  ;;  %v1094_v2 = vmul.bf16 %v870_v60, %v646_v56  ;;  %v647_v3 = vld [vmem:[#allocation7 + $0x500] sm:$0xff]  ;;  %v649_v4 = vld [vmem:[#allocation7 + $0x510] sm:$0xff]  ;;  %v424_v10 = vld [vmem:[#allocation5 + $0x508] sm:$0xff] }
 0x1c0   :  { %v6666_v63 = vcombine.high %v1312_v46, %v1314_v52  ;;  %v6665_v0 = vcombine.low %v1312_v46, %v1314_v52  ;;  %v1317_v1 = vadd.bf16 %v1093_v54, %v421_v47  ;;  %v871_v5 = vld [vmem:[#allocation8 + $0x500] sm:$0xff]  ;;  %v425_v7 = vld [vmem:[#allocation5 + $0x510] sm:$0xff]  ;;  %v648_v15 = vld [vmem:[#allocation7 + $0x508] sm:$0xff] }
 0x1c1   :  { %2650 = vmatpush1.bf16.msra.mxu0 %v6663_v53  ;;  %v1316_v6 = vadd.bf16 %v1092_v61, %v420_v50  ;;  %v873_v8 = vld [vmem:[#allocation8 + $0x510] sm:$0xff]  ;;  %v1095_v9 = vmul.bf16 %v871_v5, %v647_v3  ;;  %v1318_v12 = vadd.bf16 %v1094_v2, %v422_v59  ;;  %v650_v16 = vld [vmem:[#allocation7 + $0x518] sm:$0xff]  ;;  %v872_v17 = vld [vmem:[#allocation8 + $0x508] sm:$0xff] }
 0x1c2   :  { %2813 = vmatprep.subr.bf16.mxu1 %v6666_v63  ;;  %v6668_v11 = vcombine.high %v1315_v58, %v1317_v1  ;;  %v6667_v13 = vcombine.low %v1315_v58, %v1317_v1  ;;  %v1097_v14 = vmul.bf16 %v873_v8, %v649_v4  ;;  %v426_v19 = vld [vmem:[#allocation5 + $0x518] sm:$0xff]  ;;  %v1096_v21 = vmul.bf16 %v872_v17, %v648_v15  ;;  %v427_v22 = vld [vmem:[#allocation5 + $0x520] sm:$0xff]  ;;  %v653_v28 = vld [vmem:[#allocation7 + $0x530] sm:$0xff] }
 0x1c3   :  { %2814 = vmatpush1.bf16.msra.mxu1 %v6665_v0  ;;  %v1319_v18 = vadd.bf16 %v1095_v9, %v423_v62  ;;  %v874_v20 = vld [vmem:[#allocation8 + $0x518] sm:$0xff]  ;;  %v6670_v23 = vcombine.high %v1316_v6, %v1318_v12  ;;  %v6669_v24 = vcombine.low %v1316_v6, %v1318_v12  ;;  %v651_v27 = vld [vmem:[#allocation7 + $0x520] sm:$0xff]  ;;  %v429_v31 = vld [vmem:[#allocation5 + $0x530] sm:$0xff] }
 0x1c4   :  { %2651 = vmatprep.subr.bf16.mxu0 %v6668_v11  ;;  %v1321_v25 = vadd.bf16 %v1097_v14, %v425_v7  ;;  %v1098_v26 = vmul.bf16 %v874_v20, %v650_v16  ;;  %v875_v29 = vld [vmem:[#allocation8 + $0x520] sm:$0xff]  ;;  %v1320_v30 = vadd.bf16 %v1096_v21, %v424_v10  ;;  %v877_v32 = vld [vmem:[#allocation8 + $0x530] sm:$0xff]  ;;  %v428_v34 = vld [vmem:[#allocation5 + $0x528] sm:$0xff] }
 0x1c5   :  { %2652 = vmatpush1.bf16.msra.mxu0 %v6667_v13  ;;  %v1099_v33 = vmul.bf16 %v875_v29, %v651_v27  ;;  %2815 = vmatprep.subr.bf16.mxu1 %v6670_v23  ;;  %v1101_v38 = vmul.bf16 %v877_v32, %v653_v28  ;;  %v652_v39 = vld [vmem:[#allocation7 + $0x528] sm:$0xff]  ;;  %v654_v40 = vld [vmem:[#allocation7 + $0x538] sm:$0xff]  ;;  %v431_v46 = vld [vmem:[#allocation5 + $0x540] sm:$0xff] }
 0x1c6   :  { %v6672_v35 = vcombine.high %v1319_v18, %v1321_v25  ;;  %v1322_v36 = vadd.bf16 %v1098_v26, %v426_v19  ;;  %v6671_v37 = vcombine.low %v1319_v18, %v1321_v25  ;;  %v876_v41 = vld [vmem:[#allocation8 + $0x528] sm:$0xff]  ;;  %v430_v43 = vld [vmem:[#allocation5 + $0x538] sm:$0xff]  ;;  %v655_v51 = vld [vmem:[#allocation7 + $0x540] sm:$0xff] }
 0x1c7   :  { %2816 = vmatpush1.bf16.msra.mxu1 %v6669_v24  ;;  %v1323_v42 = vadd.bf16 %v1099_v33, %v427_v22  ;;  %v878_v44 = vld [vmem:[#allocation8 + $0x538] sm:$0xff]  ;;  %v1100_v45 = vmul.bf16 %v876_v41, %v652_v39  ;;  %v1325_v49 = vadd.bf16 %v1101_v38, %v429_v31  ;;  %v657_v52 = vld [vmem:[#allocation7 + $0x550] sm:$0xff]  ;;  %v879_v53 = vld [vmem:[#allocation8 + $0x540] sm:$0xff] }
 0x1c8   :  { %2653 = vmatprep.subr.bf16.mxu0 %v6672_v35  ;;  %v6674_v47 = vcombine.high %v1320_v30, %v1322_v36  ;;  %v6673_v48 = vcombine.low %v1320_v30, %v1322_v36  ;;  %v1102_v50 = vmul.bf16 %v878_v44, %v654_v40  ;;  %v433_v55 = vld [vmem:[#allocation5 + $0x550] sm:$0xff]  ;;  %v1103_v57 = vmul.bf16 %v879_v53, %v655_v51  ;;  %v432_v58 = vld [vmem:[#allocation5 + $0x548] sm:$0xff]  ;;  %v658_v0 = vld [vmem:[#allocation7 + $0x558] sm:$0xff] }
 0x1c9   :  { %2654 = vmatpush1.bf16.msra.mxu0 %v6671_v37  ;;  %v1324_v54 = vadd.bf16 %v1100_v45, %v428_v34  ;;  %v881_v56 = vld [vmem:[#allocation8 + $0x550] sm:$0xff]  ;;  %v6676_v59 = vcombine.high %v1323_v42, %v1325_v49  ;;  %v6675_v61 = vcombine.low %v1323_v42, %v1325_v49  ;;  %v656_v63 = vld [vmem:[#allocation7 + $0x548] sm:$0xff]  ;;  %v434_v3 = vld [vmem:[#allocation5 + $0x558] sm:$0xff] }
 0x1ca   :  { %2817 = vmatprep.subr.bf16.mxu1 %v6674_v47  ;;  %v1326_v60 = vadd.bf16 %v1102_v50, %v430_v43  ;;  %v1105_v62 = vmul.bf16 %v881_v56, %v657_v52  ;;  %v880_v1 = vld [vmem:[#allocation8 + $0x548] sm:$0xff]  ;;  %v1327_v2 = vadd.bf16 %v1103_v57, %v431_v46  ;;  %v882_v4 = vld [vmem:[#allocation8 + $0x558] sm:$0xff]  ;;  %v435_v6 = vld [vmem:[#allocation5 + $0x560] sm:$0xff] }
 0x1cb   :  { %2818 = vmatpush1.bf16.msra.mxu1 %v6673_v48  ;;  %v1104_v5 = vmul.bf16 %v880_v1, %v656_v63  ;;  %2655 = vmatprep.subr.bf16.mxu0 %v6676_v59  ;;  %v1106_v10 = vmul.bf16 %v882_v4, %v658_v0  ;;  %v659_v11 = vld [vmem:[#allocation7 + $0x560] sm:$0xff]  ;;  %v661_v12 = vld [vmem:[#allocation7 + $0x570] sm:$0xff]  ;;  %v436_v18 = vld [vmem:[#allocation5 + $0x568] sm:$0xff] }
 0x1cc   :  { %v6678_v7 = vcombine.high %v1324_v54, %v1326_v60  ;;  %v6677_v8 = vcombine.low %v1324_v54, %v1326_v60  ;;  %v1329_v9 = vadd.bf16 %v1105_v62, %v433_v55  ;;  %v883_v13 = vld [vmem:[#allocation8 + $0x560] sm:$0xff]  ;;  %v437_v15 = vld [vmem:[#allocation5 + $0x570] sm:$0xff]  ;;  %v660_v23 = vld [vmem:[#allocation7 + $0x568] sm:$0xff] }
 0x1cd   :  { %2656 = vmatpush1.bf16.msra.mxu0 %v6675_v61  ;;  %v1328_v14 = vadd.bf16 %v1104_v5, %v432_v58  ;;  %v885_v16 = vld [vmem:[#allocation8 + $0x570] sm:$0xff]  ;;  %v1107_v17 = vmul.bf16 %v883_v13, %v659_v11  ;;  %v1330_v20 = vadd.bf16 %v1106_v10, %v434_v3  ;;  %v662_v24 = vld [vmem:[#allocation7 + $0x578] sm:$0xff]  ;;  %v884_v25 = vld [vmem:[#allocation8 + $0x568] sm:$0xff] }
 0x1ce   :  { %2819 = vmatprep.subr.bf16.mxu1 %v6678_v7  ;;  %v6680_v19 = vcombine.high %v1327_v2, %v1329_v9  ;;  %v6679_v21 = vcombine.low %v1327_v2, %v1329_v9  ;;  %v1109_v22 = vmul.bf16 %v885_v16, %v661_v12  ;;  %v438_v27 = vld [vmem:[#allocation5 + $0x578] sm:$0xff]  ;;  %v1108_v29 = vmul.bf16 %v884_v25, %v660_v23  ;;  %v439_v30 = vld [vmem:[#allocation5 + $0x580] sm:$0xff]  ;;  %v665_v36 = vld [vmem:[#allocation7 + $0x590] sm:$0xff] }
 0x1cf   :  { %2820 = vmatpush1.bf16.msra.mxu1 %v6677_v8  ;;  %v1331_v26 = vadd.bf16 %v1107_v17, %v435_v6  ;;  %v886_v28 = vld [vmem:[#allocation8 + $0x578] sm:$0xff]  ;;  %v6682_v31 = vcombine.high %v1328_v14, %v1330_v20  ;;  %v6681_v32 = vcombine.low %v1328_v14, %v1330_v20  ;;  %v663_v35 = vld [vmem:[#allocation7 + $0x580] sm:$0xff]  ;;  %v441_v39 = vld [vmem:[#allocation5 + $0x590] sm:$0xff] }
 0x1d0   :  { %2657 = vmatprep.subr.bf16.mxu0 %v6680_v19  ;;  %v1333_v33 = vadd.bf16 %v1109_v22, %v437_v15  ;;  %v1110_v34 = vmul.bf16 %v886_v28, %v662_v24  ;;  %v887_v37 = vld [vmem:[#allocation8 + $0x580] sm:$0xff]  ;;  %v1332_v38 = vadd.bf16 %v1108_v29, %v436_v18  ;;  %v889_v40 = vld [vmem:[#allocation8 + $0x590] sm:$0xff]  ;;  %v440_v42 = vld [vmem:[#allocation5 + $0x588] sm:$0xff] }
 0x1d1   :  { %2658 = vmatpush1.bf16.msra.mxu0 %v6679_v21  ;;  %v1111_v41 = vmul.bf16 %v887_v37, %v663_v35  ;;  %2821 = vmatprep.subr.bf16.mxu1 %v6682_v31  ;;  %v1113_v46 = vmul.bf16 %v889_v40, %v665_v36  ;;  %v664_v47 = vld [vmem:[#allocation7 + $0x588] sm:$0xff]  ;;  %v666_v48 = vld [vmem:[#allocation7 + $0x598] sm:$0xff]  ;;  %v443_v54 = vld [vmem:[#allocation5 + $0x5a0] sm:$0xff] }
 0x1d2   :  { %v6684_v43 = vcombine.high %v1331_v26, %v1333_v33  ;;  %v1334_v44 = vadd.bf16 %v1110_v34, %v438_v27  ;;  %v6683_v45 = vcombine.low %v1331_v26, %v1333_v33  ;;  %v888_v49 = vld [vmem:[#allocation8 + $0x588] sm:$0xff]  ;;  %v442_v51 = vld [vmem:[#allocation5 + $0x598] sm:$0xff]  ;;  %v667_v59 = vld [vmem:[#allocation7 + $0x5a0] sm:$0xff] }
 0x1d3   :  { %2822 = vmatpush1.bf16.msra.mxu1 %v6681_v32  ;;  %v1335_v50 = vadd.bf16 %v1111_v41, %v439_v30  ;;  %v890_v52 = vld [vmem:[#allocation8 + $0x598] sm:$0xff]  ;;  %v1112_v53 = vmul.bf16 %v888_v49, %v664_v47  ;;  %v1337_v57 = vadd.bf16 %v1113_v46, %v441_v39  ;;  %v669_v60 = vld [vmem:[#allocation7 + $0x5b0] sm:$0xff]  ;;  %v891_v61 = vld [vmem:[#allocation8 + $0x5a0] sm:$0xff] }
 0x1d4   :  { %2659 = vmatprep.subr.bf16.mxu0 %v6684_v43  ;;  %v6686_v55 = vcombine.high %v1332_v38, %v1334_v44  ;;  %v6685_v56 = vcombine.low %v1332_v38, %v1334_v44  ;;  %v1114_v58 = vmul.bf16 %v890_v52, %v666_v48  ;;  %v445_v63 = vld [vmem:[#allocation5 + $0x5b0] sm:$0xff]  ;;  %v1115_v1 = vmul.bf16 %v891_v61, %v667_v59  ;;  %v444_v2 = vld [vmem:[#allocation5 + $0x5a8] sm:$0xff]  ;;  %v670_v8 = vld [vmem:[#allocation7 + $0x5b8] sm:$0xff] }
 0x1d5   :  { %2660 = vmatpush1.bf16.msra.mxu0 %v6683_v45  ;;  %v1336_v62 = vadd.bf16 %v1112_v53, %v440_v42  ;;  %v893_v0 = vld [vmem:[#allocation8 + $0x5b0] sm:$0xff]  ;;  %v6688_v3 = vcombine.high %v1335_v50, %v1337_v57  ;;  %v6687_v5 = vcombine.low %v1335_v50, %v1337_v57  ;;  %v668_v7 = vld [vmem:[#allocation7 + $0x5a8] sm:$0xff]  ;;  %v446_v11 = vld [vmem:[#allocation5 + $0x5b8] sm:$0xff] }
 0x1d6   :  { %2823 = vmatprep.subr.bf16.mxu1 %v6686_v55  ;;  %v1338_v4 = vadd.bf16 %v1114_v58, %v442_v51  ;;  %v1117_v6 = vmul.bf16 %v893_v0, %v669_v60  ;;  %v892_v9 = vld [vmem:[#allocation8 + $0x5a8] sm:$0xff]  ;;  %v1339_v10 = vadd.bf16 %v1115_v1, %v443_v54  ;;  %v894_v12 = vld [vmem:[#allocation8 + $0x5b8] sm:$0xff]  ;;  %v447_v14 = vld [vmem:[#allocation5 + $0x5c0] sm:$0xff] }
 0x1d7   :  { %2824 = vmatpush1.bf16.msra.mxu1 %v6685_v56  ;;  %v1116_v13 = vmul.bf16 %v892_v9, %v668_v7  ;;  %2661 = vmatprep.subr.bf16.mxu0 %v6688_v3  ;;  %v1118_v18 = vmul.bf16 %v894_v12, %v670_v8  ;;  %v671_v19 = vld [vmem:[#allocation7 + $0x5c0] sm:$0xff]  ;;  %v673_v20 = vld [vmem:[#allocation7 + $0x5d0] sm:$0xff]  ;;  %v448_v26 = vld [vmem:[#allocation5 + $0x5c8] sm:$0xff] }
 0x1d8   :  { %v6690_v15 = vcombine.high %v1336_v62, %v1338_v4  ;;  %v6689_v16 = vcombine.low %v1336_v62, %v1338_v4  ;;  %v1341_v17 = vadd.bf16 %v1117_v6, %v445_v63  ;;  %v895_v21 = vld [vmem:[#allocation8 + $0x5c0] sm:$0xff]  ;;  %v449_v23 = vld [vmem:[#allocation5 + $0x5d0] sm:$0xff]  ;;  %v672_v31 = vld [vmem:[#allocation7 + $0x5c8] sm:$0xff] }
 0x1d9   :  { %2662 = vmatpush1.bf16.msra.mxu0 %v6687_v5  ;;  %v1340_v22 = vadd.bf16 %v1116_v13, %v444_v2  ;;  %v897_v24 = vld [vmem:[#allocation8 + $0x5d0] sm:$0xff]  ;;  %v1119_v25 = vmul.bf16 %v895_v21, %v671_v19  ;;  %v1342_v28 = vadd.bf16 %v1118_v18, %v446_v11  ;;  %v674_v32 = vld [vmem:[#allocation7 + $0x5d8] sm:$0xff]  ;;  %v896_v33 = vld [vmem:[#allocation8 + $0x5c8] sm:$0xff] }
 0x1da   :  { %2825 = vmatprep.subr.bf16.mxu1 %v6690_v15  ;;  %v6692_v27 = vcombine.high %v1339_v10, %v1341_v17  ;;  %v6691_v29 = vcombine.low %v1339_v10, %v1341_v17  ;;  %v1121_v30 = vmul.bf16 %v897_v24, %v673_v20  ;;  %v450_v35 = vld [vmem:[#allocation5 + $0x5d8] sm:$0xff]  ;;  %v1120_v37 = vmul.bf16 %v896_v33, %v672_v31  ;;  %v451_v38 = vld [vmem:[#allocation5 + $0x5e0] sm:$0xff]  ;;  %v677_v44 = vld [vmem:[#allocation7 + $0x5f0] sm:$0xff] }
 0x1db   :  { %2826 = vmatpush1.bf16.msra.mxu1 %v6689_v16  ;;  %v1343_v34 = vadd.bf16 %v1119_v25, %v447_v14  ;;  %v898_v36 = vld [vmem:[#allocation8 + $0x5d8] sm:$0xff]  ;;  %v6694_v39 = vcombine.high %v1340_v22, %v1342_v28  ;;  %v6693_v40 = vcombine.low %v1340_v22, %v1342_v28  ;;  %v675_v43 = vld [vmem:[#allocation7 + $0x5e0] sm:$0xff]  ;;  %v453_v47 = vld [vmem:[#allocation5 + $0x5f0] sm:$0xff] }
 0x1dc   :  { %2663 = vmatprep.subr.bf16.mxu0 %v6692_v27  ;;  %v1345_v41 = vadd.bf16 %v1121_v30, %v449_v23  ;;  %v1122_v42 = vmul.bf16 %v898_v36, %v674_v32  ;;  %v899_v45 = vld [vmem:[#allocation8 + $0x5e0] sm:$0xff]  ;;  %v1344_v46 = vadd.bf16 %v1120_v37, %v448_v26  ;;  %v901_v48 = vld [vmem:[#allocation8 + $0x5f0] sm:$0xff]  ;;  %v452_v50 = vld [vmem:[#allocation5 + $0x5e8] sm:$0xff] }
 0x1dd   :  { %2664 = vmatpush1.bf16.msra.mxu0 %v6691_v29  ;;  %v1123_v49 = vmul.bf16 %v899_v45, %v675_v43  ;;  %2827 = vmatprep.subr.bf16.mxu1 %v6694_v39  ;;  %v1125_v54 = vmul.bf16 %v901_v48, %v677_v44  ;;  %v676_v55 = vld [vmem:[#allocation7 + $0x5e8] sm:$0xff]  ;;  %v678_v56 = vld [vmem:[#allocation7 + $0x5f8] sm:$0xff]  ;;  %v261_v62 = vld [vmem:[#allocation2 + $0x28] sm:$0xff] }
 0x1de   :  { %v6696_v51 = vcombine.high %v1343_v34, %v1345_v41  ;;  %v1346_v52 = vadd.bf16 %v1122_v42, %v450_v35  ;;  %v6695_v53 = vcombine.low %v1343_v34, %v1345_v41  ;;  %v900_v57 = vld [vmem:[#allocation8 + $0x5e8] sm:$0xff]  ;;  %v454_v59 = vld [vmem:[#allocation5 + $0x5f8] sm:$0xff]  ;;  %v455_v3 = vld [vmem:[#allocation5 + $0x600] sm:$0xff]  ;;  %v1396_v7 = vpack.c.bf16 %v261_v62, %v261_v62 }
 0x1df   :  { %2828 = vmatpush1.bf16.msra.mxu1 %v6693_v40  ;;  %v1347_v58 = vadd.bf16 %v1123_v49, %v451_v38  ;;  %v902_v60 = vld [vmem:[#allocation8 + $0x5f8] sm:$0xff]  ;;  %v1124_v61 = vmul.bf16 %v900_v57, %v676_v55  ;;  %v1349_v1 = vadd.bf16 %v1125_v54, %v453_v47  ;;  %v679_v4 = vld [vmem:[#allocation7 + $0x600] sm:$0xff]  ;;  %v681_v5 = vld [vmem:[#allocation7 + $0x610] sm:$0xff] }
 0x1e0   :  { %2665 = vmatprep.subr.bf16.mxu0 %v6696_v51  ;;  %v6698_v63 = vcombine.high %v1344_v46, %v1346_v52  ;;  %v6697_v0 = vcombine.low %v1344_v46, %v1346_v52  ;;  %v1126_v2 = vmul.bf16 %v902_v60, %v678_v56  ;;  %v457_v8 = vld [vmem:[#allocation5 + $0x610] sm:$0xff]  ;;  %v903_v9 = vld [vmem:[#allocation8 + $0x600] sm:$0xff]  ;;  %v456_v15 = vld [vmem:[#allocation5 + $0x608] sm:$0xff]  ;;  %2669 = vmatprep.mubr.bf16.mxu0 %v1396_v7  ;;  %v7479_v60 = vmov 0  }
 0x1e1   :  { %2666 = vmatpush1.bf16.msra.mxu0 %v6695_v53  ;;  %v1348_v6 = vadd.bf16 %v1124_v61, %v452_v50  ;;  %v905_v10 = vld [vmem:[#allocation8 + $0x610] sm:$0xff]  ;;  %v6700_v11 = vcombine.high %v1347_v58, %v1349_v1  ;;  %v6699_v13 = vcombine.low %v1347_v58, %v1349_v1  ;;  %v1127_v14 = vmul.bf16 %v903_v9, %v679_v4  ;;  %v458_v16 = vld [vmem:[#allocation5 + $0x618] sm:$0xff]  ;;  %v680_v17 = vld [vmem:[#allocation7 + $0x608] sm:$0xff] }
 0x1e2   :  { %2829 = vmatprep.subr.bf16.mxu1 %v6698_v63  ;;  %v1350_v12 = vadd.bf16 %v1126_v2, %v454_v59  ;;  %v682_v18 = vld [vmem:[#allocation7 + $0x618] sm:$0xff]  ;;  %v1129_v19 = vmul.bf16 %v905_v10, %v681_v5  ;;  %v904_v20 = vld [vmem:[#allocation8 + $0x608] sm:$0xff]  ;;  %2833 = vmatprep.mubr.bf16.mxu1 %v1396_v7  ;;  %v459_v26 = vld [vmem:[#allocation5 + $0x620] sm:$0xff] }
 0x1e3   :  { %2830 = vmatpush1.bf16.msra.mxu1 %v6697_v0  ;;  %v906_v21 = vld [vmem:[#allocation8 + $0x618] sm:$0xff]  ;;  %v260_v22 = vld [vmem:[#allocation2 + $0x20] sm:$0xff]  ;;  %2667 = vmatprep.subr.bf16.mxu0 %v6700_v11  ;;  %v1351_v25 = vadd.bf16 %v1127_v14, %v455_v3  ;;  %v461_v27 = vld [vmem:[#allocation5 + $0x630] sm:$0xff]  ;;  %v1128_v30 = vmul.bf16 %v904_v20, %v680_v17 }
 0x1e4   :  { %v6702_v23 = vcombine.high %v1348_v6, %v1350_v12  ;;  %v6701_v24 = vcombine.low %v1348_v6, %v1350_v12  ;;  %v683_v28 = vld [vmem:[#allocation7 + $0x620] sm:$0xff]  ;;  %v1353_v29 = vadd.bf16 %v1129_v19, %v457_v8  ;;  %v1130_v31 = vmul.bf16 %v906_v21, %v682_v18  ;;  %v685_v33 = vld [vmem:[#allocation7 + $0x630] sm:$0xff]  ;;  %v460_v38 = vld [vmem:[#allocation5 + $0x628] sm:$0xff] }
 0x1e5   :  { %2668 = vmatpush1.bf16.msra.mxu0 %v6699_v13  ;;  %v1395_v32 = vpack.c.bf16 %v260_v22, %v260_v22  ;;  %v907_v34 = vld [vmem:[#allocation8 + $0x620] sm:$0xff]  ;;  %v909_v35 = vld [vmem:[#allocation8 + $0x630] sm:$0xff]  ;;  %v462_v39 = vld [vmem:[#allocation5 + $0x638] sm:$0xff]  ;;  %v1352_v42 = vadd.bf16 %v1128_v30, %v456_v15 }
 0x1e6   :  { %2831 = vmatprep.subr.bf16.mxu1 %v6702_v23  ;;  %v1131_v36 = vmul.bf16 %v907_v34, %v683_v28  ;;  %v1133_v37 = vmul.bf16 %v909_v35, %v685_v33  ;;  %v684_v40 = vld [vmem:[#allocation7 + $0x628] sm:$0xff]  ;;  %v6704_v41 = vcombine.high %v1351_v25, %v1353_v29  ;;  %v1354_v43 = vadd.bf16 %v1130_v31, %v458_v16  ;;  %v686_v45 = vld [vmem:[#allocation7 + $0x638] sm:$0xff]  ;;  %v463_v52 = vld [vmem:[#allocation5 + $0x640] sm:$0xff] }
 0x1e7   :  { %2832 = vmatpush1.bf16.msra.mxu1 %v6701_v24  ;;  %v6703_v44 = vcombine.low %v1351_v25, %v1353_v29  ;;  %v908_v46 = vld [vmem:[#allocation8 + $0x628] sm:$0xff]  ;;  %v910_v47 = vld [vmem:[#allocation8 + $0x638] sm:$0xff]  ;;  %v465_v53 = vld [vmem:[#allocation5 + $0x650] sm:$0xff] }
 0x1e8   :  { %2670 = vmatmul.mubr.bf16.vlgmr.msra.gmra.mrb[0].mxu0 %v1395_v32  ;;  %v1355_v48 = vadd.bf16 %v1131_v36, %v459_v26  ;;  %v1357_v49 = vadd.bf16 %v1133_v37, %v461_v27  ;;  %v1132_v50 = vmul.bf16 %v908_v46, %v684_v40  ;;  %v1134_v51 = vmul.bf16 %v910_v47, %v686_v45  ;;  %v687_v54 = vld [vmem:[#allocation7 + $0x640] sm:$0xff]  ;;  %v689_v57 = vld [vmem:[#allocation7 + $0x650] sm:$0xff]  ;;  %v464_v0 = vld [vmem:[#allocation5 + $0x648] sm:$0xff] }
 0x1e9   :  { %2678 = vmatprep.subr.bf16.mxu0 %v6704_v41  ;;  %v6706_v55 = vcombine.high %v1352_v42, %v1354_v43  ;;  %v6705_v56 = vcombine.low %v1352_v42, %v1354_v43  ;;  %v911_v58 = vld [vmem:[#allocation8 + $0x640] sm:$0xff]  ;;  %v913_v59 = vld [vmem:[#allocation8 + $0x650] sm:$0xff]  ;;  %2710 = vmatprep.mubr.bf16.mxu0 %v7479_v60  ;;  %v466_v1 = vld [vmem:[#allocation5 + $0x658] sm:$0xff] }
 0x1ea   :  { %2679 = vmatpush1.bf16.msra.mxu0 %v6703_v44  ;;  %2834 = vmatmul.mubr.bf16.vlgmr.msra.gmra.mrb[0].mxu1 %v1395_v32  ;;  %v6708_v61 = vcombine.high %v1355_v48, %v1357_v49  ;;  %v1356_v62 = vadd.bf16 %v1132_v50, %v460_v38  ;;  %v1358_v63 = vadd.bf16 %v1134_v51, %v462_v39  ;;  %v688_v2 = vld [vmem:[#allocation7 + $0x648] sm:$0xff]  ;;  %v690_v6 = vld [vmem:[#allocation7 + $0x658] sm:$0xff]  ;;  %v467_v12 = vld [vmem:[#allocation5 + $0x660] sm:$0xff] }
 0x1eb   :  { %2842 = vmatprep.subr.bf16.mxu1 %v6706_v55  ;;  %v6707_v3 = vcombine.low %v1355_v48, %v1357_v49  ;;  %v1135_v4 = vmul.bf16 %v911_v58, %v687_v54  ;;  %v1137_v5 = vmul.bf16 %v913_v59, %v689_v57  ;;  %v912_v7 = vld [vmem:[#allocation8 + $0x648] sm:$0xff]  ;;  %v914_v8 = vld [vmem:[#allocation8 + $0x658] sm:$0xff]  ;;  %2874 = vmatprep.mubr.bf16.mxu1 %v7479_v60  ;;  %v469_v13 = vld [vmem:[#allocation5 + $0x670] sm:$0xff] }
 0x1ec   :  { %2843 = vmatpush1.bf16.msra.mxu1 %v6705_v56  ;;  %2680 = vmatprep.subr.bf16.mxu0 %v6708_v61  ;;  %v6710_v9 = vcombine.high %v1356_v62, %v1358_v63  ;;  %v6709_v10 = vcombine.low %v1356_v62, %v1358_v63  ;;  %v1136_v11 = vmul.bf16 %v912_v7, %v688_v2  ;;  %v691_v14 = vld [vmem:[#allocation7 + $0x660] sm:$0xff]  ;;  %v693_v18 = vld [vmem:[#allocation7 + $0x670] sm:$0xff]  ;;  %v468_v24 = vld [vmem:[#allocation5 + $0x668] sm:$0xff] }
 0x1ed   :  { %v1359_v15 = vadd.bf16 %v1135_v4, %v463_v52  ;;  %v1361_v16 = vadd.bf16 %v1137_v5, %v465_v53  ;;  %v1138_v17 = vmul.bf16 %v914_v8, %v690_v6  ;;  %v915_v19 = vld [vmem:[#allocation8 + $0x660] sm:$0xff]  ;;  %v917_v20 = vld [vmem:[#allocation8 + $0x670] sm:$0xff]  ;;  %v470_v25 = vld [vmem:[#allocation5 + $0x678] sm:$0xff] }
 0x1ee   :  { %2844 = vmatprep.subr.bf16.mxu1 %v6710_v9  ;;  %2681 = vmatpush1.bf16.msra.mxu0 %v6707_v3  ;;  %v1360_v21 = vadd.bf16 %v1136_v11, %v464_v0  ;;  %v1139_v22 = vmul.bf16 %v915_v19, %v691_v14  ;;  %v1141_v23 = vmul.bf16 %v917_v20, %v693_v18  ;;  %v692_v26 = vld [vmem:[#allocation7 + $0x668] sm:$0xff]  ;;  %v694_v30 = vld [vmem:[#allocation7 + $0x678] sm:$0xff]  ;;  %v471_v37 = vld [vmem:[#allocation5 + $0x680] sm:$0xff] }
 0x1ef   :  { %v6712_v27 = vcombine.high %v1359_v15, %v1361_v16  ;;  %v1362_v28 = vadd.bf16 %v1138_v17, %v466_v1  ;;  %v6711_v29 = vcombine.low %v1359_v15, %v1361_v16  ;;  %v916_v31 = vld [vmem:[#allocation8 + $0x668] sm:$0xff]  ;;  %v918_v32 = vld [vmem:[#allocation8 + $0x678] sm:$0xff]  ;;  %v473_v38 = vld [vmem:[#allocation5 + $0x690] sm:$0xff] }
 0x1f0   :  { %2845 = vmatpush1.bf16.msra.mxu1 %v6709_v10  ;;  %v1363_v33 = vadd.bf16 %v1139_v22, %v467_v12  ;;  %v1365_v34 = vadd.bf16 %v1141_v23, %v469_v13  ;;  %v1140_v35 = vmul.bf16 %v916_v31, %v692_v26  ;;  %v1142_v36 = vmul.bf16 %v918_v32, %v694_v30  ;;  %v695_v39 = vld [vmem:[#allocation7 + $0x680] sm:$0xff]  ;;  %v697_v42 = vld [vmem:[#allocation7 + $0x690] sm:$0xff]  ;;  %v472_v49 = vld [vmem:[#allocation5 + $0x688] sm:$0xff] }
 0x1f1   :  { %2682 = vmatprep.subr.bf16.mxu0 %v6712_v27  ;;  %v6714_v40 = vcombine.high %v1360_v21, %v1362_v28  ;;  %v6713_v41 = vcombine.low %v1360_v21, %v1362_v28  ;;  %v919_v43 = vld [vmem:[#allocation8 + $0x680] sm:$0xff]  ;;  %v921_v44 = vld [vmem:[#allocation8 + $0x690] sm:$0xff]  ;;  %v474_v50 = vld [vmem:[#allocation5 + $0x698] sm:$0xff] }
 0x1f2   :  { %2683 = vmatpush1.bf16.msra.mxu0 %v6711_v29  ;;  %v6716_v45 = vcombine.high %v1363_v33, %v1365_v34  ;;  %v1364_v46 = vadd.bf16 %v1140_v35, %v468_v24  ;;  %v1366_v47 = vadd.bf16 %v1142_v36, %v470_v25  ;;  %v6715_v48 = vcombine.low %v1363_v33, %v1365_v34  ;;  %v696_v51 = vld [vmem:[#allocation7 + $0x688] sm:$0xff]  ;;  %v698_v54 = vld [vmem:[#allocation7 + $0x698] sm:$0xff]  ;;  %v475_v60 = vld [vmem:[#allocation5 + $0x6a0] sm:$0xff] }
 0x1f3   :  { %2846 = vmatprep.subr.bf16.mxu1 %v6714_v40  ;;  %v1143_v52 = vmul.bf16 %v919_v43, %v695_v39  ;;  %v1145_v53 = vmul.bf16 %v921_v44, %v697_v42  ;;  %v920_v55 = vld [vmem:[#allocation8 + $0x688] sm:$0xff]  ;;  %v922_v56 = vld [vmem:[#allocation8 + $0x698] sm:$0xff]  ;;  %v477_v61 = vld [vmem:[#allocation5 + $0x6b0] sm:$0xff] }
 0x1f4   :  { %2847 = vmatpush1.bf16.msra.mxu1 %v6713_v41  ;;  %2684 = vmatprep.subr.bf16.mxu0 %v6716_v45  ;;  %v6718_v57 = vcombine.high %v1364_v46, %v1366_v47  ;;  %v6717_v58 = vcombine.low %v1364_v46, %v1366_v47  ;;  %v1144_v59 = vmul.bf16 %v920_v55, %v696_v51  ;;  %v699_v62 = vld [vmem:[#allocation7 + $0x6a0] sm:$0xff]  ;;  %v701_v2 = vld [vmem:[#allocation7 + $0x6b0] sm:$0xff]  ;;  %v476_v8 = vld [vmem:[#allocation5 + $0x6a8] sm:$0xff] }
 0x1f5   :  { %v1367_v63 = vadd.bf16 %v1143_v52, %v471_v37  ;;  %v1369_v0 = vadd.bf16 %v1145_v53, %v473_v38  ;;  %v1146_v1 = vmul.bf16 %v922_v56, %v698_v54  ;;  %v923_v3 = vld [vmem:[#allocation8 + $0x6a0] sm:$0xff]  ;;  %v925_v4 = vld [vmem:[#allocation8 + $0x6b0] sm:$0xff]  ;;  %v478_v9 = vld [vmem:[#allocation5 + $0x6b8] sm:$0xff] }
 0x1f6   :  { %2848 = vmatprep.subr.bf16.mxu1 %v6718_v57  ;;  %2685 = vmatpush1.bf16.msra.mxu0 %v6715_v48  ;;  %v1368_v5 = vadd.bf16 %v1144_v59, %v472_v49  ;;  %v1147_v6 = vmul.bf16 %v923_v3, %v699_v62  ;;  %v1149_v7 = vmul.bf16 %v925_v4, %v701_v2  ;;  %v700_v10 = vld [vmem:[#allocation7 + $0x6a8] sm:$0xff]  ;;  %v702_v14 = vld [vmem:[#allocation7 + $0x6b8] sm:$0xff]  ;;  %v479_v21 = vld [vmem:[#allocation5 + $0x6c0] sm:$0xff] }
 0x1f7   :  { %v6720_v11 = vcombine.high %v1367_v63, %v1369_v0  ;;  %v1370_v12 = vadd.bf16 %v1146_v1, %v474_v50  ;;  %v6719_v13 = vcombine.low %v1367_v63, %v1369_v0  ;;  %v924_v15 = vld [vmem:[#allocation8 + $0x6a8] sm:$0xff]  ;;  %v926_v16 = vld [vmem:[#allocation8 + $0x6b8] sm:$0xff]  ;;  %v481_v22 = vld [vmem:[#allocation5 + $0x6d0] sm:$0xff] }
 0x1f8   :  { %2849 = vmatpush1.bf16.msra.mxu1 %v6717_v58  ;;  %v1371_v17 = vadd.bf16 %v1147_v6, %v475_v60  ;;  %v1373_v18 = vadd.bf16 %v1149_v7, %v477_v61  ;;  %v1148_v19 = vmul.bf16 %v924_v15, %v700_v10  ;;  %v1150_v20 = vmul.bf16 %v926_v16, %v702_v14  ;;  %v703_v23 = vld [vmem:[#allocation7 + $0x6c0] sm:$0xff]  ;;  %v705_v26 = vld [vmem:[#allocation7 + $0x6d0] sm:$0xff]  ;;  %v480_v33 = vld [vmem:[#allocation5 + $0x6c8] sm:$0xff] }
 0x1f9   :  { %2686 = vmatprep.subr.bf16.mxu0 %v6720_v11  ;;  %v6722_v24 = vcombine.high %v1368_v5, %v1370_v12  ;;  %v6721_v25 = vcombine.low %v1368_v5, %v1370_v12  ;;  %v927_v27 = vld [vmem:[#allocation8 + $0x6c0] sm:$0xff]  ;;  %v929_v28 = vld [vmem:[#allocation8 + $0x6d0] sm:$0xff]  ;;  %v482_v34 = vld [vmem:[#allocation5 + $0x6d8] sm:$0xff] }
 0x1fa   :  { %2687 = vmatpush1.bf16.msra.mxu0 %v6719_v13  ;;  %v6724_v29 = vcombine.high %v1371_v17, %v1373_v18  ;;  %v1372_v30 = vadd.bf16 %v1148_v19, %v476_v8  ;;  %v1374_v31 = vadd.bf16 %v1150_v20, %v478_v9  ;;  %v6723_v32 = vcombine.low %v1371_v17, %v1373_v18  ;;  %v704_v35 = vld [vmem:[#allocation7 + $0x6c8] sm:$0xff]  ;;  %v706_v38 = vld [vmem:[#allocation7 + $0x6d8] sm:$0xff]  ;;  %v483_v44 = vld [vmem:[#allocation5 + $0x6e0] sm:$0xff] }
 0x1fb   :  { %2850 = vmatprep.subr.bf16.mxu1 %v6722_v24  ;;  %v1151_v36 = vmul.bf16 %v927_v27, %v703_v23  ;;  %v1153_v37 = vmul.bf16 %v929_v28, %v705_v26  ;;  %v928_v39 = vld [vmem:[#allocation8 + $0x6c8] sm:$0xff]  ;;  %v930_v40 = vld [vmem:[#allocation8 + $0x6d8] sm:$0xff]  ;;  %v485_v45 = vld [vmem:[#allocation5 + $0x6f0] sm:$0xff] }
 0x1fc   :  { %2851 = vmatpush1.bf16.msra.mxu1 %v6721_v25  ;;  %2688 = vmatprep.subr.bf16.mxu0 %v6724_v29  ;;  %v6726_v41 = vcombine.high %v1372_v30, %v1374_v31  ;;  %v6725_v42 = vcombine.low %v1372_v30, %v1374_v31  ;;  %v1152_v43 = vmul.bf16 %v928_v39, %v704_v35  ;;  %v707_v46 = vld [vmem:[#allocation7 + $0x6e0] sm:$0xff]  ;;  %v709_v50 = vld [vmem:[#allocation7 + $0x6f0] sm:$0xff]  ;;  %v484_v56 = vld [vmem:[#allocation5 + $0x6e8] sm:$0xff] }
 0x1fd   :  { %v1375_v47 = vadd.bf16 %v1151_v36, %v479_v21  ;;  %v1377_v48 = vadd.bf16 %v1153_v37, %v481_v22  ;;  %v1154_v49 = vmul.bf16 %v930_v40, %v706_v38  ;;  %v931_v51 = vld [vmem:[#allocation8 + $0x6e0] sm:$0xff]  ;;  %v933_v52 = vld [vmem:[#allocation8 + $0x6f0] sm:$0xff]  ;;  %v486_v57 = vld [vmem:[#allocation5 + $0x6f8] sm:$0xff] }
 0x1fe   :  { %2852 = vmatprep.subr.bf16.mxu1 %v6726_v41  ;;  %2689 = vmatpush1.bf16.msra.mxu0 %v6723_v32  ;;  %v1376_v53 = vadd.bf16 %v1152_v43, %v480_v33  ;;  %v1155_v54 = vmul.bf16 %v931_v51, %v707_v46  ;;  %v1157_v55 = vmul.bf16 %v933_v52, %v709_v50  ;;  %v708_v58 = vld [vmem:[#allocation7 + $0x6e8] sm:$0xff]  ;;  %v710_v62 = vld [vmem:[#allocation7 + $0x6f8] sm:$0xff]  ;;  %v2887_v6 = vld [vmem:[#allocation10] sm:$0xff] }
 0x1ff   :  { %v6728_v59 = vcombine.high %v1375_v47, %v1377_v48  ;;  %v1378_v60 = vadd.bf16 %v1154_v49, %v482_v34  ;;  %v6727_v61 = vcombine.low %v1375_v47, %v1377_v48  ;;  %v932_v63 = vld [vmem:[#allocation8 + $0x6e8] sm:$0xff]  ;;  %v934_v0 = vld [vmem:[#allocation8 + $0x6f8] sm:$0xff]  ;;  %v3015_v9 = vld [vmem:[#allocation11] sm:$0xff] }
 0x200   :  { %2853 = vmatpush1.bf16.msra.mxu1 %v6725_v42  ;;  %v1379_v1 = vadd.bf16 %v1155_v54, %v483_v44  ;;  %v1381_v2 = vadd.bf16 %v1157_v55, %v485_v45  ;;  %v1156_v3 = vmul.bf16 %v932_v63, %v708_v58  ;;  %v1158_v4 = vmul.bf16 %v934_v0, %v710_v62  ;;  %v262_v5 = vld [vmem:[#allocation2 + $0x30] sm:$0xff]  ;;  %v3017_v10 = vld [vmem:[#allocation11 + $0x10] sm:$0xff]  ;;  %v3143_v11 = vld [vmem:[#allocation13] sm:$0xff] }
 0x201   :  { %2690 = vmatprep.subr.bf16.mxu0 %v6728_v59  ;;  %v6730_v7 = vcombine.high %v1376_v53, %v1378_v60  ;;  %v6729_v8 = vcombine.low %v1376_v53, %v1378_v60  ;;  %v2889_v16 = vld [vmem:[#allocation10 + $0x10] sm:$0xff]  ;;  %v2888_v18 = vld [vmem:[#allocation10 + $0x8] sm:$0xff]  ;;  %v3271_v19 = vmul.bf16 %v3143_v11, %v3015_v9  ;;  %v3018_v22 = vld [vmem:[#allocation11 + $0x18] sm:$0xff]  ;;  %v1397_v30 = vpack.c.bf16 %v262_v5, %v262_v5 }
 0x202   :  { %2691 = vmatpush1.bf16.msra.mxu0 %v6727_v61  ;;  %v6732_v12 = vcombine.high %v1379_v1, %v1381_v2  ;;  %v1380_v13 = vadd.bf16 %v1156_v3, %v484_v56  ;;  %v1382_v14 = vadd.bf16 %v1158_v4, %v486_v57  ;;  %v6731_v15 = vcombine.low %v1379_v1, %v1381_v2  ;;  %v3145_v17 = vld [vmem:[#allocation13 + $0x10] sm:$0xff]  ;;  %v3016_v21 = vld [vmem:[#allocation11 + $0x8] sm:$0xff]  ;;  %v2890_v26 = vld [vmem:[#allocation10 + $0x18] sm:$0xff] }
 0x203   :  { %2854 = vmatprep.subr.bf16.mxu1 %v6730_v7  ;;  %v3273_v20 = vmul.bf16 %v3145_v17, %v3017_v10  ;;  %v3144_v23 = vld [vmem:[#allocation13 + $0x8] sm:$0xff]  ;;  %v3146_v27 = vld [vmem:[#allocation13 + $0x18] sm:$0xff]  ;;  %v2891_v29 = vld [vmem:[#allocation10 + $0x20] sm:$0xff]  ;;  %v3399_v31 = vadd.bf16 %v3271_v19, %v2887_v6 }
 0x204   :  { %2855 = vmatpush1.bf16.msra.mxu1 %v6729_v8  ;;  %2692 = vmatprep.subr.bf16.mxu0 %v6732_v12  ;;  %v6734_v24 = vcombine.high %v1380_v13, %v1382_v14  ;;  %v6733_v25 = vcombine.low %v1380_v13, %v1382_v14  ;;  %v3272_v28 = vmul.bf16 %v3144_v23, %v3016_v21  ;;  %v3019_v34 = vld [vmem:[#allocation11 + $0x20] sm:$0xff]  ;;  %v3021_v35 = vld [vmem:[#allocation11 + $0x30] sm:$0xff]  ;;  %v2892_v41 = vld [vmem:[#allocation10 + $0x28] sm:$0xff] }
 0x205   :  { %v3401_v32 = vadd.bf16 %v3273_v20, %v2889_v16  ;;  %v3274_v33 = vmul.bf16 %v3146_v27, %v3018_v22  ;;  %v3147_v36 = vld [vmem:[#allocation13 + $0x20] sm:$0xff]  ;;  %v2893_v38 = vld [vmem:[#allocation10 + $0x30] sm:$0xff]  ;;  %v3020_v46 = vld [vmem:[#allocation11 + $0x28] sm:$0xff] }
 0x206   :  { %2856 = vmatprep.subr.bf16.mxu1 %v6734_v24  ;;  %2693 = vmatpush1.bf16.msra.mxu0 %v6731_v15  ;;  %v3400_v37 = vadd.bf16 %v3272_v28, %v2888_v18  ;;  %v3149_v39 = vld [vmem:[#allocation13 + $0x30] sm:$0xff]  ;;  %v3275_v40 = vmul.bf16 %v3147_v36, %v3019_v34  ;;  %v3022_v47 = vld [vmem:[#allocation11 + $0x38] sm:$0xff]  ;;  %v3148_v48 = vld [vmem:[#allocation13 + $0x28] sm:$0xff] }
 0x207   :  { %v6736_v42 = vcombine.high %v3399_v31, %v3401_v32  ;;  %v3402_v43 = vadd.bf16 %v3274_v33, %v2890_v26  ;;  %v6735_v44 = vcombine.low %v3399_v31, %v3401_v32  ;;  %v3277_v45 = vmul.bf16 %v3149_v39, %v3021_v35  ;;  %v2894_v50 = vld [vmem:[#allocation10 + $0x38] sm:$0xff]  ;;  %v2895_v53 = vld [vmem:[#allocation10 + $0x40] sm:$0xff]  ;;  %v3025_v58 = vld [vmem:[#allocation11 + $0x50] sm:$0xff] }
 0x208   :  { %2857 = vmatpush1.bf16.msra.mxu1 %v6733_v25  ;;  %v3403_v49 = vadd.bf16 %v3275_v40, %v2891_v29  ;;  %v3150_v51 = vld [vmem:[#allocation13 + $0x38] sm:$0xff]  ;;  %v3276_v52 = vmul.bf16 %v3148_v48, %v3020_v46  ;;  %v3023_v57 = vld [vmem:[#allocation11 + $0x40] sm:$0xff]  ;;  %v2897_v62 = vld [vmem:[#allocation10 + $0x50] sm:$0xff] }
 0x209   :  { %2711 = vmatmul.mubr.bf16.vlgmr.msra.gmra.mrb[0].mxu0 %v1397_v30  ;;  %4216 = vmatprep.subr.bf16.mxu0 %v6736_v42  ;;  %v6738_v54 = vcombine.high %v3400_v37, %v3402_v43  ;;  %v6737_v55 = vcombine.low %v3400_v37, %v3402_v43  ;;  %v3405_v56 = vadd.bf16 %v3277_v45, %v2893_v38  ;;  %v3151_v59 = vld [vmem:[#allocation13 + $0x40] sm:$0xff]  ;;  %v3153_v63 = vld [vmem:[#allocation13 + $0x50] sm:$0xff]  ;;  %v2896_v1 = vld [vmem:[#allocation10 + $0x48] sm:$0xff] }
 0x20a   :  { %4217 = vmatpush1.bf16.msra.mxu0 %v6735_v44  ;;  %v3278_v60 = vmul.bf16 %v3150_v51, %v3022_v47  ;;  %v3404_v61 = vadd.bf16 %v3276_v52, %v2892_v41  ;;  %v3279_v0 = vmul.bf16 %v3151_v59, %v3023_v57  ;;  %v3281_v4 = vmul.bf16 %v3153_v63, %v3025_v58  ;;  %v3024_v5 = vld [vmem:[#allocation11 + $0x48] sm:$0xff]  ;;  %v3026_v6 = vld [vmem:[#allocation11 + $0x58] sm:$0xff]  ;;  %v2899_v13 = vld [vmem:[#allocation10 + $0x60] sm:$0xff] }
 0x20b   :  { %2875 = vmatmul.mubr.bf16.vlgmr.msra.gmra.mrb[0].mxu1 %v1397_v30  ;;  %4298 = vmatprep.subr.bf16.mxu1 %v6738_v54  ;;  %v6740_v2 = vcombine.high %v3403_v49, %v3405_v56  ;;  %v6739_v3 = vcombine.low %v3403_v49, %v3405_v56  ;;  %v3152_v7 = vld [vmem:[#allocation13 + $0x48] sm:$0xff]  ;;  %v2898_v10 = vld [vmem:[#allocation10 + $0x58] sm:$0xff]  ;;  %v3027_v16 = vld [vmem:[#allocation11 + $0x60] sm:$0xff] }
 0x20c   :  { %4299 = vmatpush1.bf16.msra.mxu1 %v6737_v55  ;;  %v3406_v8 = vadd.bf16 %v3278_v60, %v2894_v50  ;;  %v3407_v9 = vadd.bf16 %v3279_v0, %v2895_v53  ;;  %v3154_v11 = vld [vmem:[#allocation13 + $0x58] sm:$0xff]  ;;  %v3280_v12 = vmul.bf16 %v3152_v7, %v3024_v5  ;;  %v3409_v14 = vadd.bf16 %v3281_v4, %v2897_v62  ;;  %v3029_v17 = vld [vmem:[#allocation11 + $0x70] sm:$0xff]  ;;  %v3155_v18 = vld [vmem:[#allocation13 + $0x60] sm:$0xff] }
 0x20d   :  { %4218 = vmatprep.subr.bf16.mxu0 %v6740_v2  ;;  %v3282_v15 = vmul.bf16 %v3154_v11, %v3026_v6  ;;  %v2901_v22 = vld [vmem:[#allocation10 + $0x70] sm:$0xff]  ;;  %v3283_v24 = vmul.bf16 %v3155_v18, %v3027_v16  ;;  %v2900_v25 = vld [vmem:[#allocation10 + $0x68] sm:$0xff]  ;;  %v3030_v31 = vld [vmem:[#allocation11 + $0x78] sm:$0xff] }
 0x20e   :  { %v6742_v19 = vcombine.high %v3404_v61, %v3406_v8  ;;  %4219 = vmatpush1.bf16.msra.mxu0 %v6739_v3  ;;  %v6741_v20 = vcombine.low %v3404_v61, %v3406_v8  ;;  %v3408_v21 = vadd.bf16 %v3280_v12, %v2896_v1  ;;  %v3157_v23 = vld [vmem:[#allocation13 + $0x70] sm:$0xff]  ;;  %v6744_v26 = vcombine.high %v3407_v9, %v3409_v14  ;;  %v3028_v30 = vld [vmem:[#allocation11 + $0x68] sm:$0xff]  ;;  %v2902_v34 = vld [vmem:[#allocation10 + $0x78] sm:$0xff] }
 0x20f   :  { %v3410_v27 = vadd.bf16 %v3282_v15, %v2898_v10  ;;  %v6743_v28 = vcombine.low %v3407_v9, %v3409_v14  ;;  %v3285_v29 = vmul.bf16 %v3157_v23, %v3029_v17  ;;  %v3156_v32 = vld [vmem:[#allocation13 + $0x68] sm:$0xff]  ;;  %v3411_v33 = vadd.bf16 %v3283_v24, %v2899_v13  ;;  %v3158_v35 = vld [vmem:[#allocation13 + $0x78] sm:$0xff]  ;;  %v2903_v37 = vld [vmem:[#allocation10 + $0x80] sm:$0xff] }
 0x210   :  { %4300 = vmatprep.subr.bf16.mxu1 %v6742_v19  ;;  %v3284_v36 = vmul.bf16 %v3156_v32, %v3028_v30  ;;  %4220 = vmatprep.subr.bf16.mxu0 %v6744_v26  ;;  %v3031_v41 = vld [vmem:[#allocation11 + $0x80] sm:$0xff]  ;;  %v3033_v42 = vld [vmem:[#allocation11 + $0x90] sm:$0xff]  ;;  %v3286_v44 = vmul.bf16 %v3158_v35, %v3030_v31  ;;  %v2904_v49 = vld [vmem:[#allocation10 + $0x88] sm:$0xff] }
 0x211   :  { %4301 = vmatpush1.bf16.msra.mxu1 %v6741_v20  ;;  %v6746_v38 = vcombine.high %v3408_v21, %v3410_v27  ;;  %v6745_v39 = vcombine.low %v3408_v21, %v3410_v27  ;;  %v3413_v40 = vadd.bf16 %v3285_v29, %v2901_v22  ;;  %v3159_v43 = vld [vmem:[#allocation13 + $0x80] sm:$0xff]  ;;  %v2905_v46 = vld [vmem:[#allocation10 + $0x90] sm:$0xff]  ;;  %v3032_v53 = vld [vmem:[#allocation11 + $0x88] sm:$0xff] }
 0x212   :  { %4221 = vmatpush1.bf16.msra.mxu0 %v6743_v28  ;;  %v3412_v45 = vadd.bf16 %v3284_v36, %v2900_v25  ;;  %v3161_v47 = vld [vmem:[#allocation13 + $0x90] sm:$0xff]  ;;  %v3287_v48 = vmul.bf16 %v3159_v43, %v3031_v41  ;;  %v3034_v54 = vld [vmem:[#allocation11 + $0x98] sm:$0xff]  ;;  %v3160_v55 = vld [vmem:[#allocation13 + $0x88] sm:$0xff]  ;;  %v3414_v56 = vadd.bf16 %v3286_v44, %v2902_v34 }
 0x213   :  { %4302 = vmatprep.subr.bf16.mxu1 %v6746_v38  ;;  %v6748_v50 = vcombine.high %v3411_v33, %v3413_v40  ;;  %v6747_v51 = vcombine.low %v3411_v33, %v3413_v40  ;;  %v3289_v52 = vmul.bf16 %v3161_v47, %v3033_v42  ;;  %v2906_v58 = vld [vmem:[#allocation10 + $0x98] sm:$0xff]  ;;  %v3288_v60 = vmul.bf16 %v3160_v55, %v3032_v53  ;;  %v2907_v61 = vld [vmem:[#allocation10 + $0xa0] sm:$0xff]  ;;  %v3037_v1 = vld [vmem:[#allocation11 + $0xb0] sm:$0xff] }
 0x214   :  { %v3415_v57 = vadd.bf16 %v3287_v48, %v2903_v37  ;;  %v3162_v59 = vld [vmem:[#allocation13 + $0x98] sm:$0xff]  ;;  %v3035_v0 = vld [vmem:[#allocation11 + $0xa0] sm:$0xff]  ;;  %v6750_v3 = vcombine.high %v3412_v45, %v3414_v56  ;;  %v6749_v4 = vcombine.low %v3412_v45, %v3414_v56  ;;  %v2909_v6 = vld [vmem:[#allocation10 + $0xb0] sm:$0xff] }
 0x215   :  { %4303 = vmatpush1.bf16.msra.mxu1 %v6745_v39  ;;  %4222 = vmatprep.subr.bf16.mxu0 %v6748_v50  ;;  %v3417_v62 = vadd.bf16 %v3289_v52, %v2905_v46  ;;  %v3290_v63 = vmul.bf16 %v3162_v59, %v3034_v54  ;;  %v3163_v2 = vld [vmem:[#allocation13 + $0xa0] sm:$0xff]  ;;  %v3416_v5 = vadd.bf16 %v3288_v60, %v2904_v49  ;;  %v3165_v7 = vld [vmem:[#allocation13 + $0xb0] sm:$0xff]  ;;  %v2908_v9 = vld [vmem:[#allocation10 + $0xa8] sm:$0xff] }
 0x216   :  { %4223 = vmatpush1.bf16.msra.mxu0 %v6747_v51  ;;  %v3291_v8 = vmul.bf16 %v3163_v2, %v3035_v0  ;;  %v3293_v13 = vmul.bf16 %v3165_v7, %v3037_v1  ;;  %v3036_v14 = vld [vmem:[#allocation11 + $0xa8] sm:$0xff]  ;;  %v3038_v15 = vld [vmem:[#allocation11 + $0xb8] sm:$0xff]  ;;  %4304 = vmatprep.subr.bf16.mxu1 %v6750_v3  ;;  %v2911_v21 = vld [vmem:[#allocation10 + $0xc0] sm:$0xff] }
 0x217   :  { %v6752_v10 = vcombine.high %v3415_v57, %v3417_v62  ;;  %v3418_v11 = vadd.bf16 %v3290_v63, %v2906_v58  ;;  %v6751_v12 = vcombine.low %v3415_v57, %v3417_v62  ;;  %v3164_v16 = vld [vmem:[#allocation13 + $0xa8] sm:$0xff]  ;;  %v2910_v18 = vld [vmem:[#allocation10 + $0xb8] sm:$0xff]  ;;  %v3039_v25 = vld [vmem:[#allocation11 + $0xc0] sm:$0xff] }
 0x218   :  { %v3419_v17 = vadd.bf16 %v3291_v8, %v2907_v61  ;;  %v3166_v19 = vld [vmem:[#allocation13 + $0xb8] sm:$0xff]  ;;  %v3292_v20 = vmul.bf16 %v3164_v16, %v3036_v14  ;;  %v3421_v24 = vadd.bf16 %v3293_v13, %v2909_v6  ;;  %v3041_v26 = vld [vmem:[#allocation11 + $0xd0] sm:$0xff]  ;;  %v3167_v27 = vld [vmem:[#allocation13 + $0xc0] sm:$0xff] }
 0x219   :  { %4305 = vmatpush1.bf16.msra.mxu1 %v6749_v4  ;;  %4224 = vmatprep.subr.bf16.mxu0 %v6752_v10  ;;  %v6754_v22 = vcombine.high %v3416_v5, %v3418_v11  ;;  %v6753_v23 = vcombine.low %v3416_v5, %v3418_v11  ;;  %v3294_v28 = vmul.bf16 %v3166_v19, %v3038_v15  ;;  %v2913_v30 = vld [vmem:[#allocation10 + $0xd0] sm:$0xff]  ;;  %v2912_v33 = vld [vmem:[#allocation10 + $0xc8] sm:$0xff]  ;;  %v3042_v38 = vld [vmem:[#allocation11 + $0xd8] sm:$0xff] }
 0x21a   :  { %4225 = vmatpush1.bf16.msra.mxu0 %v6751_v12  ;;  %v3420_v29 = vadd.bf16 %v3292_v20, %v2908_v9  ;;  %v3169_v31 = vld [vmem:[#allocation13 + $0xd0] sm:$0xff]  ;;  %v3295_v32 = vmul.bf16 %v3167_v27, %v3039_v25  ;;  %v6756_v34 = vcombine.high %v3419_v17, %v3421_v24  ;;  %v6755_v35 = vcombine.low %v3419_v17, %v3421_v24  ;;  %v3040_v37 = vld [vmem:[#allocation11 + $0xc8] sm:$0xff]  ;;  %v2914_v42 = vld [vmem:[#allocation10 + $0xd8] sm:$0xff] }
 0x21b   :  { %4306 = vmatprep.subr.bf16.mxu1 %v6754_v22  ;;  %v3297_v36 = vmul.bf16 %v3169_v31, %v3041_v26  ;;  %v3168_v39 = vld [vmem:[#allocation13 + $0xc8] sm:$0xff]  ;;  %v3422_v40 = vadd.bf16 %v3294_v28, %v2910_v18  ;;  %v3170_v43 = vld [vmem:[#allocation13 + $0xd8] sm:$0xff]  ;;  %v2915_v45 = vld [vmem:[#allocation10 + $0xe0] sm:$0xff] }
 0x21c   :  { %v3423_v41 = vadd.bf16 %v3295_v32, %v2911_v21  ;;  %v3296_v44 = vmul.bf16 %v3168_v39, %v3040_v37  ;;  %4226 = vmatprep.subr.bf16.mxu0 %v6756_v34  ;;  %v3298_v47 = vmul.bf16 %v3170_v43, %v3042_v38  ;;  %v3043_v48 = vld [vmem:[#allocation11 + $0xe0] sm:$0xff]  ;;  %v3045_v49 = vld [vmem:[#allocation11 + $0xf0] sm:$0xff]  ;;  %v2916_v57 = vld [vmem:[#allocation10 + $0xe8] sm:$0xff] }
 0x21d   :  { %4307 = vmatpush1.bf16.msra.mxu1 %v6753_v23  ;;  %v3425_v46 = vadd.bf16 %v3297_v36, %v2913_v30  ;;  %v3171_v50 = vld [vmem:[#allocation13 + $0xe0] sm:$0xff]  ;;  %v6758_v51 = vcombine.high %v3420_v29, %v3422_v40  ;;  %v6757_v52 = vcombine.low %v3420_v29, %v3422_v40  ;;  %v2917_v54 = vld [vmem:[#allocation10 + $0xf0] sm:$0xff]  ;;  %v3044_v62 = vld [vmem:[#allocation11 + $0xe8] sm:$0xff] }
 0x21e   :  { %4227 = vmatpush1.bf16.msra.mxu0 %v6755_v35  ;;  %v3424_v53 = vadd.bf16 %v3296_v44, %v2912_v33  ;;  %v3173_v55 = vld [vmem:[#allocation13 + $0xf0] sm:$0xff]  ;;  %v3299_v56 = vmul.bf16 %v3171_v50, %v3043_v48  ;;  %v3426_v59 = vadd.bf16 %v3298_v47, %v2914_v42  ;;  %v3046_v63 = vld [vmem:[#allocation11 + $0xf8] sm:$0xff]  ;;  %v3172_v0 = vld [vmem:[#allocation13 + $0xe8] sm:$0xff] }
 0x21f   :  { %v6760_v58 = vcombine.high %v3423_v41, %v3425_v46  ;;  %v6759_v60 = vcombine.low %v3423_v41, %v3425_v46  ;;  %v3301_v61 = vmul.bf16 %v3173_v55, %v3045_v49  ;;  %4308 = vmatprep.subr.bf16.mxu1 %v6758_v51  ;;  %v2918_v2 = vld [vmem:[#allocation10 + $0xf8] sm:$0xff]  ;;  %v3300_v4 = vmul.bf16 %v3172_v0, %v3044_v62  ;;  %v2919_v5 = vld [vmem:[#allocation10 + $0x100] sm:$0xff]  ;;  %v3049_v10 = vld [vmem:[#allocation11 + $0x110] sm:$0xff] }
 0x220   :  { %v3427_v1 = vadd.bf16 %v3299_v56, %v2915_v45  ;;  %v3174_v3 = vld [vmem:[#allocation13 + $0xf8] sm:$0xff]  ;;  %v6762_v6 = vcombine.high %v3424_v53, %v3426_v59  ;;  %v6761_v7 = vcombine.low %v3424_v53, %v3426_v59  ;;  %v3047_v9 = vld [vmem:[#allocation11 + $0x100] sm:$0xff]  ;;  %v2921_v14 = vld [vmem:[#allocation10 + $0x110] sm:$0xff] }
 0x221   :  { %4309 = vmatpush1.bf16.msra.mxu1 %v6757_v52  ;;  %4228 = vmatprep.subr.bf16.mxu0 %v6760_v58  ;;  %v3429_v8 = vadd.bf16 %v3301_v61, %v2917_v54  ;;  %v3175_v11 = vld [vmem:[#allocation13 + $0x100] sm:$0xff]  ;;  %v3302_v12 = vmul.bf16 %v3174_v3, %v3046_v63  ;;  %v3428_v13 = vadd.bf16 %v3300_v4, %v2916_v57  ;;  %v3177_v15 = vld [vmem:[#allocation13 + $0x110] sm:$0xff]  ;;  %v2920_v17 = vld [vmem:[#allocation10 + $0x108] sm:$0xff] }
 0x222   :  { %4229 = vmatpush1.bf16.msra.mxu0 %v6759_v60  ;;  %v3303_v16 = vmul.bf16 %v3175_v11, %v3047_v9  ;;  %4310 = vmatprep.subr.bf16.mxu1 %v6762_v6  ;;  %v3305_v20 = vmul.bf16 %v3177_v15, %v3049_v10  ;;  %v3048_v21 = vld [vmem:[#allocation11 + $0x108] sm:$0xff]  ;;  %v3050_v22 = vld [vmem:[#allocation11 + $0x118] sm:$0xff]  ;;  %v2923_v29 = vld [vmem:[#allocation10 + $0x120] sm:$0xff] }
 0x223   :  { %v6764_v18 = vcombine.high %v3427_v1, %v3429_v8  ;;  %v6763_v19 = vcombine.low %v3427_v1, %v3429_v8  ;;  %v3176_v23 = vld [vmem:[#allocation13 + $0x108] sm:$0xff]  ;;  %v3430_v24 = vadd.bf16 %v3302_v12, %v2918_v2  ;;  %v2922_v26 = vld [vmem:[#allocation10 + $0x118] sm:$0xff]  ;;  %v3051_v32 = vld [vmem:[#allocation11 + $0x120] sm:$0xff] }
 0x224   :  { %v3431_v25 = vadd.bf16 %v3303_v16, %v2919_v5  ;;  %v3178_v27 = vld [vmem:[#allocation13 + $0x118] sm:$0xff]  ;;  %v3304_v28 = vmul.bf16 %v3176_v23, %v3048_v21  ;;  %v3433_v30 = vadd.bf16 %v3305_v20, %v2921_v14  ;;  %v3053_v33 = vld [vmem:[#allocation11 + $0x130] sm:$0xff]  ;;  %v3179_v34 = vld [vmem:[#allocation13 + $0x120] sm:$0xff] }
 0x225   :  { %4311 = vmatpush1.bf16.msra.mxu1 %v6761_v7  ;;  %4230 = vmatprep.subr.bf16.mxu0 %v6764_v18  ;;  %v3306_v31 = vmul.bf16 %v3178_v27, %v3050_v22  ;;  %v6766_v35 = vcombine.high %v3428_v13, %v3430_v24  ;;  %v6765_v36 = vcombine.low %v3428_v13, %v3430_v24  ;;  %v2925_v38 = vld [vmem:[#allocation10 + $0x130] sm:$0xff]  ;;  %v2924_v41 = vld [vmem:[#allocation10 + $0x128] sm:$0xff]  ;;  %v3054_v47 = vld [vmem:[#allocation11 + $0x138] sm:$0xff] }
 0x226   :  { %4231 = vmatpush1.bf16.msra.mxu0 %v6763_v19  ;;  %v3432_v37 = vadd.bf16 %v3304_v28, %v2920_v17  ;;  %v3181_v39 = vld [vmem:[#allocation13 + $0x130] sm:$0xff]  ;;  %v3307_v40 = vmul.bf16 %v3179_v34, %v3051_v32  ;;  %v6768_v42 = vcombine.high %v3431_v25, %v3433_v30  ;;  %v6767_v44 = vcombine.low %v3431_v25, %v3433_v30  ;;  %v3052_v46 = vld [vmem:[#allocation11 + $0x128] sm:$0xff]  ;;  %v2926_v50 = vld [vmem:[#allocation10 + $0x138] sm:$0xff] }
 0x227   :  { %v3434_v43 = vadd.bf16 %v3306_v31, %v2922_v26  ;;  %v3309_v45 = vmul.bf16 %v3181_v39, %v3053_v33  ;;  %v3180_v48 = vld [vmem:[#allocation13 + $0x128] sm:$0xff]  ;;  %4312 = vmatprep.subr.bf16.mxu1 %v6766_v35  ;;  %v3182_v51 = vld [vmem:[#allocation13 + $0x138] sm:$0xff]  ;;  %v2927_v53 = vld [vmem:[#allocation10 + $0x140] sm:$0xff] }
 0x228   :  { %v3435_v49 = vadd.bf16 %v3307_v40, %v2923_v29  ;;  %v3308_v52 = vmul.bf16 %v3180_v48, %v3052_v46  ;;  %4232 = vmatprep.subr.bf16.mxu0 %v6768_v42  ;;  %v3055_v57 = vld [vmem:[#allocation11 + $0x140] sm:$0xff]  ;;  %v3057_v58 = vld [vmem:[#allocation11 + $0x150] sm:$0xff]  ;;  %v3310_v60 = vmul.bf16 %v3182_v51, %v3054_v47  ;;  %v2928_v1 = vld [vmem:[#allocation10 + $0x148] sm:$0xff] }
 0x229   :  { %4313 = vmatpush1.bf16.msra.mxu1 %v6765_v36  ;;  %v6770_v54 = vcombine.high %v3432_v37, %v3434_v43  ;;  %v6769_v55 = vcombine.low %v3432_v37, %v3434_v43  ;;  %v3437_v56 = vadd.bf16 %v3309_v45, %v2925_v38  ;;  %v3183_v59 = vld [vmem:[#allocation13 + $0x140] sm:$0xff]  ;;  %v2929_v62 = vld [vmem:[#allocation10 + $0x150] sm:$0xff]  ;;  %v3056_v5 = vld [vmem:[#allocation11 + $0x148] sm:$0xff] }
 0x22a   :  { %4233 = vmatpush1.bf16.msra.mxu0 %v6767_v44  ;;  %v3436_v61 = vadd.bf16 %v3308_v52, %v2924_v41  ;;  %v3185_v63 = vld [vmem:[#allocation13 + $0x150] sm:$0xff]  ;;  %v3311_v0 = vmul.bf16 %v3183_v59, %v3055_v57  ;;  %v3058_v6 = vld [vmem:[#allocation11 + $0x158] sm:$0xff]  ;;  %v3184_v7 = vld [vmem:[#allocation13 + $0x148] sm:$0xff]  ;;  %v3438_v8 = vadd.bf16 %v3310_v60, %v2926_v50 }
 0x22b   :  { %4314 = vmatprep.subr.bf16.mxu1 %v6770_v54  ;;  %v6772_v2 = vcombine.high %v3435_v49, %v3437_v56  ;;  %v6771_v3 = vcombine.low %v3435_v49, %v3437_v56  ;;  %v3313_v4 = vmul.bf16 %v3185_v63, %v3057_v58  ;;  %v2930_v10 = vld [vmem:[#allocation10 + $0x158] sm:$0xff]  ;;  %v3312_v12 = vmul.bf16 %v3184_v7, %v3056_v5  ;;  %v2931_v13 = vld [vmem:[#allocation10 + $0x160] sm:$0xff]  ;;  %v3061_v17 = vld [vmem:[#allocation11 + $0x170] sm:$0xff] }
 0x22c   :  { %v3439_v9 = vadd.bf16 %v3311_v0, %v2927_v53  ;;  %v3186_v11 = vld [vmem:[#allocation13 + $0x158] sm:$0xff]  ;;  %v3059_v16 = vld [vmem:[#allocation11 + $0x160] sm:$0xff]  ;;  %v6774_v19 = vcombine.high %v3436_v61, %v3438_v8  ;;  %v6773_v20 = vcombine.low %v3436_v61, %v3438_v8  ;;  %v2933_v22 = vld [vmem:[#allocation10 + $0x170] sm:$0xff] }
 0x22d   :  { %4315 = vmatpush1.bf16.msra.mxu1 %v6769_v55  ;;  %4234 = vmatprep.subr.bf16.mxu0 %v6772_v2  ;;  %v3441_v14 = vadd.bf16 %v3313_v4, %v2929_v62  ;;  %v3314_v15 = vmul.bf16 %v3186_v11, %v3058_v6  ;;  %v3187_v18 = vld [vmem:[#allocation13 + $0x160] sm:$0xff]  ;;  %v3440_v21 = vadd.bf16 %v3312_v12, %v2928_v1  ;;  %v3189_v23 = vld [vmem:[#allocation13 + $0x170] sm:$0xff]  ;;  %v2932_v25 = vld [vmem:[#allocation10 + $0x168] sm:$0xff] }
 0x22e   :  { %4235 = vmatpush1.bf16.msra.mxu0 %v6771_v3  ;;  %v3315_v24 = vmul.bf16 %v3187_v18, %v3059_v16  ;;  %v3317_v29 = vmul.bf16 %v3189_v23, %v3061_v17  ;;  %v3060_v30 = vld [vmem:[#allocation11 + $0x168] sm:$0xff]  ;;  %v3062_v31 = vld [vmem:[#allocation11 + $0x178] sm:$0xff]  ;;  %4316 = vmatprep.subr.bf16.mxu1 %v6774_v19  ;;  %v2935_v37 = vld [vmem:[#allocation10 + $0x180] sm:$0xff] }
 0x22f   :  { %v6776_v26 = vcombine.high %v3439_v9, %v3441_v14  ;;  %v3442_v27 = vadd.bf16 %v3314_v15, %v2930_v10  ;;  %v6775_v28 = vcombine.low %v3439_v9, %v3441_v14  ;;  %v3188_v32 = vld [vmem:[#allocation13 + $0x168] sm:$0xff]  ;;  %v2934_v34 = vld [vmem:[#allocation10 + $0x178] sm:$0xff]  ;;  %v3063_v41 = vld [vmem:[#allocation11 + $0x180] sm:$0xff] }
 0x230   :  { %v3443_v33 = vadd.bf16 %v3315_v24, %v2931_v13  ;;  %v3190_v35 = vld [vmem:[#allocation13 + $0x178] sm:$0xff]  ;;  %v3316_v36 = vmul.bf16 %v3188_v32, %v3060_v30  ;;  %v3445_v40 = vadd.bf16 %v3317_v29, %v2933_v22  ;;  %v3065_v42 = vld [vmem:[#allocation11 + $0x190] sm:$0xff]  ;;  %v3191_v43 = vld [vmem:[#allocation13 + $0x180] sm:$0xff] }
 0x231   :  { %4317 = vmatpush1.bf16.msra.mxu1 %v6773_v20  ;;  %4236 = vmatprep.subr.bf16.mxu0 %v6776_v26  ;;  %v6778_v38 = vcombine.high %v3440_v21, %v3442_v27  ;;  %v6777_v39 = vcombine.low %v3440_v21, %v3442_v27  ;;  %v3318_v44 = vmul.bf16 %v3190_v35, %v3062_v31  ;;  %v2937_v46 = vld [vmem:[#allocation10 + $0x190] sm:$0xff]  ;;  %v2936_v49 = vld [vmem:[#allocation10 + $0x188] sm:$0xff]  ;;  %v3066_v54 = vld [vmem:[#allocation11 + $0x198] sm:$0xff] }
 0x232   :  { %4237 = vmatpush1.bf16.msra.mxu0 %v6775_v28  ;;  %v3444_v45 = vadd.bf16 %v3316_v36, %v2932_v25  ;;  %v3193_v47 = vld [vmem:[#allocation13 + $0x190] sm:$0xff]  ;;  %v3319_v48 = vmul.bf16 %v3191_v43, %v3063_v41  ;;  %v6780_v50 = vcombine.high %v3443_v33, %v3445_v40  ;;  %v6779_v51 = vcombine.low %v3443_v33, %v3445_v40  ;;  %v3064_v53 = vld [vmem:[#allocation11 + $0x188] sm:$0xff]  ;;  %v2938_v58 = vld [vmem:[#allocation10 + $0x198] sm:$0xff] }
 0x233   :  { %4318 = vmatprep.subr.bf16.mxu1 %v6778_v38  ;;  %v3321_v52 = vmul.bf16 %v3193_v47, %v3065_v42  ;;  %v3192_v55 = vld [vmem:[#allocation13 + $0x188] sm:$0xff]  ;;  %v3446_v56 = vadd.bf16 %v3318_v44, %v2934_v34  ;;  %v3194_v59 = vld [vmem:[#allocation13 + $0x198] sm:$0xff]  ;;  %v2939_v61 = vld [vmem:[#allocation10 + $0x1a0] sm:$0xff] }
 0x234   :  { %v3447_v57 = vadd.bf16 %v3319_v48, %v2935_v37  ;;  %v3320_v60 = vmul.bf16 %v3192_v55, %v3064_v53  ;;  %4238 = vmatprep.subr.bf16.mxu0 %v6780_v50  ;;  %v3322_v63 = vmul.bf16 %v3194_v59, %v3066_v54  ;;  %v3067_v0 = vld [vmem:[#allocation11 + $0x1a0] sm:$0xff]  ;;  %v3069_v1 = vld [vmem:[#allocation11 + $0x1b0] sm:$0xff]  ;;  %v2940_v9 = vld [vmem:[#allocation10 + $0x1a8] sm:$0xff] }
 0x235   :  { %4319 = vmatpush1.bf16.msra.mxu1 %v6777_v39  ;;  %v3449_v62 = vadd.bf16 %v3321_v52, %v2937_v46  ;;  %v3195_v2 = vld [vmem:[#allocation13 + $0x1a0] sm:$0xff]  ;;  %v6782_v3 = vcombine.high %v3444_v45, %v3446_v56  ;;  %v6781_v4 = vcombine.low %v3444_v45, %v3446_v56  ;;  %v2941_v6 = vld [vmem:[#allocation10 + $0x1b0] sm:$0xff]  ;;  %v3068_v14 = vld [vmem:[#allocation11 + $0x1a8] sm:$0xff] }
 0x236   :  { %4239 = vmatpush1.bf16.msra.mxu0 %v6779_v51  ;;  %v3448_v5 = vadd.bf16 %v3320_v60, %v2936_v49  ;;  %v3197_v7 = vld [vmem:[#allocation13 + $0x1b0] sm:$0xff]  ;;  %v3323_v8 = vmul.bf16 %v3195_v2, %v3067_v0  ;;  %v3450_v11 = vadd.bf16 %v3322_v63, %v2938_v58  ;;  %v3070_v15 = vld [vmem:[#allocation11 + $0x1b8] sm:$0xff]  ;;  %v3196_v16 = vld [vmem:[#allocation13 + $0x1a8] sm:$0xff] }
 0x237   :  { %v6784_v10 = vcombine.high %v3447_v57, %v3449_v62  ;;  %v6783_v12 = vcombine.low %v3447_v57, %v3449_v62  ;;  %v3325_v13 = vmul.bf16 %v3197_v7, %v3069_v1  ;;  %4320 = vmatprep.subr.bf16.mxu1 %v6782_v3  ;;  %v3198_v18 = vld [vmem:[#allocation13 + $0x1b8] sm:$0xff]  ;;  %v3324_v19 = vmul.bf16 %v3196_v16, %v3068_v14  ;;  %v3071_v31 = vld [vmem:[#allocation11 + $0x1c0] sm:$0xff]  ;;  %v3073_v32 = vld [vmem:[#allocation11 + $0x1d0] sm:$0xff] }
 0x238   :  { %v3451_v17 = vadd.bf16 %v3323_v8, %v2939_v61  ;;  %v6786_v20 = vcombine.high %v3448_v5, %v3450_v11  ;;  %v6785_v21 = vcombine.low %v3448_v5, %v3450_v11  ;;  %v2942_v23 = vld [vmem:[#allocation10 + $0x1b8] sm:$0xff]  ;;  %v3326_v24 = vmul.bf16 %v3198_v18, %v3070_v15  ;;  %v3199_v33 = vld [vmem:[#allocation13 + $0x1c0] sm:$0xff]  ;;  %v3201_v34 = vld [vmem:[#allocation13 + $0x1d0] sm:$0xff] }
 0x239   :  { %4321 = vmatpush1.bf16.msra.mxu1 %v6781_v4  ;;  %4240 = vmatprep.subr.bf16.mxu0 %v6784_v10  ;;  %v3453_v22 = vadd.bf16 %v3325_v13, %v2941_v6  ;;  %v3452_v25 = vadd.bf16 %v3324_v19, %v2940_v9  ;;  %v3327_v35 = vmul.bf16 %v3199_v33, %v3071_v31  ;;  %v3072_v36 = vld [vmem:[#allocation11 + $0x1c8] sm:$0xff]  ;;  %v3074_v37 = vld [vmem:[#allocation11 + $0x1d8] sm:$0xff]  ;;  %v2943_v38 = vld [vmem:[#allocation10 + $0x1c0] sm:$0xff] }
 0x23a   :  { %4241 = vmatpush1.bf16.msra.mxu0 %v6783_v12  ;;  %4322 = vmatprep.subr.bf16.mxu1 %v6786_v20  ;;  %v3454_v28 = vadd.bf16 %v3326_v24, %v2942_v23  ;;  %v2945_v39 = vld [vmem:[#allocation10 + $0x1d0] sm:$0xff]  ;;  %v3329_v40 = vmul.bf16 %v3201_v34, %v3073_v32  ;;  %v2944_v41 = vld [vmem:[#allocation10 + $0x1c8] sm:$0xff]  ;;  %v2946_v43 = vld [vmem:[#allocation10 + $0x1d8] sm:$0xff] }
 0x23b   :  { %v6788_v26 = vcombine.high %v3451_v17, %v3453_v22  ;;  %v6787_v27 = vcombine.low %v3451_v17, %v3453_v22  ;;  %v3455_v42 = vadd.bf16 %v3327_v35, %v2943_v38  ;;  %v3200_v44 = vld [vmem:[#allocation13 + $0x1c8] sm:$0xff]  ;;  %v3202_v45 = vld [vmem:[#allocation13 + $0x1d8] sm:$0xff]  ;;  %v3075_v49 = vld [vmem:[#allocation11 + $0x1e0] sm:$0xff] }
 0x23c   :  { %v6790_v29 = vcombine.high %v3452_v25, %v3454_v28  ;;  %v6789_v30 = vcombine.low %v3452_v25, %v3454_v28  ;;  %v3457_v46 = vadd.bf16 %v3329_v40, %v2945_v39  ;;  %v3328_v47 = vmul.bf16 %v3200_v44, %v3072_v36  ;;  %v3077_v50 = vld [vmem:[#allocation11 + $0x1f0] sm:$0xff]  ;;  %v3203_v51 = vld [vmem:[#allocation13 + $0x1e0] sm:$0xff]  ;;  %v3076_v54 = vld [vmem:[#allocation11 + $0x1e8] sm:$0xff] }
 0x23d   :  { %4323 = vmatpush1.bf16.msra.mxu1 %v6785_v21  ;;  %4242 = vmatprep.subr.bf16.mxu0 %v6788_v26  ;;  %v3330_v48 = vmul.bf16 %v3202_v45, %v3074_v37  ;;  %v3205_v52 = vld [vmem:[#allocation13 + $0x1f0] sm:$0xff]  ;;  %v3331_v53 = vmul.bf16 %v3203_v51, %v3075_v49  ;;  %v3078_v55 = vld [vmem:[#allocation11 + $0x1f8] sm:$0xff]  ;;  %v2947_v59 = vld [vmem:[#allocation10 + $0x1e0] sm:$0xff] }
 0x23e   :  { %4243 = vmatpush1.bf16.msra.mxu0 %v6787_v27  ;;  %4324 = vmatprep.subr.bf16.mxu1 %v6790_v29  ;;  %v6792_v56 = vcombine.high %v3455_v42, %v3457_v46  ;;  %v3456_v57 = vadd.bf16 %v3328_v47, %v2944_v41  ;;  %v2949_v60 = vld [vmem:[#allocation10 + $0x1f0] sm:$0xff]  ;;  %v2948_v61 = vld [vmem:[#allocation10 + $0x1e8] sm:$0xff]  ;;  %v6791_v62 = vcombine.low %v3455_v42, %v3457_v46  ;;  %v2950_v0 = vld [vmem:[#allocation10 + $0x1f8] sm:$0xff] }
 0x23f   :  { %v3458_v58 = vadd.bf16 %v3330_v48, %v2946_v43  ;;  %v3333_v63 = vmul.bf16 %v3205_v52, %v3077_v50  ;;  %v3204_v1 = vld [vmem:[#allocation13 + $0x1e8] sm:$0xff]  ;;  %v3206_v2 = vld [vmem:[#allocation13 + $0x1f8] sm:$0xff]  ;;  %v3459_v5 = vadd.bf16 %v3331_v53, %v2947_v59  ;;  %v3079_v7 = vld [vmem:[#allocation11 + $0x200] sm:$0xff]  ;;  %v1399_v43 = vlaneseq }
 0x240   :  { %4244 = vmatprep.subr.bf16.mxu0 %v6792_v56  ;;  %v3332_v6 = vmul.bf16 %v3204_v1, %v3076_v54  ;;  %v3081_v8 = vld [vmem:[#allocation11 + $0x210] sm:$0xff]  ;;  %v3207_v9 = vld [vmem:[#allocation13 + $0x200] sm:$0xff]  ;;  %v3334_v11 = vmul.bf16 %v3206_v2, %v3078_v55  ;;  %v3080_v14 = vld [vmem:[#allocation11 + $0x208] sm:$0xff] }
 0x241   :  { %4325 = vmatpush1.bf16.msra.mxu1 %v6789_v30  ;;  %v6794_v3 = vcombine.high %v3456_v57, %v3458_v58  ;;  %v6793_v4 = vcombine.low %v3456_v57, %v3458_v58  ;;  %v3461_v10 = vadd.bf16 %v3333_v63, %v2949_v60  ;;  %v3209_v12 = vld [vmem:[#allocation13 + $0x210] sm:$0xff]  ;;  %v3335_v13 = vmul.bf16 %v3207_v9, %v3079_v7  ;;  %v3082_v15 = vld [vmem:[#allocation11 + $0x218] sm:$0xff]  ;;  %v2951_v17 = vld [vmem:[#allocation10 + $0x200] sm:$0xff] }
 0x242   :  { %4245 = vmatpush1.bf16.msra.mxu0 %v6791_v62  ;;  %v3460_v16 = vadd.bf16 %v3332_v6, %v2948_v61  ;;  %v2953_v18 = vld [vmem:[#allocation10 + $0x210] sm:$0xff]  ;;  %v3337_v19 = vmul.bf16 %v3209_v12, %v3081_v8  ;;  %v2952_v20 = vld [vmem:[#allocation10 + $0x208] sm:$0xff]  ;;  %v3462_v22 = vadd.bf16 %v3334_v11, %v2950_v0  ;;  %v2954_v25 = vld [vmem:[#allocation10 + $0x218] sm:$0xff]  ;;  %v1400_v47 = vshrl.u32 %v1399_v43, 7 }
 0x243   :  { %4326 = vmatprep.subr.bf16.mxu1 %v6794_v3  ;;  %v6796_v21 = vcombine.high %v3459_v5, %v3461_v10  ;;  %v6795_v23 = vcombine.low %v3459_v5, %v3461_v10  ;;  %v7803_v24 = vadd.bf16 %v3335_v13, %v2951_v17  ;;  %v3208_v26 = vld [vmem:[#allocation13 + $0x208] sm:$0xff]  ;;  %v3210_v27 = vld [vmem:[#allocation13 + $0x218] sm:$0xff]  ;;  %v3083_v54 = vld [vmem:[#allocation11 + $0x220] sm:$0xff] }
 0x244   :  { %v7805_v28 = vadd.bf16 %v3337_v19, %v2953_v18  ;;  %v3336_v29 = vmul.bf16 %v3208_v26, %v3080_v14  ;;  %v3338_v30 = vmul.bf16 %v3210_v27, %v3082_v15  ;;  %v6798_v31 = vcombine.high %v3460_v16, %v3462_v22  ;;  %v1385_v39 = vld [vmem:[%s9171_s22] sm:$0xf]  ;;  %v3085_v55 = vld [vmem:[#allocation11 + $0x230] sm:$0xff]  ;;  %v3211_v56 = vld [vmem:[#allocation13 + $0x220] sm:$0xff] }
 0x245   :  { %4327 = vmatpush1.bf16.msra.mxu1 %v6793_v4  ;;  %4246 = vmatprep.subr.bf16.mxu0 %v6796_v21  ;;  %v6797_v32 = vcombine.low %v3460_v16, %v3462_v22  ;;  %v1387_v40 = vld [vmem:[%s9172_s27] sm:$0xf]  ;;  %v1386_v41 = vunpack.c.l.bf16 %v1385_v39  ;;  %v7828_v49 = vsub.s32 0, %v1400_v47  ;;  %v7830_v50 = vsub.s32 2, %v1400_v47  ;;  %v3213_v58 = vld [vmem:[#allocation13 + $0x230] sm:$0xff]  ;;  %v3086_v62 = vld [vmem:[#allocation11 + $0x238] sm:$0xff] }
 0x246   :  { %4247 = vmatpush1.bf16.msra.mxu0 %v6795_v23  ;;  %v6800_v33 = vcombine.high %v7803_v24, %v7805_v28  ;;  %v7809_v34 = vadd.bf16 %v3336_v29, %v2952_v20  ;;  %v7811_v35 = vadd.bf16 %v3338_v30, %v2954_v25  ;;  %v6799_v36 = vcombine.low %v7803_v24, %v7805_v28  ;;  %v1383_v44 = vld [vmem:[%s9173_s6] sm:$0xf]  ;;  %v3214_v63 = vld [vmem:[#allocation13 + $0x238] sm:$0xff]  ;;  %v2955_v1 = vld [vmem:[#allocation10 + $0x220] sm:$0xff] }
 0x247   :  { %4328 = vmatprep.subr.bf16.mxu1 %v6798_v31  ;;  %v1388_v42 = vunpack.c.l.bf16 %v1387_v40  ;;  %v1384_v45 = vunpack.c.l.bf16 %v1383_v44  ;;  %9174 = vst [vmem:[#allocation32_spill] sm:$0xff] %v7830_v50  ;;  %v7832_v51 = vsub.s32 4, %v1400_v47  ;;  %v7834_v52 = vsub.s32 6, %v1400_v47  ;;  %v3084_v59 = vld [vmem:[#allocation11 + $0x228] sm:$0xff]  ;;  %v2957_v2 = vld [vmem:[#allocation10 + $0x230] sm:$0xff]  ;;  %v2958_v7 = vld [vmem:[#allocation10 + $0x238] sm:$0xff] }
 0x248   :  { %4257 = vmatprep.subr.bf16.mxu0 %v6800_v33  ;;  %v6802_v37 = vcombine.high %v7809_v34, %v7811_v35  ;;  %v6801_v38 = vcombine.low %v7809_v34, %v7811_v35  ;;  %v3212_v60 = vld [vmem:[#allocation13 + $0x228] sm:$0xff]  ;;  %v3339_v3 = vmul.bf16 %v3211_v56, %v3083_v54  ;;  %v3341_v6 = vmul.bf16 %v3213_v58, %v3085_v55  ;;  %v3087_v9 = vld [vmem:[#allocation11 + $0x240] sm:$0xff]  ;;  %v3089_v10 = vld [vmem:[#allocation11 + $0x250] sm:$0xff] }
 0x249   :  { %4329 = vmatpush1.bf16.msra.mxu1 %v6797_v32  ;;  %v1389_v46 = vmul.f32 %v1388_v42, %v1386_v41  ;;  %9175 = vst [vmem:[#allocation33_spill] sm:$0xff] %v7832_v51  ;;  %9176 = vst [vmem:[#allocation34_spill] sm:$0xff] %v7834_v52  ;;  %v2956_v4 = vld [vmem:[#allocation10 + $0x228] sm:$0xff]  ;;  %v3340_v8 = vmul.bf16 %v3212_v60, %v3084_v59  ;;  %v3342_v12 = vmul.bf16 %v3214_v63, %v3086_v62  ;;  %v3215_v13 = vld [vmem:[#allocation13 + $0x240] sm:$0xff] }
 0x24a   :  { %4339 = vmatprep.subr.bf16.mxu1 %v6802_v37  ;;  %v3217_v14 = vld [vmem:[#allocation13 + $0x250] sm:$0xff]  ;;  %v3088_v15 = vld [vmem:[#allocation11 + $0x248] sm:$0xff]  ;;  %v3090_v17 = vld [vmem:[#allocation11 + $0x258] sm:$0xff]  ;;  %v7844_v22 = vadd.bf16 %v3339_v3, %v2955_v1  ;;  %v7846_v30 = vadd.bf16 %v3341_v6, %v2957_v2  ;;  %v3343_v32 = vmul.bf16 %v3215_v13, %v3087_v9 }
 0x24b   :  { %v1390_v48 = vadd.f32 %v1389_v46, %v1384_v45  ;;  %v3216_v18 = vld [vmem:[#allocation13 + $0x248] sm:$0xff]  ;;  %v3218_v19 = vld [vmem:[#allocation13 + $0x258] sm:$0xff]  ;;  %v3091_v23 = vld [vmem:[#allocation11 + $0x260] sm:$0xff]  ;;  %v7848_v31 = vadd.bf16 %v3340_v8, %v2956_v4  ;;  %v7850_v43 = vadd.bf16 %v3342_v12, %v2958_v7  ;;  %v3345_v45 = vmul.bf16 %v3217_v14, %v3089_v10 }
 0x24c   :  { %v3093_v25 = vld [vmem:[#allocation11 + $0x270] sm:$0xff]  ;;  %v3219_v26 = vld [vmem:[#allocation13 + $0x260] sm:$0xff]  ;;  %v3092_v37 = vld [vmem:[#allocation11 + $0x268] sm:$0xff]  ;;  %v3344_v46 = vmul.bf16 %v3216_v18, %v3088_v15  ;;  %v3346_v59 = vmul.bf16 %v3218_v19, %v3090_v17  ;;  %v6804_v6 = vcombine.high %v7844_v22, %v7846_v30 }
 0x24d   :  { %v1402_v53 = vrot.slane %v1390_v48, %v7828_v49  ;;  %v1406_v57 = vrot.slane %v1390_v48, %v7830_v50  ;;  %v1410_v61 = vrot.slane %v1390_v48, %v7832_v51  ;;  %v1414_v0 = vrot.slane %v1390_v48, %v7834_v52  ;;  %v3221_v33 = vld [vmem:[#allocation13 + $0x270] sm:$0xff]  ;;  %v3220_v39 = vld [vmem:[#allocation13 + $0x268] sm:$0xff]  ;;  %v2959_v44 = vld [vmem:[#allocation10 + $0x240] sm:$0xff] }
 0x24e   :  { %v3094_v47 = vld [vmem:[#allocation11 + $0x278] sm:$0xff]  ;;  %v2960_v58 = vld [vmem:[#allocation10 + $0x248] sm:$0xff]  ;;  %v3347_v60 = vmul.bf16 %v3219_v26, %v3091_v23  ;;  %v2963_v1 = vld [vmem:[#allocation10 + $0x260] sm:$0xff]  ;;  %v3349_v3 = vmul.bf16 %v3221_v33, %v3093_v25  ;;  %v3348_v4 = vmul.bf16 %v3220_v39, %v3092_v37  ;;  %v7856_v7 = vadd.bf16 %v3343_v32, %v2959_v44 }
 0x24f   :  { %v1422_v5 = vrot.slane %v1402_v53, %v7828_v49  ;;  %v1426_v11 = vrot.slane %v1406_v57, %v7828_v49  ;;  %v1430_v16 = vrot.slane %v1410_v61, %v7828_v49  ;;  %v1434_v21 = vrot.slane %v1414_v0, %v7828_v49  ;;  %v3222_v48 = vld [vmem:[#allocation13 + $0x278] sm:$0xff]  ;;  %v2961_v57 = vld [vmem:[#allocation10 + $0x250] sm:$0xff]  ;;  %v2964_v8 = vld [vmem:[#allocation10 + $0x268] sm:$0xff] }
 0x250   :  { %v2962_v0 = vld [vmem:[#allocation10 + $0x258] sm:$0xff]  ;;  %v2965_v2 = vld [vmem:[#allocation10 + $0x270] sm:$0xff]  ;;  %v3350_v9 = vmul.bf16 %v3222_v48, %v3094_v47  ;;  %v3095_v10 = vld [vmem:[#allocation11 + $0x280] sm:$0xff]  ;;  %v6806_v14 = vcombine.high %v7848_v31, %v7850_v43  ;;  %v7860_v15 = vadd.bf16 %v3345_v45, %v2961_v57  ;;  %v7866_v23 = vadd.bf16 %v3347_v60, %v2963_v1 }
 0x251   :  { %v3097_v17 = vld [vmem:[#allocation11 + $0x290] sm:$0xff]  ;;  %v3096_v25 = vld [vmem:[#allocation11 + $0x288] sm:$0xff]  ;;  %v2967_v32 = vld [vmem:[#allocation10 + $0x280] sm:$0xff]  ;;  %v6803_v47 = vcombine.low %v7844_v22, %v7846_v30  ;;  %v6805_v48 = vcombine.low %v7848_v31, %v7850_v43 }
 0x252   :  { %v3225_v18 = vld [vmem:[#allocation13 + $0x290] sm:$0xff]  ;;  %v3224_v26 = vld [vmem:[#allocation13 + $0x288] sm:$0xff]  ;;  %v3098_v37 = vld [vmem:[#allocation11 + $0x298] sm:$0xff]  ;;  %v6808_v24 = vcombine.high %v7856_v7, %v7860_v15  ;;  %v6807_v22 = vcombine.low %v7856_v7, %v7860_v15 }
 0x253   :  { %v3226_v39 = vld [vmem:[#allocation13 + $0x298] sm:$0xff]  ;;  %v3353_v44 = vmul.bf16 %v3225_v18, %v3097_v17  ;;  %v2968_v45 = vld [vmem:[#allocation10 + $0x288] sm:$0xff]  ;;  %v3227_v57 = vld [vmem:[#allocation13 + $0x2a0] sm:$0xff] }
 0x254   :  { %v3354_v34 = vmul.bf16 %v3226_v39, %v3098_v37  ;;  %v3100_v35 = vld [vmem:[#allocation11 + $0x2a8] sm:$0xff]  ;;  %v3230_v31 = vld [vmem:[#allocation13 + $0x2b8] sm:$0xff]  ;;  %v3103_v43 = vld [vmem:[#allocation11 + $0x2c0] sm:$0xff] }
 0x255   :  { %v3233_v1 = vld [vmem:[#allocation13 + $0x2d0] sm:$0xff]  ;;  %v3232_v7 = vld [vmem:[#allocation13 + $0x2c8] sm:$0xff]  ;;  %v2974_v15 = vld [vmem:[#allocation10 + $0x2b8] sm:$0xff] }
 0x256   :  { %v2977_v17 = vld [vmem:[#allocation10 + $0x2d0] sm:$0xff]  ;;  %v3107_v37 = vld [vmem:[#allocation11 + $0x2e0] sm:$0xff] }
 0x2dc   :  { %v2712_v20 = vpop.f32.mrb[0].mxu0 }
 0x2dd   :  { %v7067_v27 = vadd.f32 %v2712_v20, %v1422_v5  ;;  %v2714_v29 = vpop.f32.mrb[1].mxu0  ;;  %v7862_v20 = vadd.bf16 %v3344_v46, %v2960_v58  ;;  %v7874_v46 = vld [vmem:[#allocation11 + $0x2a0] sm:$0xff]  ;;  %v3229_v58 = vld [vmem:[#allocation13 + $0x2b0] sm:$0xff] }
 0x2de   :  { %v2876_v40 = vpop.f32.mrb[0].mxu1  ;;  %v7068_v41 = vadd.f32 %v2714_v29, %v1426_v11  ;;  %v2716_v42 = vpop.f32.mrb[2].mxu0  ;;  %v3223_v11 = vld [vmem:[#allocation13 + $0x280] sm:$0xff]  ;;  %v7870_v29 = vadd.bf16 %v3348_v4, %v2964_v8  ;;  %v3355_v4 = vmul.bf16 %v3227_v57, %v7874_v46  ;;  %v3234_v8 = vld [vmem:[#allocation13 + $0x2d8] sm:$0xff]  ;;  %v3108_v46 = vld [vmem:[#allocation11 + $0x2e8] sm:$0xff] }
 0x2df   :  { %v2883_v53 = vmax.f32 %v7067_v27, 0.0  ;;  %v7852_v54 = vadd.f32 %v2876_v40, %v1430_v16  ;;  %v2878_v55 = vpop.f32.mrb[1].mxu1  ;;  %v2717_v56 = vpop.f32.mrb[3].mxu0  ;;  %v2966_v16 = vld [vmem:[#allocation10 + $0x278] sm:$0xff]  ;;  %v7868_v27 = vadd.bf16 %v3349_v3, %v2965_v2  ;;  %v3351_v33 = vmul.bf16 %v3223_v11, %v3095_v10  ;;  %v2969_v42 = vld [vmem:[#allocation10 + $0x290] sm:$0xff]  ;;  %v3104_v2 = vld [vmem:[#allocation11 + $0x2c8] sm:$0xff] }
 0x2e0   :  { %v2884_v61 = vmax.f32 %v7068_v41, 0.0  ;;  %v7070_v62 = vadd.f32 %v2878_v55, %v1434_v21  ;;  %v2880_v63 = vpop.f32.mrb[2].mxu1  ;;  %v7864_v21 = vadd.bf16 %v3346_v59, %v2962_v0  ;;  %v7872_v41 = vadd.bf16 %v3350_v9, %v2966_v16  ;;  %v3101_v56 = vld [vmem:[#allocation11 + $0x2b0] sm:$0xff]  ;;  %v3231_v0 = vld [vmem:[#allocation13 + $0x2c0] sm:$0xff]  ;;  %v3238_v57 = vld [vmem:[#allocation13 + $0x2f8] sm:$0xff] }
 0x2e1   :  { %v2881_v5 = vpop.f32.mrb[3].mxu1  ;;  %v3535_v19 = vpack.c.bf16 %v2883_v53, %v2883_v53  ;;  %v2970_v53 = vld [vmem:[#allocation10 + $0x298] sm:$0xff]  ;;  %v3352_v55 = vmul.bf16 %v3224_v26, %v3096_v25  ;;  %v3105_v59 = vld [vmem:[#allocation11 + $0x2d0] sm:$0xff]  ;;  %v6812_v60 = vcombine.high %v7866_v23, %v7868_v27  ;;  %v7900_v63 = vadd.bf16 %v3353_v44, %v2969_v42  ;;  %v2971_v10 = vld [vmem:[#allocation10 + $0x2a0] sm:$0xff] }
 0x2e2   :  { %v3536_v12 = vpack.c.bf16 %v2884_v61, %v2884_v61  ;;  %v2886_v13 = vmax.f32 %v7070_v62, 0.0  ;;  %v6810_v28 = vcombine.high %v7862_v20, %v7864_v21  ;;  %v6809_v30 = vcombine.low %v7862_v20, %v7864_v21  ;;  %v2973_v11 = vld [vmem:[#allocation10 + $0x2b0] sm:$0xff]  ;;  %v2975_v16 = vld [vmem:[#allocation10 + $0x2c0] sm:$0xff]  ;;  %v2976_v25 = vld [vmem:[#allocation10 + $0x2c8] sm:$0xff] }
 0x2e3   :  { %v6814_v61 = vcombine.high %v7870_v29, %v7872_v41  ;;  %v7898_v62 = vadd.bf16 %v3351_v33, %v2967_v32  ;;  %v7902_v3 = vadd.bf16 %v3352_v55, %v2968_v45  ;;  %v3357_v5 = vmul.bf16 %v3229_v58, %v3101_v56  ;;  %v2978_v26 = vld [vmem:[#allocation10 + $0x2d8] sm:$0xff]  ;;  %v3109_v44 = vld [vmem:[#allocation11 + $0x2f0] sm:$0xff]  ;;  %v3235_v45 = vld [vmem:[#allocation13 + $0x2e0] sm:$0xff] }
 0x2e4   :  { %4248 = vmatprep.mubr.bf16.mxu0 %v3536_v12  ;;  %4330 = vmatprep.mubr.bf16.mxu1 %v3536_v12  ;;  %v3538_v40 = vpack.c.bf16 %v2886_v13, %v2886_v13  ;;  %v7905_v9 = vadd.bf16 %v3354_v34, %v2970_v53  ;;  %v2972_v12 = vld [vmem:[#allocation10 + $0x2a8] sm:$0xff]  ;;  %v3359_v18 = vmul.bf16 %v3231_v0, %v3103_v43  ;;  %v2979_v55 = vld [vmem:[#allocation10 + $0x2e0] sm:$0xff]  ;;  %v3110_v56 = vld [vmem:[#allocation11 + $0x2f8] sm:$0xff] }
 0x2e5   :  { %4249 = vmatmul.mubr.bf16.vlgmr.msra.gmra.mrb[4].mxu0 %v3535_v19  ;;  %4331 = vmatmul.mubr.bf16.vlgmr.msra.gmra.mrb[4].mxu1 %v3535_v19  ;;  %v3361_v19 = vmul.bf16 %v3233_v1, %v3105_v59  ;;  %v6811_v20 = vcombine.low %v7866_v23, %v7868_v27  ;;  %v6813_v21 = vcombine.low %v7870_v29, %v7872_v41  ;;  %v3237_v23 = vld [vmem:[#allocation13 + $0x2f0] sm:$0xff] }
 0x2e6   :  { %4258 = vmatpush1.bf16.msra.mxu0 %v6799_v36  ;;  %4340 = vmatpush1.bf16.msra.mxu1 %v6801_v38  ;;  %v3102_v36 = vld [vmem:[#allocation11 + $0x2b8] sm:$0xff]  ;;  %v3228_v38 = vld [vmem:[#allocation13 + $0x2a8] sm:$0xff]  ;;  %v3360_v32 = vmul.bf16 %v3232_v7, %v3104_v2  ;;  %v6816_v39 = vcombine.high %v7898_v62, %v7900_v63  ;;  %v7915_v42 = vadd.bf16 %v3357_v5, %v2973_v11  ;;  %v3113_v59 = vld [vmem:[#allocation11 + $0x310] sm:$0xff] }
 0x2e7   :  { %4289 = vmatprep.mubr.bf16.mxu0 %v3538_v40  ;;  %4371 = vmatprep.mubr.bf16.mxu1 %v3538_v40  ;;  %v3356_v13 = vmul.bf16 %v3228_v38, %v3100_v35  ;;  %v7913_v40 = vadd.bf16 %v3355_v4, %v2971_v10  ;;  %v6818_v27 = vcombine.high %v7902_v3, %v7905_v9  ;;  %v3111_v38 = vld [vmem:[#allocation11 + $0x300] sm:$0xff]  ;;  %v3112_v4 = vld [vmem:[#allocation11 + $0x308] sm:$0xff]  ;;  %v3114_v5 = vld [vmem:[#allocation11 + $0x318] sm:$0xff] }
 0x2e8   :  { %4259 = vmatprep.subr.bf16.mxu0 %v6804_v6  ;;  %4341 = vmatprep.subr.bf16.mxu1 %v6806_v14  ;;  %v3106_v6 = vld [vmem:[#allocation11 + $0x2d8] sm:$0xff]  ;;  %v3358_v14 = vmul.bf16 %v3230_v31, %v3102_v36  ;;  %v7925_v53 = vadd.bf16 %v3361_v19, %v2977_v17  ;;  %v7927_v58 = vadd.bf16 %v3360_v32, %v2976_v25  ;;  %v2980_v36 = vld [vmem:[#allocation10 + $0x2e8] sm:$0xff]  ;;  %v3115_v7 = vld [vmem:[#allocation11 + $0x320] sm:$0xff] }
 0x2e9   :  { %v3362_v33 = vmul.bf16 %v3234_v8, %v3106_v6  ;;  %v7919_v29 = vadd.bf16 %v3356_v13, %v2972_v12  ;;  %v3363_v34 = vmul.bf16 %v3235_v45, %v3107_v37  ;;  %v3365_v35 = vmul.bf16 %v3237_v23, %v3109_v44  ;;  %v2982_v31 = vld [vmem:[#allocation10 + $0x2f8] sm:$0xff]  ;;  %v3117_v8 = vld [vmem:[#allocation11 + $0x330] sm:$0xff]  ;;  %v3243_v13 = vld [vmem:[#allocation13 + $0x320] sm:$0xff] }
 0x2ea   :  { %4260 = vmatpush1.bf16.msra.mxu0 %v6803_v47  ;;  %4342 = vmatpush1.bf16.msra.mxu1 %v6805_v48  ;;  %v7921_v41 = vadd.bf16 %v3358_v14, %v2974_v15  ;;  %v3236_v47 = vld [vmem:[#allocation13 + $0x2e8] sm:$0xff]  ;;  %v7923_v48 = vadd.bf16 %v3359_v18, %v2975_v16  ;;  %v6820_v0 = vcombine.high %v7913_v40, %v7915_v42  ;;  %v3242_v6 = vld [vmem:[#allocation13 + $0x318] sm:$0xff]  ;;  %v3245_v14 = vld [vmem:[#allocation13 + $0x330] sm:$0xff] }
 0x2eb   :  { %4261 = vmatprep.subr.bf16.mxu0 %v6808_v24  ;;  %4343 = vmatprep.subr.bf16.mxu1 %v6810_v28  ;;  %v7929_v24 = vadd.bf16 %v3362_v33, %v2978_v26  ;;  %v2981_v28 = vld [vmem:[#allocation10 + $0x2f0] sm:$0xff]  ;;  %v3364_v43 = vmul.bf16 %v3236_v47, %v3108_v46  ;;  %v3366_v2 = vmul.bf16 %v3238_v57, %v3110_v56  ;;  %v3116_v15 = vld [vmem:[#allocation11 + $0x328] sm:$0xff]  ;;  %v3118_v19 = vld [vmem:[#allocation11 + $0x338] sm:$0xff] }
 0x2ec   :  { %v6822_v1 = vcombine.high %v7919_v29, %v7921_v41  ;;  %v7947_v11 = vadd.bf16 %v3363_v34, %v2979_v55  ;;  %v7949_v12 = vadd.bf16 %v3365_v35, %v2981_v28  ;;  %v2983_v26 = vld [vmem:[#allocation10 + $0x300] sm:$0xff]  ;;  %v2985_v32 = vld [vmem:[#allocation10 + $0x310] sm:$0xff]  ;;  %v2984_v33 = vld [vmem:[#allocation10 + $0x308] sm:$0xff]  ;;  %v3371_v45 = vmul.bf16 %v3243_v13, %v3115_v7 }
 0x2ed   :  { %v6826_v10 = vcombine.high %v7927_v58, %v7929_v24  ;;  %v7951_v16 = vadd.bf16 %v3364_v43, %v2980_v36  ;;  %v7953_v25 = vadd.bf16 %v3366_v2, %v2982_v31  ;;  %v2989_v44 = vld [vmem:[#allocation10 + $0x330] sm:$0xff]  ;;  %v3373_v23 = vmul.bf16 %v3245_v14, %v3117_v8  ;;  %v2990_v46 = vld [vmem:[#allocation10 + $0x338] sm:$0xff]  ;;  %v3119_v56 = vld [vmem:[#allocation11 + $0x340] sm:$0xff] }
 0x2ee   :  { %4262 = vmatpush1.bf16.msra.mxu0 %v6807_v22  ;;  %4344 = vmatpush1.bf16.msra.mxu1 %v6809_v30  ;;  %v6815_v22 = vcombine.low %v7898_v62, %v7900_v63  ;;  %v6817_v30 = vcombine.low %v7902_v3, %v7905_v9  ;;  %v3240_v62 = vld [vmem:[#allocation13 + $0x308] sm:$0xff]  ;;  %v6819_v63 = vcombine.low %v7913_v40, %v7915_v42  ;;  %v2986_v40 = vld [vmem:[#allocation10 + $0x318] sm:$0xff]  ;;  %v2987_v42 = vld [vmem:[#allocation10 + $0x320] sm:$0xff] }
 0x2ef   :  { %4263 = vmatprep.subr.bf16.mxu0 %v6812_v60  ;;  %4345 = vmatprep.subr.bf16.mxu1 %v6814_v61  ;;  %v3239_v60 = vld [vmem:[#allocation13 + $0x300] sm:$0xff]  ;;  %v3241_v61 = vld [vmem:[#allocation13 + $0x310] sm:$0xff]  ;;  %v6821_v3 = vcombine.low %v7919_v29, %v7921_v41  ;;  %v6824_v9 = vcombine.high %v7923_v48, %v7925_v53  ;;  %v3368_v37 = vmul.bf16 %v3240_v62, %v3112_v4  ;;  %v2988_v41 = vld [vmem:[#allocation10 + $0x328] sm:$0xff] }
 0x2f0   :  { %v3367_v17 = vmul.bf16 %v3239_v60, %v3111_v38  ;;  %v3369_v18 = vmul.bf16 %v3241_v61, %v3113_v59  ;;  %v6825_v29 = vcombine.low %v7927_v58, %v7929_v24  ;;  %v6828_v57 = vcombine.high %v7947_v11, %v7949_v12  ;;  %v3121_v35 = vld [vmem:[#allocation11 + $0x350] sm:$0xff]  ;;  %v3247_v36 = vld [vmem:[#allocation13 + $0x340] sm:$0xff]  ;;  %v3120_v38 = vld [vmem:[#allocation11 + $0x348] sm:$0xff] }
 0x2f1   :  { %v7967_v58 = vadd.bf16 %v3368_v37, %v2984_v33  ;;  %v7973_v31 = vadd.bf16 %v3373_v23, %v2989_v44  ;;  %v2991_v43 = vld [vmem:[#allocation10 + $0x340] sm:$0xff]  ;;  %v3122_v59 = vld [vmem:[#allocation11 + $0x358] sm:$0xff]  ;;  %v3375_v2 = vmul.bf16 %v3247_v36, %v3119_v56  ;;  %v3125_v8 = vld [vmem:[#allocation11 + $0x370] sm:$0xff] }
 0x2f2   :  { %4264 = vmatpush1.bf16.msra.mxu0 %v6811_v20  ;;  %4346 = vmatpush1.bf16.msra.mxu1 %v6813_v21  ;;  %v3244_v20 = vld [vmem:[#allocation13 + $0x328] sm:$0xff]  ;;  %v3246_v21 = vld [vmem:[#allocation13 + $0x338] sm:$0xff]  ;;  %v7961_v28 = vadd.bf16 %v3367_v17, %v2983_v26  ;;  %v7963_v34 = vadd.bf16 %v3369_v18, %v2985_v32  ;;  %v3123_v62 = vld [vmem:[#allocation11 + $0x360] sm:$0xff] }
 0x2f3   :  { %4265 = vmatprep.subr.bf16.mxu0 %v6816_v39  ;;  %4347 = vmatprep.subr.bf16.mxu1 %v6818_v27  ;;  %v3370_v39 = vmul.bf16 %v3242_v6, %v3114_v5  ;;  %v6823_v27 = vcombine.low %v7923_v48, %v7925_v53  ;;  %v3372_v47 = vmul.bf16 %v3244_v20, %v3116_v15  ;;  %v3249_v48 = vld [vmem:[#allocation13 + $0x350] sm:$0xff]  ;;  %v3250_v60 = vld [vmem:[#allocation13 + $0x358] sm:$0xff]  ;;  %v2992_v5 = vld [vmem:[#allocation10 + $0x348] sm:$0xff] }
 0x2f4   :  { %v3374_v55 = vmul.bf16 %v3246_v21, %v3118_v19  ;;  %v6830_v53 = vcombine.high %v7951_v16, %v7953_v25  ;;  %v3377_v4 = vmul.bf16 %v3249_v48, %v3121_v35  ;;  %v2994_v6 = vld [vmem:[#allocation10 + $0x358] sm:$0xff]  ;;  %v6832_v13 = vcombine.high %v7961_v28, %v7963_v34  ;;  %v3124_v17 = vld [vmem:[#allocation11 + $0x368] sm:$0xff]  ;;  %v3127_v20 = vld [vmem:[#allocation11 + $0x380] sm:$0xff] }
 0x2f5   :  { %v7969_v24 = vadd.bf16 %v3370_v39, %v2986_v40  ;;  %v7975_v61 = vadd.bf16 %v3372_v47, %v2988_v41  ;;  %v3378_v15 = vmul.bf16 %v3250_v60, %v3122_v59  ;;  %v3126_v18 = vld [vmem:[#allocation11 + $0x378] sm:$0xff]  ;;  %v3129_v21 = vld [vmem:[#allocation11 + $0x390] sm:$0xff]  ;;  %v7995_v32 = vadd.bf16 %v3375_v2, %v2991_v43  ;;  %v3255_v37 = vld [vmem:[#allocation13 + $0x380] sm:$0xff] }
 0x2f6   :  { %4266 = vmatpush1.bf16.msra.mxu0 %v6815_v22  ;;  %4348 = vmatpush1.bf16.msra.mxu1 %v6817_v30  ;;  %v3248_v22 = vld [vmem:[#allocation13 + $0x348] sm:$0xff]  ;;  %v7971_v30 = vadd.bf16 %v3371_v45, %v2987_v42  ;;  %v3254_v19 = vld [vmem:[#allocation13 + $0x378] sm:$0xff]  ;;  %v3257_v39 = vld [vmem:[#allocation13 + $0x390] sm:$0xff]  ;;  %v3383_v36 = vmul.bf16 %v3255_v37, %v3127_v20 }
 0x2f7   :  { %4267 = vmatprep.subr.bf16.mxu0 %v6820_v0  ;;  %4349 = vmatprep.subr.bf16.mxu1 %v6822_v1  ;;  %v7977_v0 = vadd.bf16 %v3374_v55, %v2990_v46  ;;  %v2993_v1 = vld [vmem:[#allocation10 + $0x350] sm:$0xff]  ;;  %v3376_v7 = vmul.bf16 %v3248_v22, %v3120_v38  ;;  %v6834_v14 = vcombine.high %v7967_v58, %v7969_v24  ;;  %v3128_v40 = vld [vmem:[#allocation11 + $0x388] sm:$0xff]  ;;  %v3130_v23 = vld [vmem:[#allocation11 + $0x398] sm:$0xff] }
 0x2f8   :  { %v7997_v33 = vadd.bf16 %v3377_v4, %v2993_v1  ;;  %v8001_v41 = vadd.bf16 %v3378_v15, %v2994_v6  ;;  %v2995_v46 = vld [vmem:[#allocation10 + $0x360] sm:$0xff]  ;;  %v2997_v47 = vld [vmem:[#allocation10 + $0x370] sm:$0xff]  ;;  %v2996_v55 = vld [vmem:[#allocation10 + $0x368] sm:$0xff]  ;;  %v3385_v48 = vmul.bf16 %v3257_v39, %v3129_v21 }
 0x2f9   :  { %v6838_v26 = vcombine.high %v7975_v61, %v7977_v0  ;;  %v7999_v42 = vadd.bf16 %v3376_v7, %v2992_v5  ;;  %v3001_v35 = vld [vmem:[#allocation10 + $0x390] sm:$0xff]  ;;  %v3002_v38 = vld [vmem:[#allocation10 + $0x398] sm:$0xff]  ;;  %v3131_v59 = vld [vmem:[#allocation11 + $0x3a0] sm:$0xff] }
 0x2fa   :  { %4268 = vmatpush1.bf16.msra.mxu0 %v6819_v63  ;;  %4350 = vmatpush1.bf16.msra.mxu1 %v6821_v3  ;;  %v6827_v63 = vcombine.low %v7947_v11, %v7949_v12  ;;  %v6829_v3 = vcombine.low %v7951_v16, %v7953_v25  ;;  %v3252_v11 = vld [vmem:[#allocation13 + $0x368] sm:$0xff]  ;;  %v6831_v12 = vcombine.low %v7961_v28, %v7963_v34  ;;  %v2998_v28 = vld [vmem:[#allocation10 + $0x378] sm:$0xff]  ;;  %v2999_v34 = vld [vmem:[#allocation10 + $0x380] sm:$0xff] }
 0x2fb   :  { %4269 = vmatprep.subr.bf16.mxu0 %v6824_v9  ;;  %4351 = vmatprep.subr.bf16.mxu1 %v6826_v10  ;;  %v3251_v9 = vld [vmem:[#allocation13 + $0x360] sm:$0xff]  ;;  %v3253_v10 = vld [vmem:[#allocation13 + $0x370] sm:$0xff]  ;;  %v6833_v16 = vcombine.low %v7967_v58, %v7969_v24  ;;  %v6836_v25 = vcombine.high %v7971_v30, %v7973_v31  ;;  %v3380_v56 = vmul.bf16 %v3252_v11, %v3124_v17  ;;  %v3000_v24 = vld [vmem:[#allocation10 + $0x388] sm:$0xff] }
 0x2fc   :  { %v3379_v44 = vmul.bf16 %v3251_v9, %v3123_v62  ;;  %v3381_v45 = vmul.bf16 %v3253_v10, %v3125_v8  ;;  %v6837_v58 = vcombine.low %v7975_v61, %v7977_v0  ;;  %v6840_v60 = vcombine.high %v7995_v32, %v7997_v33  ;;  %v3133_v4 = vld [vmem:[#allocation11 + $0x3b0] sm:$0xff]  ;;  %v3259_v5 = vld [vmem:[#allocation13 + $0x3a0] sm:$0xff]  ;;  %v3132_v62 = vld [vmem:[#allocation11 + $0x3a8] sm:$0xff] }
 0x2fd   :  { %v8015_v61 = vadd.bf16 %v3380_v56, %v2996_v55  ;;  %v8021_v6 = vadd.bf16 %v3385_v48, %v3001_v35  ;;  %v3003_v7 = vld [vmem:[#allocation10 + $0x3a0] sm:$0xff]  ;;  %v3134_v8 = vld [vmem:[#allocation11 + $0x3b8] sm:$0xff]  ;;  %v3387_v15 = vmul.bf16 %v3259_v5, %v3131_v59  ;;  %v3137_v21 = vld [vmem:[#allocation11 + $0x3d0] sm:$0xff] }
 0x2fe   :  { %4270 = vmatpush1.bf16.msra.mxu0 %v6823_v27  ;;  %4352 = vmatpush1.bf16.msra.mxu1 %v6825_v29  ;;  %v3256_v27 = vld [vmem:[#allocation13 + $0x388] sm:$0xff]  ;;  %v3258_v29 = vld [vmem:[#allocation13 + $0x398] sm:$0xff]  ;;  %v8009_v1 = vadd.bf16 %v3379_v44, %v2995_v46  ;;  %v8011_v2 = vadd.bf16 %v3381_v45, %v2997_v47  ;;  %v8027_v11 = vld [vmem:[#allocation11 + $0x3c0] sm:$0xff] }
 0x2ff   :  { %4271 = vmatprep.subr.bf16.mxu0 %v6828_v57  ;;  %4353 = vmatprep.subr.bf16.mxu1 %v6830_v53  ;;  %v3382_v57 = vmul.bf16 %v3254_v19, %v3126_v18  ;;  %v6835_v53 = vcombine.low %v7971_v30, %v7973_v31  ;;  %v3384_v22 = vmul.bf16 %v3256_v27, %v3128_v40  ;;  %v3261_v30 = vld [vmem:[#allocation13 + $0x3b0] sm:$0xff]  ;;  %v3262_v9 = vld [vmem:[#allocation13 + $0x3b8] sm:$0xff]  ;;  %v3004_v18 = vld [vmem:[#allocation10 + $0x3a8] sm:$0xff] }
 0x300   :  { %v3386_v43 = vmul.bf16 %v3258_v29, %v3130_v23  ;;  %v6842_v31 = vcombine.high %v7999_v42, %v8001_v41  ;;  %v3389_v17 = vmul.bf16 %v3261_v30, %v3133_v4  ;;  %v3006_v19 = vld [vmem:[#allocation10 + $0x3b8] sm:$0xff]  ;;  %v6844_v37 = vcombine.high %v8009_v1, %v8011_v2  ;;  %v3136_v44 = vld [vmem:[#allocation11 + $0x3c8] sm:$0xff]  ;;  %v3139_v27 = vld [vmem:[#allocation11 + $0x3e0] sm:$0xff] }
 0x301   :  { %v8017_v0 = vadd.bf16 %v3382_v57, %v2998_v28  ;;  %v8023_v10 = vadd.bf16 %v3384_v22, %v3000_v24  ;;  %v3390_v40 = vmul.bf16 %v3262_v9, %v3134_v8  ;;  %v3138_v45 = vld [vmem:[#allocation11 + $0x3d8] sm:$0xff]  ;;  %v3141_v29 = vld [vmem:[#allocation11 + $0x3f0] sm:$0xff]  ;;  %v8045_v47 = vadd.bf16 %v3387_v15, %v3003_v7  ;;  %v3007_v56 = vld [vmem:[#allocation10 + $0x3c0] sm:$0xff] }
 0x302   :  { %4272 = vmatpush1.bf16.msra.mxu0 %v6827_v63  ;;  %4354 = vmatpush1.bf16.msra.mxu1 %v6829_v3  ;;  %v3260_v63 = vld [vmem:[#allocation13 + $0x3a8] sm:$0xff]  ;;  %v8019_v3 = vadd.bf16 %v3383_v36, %v2999_v34  ;;  %v3266_v23 = vld [vmem:[#allocation13 + $0x3d8] sm:$0xff]  ;;  %v3267_v57 = vld [vmem:[#allocation13 + $0x3e0] sm:$0xff] }
 0x303   :  { %4273 = vmatprep.subr.bf16.mxu0 %v6832_v13  ;;  %4355 = vmatprep.subr.bf16.mxu1 %v6834_v14  ;;  %v8025_v13 = vadd.bf16 %v3386_v43, %v3002_v38  ;;  %v3005_v14 = vld [vmem:[#allocation10 + $0x3b0] sm:$0xff]  ;;  %v3388_v20 = vmul.bf16 %v3260_v63, %v3132_v62  ;;  %v6846_v39 = vcombine.high %v8015_v61, %v8017_v0  ;;  %v3140_v34 = vld [vmem:[#allocation11 + $0x3e8] sm:$0xff]  ;;  %v3270_v24 = vld [vmem:[#allocation13 + $0x3f8] sm:$0xff] }
 0x304   :  { %v8047_v55 = vadd.bf16 %v3389_v17, %v3005_v14  ;;  %v3269_v28 = vld [vmem:[#allocation13 + $0x3f0] sm:$0xff]  ;;  %v8052_v38 = vadd.bf16 %v3390_v40, %v3006_v19  ;;  %v3008_v43 = vld [vmem:[#allocation10 + $0x3c8] sm:$0xff]  ;;  %v3010_v59 = vld [vmem:[#allocation10 + $0x3d8] sm:$0xff]  ;;  %v3395_v5 = vmul.bf16 %v3267_v57, %v3139_v27 }
 0x305   :  { %v6850_v46 = vcombine.high %v8023_v10, %v8025_v13  ;;  %v8049_v35 = vadd.bf16 %v3388_v20, %v3004_v18  ;;  %v3009_v22 = vld [vmem:[#allocation10 + $0x3d0] sm:$0xff]  ;;  %v3397_v30 = vmul.bf16 %v3269_v28, %v3141_v29  ;;  %v3014_v62 = vld [vmem:[#allocation10 + $0x3f8] sm:$0xff]  ;;  %v4512_v8 = vld [vmem:[#allocation16] sm:$0xff] }
 0x306   :  { %4274 = vmatpush1.bf16.msra.mxu0 %v6831_v12  ;;  %4356 = vmatpush1.bf16.msra.mxu1 %v6833_v16  ;;  %v6839_v12 = vcombine.low %v7995_v32, %v7997_v33  ;;  %v6841_v16 = vcombine.low %v7999_v42, %v8001_v41  ;;  %v3264_v32 = vld [vmem:[#allocation13 + $0x3c8] sm:$0xff]  ;;  %v6843_v33 = vcombine.low %v8009_v1, %v8011_v2  ;;  %v3011_v2 = vld [vmem:[#allocation10 + $0x3e0] sm:$0xff]  ;;  %v3013_v4 = vld [vmem:[#allocation10 + $0x3f0] sm:$0xff] }
 0x307   :  { %4275 = vmatprep.subr.bf16.mxu0 %v6836_v25  ;;  %4357 = vmatprep.subr.bf16.mxu1 %v6838_v26  ;;  %v3263_v25 = vld [vmem:[#allocation13 + $0x3c0] sm:$0xff]  ;;  %v3265_v26 = vld [vmem:[#allocation13 + $0x3d0] sm:$0xff]  ;;  %v6845_v42 = vcombine.low %v8015_v61, %v8017_v0  ;;  %v6848_v41 = vcombine.high %v8019_v3, %v8021_v6  ;;  %v3394_v1 = vmul.bf16 %v3266_v23, %v3138_v45  ;;  %v4643_v19 = vld [vmem:[#allocation17 + $0x18] sm:$0xff] }
 0x308   :  { %v3391_v36 = vmul.bf16 %v3263_v25, %v8027_v11  ;;  %v3393_v48 = vmul.bf16 %v3265_v26, %v3137_v21  ;;  %v6847_v61 = vcombine.low %v8019_v3, %v8021_v6  ;;  %v6849_v0 = vcombine.low %v8023_v10, %v8025_v13  ;;  %v4514_v9 = vld [vmem:[#allocation16 + $0x10] sm:$0xff]  ;;  %v4640_v18 = vld [vmem:[#allocation17] sm:$0xff]  ;;  %v4513_v3 = vld [vmem:[#allocation16 + $0x8] sm:$0xff] }
 0x309   :  { %v6852_v14 = vcombine.high %v8045_v47, %v8047_v55  ;;  %v4642_v11 = vld [vmem:[#allocation17 + $0x10] sm:$0xff]  ;;  %v6854_v6 = vcombine.high %v8049_v35, %v8052_v38  ;;  %v8068_v13 = vadd.bf16 %v3394_v1, %v3010_v59  ;;  %v6851_v20 = vcombine.low %v8045_v47, %v8047_v55  ;;  %v4384_v26 = vld [vmem:[#allocation14] sm:$0xff]  ;;  %v4517_v57 = vld [vmem:[#allocation16 + $0x28] sm:$0xff] }
 0x30a   :  { %4276 = vmatpush1.bf16.msra.mxu0 %v6835_v53  ;;  %4358 = vmatpush1.bf16.msra.mxu1 %v6837_v58  ;;  %v3142_v53 = vld [vmem:[#allocation11 + $0x3f8] sm:$0xff]  ;;  %v3268_v58 = vld [vmem:[#allocation13 + $0x3e8] sm:$0xff]  ;;  %v8060_v15 = vadd.bf16 %v3391_v36, %v3007_v56  ;;  %v8062_v17 = vadd.bf16 %v3393_v48, %v3009_v22  ;;  %v8072_v21 = vadd.bf16 %v3395_v5, %v3011_v2  ;;  %v4646_v47 = vld [vmem:[#allocation17 + $0x30] sm:$0xff] }
 0x30b   :  { %4277 = vmatprep.subr.bf16.mxu0 %v6840_v60  ;;  %4359 = vmatprep.subr.bf16.mxu1 %v6842_v31  ;;  %v3392_v60 = vmul.bf16 %v3264_v32, %v3136_v44  ;;  %v3012_v31 = vld [vmem:[#allocation10 + $0x3e8] sm:$0xff]  ;;  %v3396_v63 = vmul.bf16 %v3268_v58, %v3140_v34  ;;  %v3398_v7 = vmul.bf16 %v3270_v24, %v3142_v53  ;;  %v4519_v28 = vld [vmem:[#allocation16 + $0x38] sm:$0xff]  ;;  %v4520_v53 = vld [vmem:[#allocation16 + $0x40] sm:$0xff] }
 0x30c   :  { %v8074_v25 = vadd.bf16 %v3397_v30, %v3013_v4  ;;  %v4768_v44 = vmul.bf16 %v4640_v18, %v4512_v8  ;;  %v4770_v45 = vmul.bf16 %v4642_v11, %v4514_v9  ;;  %v4385_v32 = vld [vmem:[#allocation14 + $0x8] sm:$0xff]  ;;  %v6853_v23 = vcombine.low %v8049_v35, %v8052_v38  ;;  %v4647_v48 = vld [vmem:[#allocation17 + $0x38] sm:$0xff]  ;;  %v4522_v58 = vld [vmem:[#allocation16 + $0x50] sm:$0xff] }
 0x30d   :  { %v8066_v10 = vadd.bf16 %v3392_v60, %v3008_v43  ;;  %v8078_v40 = vadd.bf16 %v3398_v7, %v3014_v62  ;;  %v6856_v55 = vcombine.high %v8060_v15, %v8062_v17  ;;  %v4645_v34 = vld [vmem:[#allocation17 + $0x28] sm:$0xff]  ;;  %v6855_v35 = vcombine.low %v8060_v15, %v8062_v17  ;;  %v4388_v59 = vld [vmem:[#allocation14 + $0x20] sm:$0xff]  ;;  %v4650_v1 = vld [vmem:[#allocation17 + $0x50] sm:$0xff] }
 0x30e   :  { %4278 = vmatpush1.bf16.msra.mxu0 %v6839_v12  ;;  %4360 = vmatpush1.bf16.msra.mxu1 %v6841_v16  ;;  %v4515_v12 = vld [vmem:[#allocation16 + $0x18] sm:$0xff]  ;;  %v4641_v16 = vld [vmem:[#allocation17 + $0x8] sm:$0xff]  ;;  %v6860_v24 = vcombine.high %v8072_v21, %v8074_v25  ;;  %v8096_v22 = vadd.bf16 %v4768_v44, %v4384_v26  ;;  %v4648_v60 = vld [vmem:[#allocation17 + $0x40] sm:$0xff]  ;;  %v4773_v9 = vmul.bf16 %v4645_v34, %v4517_v57 }
 0x30f   :  { %4279 = vmatprep.subr.bf16.mxu0 %v6844_v37  ;;  %4361 = vmatprep.subr.bf16.mxu1 %v6846_v39  ;;  %v4386_v37 = vld [vmem:[#allocation14 + $0x10] sm:$0xff]  ;;  %v8076_v39 = vadd.bf16 %v3396_v63, %v3012_v31  ;;  %v4769_v27 = vmul.bf16 %v4641_v16, %v4513_v3  ;;  %v4771_v29 = vmul.bf16 %v4643_v19, %v4515_v12  ;;  %v4521_v2 = vld [vmem:[#allocation16 + $0x48] sm:$0xff]  ;;  %v4523_v31 = vld [vmem:[#allocation16 + $0x58] sm:$0xff] }
 0x310   :  { %v6858_v56 = vcombine.high %v8066_v10, %v8068_v13  ;;  %v6857_v36 = vcombine.low %v8066_v10, %v8068_v13  ;;  %v8098_v43 = vadd.bf16 %v4770_v45, %v4386_v37  ;;  %v4390_v62 = vld [vmem:[#allocation14 + $0x30] sm:$0xff]  ;;  %v4389_v7 = vld [vmem:[#allocation14 + $0x28] sm:$0xff]  ;;  %v4391_v8 = vld [vmem:[#allocation14 + $0x38] sm:$0xff]  ;;  %v4776_v18 = vmul.bf16 %v4648_v60, %v4520_v53 }
 0x311   :  { %v6862_v38 = vcombine.high %v8076_v39, %v8078_v40  ;;  %v8100_v4 = vadd.bf16 %v4769_v27, %v4385_v32  ;;  %v4392_v15 = vld [vmem:[#allocation14 + $0x40] sm:$0xff]  ;;  %v4394_v17 = vld [vmem:[#allocation14 + $0x50] sm:$0xff]  ;;  %v4778_v11 = vmul.bf16 %v4650_v1, %v4522_v58  ;;  %v4393_v3 = vld [vmem:[#allocation14 + $0x48] sm:$0xff]  ;;  %v6861_v10 = vcombine.low %v8076_v39, %v8078_v40 }
 0x312   :  { %4280 = vmatpush1.bf16.msra.mxu0 %v6843_v33  ;;  %4362 = vmatpush1.bf16.msra.mxu1 %v6845_v42  ;;  %v4387_v33 = vld [vmem:[#allocation14 + $0x18] sm:$0xff]  ;;  %v4516_v42 = vld [vmem:[#allocation16 + $0x20] sm:$0xff]  ;;  %v6864_v26 = vcombine.high %v8096_v22, %v8098_v43  ;;  %v2885_v39 = vmax.f32 %v7852_v54, 0.0  ;;  %v8118_v32 = vadd.bf16 %v4773_v9, %v4389_v7  ;;  %v4398_v54 = vld [vmem:[#allocation14 + $0x70] sm:$0xff] }
 0x313   :  { %4281 = vmatprep.subr.bf16.mxu0 %v6848_v41  ;;  %4363 = vmatprep.subr.bf16.mxu1 %v6850_v46  ;;  %v8082_v41 = vld [vmem:[#allocation16 + $0x30] sm:$0xff]  ;;  %v4644_v46 = vld [vmem:[#allocation17 + $0x20] sm:$0xff]  ;;  %v8102_v5 = vadd.bf16 %v4771_v29, %v4387_v33  ;;  %v4395_v13 = vld [vmem:[#allocation14 + $0x58] sm:$0xff]  ;;  %v6863_v29 = vcombine.low %v8096_v22, %v8098_v43 }
 0x314   :  { %v4772_v30 = vmul.bf16 %v4644_v46, %v4516_v42  ;;  %v4774_v63 = vmul.bf16 %v4646_v47, %v8082_v41  ;;  %v4524_v19 = vld [vmem:[#allocation16 + $0x60] sm:$0xff]  ;;  %v4527_v42 = vld [vmem:[#allocation16 + $0x78] sm:$0xff]  ;;  %v8124_v41 = vadd.bf16 %v4776_v18, %v4392_v15  ;;  %v8126_v46 = vadd.bf16 %v4778_v11, %v4394_v17  ;;  %v4397_v34 = vld [vmem:[#allocation14 + $0x68] sm:$0xff] }
 0x315   :  { %v6866_v37 = vcombine.high %v8100_v4, %v8102_v5  ;;  %v4652_v45 = vld [vmem:[#allocation17 + $0x60] sm:$0xff]  ;;  %v4655_v27 = vld [vmem:[#allocation17 + $0x78] sm:$0xff]  ;;  %v8138_v22 = vld [vmem:[#allocation17 + $0x90] sm:$0xff]  ;;  %v3537_v43 = vpack.c.bf16 %v2885_v39, %v2885_v39 }
 0x316   :  { %4282 = vmatpush1.bf16.msra.mxu0 %v6847_v61  ;;  %4364 = vmatpush1.bf16.msra.mxu1 %v6849_v0  ;;  %v4649_v61 = vld [vmem:[#allocation17 + $0x48] sm:$0xff]  ;;  %v4651_v0 = vld [vmem:[#allocation17 + $0x58] sm:$0xff]  ;;  %v8113_v44 = vadd.bf16 %v4772_v30, %v4388_v59  ;;  %v8116_v40 = vadd.bf16 %v4774_v63, %v4390_v62  ;;  %v4396_v47 = vld [vmem:[#allocation14 + $0x60] sm:$0xff]  ;;  %v4780_v57 = vmul.bf16 %v4652_v45, %v4524_v19 }
 0x317   :  { %4283 = vmatprep.subr.bf16.mxu0 %v6852_v14  ;;  %4365 = vmatprep.subr.bf16.mxu1 %v6854_v6  ;;  %v4775_v14 = vmul.bf16 %v4647_v48, %v4519_v28  ;;  %v6859_v6 = vcombine.low %v8072_v21, %v8074_v25  ;;  %v4777_v12 = vmul.bf16 %v4649_v61, %v4521_v2  ;;  %v4654_v21 = vld [vmem:[#allocation17 + $0x70] sm:$0xff]  ;;  %v4525_v25 = vld [vmem:[#allocation16 + $0x68] sm:$0xff]  ;;  %v4531_v2 = vld [vmem:[#allocation16 + $0x98] sm:$0xff] }
 0x318   :  { %v4779_v16 = vmul.bf16 %v4651_v0, %v4523_v31  ;;  %v6865_v48 = vcombine.low %v8100_v4, %v8102_v5  ;;  %v4783_v58 = vmul.bf16 %v4655_v27, %v4527_v42  ;;  %v6868_v59 = vcombine.high %v8113_v44, %v8116_v40  ;;  %v4529_v1 = vld [vmem:[#allocation16 + $0x88] sm:$0xff]  ;;  %v4659_v61 = vld [vmem:[#allocation17 + $0x98] sm:$0xff]  ;;  %v4532_v0 = vld [vmem:[#allocation16 + $0xa0] sm:$0xff] }
 0x319   :  { %v8120_v33 = vadd.bf16 %v4775_v14, %v4391_v8  ;;  %v4657_v30 = vld [vmem:[#allocation17 + $0x88] sm:$0xff]  ;;  %v6867_v4 = vcombine.low %v8113_v44, %v8116_v40  ;;  %v6872_v31 = vcombine.high %v8124_v41, %v8126_v46  ;;  %v4534_v62 = vld [vmem:[#allocation16 + $0xb0] sm:$0xff]  ;;  %v8152_v7 = vadd.bf16 %v4780_v57, %v4396_v47  ;;  %v4400_v9 = vld [vmem:[#allocation14 + $0x80] sm:$0xff] }
 0x31a   :  { %4284 = vmatpush1.bf16.msra.mxu0 %v6851_v20  ;;  %4366 = vmatpush1.bf16.msra.mxu1 %v6853_v23  ;;  %v4526_v20 = vld [vmem:[#allocation16 + $0x70] sm:$0xff]  ;;  %v4653_v23 = vld [vmem:[#allocation17 + $0x68] sm:$0xff]  ;;  %v4660_v14 = vld [vmem:[#allocation17 + $0xa0] sm:$0xff]  ;;  %v6871_v40 = vcombine.low %v8124_v41, %v8126_v46 }
 0x31b   :  { %4285 = vmatprep.subr.bf16.mxu0 %v6856_v55  ;;  %4367 = vmatprep.subr.bf16.mxu1 %v6858_v56  ;;  %v8128_v55 = vadd.bf16 %v4777_v12, %v4393_v3  ;;  %v8130_v56 = vadd.bf16 %v4779_v16, %v4395_v13  ;;  %v4782_v28 = vmul.bf16 %v4654_v21, %v4526_v20  ;;  %v4662_v15 = vld [vmem:[#allocation17 + $0xb0] sm:$0xff]  ;;  %v4533_v17 = vld [vmem:[#allocation16 + $0xa8] sm:$0xff]  ;;  %v4663_v13 = vld [vmem:[#allocation17 + $0xb8] sm:$0xff] }
 0x31c   :  { %v4781_v53 = vmul.bf16 %v4653_v23, %v4525_v25  ;;  %v6870_v60 = vcombine.high %v8118_v32, %v8120_v33  ;;  %v6869_v5 = vcombine.low %v8118_v32, %v8120_v33  ;;  %v4402_v12 = vld [vmem:[#allocation14 + $0x90] sm:$0xff]  ;;  %v4401_v19 = vld [vmem:[#allocation14 + $0x88] sm:$0xff]  ;;  %v4403_v20 = vld [vmem:[#allocation14 + $0x98] sm:$0xff]  ;;  %v4788_v21 = vmul.bf16 %v4660_v14, %v4532_v0 }
 0x31d   :  { %v6874_v63 = vcombine.high %v8128_v55, %v8130_v56  ;;  %v8154_v8 = vadd.bf16 %v4782_v28, %v4398_v54  ;;  %v4404_v44 = vld [vmem:[#allocation14 + $0xa0] sm:$0xff]  ;;  %v4406_v45 = vld [vmem:[#allocation14 + $0xb0] sm:$0xff]  ;;  %v4790_v25 = vmul.bf16 %v4662_v15, %v4534_v62  ;;  %v4405_v39 = vld [vmem:[#allocation14 + $0xa8] sm:$0xff]  ;;  %v6873_v32 = vcombine.low %v8128_v55, %v8130_v56 }
 0x31e   :  { %4286 = vmatpush1.bf16.msra.mxu0 %v6855_v35  ;;  %4368 = vmatpush1.bf16.msra.mxu1 %v6857_v36  ;;  %v4399_v35 = vld [vmem:[#allocation14 + $0x78] sm:$0xff]  ;;  %v8132_v36 = vld [vmem:[#allocation16 + $0x80] sm:$0xff]  ;;  %v8156_v18 = vadd.bf16 %v4781_v53, %v4397_v34  ;;  %v4666_v41 = vld [vmem:[#allocation17 + $0xd0] sm:$0xff] }
 0x31f   :  { %4287 = vmatprep.subr.bf16.mxu0 %v6860_v24  ;;  %4369 = vmatprep.subr.bf16.mxu1 %v6862_v38  ;;  %v8136_v24 = vld [vmem:[#allocation16 + $0x90] sm:$0xff]  ;;  %v4656_v38 = vld [vmem:[#allocation17 + $0x80] sm:$0xff]  ;;  %v8158_v11 = vadd.bf16 %v4783_v58, %v4399_v35  ;;  %v4407_v33 = vld [vmem:[#allocation14 + $0xb8] sm:$0xff]  ;;  %v6876_v47 = vcombine.high %v8152_v7, %v8154_v8  ;;  %v6875_v53 = vcombine.low %v8152_v7, %v8154_v8 }
 0x320   :  { %v4784_v3 = vmul.bf16 %v4656_v38, %v8132_v36  ;;  %v4786_v16 = vmul.bf16 %v8138_v22, %v8136_v24  ;;  %v4536_v27 = vld [vmem:[#allocation16 + $0xc0] sm:$0xff]  ;;  %v4537_v46 = vld [vmem:[#allocation16 + $0xc8] sm:$0xff]  ;;  %v4539_v35 = vld [vmem:[#allocation16 + $0xd8] sm:$0xff]  ;;  %v8181_v58 = vadd.bf16 %v4788_v21, %v4404_v44  ;;  %v8183_v24 = vadd.bf16 %v4790_v25, %v4406_v45 }
 0x321   :  { %v6878_v54 = vcombine.high %v8156_v18, %v8158_v11  ;;  %v4664_v28 = vld [vmem:[#allocation17 + $0xc0] sm:$0xff]  ;;  %v4665_v36 = vld [vmem:[#allocation17 + $0xc8] sm:$0xff]  ;;  %v4410_v22 = vld [vmem:[#allocation14 + $0xd0] sm:$0xff] }
 0x322   :  { %4288 = vmatpush1.bf16.msra.mxu0 %v6859_v6  ;;  %4370 = vmatpush1.bf16.msra.mxu1 %v6861_v10  ;;  %v4535_v6 = vld [vmem:[#allocation16 + $0xb8] sm:$0xff]  ;;  %v4661_v10 = vld [vmem:[#allocation17 + $0xa8] sm:$0xff]  ;;  %v8171_v57 = vadd.bf16 %v4784_v3, %v4400_v9  ;;  %v8173_v55 = vadd.bf16 %v4786_v16, %v4402_v12  ;;  %v4408_v38 = vld [vmem:[#allocation14 + $0xc0] sm:$0xff] }
 0x323   :  { %5713 = vmatprep.subr.bf16.mxu0 %v6864_v26  ;;  %5795 = vmatprep.subr.bf16.mxu1 %v6866_v37  ;;  %v4785_v26 = vmul.bf16 %v4657_v30, %v4529_v1  ;;  %v4787_v37 = vmul.bf16 %v4659_v61, %v4531_v2  ;;  %v4789_v42 = vmul.bf16 %v4661_v10, %v4533_v17  ;;  %v4409_v2 = vld [vmem:[#allocation14 + $0xc8] sm:$0xff]  ;;  %v4411_v30 = vld [vmem:[#allocation14 + $0xd8] sm:$0xff]  ;;  %v4542_v0 = vld [vmem:[#allocation16 + $0xf0] sm:$0xff] }
 0x324   :  { %v4791_v23 = vmul.bf16 %v4663_v13, %v4535_v6  ;;  %v4668_v62 = vld [vmem:[#allocation17 + $0xe0] sm:$0xff]  ;;  %v6880_v7 = vcombine.high %v8171_v57, %v8173_v55  ;;  %v4541_v9 = vld [vmem:[#allocation16 + $0xe8] sm:$0xff]  ;;  %v4543_v14 = vld [vmem:[#allocation16 + $0xf8] sm:$0xff]  ;;  %v6879_v17 = vcombine.low %v8171_v57, %v8173_v55  ;;  %v6884_v10 = vcombine.high %v8181_v58, %v8183_v24 }
 0x325   :  { %4290 = vmatmul.mubr.bf16.vlgmr.msra.gmra.mrb[4].mxu0 %v3537_v43  ;;  %4372 = vmatmul.mubr.bf16.vlgmr.msra.gmra.mrb[4].mxu1 %v3537_v43  ;;  %v8175_v56 = vadd.bf16 %v4785_v26, %v4401_v19  ;;  %v8177_v34 = vadd.bf16 %v4787_v37, %v4403_v20  ;;  %v8185_v43 = vadd.bf16 %v4789_v42, %v4405_v39  ;;  %v4669_v15 = vld [vmem:[#allocation17 + $0xe8] sm:$0xff]  ;;  %v4544_v3 = vld [vmem:[#allocation16 + $0x100] sm:$0xff]  ;;  %v4546_v6 = vld [vmem:[#allocation16 + $0x110] sm:$0xff] }
 0x326   :  { %5714 = vmatpush1.bf16.msra.mxu0 %v6863_v29  ;;  %5796 = vmatpush1.bf16.msra.mxu1 %v6865_v48  ;;  %v4538_v29 = vld [vmem:[#allocation16 + $0xd0] sm:$0xff]  ;;  %v4667_v48 = vld [vmem:[#allocation17 + $0xd8] sm:$0xff]  ;;  %v4412_v19 = vld [vmem:[#allocation14 + $0xe0] sm:$0xff] }
 0x327   :  { %5715 = vmatprep.subr.bf16.mxu0 %v6868_v59  ;;  %5797 = vmatprep.subr.bf16.mxu1 %v6870_v60  ;;  %v8187_v59 = vadd.bf16 %v4791_v23, %v4407_v33  ;;  %v4792_v60 = vmul.bf16 %v4664_v28, %v4536_v27  ;;  %v4794_v1 = vmul.bf16 %v4666_v41, %v4538_v29  ;;  %v4672_v20 = vld [vmem:[#allocation17 + $0x100] sm:$0xff]  ;;  %v4674_v26 = vld [vmem:[#allocation17 + $0x110] sm:$0xff]  ;;  %v4545_v37 = vld [vmem:[#allocation16 + $0x108] sm:$0xff] }
 0x328   :  { %v4795_v61 = vmul.bf16 %v4667_v48, %v4539_v35  ;;  %v6882_v8 = vcombine.high %v8175_v56, %v8177_v34  ;;  %v4547_v25 = vld [vmem:[#allocation16 + $0x118] sm:$0xff]  ;;  %v4673_v39 = vld [vmem:[#allocation17 + $0x108] sm:$0xff]  ;;  %v4797_v27 = vmul.bf16 %v4669_v15, %v4541_v9  ;;  %v4800_v57 = vmul.bf16 %v4672_v20, %v4544_v3  ;;  %v4550_v48 = vld [vmem:[#allocation16 + $0x130] sm:$0xff] }
 0x329   :  { %v6886_v13 = vcombine.high %v8185_v43, %v8187_v59  ;;  %v8203_v12 = vadd.bf16 %v4792_v60, %v4408_v38  ;;  %v8205_v16 = vadd.bf16 %v4794_v1, %v4410_v22  ;;  %v4413_v42 = vld [vmem:[#allocation14 + $0xe8] sm:$0xff]  ;;  %v4415_v23 = vld [vmem:[#allocation14 + $0xf8] sm:$0xff]  ;;  %v4802_v28 = vmul.bf16 %v4674_v26, %v4546_v6  ;;  %v4676_v60 = vld [vmem:[#allocation17 + $0x120] sm:$0xff] }
 0x32a   :  { %5716 = vmatpush1.bf16.msra.mxu0 %v6867_v4  ;;  %5798 = vmatpush1.bf16.msra.mxu1 %v6869_v5  ;;  %v4540_v4 = vld [vmem:[#allocation16 + $0xe0] sm:$0xff]  ;;  %v6877_v5 = vcombine.low %v8156_v18, %v8158_v11  ;;  %v6881_v18 = vcombine.low %v8175_v56, %v8177_v34  ;;  %v4671_v11 = vld [vmem:[#allocation17 + $0xf8] sm:$0xff]  ;;  %v8209_v45 = vadd.bf16 %v4795_v61, %v4411_v30  ;;  %v4417_v41 = vld [vmem:[#allocation14 + $0x108] sm:$0xff] }
 0x32b   :  { %5717 = vmatprep.subr.bf16.mxu0 %v6872_v31  ;;  %5799 = vmatprep.subr.bf16.mxu1 %v6874_v63  ;;  %v4793_v31 = vmul.bf16 %v4665_v36, %v4537_v46  ;;  %v4670_v63 = vld [vmem:[#allocation17 + $0xf0] sm:$0xff]  ;;  %v4796_v21 = vmul.bf16 %v4668_v62, %v4540_v4  ;;  %v4799_v29 = vmul.bf16 %v4671_v11, %v4543_v14  ;;  %v4419_v56 = vld [vmem:[#allocation14 + $0x118] sm:$0xff]  ;;  %v4548_v36 = vld [vmem:[#allocation16 + $0x120] sm:$0xff] }
 0x32c   :  { %v4798_v33 = vmul.bf16 %v4670_v63, %v4542_v0  ;;  %v6883_v46 = vcombine.low %v8181_v58, %v8183_v24  ;;  %v6885_v55 = vcombine.low %v8185_v43, %v8187_v59  ;;  %v4801_v34 = vmul.bf16 %v4673_v39, %v4545_v37  ;;  %v4678_v58 = vld [vmem:[#allocation17 + $0x130] sm:$0xff]  ;;  %v4549_v24 = vld [vmem:[#allocation16 + $0x128] sm:$0xff]  ;;  %v4679_v4 = vld [vmem:[#allocation17 + $0x138] sm:$0xff] }
 0x32d   :  { %v8207_v44 = vadd.bf16 %v4793_v31, %v4409_v2  ;;  %v8219_v22 = vadd.bf16 %v4796_v21, %v4412_v19  ;;  %v8223_v59 = vadd.bf16 %v4797_v27, %v4413_v42  ;;  %v8225_v1 = vadd.bf16 %v4799_v29, %v4415_v23  ;;  %v4551_v2 = vld [vmem:[#allocation16 + $0x138] sm:$0xff]  ;;  %v4677_v30 = vld [vmem:[#allocation17 + $0x128] sm:$0xff]  ;;  %v4420_v0 = vld [vmem:[#allocation14 + $0x120] sm:$0xff] }
 0x32e   :  { %5718 = vmatpush1.bf16.msra.mxu0 %v6871_v40  ;;  %5800 = vmatpush1.bf16.msra.mxu1 %v6873_v32  ;;  %v4675_v40 = vld [vmem:[#allocation17 + $0x118] sm:$0xff]  ;;  %v4414_v32 = vld [vmem:[#allocation14 + $0xf0] sm:$0xff]  ;;  %v8233_v63 = vadd.bf16 %v4801_v34, %v4417_v41  ;;  %v4806_v9 = vmul.bf16 %v4678_v58, %v4550_v48  ;;  %v4421_v14 = vld [vmem:[#allocation14 + $0x128] sm:$0xff]  ;;  %v4805_v11 = vmul.bf16 %v4677_v30, %v4549_v24 }
 0x32f   :  { %5719 = vmatprep.subr.bf16.mxu0 %v6876_v47  ;;  %5801 = vmatprep.subr.bf16.mxu1 %v6878_v54  ;;  %v4416_v47 = vld [vmem:[#allocation14 + $0x100] sm:$0xff]  ;;  %v4418_v54 = vld [vmem:[#allocation14 + $0x110] sm:$0xff]  ;;  %v4803_v35 = vmul.bf16 %v4675_v40, %v4547_v25  ;;  %v6890_v38 = vcombine.high %v8207_v44, %v8209_v45  ;;  %v8221_v43 = vadd.bf16 %v4798_v33, %v4414_v32  ;;  %v4423_v15 = vld [vmem:[#allocation14 + $0x138] sm:$0xff] }
 0x330   :  { %v8229_v31 = vadd.bf16 %v4800_v57, %v4416_v47  ;;  %v8231_v61 = vadd.bf16 %v4802_v28, %v4418_v54  ;;  %v4422_v62 = vld [vmem:[#allocation14 + $0x130] sm:$0xff]  ;;  %v4807_v3 = vmul.bf16 %v4679_v4, %v4551_v2  ;;  %v4553_v19 = vld [vmem:[#allocation16 + $0x148] sm:$0xff]  ;;  %v4555_v20 = vld [vmem:[#allocation16 + $0x158] sm:$0xff]  ;;  %v8255_v47 = vadd.bf16 %v4805_v11, %v4421_v14 }
 0x331   :  { %v4554_v6 = vld [vmem:[#allocation16 + $0x150] sm:$0xff]  ;;  %v4681_v26 = vld [vmem:[#allocation17 + $0x148] sm:$0xff]  ;;  %v6891_v37 = vcombine.low %v8219_v22, %v8221_v43  ;;  %v4556_v21 = vld [vmem:[#allocation16 + $0x160] sm:$0xff]  ;;  %v8253_v33 = vadd.bf16 %v4806_v9, %v4422_v62 }
 0x332   :  { %5720 = vmatpush1.bf16.msra.mxu0 %v6875_v53  ;;  %5802 = vmatpush1.bf16.msra.mxu1 %v6877_v5  ;;  %v6888_v53 = vcombine.high %v8203_v12, %v8205_v16  ;;  %v6887_v5 = vcombine.low %v8203_v12, %v8205_v16  ;;  %v6892_v12 = vcombine.high %v8219_v22, %v8221_v43  ;;  %v4558_v25 = vld [vmem:[#allocation16 + $0x170] sm:$0xff]  ;;  %v4424_v42 = vld [vmem:[#allocation14 + $0x140] sm:$0xff]  ;;  %v4557_v29 = vld [vmem:[#allocation16 + $0x168] sm:$0xff] }
 0x333   :  { %5721 = vmatprep.subr.bf16.mxu0 %v6880_v7  ;;  %5803 = vmatprep.subr.bf16.mxu1 %v6882_v8  ;;  %v8235_v7 = vadd.bf16 %v4803_v35, %v4419_v56  ;;  %v4804_v8 = vmul.bf16 %v4676_v60, %v4548_v36  ;;  %v6894_v16 = vcombine.high %v8223_v59, %v8225_v1  ;;  %v4684_v23 = vld [vmem:[#allocation17 + $0x160] sm:$0xff]  ;;  %v4686_v27 = vld [vmem:[#allocation17 + $0x170] sm:$0xff]  ;;  %v4559_v28 = vld [vmem:[#allocation16 + $0x178] sm:$0xff] }
 0x334   :  { %v6896_v39 = vcombine.high %v8229_v31, %v8231_v61  ;;  %v8257_v54 = vadd.bf16 %v4807_v3, %v4423_v15  ;;  %v4685_v41 = vld [vmem:[#allocation17 + $0x168] sm:$0xff]  ;;  %v4427_v35 = vld [vmem:[#allocation14 + $0x158] sm:$0xff]  ;;  %v4809_v36 = vmul.bf16 %v4681_v26, %v4553_v19  ;;  %v4812_v22 = vmul.bf16 %v4684_v23, %v4556_v21  ;;  %v4560_v30 = vld [vmem:[#allocation16 + $0x180] sm:$0xff] }
 0x335   :  { %v6898_v40 = vcombine.high %v8233_v63, %v8235_v7  ;;  %v8251_v32 = vadd.bf16 %v4804_v8, %v4420_v0  ;;  %v4425_v34 = vld [vmem:[#allocation14 + $0x148] sm:$0xff]  ;;  %v4814_v60 = vmul.bf16 %v4686_v27, %v4558_v25  ;;  %v6895_v24 = vcombine.low %v8229_v31, %v8231_v61  ;;  %v4562_v4 = vld [vmem:[#allocation16 + $0x190] sm:$0xff]  ;;  %v4688_v8 = vld [vmem:[#allocation17 + $0x180] sm:$0xff] }
 0x336   :  { %5722 = vmatpush1.bf16.msra.mxu0 %v6879_v17  ;;  %5804 = vmatpush1.bf16.msra.mxu1 %v6881_v18  ;;  %v4552_v17 = vld [vmem:[#allocation16 + $0x140] sm:$0xff]  ;;  %v6889_v18 = vcombine.low %v8207_v44, %v8209_v45  ;;  %v6893_v44 = vcombine.low %v8223_v59, %v8225_v1  ;;  %v4683_v45 = vld [vmem:[#allocation17 + $0x158] sm:$0xff]  ;;  %v4429_v58 = vld [vmem:[#allocation14 + $0x168] sm:$0xff]  ;;  %v6897_v43 = vcombine.low %v8233_v63, %v8235_v7 }
 0x337   :  { %5723 = vmatprep.subr.bf16.mxu0 %v6884_v10  ;;  %5805 = vmatprep.subr.bf16.mxu1 %v6886_v13  ;;  %v4680_v10 = vld [vmem:[#allocation17 + $0x140] sm:$0xff]  ;;  %v4682_v13 = vld [vmem:[#allocation17 + $0x150] sm:$0xff]  ;;  %v4811_v48 = vmul.bf16 %v4683_v45, %v4555_v20  ;;  %v4431_v59 = vld [vmem:[#allocation14 + $0x178] sm:$0xff]  ;;  %v4813_v1 = vmul.bf16 %v4685_v41, %v4557_v29  ;;  %v6902_v0 = vcombine.high %v8255_v47, %v8257_v54 }
 0x338   :  { %v4808_v57 = vmul.bf16 %v4680_v10, %v4552_v17  ;;  %v4810_v56 = vmul.bf16 %v4682_v13, %v4554_v6  ;;  %v4690_v9 = vld [vmem:[#allocation17 + $0x190] sm:$0xff]  ;;  %v4561_v31 = vld [vmem:[#allocation16 + $0x188] sm:$0xff]  ;;  %v4937_v63 = vadd.bf16 %v4809_v36, %v4425_v34  ;;  %v4563_v14 = vld [vmem:[#allocation16 + $0x198] sm:$0xff]  ;;  %v6901_v26 = vcombine.low %v8255_v47, %v8257_v54 }
 0x339   :  { %v4939_v7 = vadd.bf16 %v4811_v48, %v4427_v35  ;;  %v4689_v15 = vld [vmem:[#allocation17 + $0x188] sm:$0xff]  ;;  %v4691_v17 = vld [vmem:[#allocation17 + $0x198] sm:$0xff]  ;;  %v4941_v6 = vadd.bf16 %v4813_v1, %v4429_v58  ;;  %v4432_v13 = vld [vmem:[#allocation14 + $0x180] sm:$0xff]  ;;  %v4818_v19 = vmul.bf16 %v4690_v9, %v4562_v4 }
 0x33a   :  { %5724 = vmatpush1.bf16.msra.mxu0 %v6883_v46  ;;  %5806 = vmatpush1.bf16.msra.mxu1 %v6885_v55  ;;  %v4687_v46 = vld [vmem:[#allocation17 + $0x178] sm:$0xff]  ;;  %v4426_v55 = vld [vmem:[#allocation14 + $0x150] sm:$0xff]  ;;  %v4936_v62 = vadd.bf16 %v4808_v57, %v4424_v42  ;;  %v4433_v20 = vld [vmem:[#allocation14 + $0x188] sm:$0xff]  ;;  %v4819_v45 = vmul.bf16 %v4691_v17, %v4563_v14 }
 0x33b   :  { %5725 = vmatprep.subr.bf16.mxu0 %v6888_v53  ;;  %5807 = vmatprep.subr.bf16.mxu1 %v6890_v38  ;;  %v4428_v53 = vld [vmem:[#allocation14 + $0x160] sm:$0xff]  ;;  %v4430_v38 = vld [vmem:[#allocation14 + $0x170] sm:$0xff]  ;;  %v4815_v2 = vmul.bf16 %v4687_v46, %v4559_v28  ;;  %v4938_v61 = vadd.bf16 %v4810_v56, %v4426_v55  ;;  %v4565_v42 = vld [vmem:[#allocation16 + $0x1a8] sm:$0xff]  ;;  %v6905_v27 = vcombine.low %v4937_v63, %v4939_v7 }
 0x33c   :  { %v4940_v11 = vadd.bf16 %v4812_v22, %v4428_v53  ;;  %v4942_v3 = vadd.bf16 %v4814_v60, %v4430_v38  ;;  %v4564_v21 = vld [vmem:[#allocation16 + $0x1a0] sm:$0xff]  ;;  %v4566_v25 = vld [vmem:[#allocation16 + $0x1b0] sm:$0xff]  ;;  %v4567_v29 = vld [vmem:[#allocation16 + $0x1b8] sm:$0xff] }
 0x33d   :  { %v4943_v10 = vadd.bf16 %v4815_v2, %v4431_v59  ;;  %v6903_v23 = vcombine.low %v4936_v62, %v4938_v61  ;;  %v4693_v57 = vld [vmem:[#allocation17 + $0x1a8] sm:$0xff]  ;;  %v4695_v28 = vld [vmem:[#allocation17 + $0x1b8] sm:$0xff]  ;;  %v4436_v35 = vld [vmem:[#allocation14 + $0x1a0] sm:$0xff] }
 0x33e   :  { %5726 = vmatpush1.bf16.msra.mxu0 %v6887_v5  ;;  %5808 = vmatpush1.bf16.msra.mxu1 %v6889_v18  ;;  %v6900_v5 = vcombine.high %v8251_v32, %v8253_v33  ;;  %v6899_v18 = vcombine.low %v8251_v32, %v8253_v33  ;;  %v4692_v32 = vld [vmem:[#allocation17 + $0x1a0] sm:$0xff]  ;;  %v4694_v33 = vld [vmem:[#allocation17 + $0x1b0] sm:$0xff]  ;;  %v6908_v41 = vcombine.high %v4940_v11, %v4942_v3  ;;  %v4437_v22 = vld [vmem:[#allocation14 + $0x1a8] sm:$0xff] }
 0x33f   :  { %5727 = vmatprep.subr.bf16.mxu0 %v6892_v12  ;;  %5809 = vmatprep.subr.bf16.mxu1 %v6894_v16  ;;  %v4434_v12 = vld [vmem:[#allocation14 + $0x190] sm:$0xff]  ;;  %v4816_v16 = vmul.bf16 %v4688_v8, %v4560_v30  ;;  %v6910_v46 = vcombine.high %v4941_v6, %v4943_v10  ;;  %v4820_v34 = vmul.bf16 %v4692_v32, %v4564_v21  ;;  %v4439_v60 = vld [vmem:[#allocation14 + $0x1b8] sm:$0xff]  ;;  %v4569_v17 = vld [vmem:[#allocation16 + $0x1c8] sm:$0xff] }
 0x340   :  { %v4946_v54 = vadd.bf16 %v4818_v19, %v4434_v12  ;;  %v4822_v36 = vmul.bf16 %v4694_v33, %v4566_v25  ;;  %v4821_v48 = vmul.bf16 %v4693_v57, %v4565_v42  ;;  %v4823_v53 = vmul.bf16 %v4695_v28, %v4567_v29  ;;  %v4438_v38 = vld [vmem:[#allocation14 + $0x1b0] sm:$0xff]  ;;  %v4443_v12 = vld [vmem:[#allocation14 + $0x1d8] sm:$0xff]  ;;  %v4700_v21 = vld [vmem:[#allocation17 + $0x1e0] sm:$0xff] }
 0x341   :  { %v4944_v47 = vadd.bf16 %v4816_v16, %v4432_v13  ;;  %v6907_v58 = vcombine.low %v4940_v11, %v4942_v3  ;;  %v4948_v1 = vadd.bf16 %v4820_v34, %v4436_v35  ;;  %v4698_v14 = vld [vmem:[#allocation17 + $0x1d0] sm:$0xff]  ;;  %v4440_v11 = vld [vmem:[#allocation14 + $0x1c0] sm:$0xff]  ;;  %v4697_v16 = vld [vmem:[#allocation17 + $0x1c8] sm:$0xff] }
 0x342   :  { %5728 = vmatpush1.bf16.msra.mxu0 %v6891_v37  ;;  %5810 = vmatpush1.bf16.msra.mxu1 %v6893_v44  ;;  %v4435_v37 = vld [vmem:[#allocation14 + $0x198] sm:$0xff]  ;;  %v4817_v44 = vmul.bf16 %v4689_v15, %v4561_v31  ;;  %v4950_v2 = vadd.bf16 %v4822_v36, %v4438_v38  ;;  %v4949_v30 = vadd.bf16 %v4821_v48, %v4437_v22  ;;  %v4442_v3 = vld [vmem:[#allocation14 + $0x1d0] sm:$0xff]  ;;  %v4445_v57 = vld [vmem:[#allocation14 + $0x1e8] sm:$0xff] }
 0x343   :  { %5729 = vmatprep.subr.bf16.mxu0 %v6896_v39  ;;  %5811 = vmatprep.subr.bf16.mxu1 %v6898_v40  ;;  %v6904_v39 = vcombine.high %v4936_v62, %v4938_v61  ;;  %v6906_v40 = vcombine.high %v4937_v63, %v4939_v7  ;;  %v4947_v56 = vadd.bf16 %v4819_v45, %v4435_v37  ;;  %v4568_v61 = vld [vmem:[#allocation16 + $0x1c0] sm:$0xff]  ;;  %v4570_v63 = vld [vmem:[#allocation16 + $0x1d0] sm:$0xff]  ;;  %v4699_v19 = vld [vmem:[#allocation17 + $0x1d8] sm:$0xff] }
 0x344   :  { %v4945_v55 = vadd.bf16 %v4817_v44, %v4433_v20  ;;  %v4951_v4 = vadd.bf16 %v4823_v53, %v4439_v60  ;;  %v6916_v62 = vcombine.high %v4948_v1, %v4950_v2  ;;  %v6915_v9 = vcombine.low %v4948_v1, %v4950_v2  ;;  %v4696_v7 = vld [vmem:[#allocation17 + $0x1c0] sm:$0xff]  ;;  %v4574_v45 = vld [vmem:[#allocation16 + $0x1f0] sm:$0xff]  ;;  %v4575_v32 = vld [vmem:[#allocation16 + $0x1f8] sm:$0xff] }
 0x345   :  { %v4824_v15 = vmul.bf16 %v4696_v7, %v4568_v61  ;;  %v4572_v44 = vld [vmem:[#allocation16 + $0x1e0] sm:$0xff]  ;;  %v4702_v25 = vld [vmem:[#allocation17 + $0x1f0] sm:$0xff]  ;;  %v4707_v61 = vld [vmem:[#allocation17 + $0x218] sm:$0xff] }
 0x346   :  { %5730 = vmatpush1.bf16.msra.mxu0 %v6895_v24  ;;  %5812 = vmatpush1.bf16.msra.mxu1 %v6897_v43  ;;  %v6909_v24 = vcombine.low %v4941_v6, %v4943_v10  ;;  %v6912_v43 = vcombine.high %v4944_v47, %v4946_v54  ;;  %v6914_v59 = vcombine.high %v4945_v55, %v4947_v56  ;;  %v4441_v10 = vld [vmem:[#allocation14 + $0x1c8] sm:$0xff]  ;;  %v4446_v29 = vld [vmem:[#allocation14 + $0x1f0] sm:$0xff]  ;;  %v4576_v36 = vld [vmem:[#allocation16 + $0x200] sm:$0xff] }
 0x347   :  { %5731 = vmatprep.subr.bf16.mxu0 %v6900_v5  ;;  %5813 = vmatprep.subr.bf16.mxu1 %v6902_v0  ;;  %v6911_v5 = vcombine.low %v4944_v47, %v4946_v54  ;;  %v6913_v0 = vcombine.low %v4945_v55, %v4947_v56  ;;  %v6918_v8 = vcombine.high %v4949_v30, %v4951_v4  ;;  %v4701_v47 = vld [vmem:[#allocation17 + $0x1e8] sm:$0xff]  ;;  %v4703_v54 = vld [vmem:[#allocation17 + $0x1f8] sm:$0xff]  ;;  %v4578_v48 = vld [vmem:[#allocation16 + $0x210] sm:$0xff] }
 0x348   :  { %v6917_v31 = vcombine.low %v4949_v30, %v4951_v4  ;;  %v4826_v6 = vmul.bf16 %v4698_v14, %v4570_v63  ;;  %v4952_v13 = vadd.bf16 %v4824_v15, %v4440_v11  ;;  %v4704_v53 = vld [vmem:[#allocation17 + $0x200] sm:$0xff]  ;;  %v4831_v22 = vmul.bf16 %v4703_v54, %v4575_v32  ;;  %v4706_v60 = vld [vmem:[#allocation17 + $0x210] sm:$0xff]  ;;  %v4449_v4 = vld [vmem:[#allocation14 + $0x208] sm:$0xff] }
 0x349   :  { %v4448_v1 = vld [vmem:[#allocation14 + $0x200] sm:$0xff]  ;;  %v4450_v2 = vld [vmem:[#allocation14 + $0x210] sm:$0xff]  ;;  %v4834_v30 = vmul.bf16 %v4706_v60, %v4578_v48  ;;  %v4581_v32 = vld [vmem:[#allocation16 + $0x228] sm:$0xff] }
 0x34a   :  { %5732 = vmatpush1.bf16.msra.mxu0 %v6899_v18  ;;  %5814 = vmatpush1.bf16.msra.mxu1 %v6901_v26  ;;  %v4571_v18 = vld [vmem:[#allocation16 + $0x1d8] sm:$0xff]  ;;  %v4954_v20 = vadd.bf16 %v4826_v6, %v4442_v3  ;;  %v4825_v26 = vmul.bf16 %v4697_v16, %v4569_v17  ;;  %v3531_v16 = vld [vmem:[%s9126_s12] sm:$0xf]  ;;  %v4452_v54 = vld [vmem:[#allocation14 + $0x220] sm:$0xff] }
 0x34b   :  { %5733 = vmatprep.subr.bf16.mxu0 %v6904_v39  ;;  %5815 = vmatprep.subr.bf16.mxu1 %v6906_v40  ;;  %v4827_v37 = vmul.bf16 %v4699_v19, %v4571_v18  ;;  %v4828_v39 = vmul.bf16 %v4700_v21, %v4572_v44  ;;  %v4573_v40 = vld [vmem:[#allocation16 + $0x1e8] sm:$0xff]  ;;  %v8273_v63 = vadd.bf16 %v4834_v30, %v4450_v2  ;;  %v4580_v21 = vld [vmem:[#allocation16 + $0x220] sm:$0xff]  ;;  %v4455_v48 = vld [vmem:[#allocation14 + $0x238] sm:$0xff] }
 0x34c   :  { %v6920_v33 = vcombine.high %v4952_v13, %v4954_v20  ;;  %v4953_v42 = vadd.bf16 %v4825_v26, %v4441_v10  ;;  %v6919_v28 = vcombine.low %v4952_v13, %v4954_v20  ;;  %v4829_v35 = vmul.bf16 %v4701_v47, %v4573_v40  ;;  %v3527_v26 = vld [vmem:[%s9124_s10] sm:$0xf]  ;;  %v4710_v40 = vld [vmem:[#allocation17 + $0x230] sm:$0xff] }
 0x34d   :  { %v3532_v20 = vunpack.c.l.bf16 %v3531_v16  ;;  %v4714_v47 = vld [vmem:[#allocation17 + $0x250] sm:$0xff]  ;;  %v8300_v60 = vld [vmem:[#allocation16 + $0x248] sm:$0xff] }
 0x34e   :  { %5734 = vmatpush1.bf16.msra.mxu0 %v6903_v23  ;;  %5816 = vmatpush1.bf16.msra.mxu1 %v6905_v27  ;;  %v4955_v23 = vadd.bf16 %v4827_v37, %v4443_v12  ;;  %v4444_v27 = vld [vmem:[#allocation14 + $0x1e0] sm:$0xff]  ;;  %v3529_v12 = vld [vmem:[%s9125_s11] sm:$0xf]  ;;  %v3528_v37 = vunpack.c.l.bf16 %v3527_v26 }
 0x34f   :  { %5735 = vmatprep.subr.bf16.mxu0 %v6908_v41  ;;  %5817 = vmatprep.subr.bf16.mxu1 %v6910_v46  ;;  %v4830_v41 = vmul.bf16 %v4702_v25, %v4574_v45  ;;  %v4447_v46 = vld [vmem:[#allocation14 + $0x1f8] sm:$0xff]  ;;  %v4956_v34 = vadd.bf16 %v4828_v39, %v4444_v27  ;;  %v3530_v19 = vunpack.c.l.bf16 %v3529_v12  ;;  %v4582_v25 = vld [vmem:[#allocation16 + $0x230] sm:$0xff]  ;;  %v4708_v39 = vld [vmem:[#allocation17 + $0x220] sm:$0xff] }
 0x350   :  { %v6922_v55 = vcombine.high %v4953_v42, %v4955_v23  ;;  %v6921_v56 = vcombine.low %v4953_v42, %v4955_v23  ;;  %v4709_v42 = vld [vmem:[#allocation17 + $0x228] sm:$0xff]  ;;  %v4711_v27 = vld [vmem:[#allocation17 + $0x238] sm:$0xff] }
 0x351   :  { %v4958_v38 = vadd.bf16 %v4830_v41, %v4446_v29  ;;  %v3533_v44 = vmul.f32 %v3532_v20, %v3530_v19  ;;  %v4584_v29 = vld [vmem:[#allocation16 + $0x240] sm:$0xff]  ;;  %v4457_v16 = vld [vmem:[#allocation14 + $0x248] sm:$0xff] }
 0x352   :  { %5736 = vmatpush1.bf16.msra.mxu0 %v6907_v58  ;;  %5818 = vmatpush1.bf16.msra.mxu1 %v6909_v24  ;;  %v4832_v58 = vmul.bf16 %v4704_v53, %v4576_v36  ;;  %v4577_v24 = vld [vmem:[#allocation16 + $0x208] sm:$0xff]  ;;  %v4837_v53 = vmul.bf16 %v4709_v42, %v4581_v32  ;;  %v4719_v32 = vld [vmem:[#allocation17 + $0x278] sm:$0xff] }
 0x353   :  { %5737 = vmatprep.subr.bf16.mxu0 %v6912_v43  ;;  %5819 = vmatprep.subr.bf16.mxu1 %v6914_v59  ;;  %v4579_v43 = vld [vmem:[#allocation16 + $0x218] sm:$0xff]  ;;  %v4957_v59 = vadd.bf16 %v4829_v35, %v4445_v57  ;;  %v3534_v45 = vadd.f32 %v3533_v44, %v3528_v37  ;;  %v4712_v57 = vld [vmem:[#allocation17 + $0x240] sm:$0xff]  ;;  %v4453_v36 = vld [vmem:[#allocation14 + $0x228] sm:$0xff] }
 0x354   :  { %v4835_v14 = vmul.bf16 %v4707_v61, %v4579_v43  ;;  %v4458_v43 = vld [vmem:[#allocation14 + $0x250] sm:$0xff]  ;;  %v4716_v61 = vld [vmem:[#allocation17 + $0x260] sm:$0xff]  ;;  %v4589_v19 = vld [vmem:[#allocation16 + $0x268] sm:$0xff] }
 0x355   :  { %v3543_v23 = vrot.slane %v3534_v45, %v7828_v49  ;;  %v3555_v41 = vrot.slane %v3534_v45, %v7834_v52  ;;  %v3551_v35 = vrot.slane %v3534_v45, %v7832_v51  ;;  %v4717_v20 = vld [vmem:[#allocation17 + $0x268] sm:$0xff]  ;;  %v5966_v52 = vld [vmem:[#allocation20 + $0x54] sm:$0xf] }
 0x356   :  { %5738 = vmatpush1.bf16.msra.mxu0 %v6911_v5  ;;  %5820 = vmatpush1.bf16.msra.mxu1 %v6913_v0  ;;  %v6924_v5 = vcombine.high %v4956_v34, %v4958_v38  ;;  %v4959_v0 = vadd.bf16 %v4831_v22, %v4447_v46  ;;  %v4586_v46 = vld [vmem:[#allocation16 + $0x250] sm:$0xff]  ;;  %v4840_v22 = vmul.bf16 %v4712_v57, %v4584_v29  ;;  %v4460_v29 = vld [vmem:[#allocation14 + $0x260] sm:$0xff] }
 0x357   :  { %5739 = vmatprep.subr.bf16.mxu0 %v6916_v62  ;;  %5821 = vmatprep.subr.bf16.mxu1 %v6918_v8  ;;  %v6923_v62 = vcombine.low %v4956_v34, %v4958_v38  ;;  %v8271_v8 = vadd.bf16 %v4832_v58, %v4448_v1  ;;  %v4838_v34 = vmul.bf16 %v4710_v40, %v4582_v25  ;;  %v4587_v1 = vld [vmem:[#allocation16 + $0x258] sm:$0xff]  ;;  %v4462_v57 = vld [vmem:[#allocation14 + $0x270] sm:$0xff] }
 0x358   :  { %v6926_v15 = vcombine.high %v4957_v59, %v4959_v0  ;;  %v6925_v17 = vcombine.low %v4957_v59, %v4959_v0  ;;  %v3563_v58 = vrot.slane %v3543_v23, %v7828_v49  ;;  %v4842_v59 = vmul.bf16 %v4714_v47, %v4586_v46  ;;  %v4588_v0 = vld [vmem:[#allocation16 + $0x260] sm:$0xff]  ;;  %v4591_v40 = vld [vmem:[#allocation16 + $0x278] sm:$0xff]  ;;  %v4461_v46 = vld [vmem:[#allocation14 + $0x268] sm:$0xff] }
 0x359   :  { %v6928_v18 = vcombine.high %v8271_v8, %v8273_v63  ;;  %v6927_v6 = vcombine.low %v8271_v8, %v8273_v63  ;;  %v3575_v30 = vrot.slane %v3555_v41, %v7828_v49 }
 0x35a   :  { %5740 = vmatpush1.bf16.msra.mxu0 %v6915_v9  ;;  %5822 = vmatpush1.bf16.msra.mxu1 %v6917_v31  ;;  %v4451_v9 = vld [vmem:[#allocation14 + $0x218] sm:$0xff]  ;;  %v4705_v31 = vld [vmem:[#allocation17 + $0x208] sm:$0xff] }
 0x35b   :  { %5741 = vmatprep.subr.bf16.mxu0 %v6920_v33  ;;  %5823 = vmatprep.subr.bf16.mxu1 %v6922_v55  ;;  %v4833_v7 = vmul.bf16 %v4705_v31, %v4577_v24  ;;  %v8279_v3 = vadd.bf16 %v4835_v14, %v4451_v9  ;;  %v4583_v33 = vld [vmem:[#allocation16 + $0x238] sm:$0xff]  ;;  %v4454_v55 = vld [vmem:[#allocation14 + $0x230] sm:$0xff]  ;;  %v4456_v24 = vld [vmem:[#allocation14 + $0x240] sm:$0xff] }
 0x35c   :  { %v4839_v38 = vmul.bf16 %v4711_v27, %v4583_v33  ;;  %v8307_v9 = vadd.bf16 %v4838_v34, %v4454_v55  ;;  %v4590_v31 = vld [vmem:[#allocation16 + $0x270] sm:$0xff]  ;;  %v8318_v12 = vadd.bf16 %v4840_v22, %v4456_v24  ;;  %v4847_v24 = vmul.bf16 %v4719_v32, %v4591_v40 }
 0x35d   :  { %v8277_v11 = vadd.bf16 %v4833_v7, %v4449_v4  ;;  %v4713_v4 = vld [vmem:[#allocation17 + $0x248] sm:$0xff]  ;;  %v4718_v7 = vld [vmem:[#allocation17 + $0x270] sm:$0xff] }
 0x35e   :  { %5742 = vmatpush1.bf16.msra.mxu0 %v6919_v28  ;;  %5824 = vmatpush1.bf16.msra.mxu1 %v6921_v56  ;;  %v3547_v28 = vrot.slane %v3534_v45, %v7830_v50  ;;  %v4836_v56 = vmul.bf16 %v4708_v39, %v4580_v21  ;;  %v8320_v45 = vadd.bf16 %v4842_v59, %v4458_v43  ;;  %v4459_v21 = vld [vmem:[#allocation14 + $0x258] sm:$0xff]  ;;  %v4722_v43 = vld [vmem:[#allocation17 + $0x290] sm:$0xff]  ;;  %v4593_v59 = vld [vmem:[#allocation16 + $0x288] sm:$0xff] }
 0x35f   :  { %5743 = vmatprep.subr.bf16.mxu0 %v6924_v5  ;;  %5825 = vmatprep.subr.bf16.mxu1 %v6926_v15  ;;  %v6930_v10 = vcombine.high %v8277_v11, %v8279_v3  ;;  %v6929_v13 = vcombine.low %v8277_v11, %v8279_v3  ;;  %v4715_v5 = vld [vmem:[#allocation17 + $0x258] sm:$0xff]  ;;  %v8310_v15 = vrot.slane %v3551_v35, %v7828_v49  ;;  %v4726_v40 = vld [vmem:[#allocation17 + $0x2b0] sm:$0xff] }
 0x360   :  { %v3567_v2 = vrot.slane %v3547_v28, %v7828_v49  ;;  %v4841_v25 = vmul.bf16 %v4713_v4, %v8300_v60  ;;  %v4843_v39 = vmul.bf16 %v4715_v5, %v4587_v1  ;;  %v4844_v28 = vmul.bf16 %v4716_v61, %v4588_v0  ;;  %v4463_v35 = vld [vmem:[#allocation14 + $0x278] sm:$0xff]  ;;  %v4721_v0 = vld [vmem:[#allocation17 + $0x288] sm:$0xff]  ;;  %v4596_v61 = vld [vmem:[#allocation16 + $0x2a0] sm:$0xff] }
 0x361   :  { %v4846_v41 = vmul.bf16 %v4718_v7, %v4590_v31  ;;  %v4595_v1 = vld [vmem:[#allocation16 + $0x298] sm:$0xff]  ;;  %v4730_v3 = vld [vmem:[#allocation17 + $0x2d0] sm:$0xff] }
 0x362   :  { %5744 = vmatpush1.bf16.msra.mxu0 %v6923_v62  ;;  %5826 = vmatpush1.bf16.msra.mxu1 %v6925_v17  ;;  %v8305_v62 = vadd.bf16 %v4836_v56, %v4452_v54  ;;  %v8333_v4 = vadd.bf16 %v4841_v25, %v4457_v16  ;;  %v8335_v5 = vadd.bf16 %v4843_v39, %v4459_v21  ;;  %v4723_v31 = vld [vmem:[#allocation17 + $0x298] sm:$0xff]  ;;  %v4466_v21 = vld [vmem:[#allocation14 + $0x290] sm:$0xff] }
 0x363   :  { %5754 = vmatprep.subr.bf16.mxu0 %v6928_v18  ;;  %5836 = vmatprep.subr.bf16.mxu1 %v6930_v10  ;;  %v8314_v18 = vadd.bf16 %v4837_v53, %v4453_v36  ;;  %v8316_v10 = vadd.bf16 %v4839_v38, %v4455_v48  ;;  %v4845_v36 = vmul.bf16 %v4717_v20, %v4589_v19  ;;  %v4592_v48 = vld [vmem:[#allocation16 + $0x280] sm:$0xff]  ;;  %v4594_v53 = vld [vmem:[#allocation16 + $0x290] sm:$0xff] }
 0x364   :  { %v6932_v56 = vcombine.high %v8305_v62, %v8307_v9  ;;  %v6931_v34 = vcombine.low %v8305_v62, %v8307_v9  ;;  %v4720_v38 = vld [vmem:[#allocation17 + $0x280] sm:$0xff]  ;;  %v8339_v19 = vadd.bf16 %v4844_v28, %v4460_v29  ;;  %v8341_v20 = vadd.bf16 %v4846_v41, %v4462_v57  ;;  %v8347_v28 = vld [vmem:[#allocation16 + $0x2a8] sm:$0xff]  ;;  %v8349_v41 = vld [vmem:[#allocation16 + $0x2b8] sm:$0xff] }
 0x365   :  { %v6934_v60 = vcombine.high %v8314_v18, %v8316_v10  ;;  %v8343_v16 = vadd.bf16 %v4845_v36, %v4461_v46  ;;  %v4848_v25 = vmul.bf16 %v4720_v38, %v4592_v48  ;;  %v4850_v39 = vmul.bf16 %v4722_v43, %v4594_v53  ;;  %v4468_v57 = vld [vmem:[#allocation14 + $0x2a0] sm:$0xff]  ;;  %v4470_v46 = vld [vmem:[#allocation14 + $0x2b0] sm:$0xff]  ;;  %v8351_v36 = vld [vmem:[#allocation17 + $0x2a8] sm:$0xff] }
 0x366   :  { %v4851_v29 = vmul.bf16 %v4723_v31, %v4595_v1  ;;  %v8353_v48 = vld [vmem:[#allocation17 + $0x2b8] sm:$0xff]  ;;  %v6937_v53 = vcombine.low %v8333_v4, %v8335_v5  ;;  %v6940_v38 = vcombine.high %v8339_v19, %v8341_v20  ;;  %v4728_v43 = vld [vmem:[#allocation17 + $0x2c0] sm:$0xff]  ;;  %v6939_v8 = vcombine.low %v8339_v19, %v8341_v20  ;;  %v6029_v50 = vld [vmem:[#allocation22 + $0x50] sm:$0xf] }
 0x367   :  { %v8375_v11 = vadd.bf16 %v4850_v39, %v4466_v21  ;;  %v4471_v31 = vld [vmem:[#allocation14 + $0x2b8] sm:$0xff]  ;;  %v4473_v21 = vld [vmem:[#allocation14 + $0x2c8] sm:$0xff]  ;;  %v4732_v39 = vld [vmem:[#allocation17 + $0x2e0] sm:$0xff] }
 0x3f8   :  { %v4291_v14 = vpop.f32.mrb[4].mxu0  ;;  %v8312_v17 = vpop.f32.mrb[4].mxu1 }
 0x3f9   :  { %v7071_v26 = vadd.f32 %v4291_v14, %v3563_v58  ;;  %v4293_v37 = vpop.f32.mrb[5].mxu0  ;;  %v4375_v44 = vpop.f32.mrb[5].mxu1  ;;  %v6933_v58 = vcombine.low %v8314_v18, %v8316_v10  ;;  %v6935_v14 = vcombine.low %v8318_v12, %v8320_v45  ;;  %v4476_v10 = vld [vmem:[#allocation14 + $0x2e0] sm:$0xff] }
 0x3fa   :  { %v7072_v33 = vadd.f32 %v4293_v37, %v3567_v2  ;;  %v7074_v42 = vadd.f32 %v4375_v44, %v3575_v30  ;;  %v4295_v23 = vpop.f32.mrb[6].mxu0  ;;  %v4377_v27 = vpop.f32.mrb[6].mxu1  ;;  %v6936_v30 = vcombine.high %v8318_v12, %v8320_v45  ;;  %v4598_v37 = vld [vmem:[#allocation16 + $0x2b0] sm:$0xff]  ;;  %v4724_v44 = vld [vmem:[#allocation17 + $0x2a0] sm:$0xff]  ;;  %v4479_v45 = vld [vmem:[#allocation14 + $0x2f8] sm:$0xff] }
 0x3fb   :  { %v4380_v47 = vmax.f32 %v7071_v26, 0.0  ;;  %v4296_v54 = vpop.f32.mrb[7].mxu0  ;;  %v4378_v55 = vpop.f32.mrb[7].mxu1  ;;  %v4464_v26 = vld [vmem:[#allocation14 + $0x280] sm:$0xff]  ;;  %v8345_v23 = vadd.bf16 %v4847_v24, %v4463_v35  ;;  %v4849_v27 = vmul.bf16 %v4721_v0, %v4593_v59  ;;  %v6938_v35 = vcombine.high %v8333_v4, %v8335_v5  ;;  %v8369_v24 = vld [vmem:[#allocation16 + $0x2d0] sm:$0xff]  ;;  %v4469_v0 = vld [vmem:[#allocation14 + $0x2a8] sm:$0xff] }
 0x3fc   :  { %v4381_v22 = vmax.f32 %v7072_v33, 0.0  ;;  %v4383_v2 = vmax.f32 %v7074_v42, 0.0  ;;  %v4465_v33 = vld [vmem:[#allocation14 + $0x288] sm:$0xff]  ;;  %v4467_v42 = vld [vmem:[#allocation14 + $0x298] sm:$0xff]  ;;  %v4854_v55 = vmul.bf16 %v4726_v40, %v4598_v37  ;;  %v8373_v63 = vadd.bf16 %v4848_v25, %v4464_v26  ;;  %v4604_v26 = vld [vmem:[#allocation16 + $0x2e0] sm:$0xff] }
 0x3fd   :  { %v5032_v32 = vpack.c.bf16 %v4380_v47, %v4380_v47  ;;  %v4852_v47 = vmul.bf16 %v4724_v44, %v4596_v61  ;;  %v6942_v59 = vcombine.high %v8343_v16, %v8345_v23  ;;  %v8382_v1 = vadd.bf16 %v4849_v27, %v4465_v33  ;;  %v4603_v61 = vld [vmem:[#allocation16 + $0x2d8] sm:$0xff]  ;;  %v4472_v40 = vld [vmem:[#allocation14 + $0x2c0] sm:$0xff]  ;;  %v4606_v25 = vld [vmem:[#allocation16 + $0x2f0] sm:$0xff] }
 0x3fe   :  { %v5033_v7 = vpack.c.bf16 %v4381_v22, %v4381_v22  ;;  %v5035_v54 = vpack.c.bf16 %v4383_v2, %v4383_v2  ;;  %v8367_v22 = vld [vmem:[#allocation16 + $0x2c0] sm:$0xff]  ;;  %v8384_v2 = vadd.bf16 %v4851_v29, %v4467_v42  ;;  %v8388_v44 = vadd.bf16 %v4854_v55, %v4470_v46  ;;  %v4734_v33 = vld [vmem:[#allocation17 + $0x2f0] sm:$0xff]  ;;  %v4475_v29 = vld [vmem:[#allocation14 + $0x2d8] sm:$0xff] }
 0x3ff   :  { %v8386_v37 = vadd.bf16 %v4852_v47, %v4468_v57  ;;  %v4856_v42 = vmul.bf16 %v4728_v43, %v8367_v22  ;;  %v4858_v27 = vmul.bf16 %v4730_v3, %v8369_v24  ;;  %v6941_v62 = vcombine.low %v8343_v16, %v8345_v23  ;;  %v4736_v24 = vld [vmem:[#allocation17 + $0x300] sm:$0xff]  ;;  %v4738_v43 = vld [vmem:[#allocation17 + $0x310] sm:$0xff]  ;;  %v4609_v3 = vld [vmem:[#allocation16 + $0x308] sm:$0xff] }
 0x400   :  { %5745 = vmatprep.mubr.bf16.mxu0 %v5033_v7  ;;  %5827 = vmatprep.mubr.bf16.mxu1 %v5033_v7  ;;  %v4731_v7 = vld [vmem:[#allocation17 + $0x2d8] sm:$0xff]  ;;  %v6944_v9 = vcombine.high %v8373_v63, %v8375_v11  ;;  %v6943_v46 = vcombine.low %v8373_v63, %v8375_v11  ;;  %v4860_v47 = vmul.bf16 %v4732_v39, %v4604_v26  ;;  %v8448_v39 = vld [vmem:[#allocation16 + $0x320] sm:$0xff] }
 0x401   :  { %5746 = vmatmul.mubr.bf16.vlgmr.msra.gmra.mrb[8].mxu0 %v5032_v32  ;;  %5828 = vmatmul.mubr.bf16.vlgmr.msra.gmra.mrb[8].mxu1 %v5032_v32  ;;  %v4474_v32 = vld [vmem:[#allocation14 + $0x2d0] sm:$0xff]  ;;  %v4859_v18 = vmul.bf16 %v4731_v7, %v4603_v61  ;;  %v4862_v55 = vmul.bf16 %v4734_v33, %v4606_v25  ;;  %v6945_v16 = vcombine.low %v8382_v1, %v8384_v2  ;;  %v4737_v7 = vld [vmem:[#allocation17 + $0x308] sm:$0xff]  ;;  %v4739_v26 = vld [vmem:[#allocation17 + $0x318] sm:$0xff] }
 0x402   :  { %5755 = vmatpush1.bf16.msra.mxu0 %v6927_v6  ;;  %5837 = vmatpush1.bf16.msra.mxu1 %v6929_v13  ;;  %v4601_v6 = vld [vmem:[#allocation16 + $0x2c8] sm:$0xff]  ;;  %v6948_v23 = vcombine.high %v8386_v37, %v8388_v44  ;;  %v4483_v25 = vld [vmem:[#allocation14 + $0x318] sm:$0xff]  ;;  %v4865_v33 = vmul.bf16 %v4737_v7, %v4609_v3  ;;  %v4746_v3 = vld [vmem:[#allocation17 + $0x350] sm:$0xff] }
 0x403   :  { %5786 = vmatprep.mubr.bf16.mxu0 %v5035_v54  ;;  %5868 = vmatprep.mubr.bf16.mxu1 %v5035_v54  ;;  %v4729_v13 = vld [vmem:[#allocation17 + $0x2c8] sm:$0xff]  ;;  %v6946_v54 = vcombine.high %v8382_v1, %v8384_v2  ;;  %v8440_v12 = vadd.bf16 %v4859_v18, %v4475_v29  ;;  %v8456_v29 = vld [vmem:[#allocation17 + $0x320] sm:$0xff] }
 0x404   :  { %5756 = vmatprep.subr.bf16.mxu0 %v6932_v56  ;;  %5838 = vmatprep.subr.bf16.mxu1 %v6934_v60  ;;  %v4853_v56 = vmul.bf16 %v8351_v36, %v8347_v28  ;;  %v4855_v60 = vmul.bf16 %v8353_v48, %v8349_v41  ;;  %v4857_v57 = vmul.bf16 %v4729_v13, %v4601_v6  ;;  %v8402_v28 = vld [vmem:[#allocation16 + $0x2e8] sm:$0xff]  ;;  %v8404_v41 = vld [vmem:[#allocation16 + $0x2f8] sm:$0xff]  ;;  %v4608_v36 = vld [vmem:[#allocation16 + $0x300] sm:$0xff] }
 0x405   :  { %v4610_v48 = vld [vmem:[#allocation16 + $0x310] sm:$0xff]  ;;  %v8431_v6 = vadd.bf16 %v4856_v42, %v4472_v40  ;;  %v8433_v13 = vadd.bf16 %v4858_v27, %v4474_v32  ;;  %v4864_v40 = vmul.bf16 %v4736_v24, %v4608_v36  ;;  %v4489_v2 = vld [vmem:[#allocation14 + $0x348] sm:$0xff]  ;;  %v4624_v11 = vld [vmem:[#allocation16 + $0x380] sm:$0xff] }
 0x406   :  { %5757 = vmatpush1.bf16.msra.mxu0 %v6931_v34  ;;  %5839 = vmatpush1.bf16.msra.mxu1 %v6933_v58  ;;  %v4478_v34 = vld [vmem:[#allocation14 + $0x2f0] sm:$0xff]  ;;  %v4733_v58 = vld [vmem:[#allocation17 + $0x2e8] sm:$0xff]  ;;  %v8423_v22 = vadd.bf16 %v4855_v60, %v4471_v31  ;;  %v8435_v61 = vadd.bf16 %v4857_v57, %v4473_v21  ;;  %v4611_v31 = vld [vmem:[#allocation16 + $0x318] sm:$0xff]  ;;  %v4866_v32 = vmul.bf16 %v4738_v43, %v4610_v48 }
 0x407   :  { %5758 = vmatprep.subr.bf16.mxu0 %v6936_v30  ;;  %5840 = vmatprep.subr.bf16.mxu1 %v6938_v35  ;;  %v4735_v30 = vld [vmem:[#allocation17 + $0x2f8] sm:$0xff]  ;;  %v8421_v35 = vadd.bf16 %v4853_v56, %v4469_v0  ;;  %v4477_v0 = vld [vmem:[#allocation14 + $0x2e8] sm:$0xff]  ;;  %v4861_v4 = vmul.bf16 %v4733_v58, %v8402_v28  ;;  %v8444_v56 = vadd.bf16 %v4860_v47, %v4476_v10  ;;  %v8454_v27 = vld [vmem:[#allocation16 + $0x330] sm:$0xff] }
 0x408   :  { %v4863_v5 = vmul.bf16 %v4735_v30, %v8404_v41  ;;  %v8446_v60 = vadd.bf16 %v4862_v55, %v4478_v34  ;;  %v4481_v21 = vld [vmem:[#allocation14 + $0x308] sm:$0xff]  ;;  %v4867_v42 = vmul.bf16 %v4739_v26, %v4611_v31  ;;  %v8458_v57 = vld [vmem:[#allocation17 + $0x330] sm:$0xff]  ;;  %v6952_v41 = vcombine.high %v8431_v6, %v8433_v13  ;;  %v8471_v34 = vld [vmem:[#allocation16 + $0x338] sm:$0xff] }
 0x409   :  { %v6949_v28 = vcombine.low %v8421_v35, %v8423_v22  ;;  %v6951_v18 = vcombine.low %v8431_v6, %v8433_v13  ;;  %v8469_v10 = vld [vmem:[#allocation16 + $0x328] sm:$0xff]  ;;  %v6954_v19 = vcombine.high %v8435_v61, %v8440_v12  ;;  %v8475_v20 = vadd.bf16 %v4861_v4, %v4477_v0  ;;  %v4616_v47 = vld [vmem:[#allocation16 + $0x340] sm:$0xff]  ;;  %v4486_v24 = vld [vmem:[#allocation14 + $0x330] sm:$0xff] }
 0x40a   :  { %5759 = vmatpush1.bf16.msra.mxu0 %v6935_v14  ;;  %5841 = vmatpush1.bf16.msra.mxu1 %v6937_v53  ;;  %v4480_v14 = vld [vmem:[#allocation14 + $0x300] sm:$0xff]  ;;  %v4482_v53 = vld [vmem:[#allocation14 + $0x310] sm:$0xff]  ;;  %v4741_v58 = vld [vmem:[#allocation17 + $0x328] sm:$0xff]  ;;  %v6953_v30 = vcombine.low %v8435_v61, %v8440_v12  ;;  %v6956_v36 = vcombine.high %v8444_v56, %v8446_v60  ;;  %v8487_v31 = vadd.bf16 %v4865_v33, %v4481_v21 }
 0x40b   :  { %5760 = vmatprep.subr.bf16.mxu0 %v6940_v38  ;;  %5842 = vmatprep.subr.bf16.mxu1 %v6942_v59  ;;  %v6950_v38 = vcombine.high %v8421_v35, %v8423_v22  ;;  %v6947_v59 = vcombine.low %v8386_v37, %v8388_v44  ;;  %v4744_v55 = vld [vmem:[#allocation17 + $0x340] sm:$0xff]  ;;  %v8483_v48 = vadd.bf16 %v4864_v40, %v4480_v14  ;;  %v4618_v43 = vld [vmem:[#allocation16 + $0x350] sm:$0xff]  ;;  %v4617_v0 = vld [vmem:[#allocation16 + $0x348] sm:$0xff] }
 0x40c   :  { %v8489_v7 = vadd.bf16 %v4867_v42, %v4483_v25  ;;  %v4868_v26 = vmul.bf16 %v8456_v29, %v8448_v39  ;;  %v4485_v4 = vld [vmem:[#allocation14 + $0x328] sm:$0xff]  ;;  %v4487_v40 = vld [vmem:[#allocation14 + $0x338] sm:$0xff]  ;;  %v4488_v25 = vld [vmem:[#allocation14 + $0x340] sm:$0xff]  ;;  %v4872_v33 = vmul.bf16 %v4744_v55, %v4616_v47  ;;  %v4874_v1 = vmul.bf16 %v4746_v3, %v4618_v43 }
 0x40d   :  { %v4745_v14 = vld [vmem:[#allocation17 + $0x348] sm:$0xff]  ;;  %v4490_v39 = vld [vmem:[#allocation14 + $0x350] sm:$0xff]  ;;  %v4751_v29 = vld [vmem:[#allocation17 + $0x378] sm:$0xff]  ;;  %v9177_v6 = vcombine.low %v8444_v56, %v8446_v60 }
 0x40e   :  { %5761 = vmatpush1.bf16.msra.mxu0 %v6939_v8  ;;  %5843 = vmatpush1.bf16.msra.mxu1 %v6941_v62  ;;  %v8477_v8 = vadd.bf16 %v4863_v5, %v4479_v45  ;;  %v4743_v62 = vld [vmem:[#allocation17 + $0x338] sm:$0xff]  ;;  %v4870_v45 = vmul.bf16 %v8458_v57, %v8454_v27  ;;  %v4622_v42 = vld [vmem:[#allocation16 + $0x370] sm:$0xff]  ;;  %v4748_v27 = vld [vmem:[#allocation17 + $0x360] sm:$0xff]  ;;  %v8540_v37 = vadd.bf16 %v4874_v1, %v4490_v39 }
 0x40f   :  { %5762 = vmatprep.subr.bf16.mxu0 %v6944_v9  ;;  %5844 = vmatprep.subr.bf16.mxu1 %v6946_v54  ;;  %v8485_v9 = vadd.bf16 %v4866_v32, %v4482_v53  ;;  %v4484_v54 = vld [vmem:[#allocation14 + $0x320] sm:$0xff]  ;;  %v4619_v5 = vld [vmem:[#allocation16 + $0x358] sm:$0xff]  ;;  %v4869_v32 = vmul.bf16 %v4741_v58, %v8469_v10  ;;  %v4871_v21 = vmul.bf16 %v4743_v62, %v8471_v34  ;;  %v4750_v10 = vld [vmem:[#allocation17 + $0x370] sm:$0xff] }
 0x410   :  { %v4747_v53 = vld [vmem:[#allocation17 + $0x358] sm:$0xff]  ;;  %v6958_v63 = vcombine.high %v8475_v20, %v8477_v8  ;;  %v4621_v34 = vld [vmem:[#allocation16 + $0x368] sm:$0xff]  ;;  %v6962_v62 = vcombine.high %v8487_v31, %v8489_v7  ;;  %v8518_v55 = vadd.bf16 %v4868_v26, %v4484_v54  ;;  %v8520_v43 = vadd.bf16 %v4870_v45, %v4486_v24  ;;  %v4492_v54 = vld [vmem:[#allocation14 + $0x360] sm:$0xff] }
 0x411   :  { %v6960_v57 = vcombine.high %v8483_v48, %v8485_v9  ;;  %v4623_v58 = vld [vmem:[#allocation16 + $0x378] sm:$0xff]  ;;  %v6959_v47 = vcombine.low %v8483_v48, %v8485_v9  ;;  %v4749_v3 = vld [vmem:[#allocation17 + $0x368] sm:$0xff]  ;;  %v4626_v24 = vld [vmem:[#allocation16 + $0x390] sm:$0xff]  ;;  %v4878_v22 = vmul.bf16 %v4750_v10, %v4622_v42 }
 0x412   :  { %5763 = vmatpush1.bf16.msra.mxu0 %v6943_v46  ;;  %5845 = vmatpush1.bf16.msra.mxu1 %v6945_v16  ;;  %v4491_v46 = vld [vmem:[#allocation14 + $0x358] sm:$0xff]  ;;  %v4620_v16 = vld [vmem:[#allocation16 + $0x360] sm:$0xff]  ;;  %v4754_v45 = vld [vmem:[#allocation17 + $0x390] sm:$0xff]  ;;  %v6964_v39 = vcombine.high %v8518_v55, %v8520_v43 }
 0x413   :  { %5764 = vmatprep.subr.bf16.mxu0 %v6948_v23  ;;  %5846 = vmatprep.subr.bf16.mxu1 %v6950_v38  ;;  %v4873_v23 = vmul.bf16 %v4745_v14, %v4617_v0  ;;  %v4875_v38 = vmul.bf16 %v4747_v53, %v4619_v5  ;;  %v8528_v0 = vadd.bf16 %v4869_v32, %v4485_v4  ;;  %v4752_v26 = vld [vmem:[#allocation17 + $0x380] sm:$0xff]  ;;  %v4494_v44 = vld [vmem:[#allocation14 + $0x370] sm:$0xff]  ;;  %v4637_v56 = vld [vmem:[#allocation16 + $0x3e8] sm:$0xff] }
 0x414   :  { %v8530_v5 = vadd.bf16 %v4871_v21, %v4487_v40  ;;  %v8532_v14 = vadd.bf16 %v4872_v33, %v4488_v25  ;;  %v4876_v35 = vmul.bf16 %v4748_v27, %v4620_v16  ;;  %v4877_v40 = vmul.bf16 %v4749_v3, %v4621_v34  ;;  %v4496_v21 = vld [vmem:[#allocation14 + $0x380] sm:$0xff]  ;;  %v8546_v25 = vld [vmem:[#allocation16 + $0x388] sm:$0xff]  ;;  %v4498_v33 = vld [vmem:[#allocation14 + $0x390] sm:$0xff] }
 0x415   :  { %v8542_v4 = vadd.bf16 %v4873_v23, %v4489_v2  ;;  %v8544_v53 = vadd.bf16 %v4875_v38, %v4491_v46  ;;  %v4879_v32 = vmul.bf16 %v4751_v29, %v4623_v58  ;;  %v4880_v1 = vmul.bf16 %v4752_v26, %v4624_v11  ;;  %v8554_v2 = vld [vmem:[#allocation17 + $0x388] sm:$0xff]  ;;  %v8556_v46 = vld [vmem:[#allocation17 + $0x398] sm:$0xff]  ;;  %v8570_v29 = vld [vmem:[#allocation16 + $0x3a0] sm:$0xff] }
 0x416   :  { %5765 = vmatpush1.bf16.msra.mxu0 %v6947_v59  ;;  %5847 = vmatpush1.bf16.msra.mxu1 %v6949_v28  ;;  %v4493_v59 = vld [vmem:[#allocation14 + $0x368] sm:$0xff]  ;;  %v4495_v28 = vld [vmem:[#allocation14 + $0x378] sm:$0xff]  ;;  %v4882_v16 = vmul.bf16 %v4754_v45, %v4626_v24  ;;  %v6966_v42 = vcombine.high %v8528_v0, %v8530_v5  ;;  %v6963_v27 = vcombine.low %v8518_v55, %v8520_v43  ;;  %v8572_v23 = vld [vmem:[#allocation16 + $0x3b0] sm:$0xff] }
 0x417   :  { %5766 = vmatprep.subr.bf16.mxu0 %v6952_v41  ;;  %5848 = vmatprep.subr.bf16.mxu1 %v6954_v19  ;;  %v8548_v41 = vld [vmem:[#allocation16 + $0x398] sm:$0xff]  ;;  %v6961_v19 = vcombine.low %v8487_v31, %v8489_v7  ;;  %v6965_v11 = vcombine.low %v8528_v0, %v8530_v5  ;;  %v4756_v38 = vld [vmem:[#allocation17 + $0x3a0] sm:$0xff]  ;;  %v8579_v13 = vadd.bf16 %v4876_v35, %v4492_v54  ;;  %v4758_v12 = vld [vmem:[#allocation17 + $0x3b0] sm:$0xff] }
 0x418   :  { %v8581_v61 = vadd.bf16 %v4878_v22, %v4494_v44  ;;  %v8587_v58 = vadd.bf16 %v4877_v40, %v4493_v59  ;;  %v4499_v3 = vld [vmem:[#allocation14 + $0x398] sm:$0xff]  ;;  %v4632_v26 = vld [vmem:[#allocation16 + $0x3c0] sm:$0xff]  ;;  %v8591_v45 = vadd.bf16 %v4880_v1, %v4496_v21  ;;  %v8593_v44 = vadd.bf16 %v4882_v16, %v4498_v33  ;;  %v4502_v59 = vld [vmem:[#allocation14 + $0x3b0] sm:$0xff] }
 0x419   :  { %v4631_v24 = vld [vmem:[#allocation16 + $0x3b8] sm:$0xff]  ;;  %v4881_v35 = vmul.bf16 %v8554_v2, %v8546_v25  ;;  %v4883_v22 = vmul.bf16 %v8556_v46, %v8548_v41  ;;  %v4500_v34 = vld [vmem:[#allocation14 + $0x3a0] sm:$0xff]  ;;  %v4501_v40 = vld [vmem:[#allocation14 + $0x3a8] sm:$0xff]  ;;  %v9178_v21 = vcombine.low %v8475_v20, %v8477_v8  ;;  %v4884_v33 = vmul.bf16 %v4756_v38, %v8570_v29 }
 0x41a   :  { %5767 = vmatpush1.bf16.msra.mxu0 %v6951_v18  ;;  %5849 = vmatpush1.bf16.msra.mxu1 %v6953_v30  ;;  %v4629_v18 = vld [vmem:[#allocation16 + $0x3a8] sm:$0xff]  ;;  %v4759_v54 = vld [vmem:[#allocation17 + $0x3b8] sm:$0xff]  ;;  %v4762_v10 = vld [vmem:[#allocation17 + $0x3d0] sm:$0xff]  ;;  %v4886_v25 = vmul.bf16 %v4758_v12, %v8572_v23  ;;  %v9179_v55 = vcombine.high %v8532_v14, %v8540_v37  ;;  %v9180_v43 = vcombine.high %v8542_v4, %v8544_v53 }
 0x41b   :  { %5768 = vmatprep.subr.bf16.mxu0 %v6956_v36  ;;  %5850 = vmatprep.subr.bf16.mxu1 %v6958_v63  ;;  %v4757_v30 = vld [vmem:[#allocation17 + $0x3a8] sm:$0xff]  ;;  %v8589_v36 = vadd.bf16 %v4879_v32, %v4495_v28  ;;  %v4634_v28 = vld [vmem:[#allocation16 + $0x3d0] sm:$0xff]  ;;  %v4760_v32 = vld [vmem:[#allocation17 + $0x3c0] sm:$0xff]  ;;  %v4887_v20 = vmul.bf16 %v4759_v54, %v4631_v24  ;;  %v9181_v0 = vcombine.low %v8532_v14, %v8540_v37 }
 0x41c   :  { %v4497_v63 = vld [vmem:[#allocation14 + $0x388] sm:$0xff]  ;;  %v4503_v1 = vld [vmem:[#allocation14 + $0x3b8] sm:$0xff]  ;;  %v4885_v41 = vmul.bf16 %v4757_v30, %v4629_v18  ;;  %v4504_v8 = vld [vmem:[#allocation14 + $0x3c0] sm:$0xff]  ;;  %v4888_v38 = vmul.bf16 %v4760_v32, %v4632_v26  ;;  %v8641_v26 = vadd.bf16 %v4886_v25, %v4502_v59  ;;  %v9183_v14 = vcombine.high %v8579_v13, %v8581_v61 }
 0x41d   :  { %v8607_v16 = vld [vmem:[#allocation16 + $0x3c8] sm:$0xff]  ;;  %v8609_v2 = vld [vmem:[#allocation16 + $0x3d8] sm:$0xff]  ;;  %v4506_v46 = vld [vmem:[#allocation14 + $0x3d0] sm:$0xff]  ;;  %v6973_v30 = vcombine.low %v8587_v58, %v8589_v36  ;;  %v8629_v54 = vadd.bf16 %v4881_v35, %v4497_v63  ;;  %v8651_v48 = vadd.bf16 %v4887_v20, %v4503_v1  ;;  %v9184_v37 = vcombine.high %v8587_v58, %v8589_v36 }
 0x41e   :  { %5769 = vmatpush1.bf16.msra.mxu0 %v9177_v6  ;;  %5851 = vmatpush1.bf16.msra.mxu1 %v9178_v21  ;;  %v4761_v29 = vld [vmem:[#allocation17 + $0x3c8] sm:$0xff]  ;;  %v4890_v6 = vmul.bf16 %v4762_v10, %v4634_v28  ;;  %v4763_v12 = vld [vmem:[#allocation17 + $0x3d8] sm:$0xff]  ;;  %v4638_v18 = vld [vmem:[#allocation16 + $0x3f0] sm:$0xff]  ;;  %v8631_v21 = vadd.bf16 %v4883_v22, %v4499_v3  ;;  %v8639_v10 = vadd.bf16 %v4884_v33, %v4500_v34 }
 0x41f   :  { %5770 = vmatprep.subr.bf16.mxu0 %v6960_v57  ;;  %5852 = vmatprep.subr.bf16.mxu1 %v6962_v62  ;;  %v6971_v57 = vcombine.low %v8579_v13, %v8581_v61  ;;  %v4636_v62 = vld [vmem:[#allocation16 + $0x3e0] sm:$0xff]  ;;  %v4766_v23 = vld [vmem:[#allocation17 + $0x3f0] sm:$0xff]  ;;  %v8643_v28 = vadd.bf16 %v4885_v41, %v4501_v40  ;;  %v4505_v63 = vld [vmem:[#allocation14 + $0x3c8] sm:$0xff]  ;;  %v4889_v31 = vmul.bf16 %v4761_v29, %v8607_v16 }
 0x420   :  { %v4764_v60 = vld [vmem:[#allocation17 + $0x3e0] sm:$0xff]  ;;  %v4639_v3 = vld [vmem:[#allocation16 + $0x3f8] sm:$0xff]  ;;  %v4765_v35 = vld [vmem:[#allocation17 + $0x3e8] sm:$0xff]  ;;  %v4891_v7 = vmul.bf16 %v4763_v12, %v8609_v2  ;;  %v8655_v34 = vadd.bf16 %v4888_v38, %v4504_v8  ;;  %v8657_v59 = vadd.bf16 %v4890_v6, %v4506_v46  ;;  %v4894_v32 = vmul.bf16 %v4766_v23, %v4638_v18 }
 0x421   :  { %v4767_v22 = vld [vmem:[#allocation17 + $0x3f8] sm:$0xff]  ;;  %v4892_v40 = vmul.bf16 %v4764_v60, %v4636_v62  ;;  %v8659_v25 = vld [vmem:[#allocation20 + $0x40] sm:$0xf]  ;;  %v4893_v41 = vmul.bf16 %v4765_v35, %v4637_v56  ;;  %v8665_v2 = vld [vmem:[#allocation20 + $0x44] sm:$0xf]  ;;  %v8697_v5 = vadd.bf16 %v4889_v31, %v4505_v63  ;;  %v9185_v51 = vcombine.high %v8591_v45, %v8593_v44 }
 0x422   :  { %5771 = vmatpush1.bf16.msra.mxu0 %v6959_v47  ;;  %5853 = vmatpush1.bf16.msra.mxu1 %v6961_v19  ;;  %v4507_v9 = vld [vmem:[#allocation14 + $0x3d8] sm:$0xff]  ;;  %v4508_v47 = vld [vmem:[#allocation14 + $0x3e0] sm:$0xff]  ;;  %v4510_v19 = vld [vmem:[#allocation14 + $0x3f0] sm:$0xff]  ;;  %v4895_v16 = vmul.bf16 %v4767_v22, %v4639_v3  ;;  %v9186_v13 = vcombine.high %v8629_v54, %v8631_v21 }
 0x423   :  { %5772 = vmatprep.subr.bf16.mxu0 %v6964_v39  ;;  %5854 = vmatprep.subr.bf16.mxu1 %v6966_v42  ;;  %v4509_v39 = vld [vmem:[#allocation14 + $0x3e8] sm:$0xff]  ;;  %v4511_v33 = vld [vmem:[#allocation14 + $0x3f8] sm:$0xff]  ;;  %v8667_v20 = vld [vmem:[#allocation22 + $0x40] sm:$0xf]  ;;  %v8711_v3 = vadd.bf16 %v4892_v40, %v4508_v47  ;;  %v8713_v35 = vadd.bf16 %v4894_v32, %v4510_v19 }
 0x424   :  { %v8669_v8 = vld [vmem:[#allocation22 + $0x44] sm:$0xf]  ;;  %v8683_v29 = vld [vmem:[#allocation20 + $0xc0] sm:$0xf]  ;;  %v6089_v47 = vmul.bf16 %v8667_v20, %v8659_v25  ;;  %v8741_v20 = vld [vmem:[#allocation20 + $0x48] sm:$0xf] }
 0x425   :  { %v8685_v23 = vld [vmem:[#allocation20 + $0xc4] sm:$0xf]  ;;  %v8687_v38 = vld [vmem:[#allocation22 + $0xc0] sm:$0xf]  ;;  %v8743_v56 = vld [vmem:[#allocation22 + $0x48] sm:$0xf] }
 0x426   :  { %5773 = vmatpush1.bf16.msra.mxu0 %v6963_v27  ;;  %5855 = vmatpush1.bf16.msra.mxu1 %v6965_v11  ;;  %v8699_v27 = vadd.bf16 %v4891_v7, %v4507_v9  ;;  %v8701_v11 = vld [vmem:[#allocation22 + $0xc4] sm:$0xf]  ;;  %v8703_v6 = vld [vmem:[#allocation20] sm:$0xf]  ;;  %v9182_v7 = vcombine.low %v8542_v4, %v8544_v53  ;;  %v8776_v4 = vld [vmem:[#allocation20 + $0xc] sm:$0xf] }
 0x427   :  { %5774 = vmatprep.subr.bf16.mxu0 %v9179_v55  ;;  %5856 = vmatprep.subr.bf16.mxu1 %v9180_v43  ;;  %v8705_v12 = vld [vmem:[#allocation20 + $0x4] sm:$0xf]  ;;  %v5897_v63 = vld [vmem:[#allocation19 + $0x40] sm:$0xf]  ;;  %v8723_v55 = vadd.bf16 %v4893_v41, %v4509_v39  ;;  %v8725_v43 = vadd.bf16 %v4895_v16, %v4511_v33  ;;  %v6090_v39 = vmul.bf16 %v8669_v8, %v8665_v2  ;;  %v8778_v60 = vld [vmem:[#allocation22 + $0x8] sm:$0xf] }
 0x428   :  { %v8715_v22 = vld [vmem:[#allocation22] sm:$0xf]  ;;  %v8717_v9 = vld [vmem:[#allocation22 + $0x4] sm:$0xf]  ;;  %v6121_v33 = vmul.bf16 %v8687_v38, %v8683_v29  ;;  %v6122_v25 = vmul.bf16 %v8701_v11, %v8685_v23  ;;  %v8757_v23 = vld [vmem:[#allocation20 + $0x4c] sm:$0xf] }
 0x429   :  { %v8719_v31 = vld [vmem:[#allocation20 + $0x80] sm:$0xf]  ;;  %v5898_v62 = vld [vmem:[#allocation19 + $0x44] sm:$0xf]  ;;  %v6073_v53 = vmul.bf16 %v8715_v22, %v8703_v6  ;;  %v6074_v2 = vmul.bf16 %v8717_v9, %v8705_v12  ;;  %v8759_v38 = vld [vmem:[#allocation22 + $0x4c] sm:$0xf] }
 0x42a   :  { %v5929_v19 = vld [vmem:[#allocation19 + $0xc0] sm:$0xf]  ;;  %v5930_v40 = vld [vmem:[#allocation19 + $0xc4] sm:$0xf]  ;;  %5775 = vmatpush1.bf16.msra.mxu0 %v9181_v0  ;;  %5857 = vmatpush1.bf16.msra.mxu1 %v9182_v7  ;;  %v8761_v0 = vld [vmem:[#allocation20 + $0xc8] sm:$0xf] }
 0x42b   :  { %v5978_v32 = vld [vmem:[#allocation20 + $0x84] sm:$0xf]  ;;  %v6041_v18 = vld [vmem:[#allocation22 + $0x80] sm:$0xf]  ;;  %5776 = vmatprep.subr.bf16.mxu0 %v9183_v14  ;;  %5858 = vmatprep.subr.bf16.mxu1 %v9184_v37  ;;  %v8763_v11 = vld [vmem:[#allocation22 + $0xc8] sm:$0xf]  ;;  %v8806_v14 = vadd.bf16 %v6121_v33, %v5929_v19 }
 0x42c   :  { %v6042_v46 = vld [vmem:[#allocation22 + $0x84] sm:$0xf]  ;;  %v5881_v41 = vld [vmem:[#allocation19] sm:$0xf]  ;;  %v6105_v6 = vmul.bf16 %v6041_v18, %v8719_v31  ;;  %v8770_v12 = vld [vmem:[#allocation20 + $0xcc] sm:$0xf]  ;;  %v8790_v31 = vadd.bf16 %v6089_v47, %v5897_v63  ;;  %v8808_v63 = vadd.bf16 %v6122_v25, %v5930_v40 }
 0x42d   :  { %v5882_v16 = vld [vmem:[#allocation19 + $0x4] sm:$0xf]  ;;  %v5913_v8 = vld [vmem:[#allocation19 + $0x80] sm:$0xf]  ;;  %v6106_v22 = vmul.bf16 %v6042_v46, %v5978_v32  ;;  %v8772_v9 = vld [vmem:[#allocation22 + $0xcc] sm:$0xf]  ;;  %v8804_v46 = vadd.bf16 %v6090_v39, %v5898_v62  ;;  %v8816_v61 = vadd.bf16 %v6073_v53, %v5881_v41  ;;  %v6123_v41 = vmul.bf16 %v8763_v11, %v8761_v0 }
 0x42e   :  { %v5914_v29 = vld [vmem:[#allocation19 + $0x84] sm:$0xf]  ;;  %v8774_v37 = vld [vmem:[#allocation20 + $0x8] sm:$0xf]  ;;  %v8780_v1 = vld [vmem:[#allocation22 + $0xc] sm:$0xf]  ;;  %5777 = vmatpush1.bf16.msra.mxu0 %v6971_v57  ;;  %5859 = vmatpush1.bf16.msra.mxu1 %v6973_v30  ;;  %v8818_v58 = vadd.bf16 %v6074_v2, %v5882_v16  ;;  %v6091_v57 = vmul.bf16 %v8743_v56, %v8741_v20  ;;  %v8822_v39 = vadd.bf16 %v6105_v6, %v5913_v8 }
 0x42f   :  { %v8782_v42 = vld [vmem:[#allocation20 + $0x88] sm:$0xf]  ;;  %v8792_v32 = vld [vmem:[#allocation20 + $0x8c] sm:$0xf]  ;;  %v5965_v18 = vld [vmem:[#allocation20 + $0x50] sm:$0xf]  ;;  %5778 = vmatprep.subr.bf16.mxu0 %v9185_v51  ;;  %5860 = vmatprep.subr.bf16.mxu1 %v9186_v13  ;;  %v8824_v33 = vadd.bf16 %v6106_v22, %v5914_v29  ;;  %v6092_v51 = vmul.bf16 %v8759_v38, %v8757_v23  ;;  %v6124_v56 = vmul.bf16 %v8772_v9, %v8770_v12 }
 0x430   :  { %v8794_v7 = vld [vmem:[#allocation22 + $0x88] sm:$0xf]  ;;  %v8796_v24 = vld [vmem:[#allocation22 + $0x8c] sm:$0xf]  ;;  %v6030_v62 = vld [vmem:[#allocation22 + $0x54] sm:$0xf]  ;;  %v6075_v20 = vmul.bf16 %v8778_v60, %v8774_v37  ;;  %v6076_v8 = vmul.bf16 %v8780_v1, %v8776_v4  ;;  %v9187_v0 = vcombine.low %v8591_v45, %v8593_v44  ;;  %v9188_v11 = vcombine.low %v8629_v54, %v8631_v21 }
 0x431   :  { %v5899_v47 = vld [vmem:[#allocation19 + $0x48] sm:$0xf]  ;;  %v5900_v36 = vld [vmem:[#allocation19 + $0x4c] sm:$0xf]  ;;  %v5997_v19 = vld [vmem:[#allocation20 + $0xd0] sm:$0xf]  ;;  %v6107_v29 = vmul.bf16 %v8794_v7, %v8782_v42  ;;  %v6108_v1 = vmul.bf16 %v8796_v24, %v8792_v32  ;;  %v6093_v4 = vmul.bf16 %v6029_v50, %v5965_v18  ;;  %v6094_v9 = vmul.bf16 %v6030_v62, %v5966_v52 }
 0x432   :  { %v5931_v30 = vld [vmem:[#allocation19 + $0xc8] sm:$0xf]  ;;  %v5998_v40 = vld [vmem:[#allocation20 + $0xd4] sm:$0xf]  ;;  %v5932_v25 = vld [vmem:[#allocation19 + $0xcc] sm:$0xf]  ;;  %5779 = vmatpush1.bf16.msra.mxu0 %v9187_v0  ;;  %5861 = vmatpush1.bf16.msra.mxu1 %v9188_v11  ;;  %v9189_v42 = vcombine.high %v8639_v10, %v8641_v26  ;;  %v9190_v45 = vcombine.high %v8643_v28, %v8651_v48  ;;  %v8852_v44 = vadd.bf16 %v6091_v57, %v5899_v47 }
 0x433   :  { %v6061_v16 = vld [vmem:[#allocation22 + $0xd0] sm:$0xf]  ;;  %v6062_v53 = vld [vmem:[#allocation22 + $0xd4] sm:$0xf]  ;;  %v5883_v22 = vld [vmem:[#allocation19 + $0x8] sm:$0xf]  ;;  %v8854_v0 = vadd.bf16 %v6092_v51, %v5900_v36  ;;  %v8856_v24 = vadd.bf16 %v6123_v41, %v5931_v30  ;;  %v8858_v11 = vadd.bf16 %v6124_v56, %v5932_v25  ;;  %v9191_v36 = vcombine.low %v8639_v10, %v8641_v26 }
 0x434   :  { %v5949_v2 = vld [vmem:[#allocation20 + $0x10] sm:$0xf]  ;;  %v5950_v23 = vld [vmem:[#allocation20 + $0x14] sm:$0xf]  ;;  %v5884_v12 = vld [vmem:[#allocation19 + $0xc] sm:$0xf]  ;;  %5780 = vmatprep.subr.bf16.mxu0 %v9189_v42  ;;  %5862 = vmatprep.subr.bf16.mxu1 %v9190_v45  ;;  %v6125_v37 = vmul.bf16 %v6061_v16, %v5997_v19  ;;  %v6126_v13 = vmul.bf16 %v6062_v53, %v5998_v40  ;;  %v8860_v42 = vadd.bf16 %v6075_v20, %v5883_v22 }
 0x435   :  { %v6013_v38 = vld [vmem:[#allocation22 + $0x10] sm:$0xf]  ;;  %v6014_v6 = vld [vmem:[#allocation22 + $0x14] sm:$0xf]  ;;  %v5915_v60 = vld [vmem:[#allocation19 + $0x88] sm:$0xf]  ;;  %v8862_v47 = vadd.bf16 %v6076_v8, %v5884_v12  ;;  %v9192_v30 = vcombine.low %v8643_v28, %v8651_v48  ;;  %v9193_v10 = vcombine.high %v8655_v34, %v8657_v59  ;;  %v9194_v26 = vcombine.high %v8697_v5, %v8699_v27 }
 0x436   :  { %v5916_v54 = vld [vmem:[#allocation19 + $0x8c] sm:$0xf]  ;;  %v5901_v21 = vld [vmem:[#allocation19 + $0x50] sm:$0xf]  ;;  %v5902_v7 = vld [vmem:[#allocation19 + $0x54] sm:$0xf]  ;;  %v6077_v32 = vmul.bf16 %v6013_v38, %v5949_v2  ;;  %v6078_v62 = vmul.bf16 %v6014_v6, %v5950_v23  ;;  %v8864_v57 = vadd.bf16 %v6107_v29, %v5915_v60  ;;  %5781 = vmatpush1.bf16.msra.mxu0 %v9191_v36  ;;  %v8880_v2 = vadd.f32 %v8312_v17, %v8310_v15 }
 0x437   :  { %v5933_v50 = vld [vmem:[#allocation19 + $0xd0] sm:$0xf]  ;;  %v5934_v52 = vld [vmem:[#allocation19 + $0xd4] sm:$0xf]  ;;  %5863 = vmatpush1.bf16.msra.mxu1 %v9192_v30  ;;  %v8872_v51 = vadd.bf16 %v6108_v1, %v5916_v54  ;;  %v8874_v25 = vadd.bf16 %v6093_v4, %v5901_v21  ;;  %v8876_v41 = vadd.bf16 %v6094_v9, %v5902_v7  ;;  %5782 = vmatprep.subr.bf16.mxu0 %v9193_v10  ;;  %v8892_v20 = vld [vmem:[#allocation20 + $0x58] sm:$0xf] }
 0x438   :  { %v5885_v18 = vld [vmem:[#allocation19 + $0x10] sm:$0xf]  ;;  %v5886_v45 = vld [vmem:[#allocation19 + $0x14] sm:$0xf]  ;;  %5864 = vmatprep.subr.bf16.mxu1 %v9194_v26  ;;  %v8888_v28 = vadd.bf16 %v6125_v37, %v5933_v50  ;;  %v8890_v48 = vadd.bf16 %v6126_v13, %v5934_v52  ;;  %v8894_v8 = vld [vmem:[#allocation20 + $0x5c] sm:$0xf]  ;;  %v7015_v54 = vcombine.low %v8806_v14, %v8808_v63  ;;  %v9196_v14 = vcombine.low %v8697_v5, %v8699_v27 }
 0x439   :  { %v5981_v19 = vld [vmem:[#allocation20 + $0x90] sm:$0xf]  ;;  %v5982_v16 = vld [vmem:[#allocation20 + $0x94] sm:$0xf]  ;;  %v8896_v29 = vld [vmem:[#allocation22 + $0x58] sm:$0xf]  ;;  %v8902_v23 = vadd.bf16 %v6077_v32, %v5885_v18  ;;  %v8904_v38 = vadd.bf16 %v6078_v62, %v5886_v45  ;;  %v9195_v32 = vcombine.low %v8655_v34, %v8657_v59  ;;  %v9197_v59 = vcombine.high %v8711_v3, %v8713_v35 }
 0x43a   :  { %v6045_v40 = vld [vmem:[#allocation22 + $0x90] sm:$0xf]  ;;  %v6046_v53 = vld [vmem:[#allocation22 + $0x94] sm:$0xf]  ;;  %v8898_v15 = vld [vmem:[#allocation22 + $0x5c] sm:$0xf]  ;;  %v9198_v5 = vcombine.high %v8723_v55, %v8725_v43  ;;  %v9199_v17 = vcombine.low %v8711_v3, %v8713_v35  ;;  %v9201_v3 = vcombine.low %v8790_v31, %v8804_v46 }
 0x43b   :  { %v5917_v56 = vld [vmem:[#allocation19 + $0x90] sm:$0xf]  ;;  %v5918_v6 = vld [vmem:[#allocation19 + $0x94] sm:$0xf]  ;;  %v6109_v22 = vmul.bf16 %v6045_v40, %v5981_v19  ;;  %v8906_v12 = vld [vmem:[#allocation20 + $0xd8] sm:$0xf]  ;;  %v6110_v37 = vmul.bf16 %v6046_v53, %v5982_v16  ;;  %5783 = vmatpush1.bf16.msra.mxu0 %v9195_v32  ;;  %5865 = vmatpush1.bf16.msra.mxu1 %v9196_v14 }
 0x43c   :  { %v8908_v60 = vld [vmem:[#allocation20 + $0xdc] sm:$0xf]  ;;  %v8910_v1 = vld [vmem:[#allocation22 + $0xd8] sm:$0xf]  ;;  %v4382_v34 = vmax.f32 %v8880_v2, 0.0  ;;  %5784 = vmatprep.subr.bf16.mxu0 %v9197_v59  ;;  %5866 = vmatprep.subr.bf16.mxu1 %v9198_v5  ;;  %v6095_v59 = vmul.bf16 %v8896_v29, %v8892_v20  ;;  %v6096_v5 = vmul.bf16 %v8898_v15, %v8894_v8 }
 0x43d   :  { %v8912_v4 = vld [vmem:[#allocation22 + $0xdc] sm:$0xf]  ;;  %v8914_v9 = vld [vmem:[#allocation20 + $0x18] sm:$0xf]  ;;  %v8961_v2 = vld [vmem:[#allocation20 + $0x60] sm:$0xf]  ;;  %v8967_v14 = vadd.bf16 %v6109_v22, %v5917_v56  ;;  %v8973_v7 = vadd.bf16 %v6110_v37, %v5918_v6  ;;  %v6127_v21 = vmul.bf16 %v8910_v1, %v8906_v12  ;;  %v9200_v6 = vcombine.low %v8723_v55, %v8725_v43 }
 0x43e   :  { %v8922_v13 = vld [vmem:[#allocation20 + $0x1c] sm:$0xf]  ;;  %v8924_v50 = vld [vmem:[#allocation22 + $0x18] sm:$0xf]  ;;  %v8963_v26 = vld [vmem:[#allocation20 + $0x64] sm:$0xf]  ;;  %v6128_v56 = vmul.bf16 %v8912_v4, %v8908_v60 }
 0x43f   :  { %v8926_v52 = vld [vmem:[#allocation22 + $0x1c] sm:$0xf]  ;;  %v8928_v18 = vld [vmem:[#allocation20 + $0x98] sm:$0xf]  ;;  %v6033_v45 = vld [vmem:[#allocation22 + $0x60] sm:$0xf]  ;;  %v6079_v20 = vmul.bf16 %v8924_v50, %v8914_v9  ;;  %5785 = vmatpush1.bf16.msra.mxu0 %v9199_v17  ;;  %5867 = vmatpush1.bf16.msra.mxu1 %v9200_v6  ;;  %v5034_v50 = vpack.c.bf16 %v4382_v34, %v4382_v34 }
 0x440   :  { %v8942_v19 = vld [vmem:[#allocation20 + $0x9c] sm:$0xf]  ;;  %v8944_v40 = vld [vmem:[#allocation22 + $0x98] sm:$0xf]  ;;  %v6034_v62 = vld [vmem:[#allocation22 + $0x64] sm:$0xf]  ;;  %v6080_v12 = vmul.bf16 %v8926_v52, %v8922_v13  ;;  %7023 = vmatprep.subr.bf16.mxu0 %v9201_v3  ;;  %7045 = vmatprep.subr.bf16.mxu1 %v7015_v54  ;;  %v6097_v35 = vmul.bf16 %v6033_v45, %v8961_v2  ;;  %v9203_v2 = vcombine.low %v8822_v39, %v8824_v33 }
 0x441   :  { %v8946_v36 = vld [vmem:[#allocation22 + $0x9c] sm:$0xf]  ;;  %v5903_v53 = vld [vmem:[#allocation19 + $0x58] sm:$0xf]  ;;  %v6001_v63 = vld [vmem:[#allocation20 + $0xe0] sm:$0xf]  ;;  %v6111_v1 = vmul.bf16 %v8944_v40, %v8928_v18  ;;  %v6098_v55 = vmul.bf16 %v6034_v62, %v8963_v26  ;;  %v9206_v3 = vcombine.low %v8860_v42, %v8862_v47  ;;  %v9208_v42 = vcombine.low %v8874_v25, %v8876_v41 }
 0x442   :  { %v5904_v10 = vld [vmem:[#allocation19 + $0x5c] sm:$0xf]  ;;  %v5935_v30 = vld [vmem:[#allocation19 + $0xd8] sm:$0xf]  ;;  %v6002_v8 = vld [vmem:[#allocation20 + $0xe4] sm:$0xf]  ;;  %v6112_v4 = vmul.bf16 %v8946_v36, %v8942_v19  ;;  %v9000_v52 = vadd.bf16 %v6095_v59, %v5903_v53  ;;  %5787 = vmatmul.mubr.bf16.vlgmr.msra.gmra.mrb[8].mxu0 %v5034_v50  ;;  %5869 = vmatmul.mubr.bf16.vlgmr.msra.gmra.mrb[8].mxu1 %v5034_v50  ;;  %v9204_v59 = vcombine.low %v8852_v44, %v8854_v0 }
 0x443   :  { %v5936_v27 = vld [vmem:[#allocation19 + $0xdc] sm:$0xf]  ;;  %v5887_v16 = vld [vmem:[#allocation19 + $0x18] sm:$0xf]  ;;  %v6065_v15 = vld [vmem:[#allocation22 + $0xe0] sm:$0xf]  ;;  %v9002_v18 = vadd.bf16 %v6096_v5, %v5904_v10  ;;  %v9010_v31 = vadd.bf16 %v6127_v21, %v5935_v30  ;;  %7046 = vmatpush3.bf16.msra.mxu1 %v9203_v2  ;;  %v9209_v47 = vcombine.low %v8888_v28, %v8890_v48 }
 0x444   :  { %v5888_v22 = vld [vmem:[#allocation19 + $0x1c] sm:$0xf]  ;;  %v5919_v29 = vld [vmem:[#allocation19 + $0x98] sm:$0xf]  ;;  %v6066_v32 = vld [vmem:[#allocation22 + $0xe4] sm:$0xf]  ;;  %v6129_v19 = vmul.bf16 %v6065_v15, %v6001_v63  ;;  %v9012_v54 = vadd.bf16 %v6128_v56, %v5936_v27  ;;  %v9014_v62 = vadd.bf16 %v6079_v20, %v5887_v16  ;;  %v9202_v63 = vcombine.low %v8816_v61, %v8818_v58 }
 0x445   :  { %v5920_v60 = vld [vmem:[#allocation19 + $0x9c] sm:$0xf]  ;;  %v5905_v9 = vld [vmem:[#allocation19 + $0x60] sm:$0xf]  ;;  %v5906_v37 = vld [vmem:[#allocation19 + $0x64] sm:$0xf]  ;;  %v6130_v40 = vmul.bf16 %v6066_v32, %v6002_v8  ;;  %v9022_v26 = vadd.bf16 %v6080_v12, %v5888_v22  ;;  %v9024_v32 = vadd.bf16 %v6111_v1, %v5919_v29  ;;  %v9205_v61 = vcombine.low %v8856_v24, %v8858_v11 }
 0x446   :  { %v5937_v43 = vld [vmem:[#allocation19 + $0xe0] sm:$0xf]  ;;  %v5938_v17 = vld [vmem:[#allocation19 + $0xe4] sm:$0xf]  ;;  %7024 = vmatpush3.bf16.msra.mxu0 %v9202_v63  ;;  %v9026_v21 = vadd.bf16 %v6112_v4, %v5920_v60  ;;  %v5971_v30 = vld [vmem:[#allocation20 + $0x68] sm:$0xf]  ;;  %v7009_v58 = vcombine.low %v8967_v14, %v8973_v7  ;;  %v9036_v39 = vadd.bf16 %v6097_v35, %v5905_v9  ;;  %v9038_v33 = vadd.bf16 %v6098_v55, %v5906_v37 }
 0x447   :  { %v8998_v13 = vld [vmem:[#allocation20 + $0x20] sm:$0xf]  ;;  %v9004_v36 = vld [vmem:[#allocation20 + $0x24] sm:$0xf]  ;;  %v6035_v16 = vld [vmem:[#allocation22 + $0x68] sm:$0xf]  ;;  %7025 = vmatprep.subr.bf16.mxu0 %v9204_v59  ;;  %7047 = vmatprep.subr.bf16.mxu1 %v9205_v61  ;;  %v9040_v8 = vadd.bf16 %v6129_v19, %v5937_v43  ;;  %v9042_v44 = vadd.bf16 %v6130_v40, %v5938_v17  ;;  %v7002_v12 = vcombine.low %v9000_v52, %v9002_v18 }
 0x448   :  { %v9006_v34 = vld [vmem:[#allocation22 + $0x20] sm:$0xf]  ;;  %v9008_v46 = vld [vmem:[#allocation22 + $0x24] sm:$0xf]  ;;  %v5972_v22 = vld [vmem:[#allocation20 + $0x6c] sm:$0xf]  ;;  %v6099_v9 = vmul.bf16 %v6035_v16, %v5971_v30  ;;  %v9207_v35 = vcombine.low %v8864_v57, %v8872_v51  ;;  %v7018_v55 = vcombine.low %v9010_v31, %v9012_v54  ;;  %v6994_v43 = vcombine.low %v9014_v62, %v9022_v26 }
 0x449   :  { %v5985_v45 = vld [vmem:[#allocation20 + $0xa0] sm:$0xf]  ;;  %v5986_v53 = vld [vmem:[#allocation20 + $0xa4] sm:$0xf]  ;;  %v6036_v20 = vld [vmem:[#allocation22 + $0x6c] sm:$0xf]  ;;  %v6081_v0 = vmul.bf16 %v9006_v34, %v8998_v13  ;;  %v6082_v24 = vmul.bf16 %v9008_v46, %v9004_v36  ;;  %v7010_v17 = vcombine.low %v9024_v32, %v9026_v21  ;;  %v7003_v46 = vcombine.low %v9036_v39, %v9038_v33 }
 0x44a   :  { %v6049_v10 = vld [vmem:[#allocation22 + $0xa0] sm:$0xf]  ;;  %v6050_v27 = vld [vmem:[#allocation22 + $0xa4] sm:$0xf]  ;;  %v6003_v29 = vld [vmem:[#allocation20 + $0xe8] sm:$0xf]  ;;  %7026 = vmatpush3.bf16.msra.mxu0 %v9206_v3  ;;  %7048 = vmatpush3.bf16.msra.mxu1 %v9207_v35  ;;  %v6100_v57 = vmul.bf16 %v6036_v20, %v5972_v22  ;;  %v7019_v31 = vcombine.low %v9040_v8, %v9042_v44  ;;  %v9210_v63 = vcombine.low %v8902_v23, %v8904_v38 }
 0x44b   :  { %v5889_v5 = vld [vmem:[#allocation19 + $0x20] sm:$0xf]  ;;  %v5890_v56 = vld [vmem:[#allocation19 + $0x24] sm:$0xf]  ;;  %v6004_v14 = vld [vmem:[#allocation20 + $0xec] sm:$0xf]  ;;  %v6113_v60 = vmul.bf16 %v6049_v10, %v5985_v45  ;;  %v6114_v1 = vmul.bf16 %v6050_v27, %v5986_v53  ;;  %7027 = vmatprep.subr.bf16.mxu0 %v9208_v42  ;;  %7049 = vmatprep.subr.bf16.mxu1 %v9209_v47 }
 0x44c   :  { %v5921_v11 = vld [vmem:[#allocation19 + $0xa0] sm:$0xf]  ;;  %v5922_v7 = vld [vmem:[#allocation19 + $0xa4] sm:$0xf]  ;;  %v6067_v15 = vld [vmem:[#allocation22 + $0xe8] sm:$0xf]  ;;  %v6145_v54 = vadd.bf16 %v6081_v0, %v5889_v5  ;;  %v6146_v62 = vadd.bf16 %v6082_v24, %v5890_v56 }
 0x44d   :  { %v6068_v6 = vld [vmem:[#allocation22 + $0xec] sm:$0xf]  ;;  %v5907_v4 = vld [vmem:[#allocation19 + $0x68] sm:$0xf]  ;;  %v6131_v51 = vmul.bf16 %v6067_v15, %v6003_v29  ;;  %v6177_v53 = vadd.bf16 %v6113_v60, %v5921_v11  ;;  %v6178_v28 = vadd.bf16 %v6114_v1, %v5922_v7  ;;  %v5973_v44 = vld [vmem:[#allocation20 + $0x70] sm:$0xf] }
 0x44e   :  { %v5955_v37 = vld [vmem:[#allocation20 + $0x28] sm:$0xf]  ;;  %v5956_v50 = vld [vmem:[#allocation20 + $0x2c] sm:$0xf]  ;;  %v6132_v19 = vmul.bf16 %v6068_v6, %v6004_v14  ;;  %v6163_v48 = vadd.bf16 %v6099_v9, %v5907_v4  ;;  %7028 = vmatpush3.bf16.msra.mxu0 %v9210_v63  ;;  %7050 = vmatpush3.bf16.msra.mxu1 %v7009_v58  ;;  %v6995_v33 = vcombine.low %v6145_v54, %v6146_v62  ;;  %v5974_v0 = vld [vmem:[#allocation20 + $0x74] sm:$0xf] }
 0x44f   :  { %v6019_v13 = vld [vmem:[#allocation22 + $0x28] sm:$0xf]  ;;  %v6020_v52 = vld [vmem:[#allocation22 + $0x2c] sm:$0xf]  ;;  %7029 = vmatprep.subr.bf16.mxu0 %v7002_v12  ;;  %7051 = vmatprep.subr.bf16.mxu1 %v7018_v55  ;;  %v7011_v5 = vcombine.low %v6177_v53, %v6178_v28  ;;  %v6037_v24 = vld [vmem:[#allocation22 + $0x70] sm:$0xf] }
 0x450   :  { %v5987_v18 = vld [vmem:[#allocation20 + $0xa8] sm:$0xf]  ;;  %v5988_v40 = vld [vmem:[#allocation20 + $0xac] sm:$0xf]  ;;  %v6083_v10 = vmul.bf16 %v6019_v13, %v5955_v37  ;;  %v6084_v26 = vmul.bf16 %v6020_v52, %v5956_v50  ;;  %v6038_v11 = vld [vmem:[#allocation22 + $0x74] sm:$0xf]  ;;  %v6101_v7 = vmul.bf16 %v6037_v24, %v5973_v44 }
 0x451   :  { %v6051_v36 = vld [vmem:[#allocation22 + $0xa8] sm:$0xf]  ;;  %v6052_v34 = vld [vmem:[#allocation22 + $0xac] sm:$0xf]  ;;  %v6005_v14 = vld [vmem:[#allocation20 + $0xf0] sm:$0xf]  ;;  %v6102_v60 = vmul.bf16 %v6038_v11, %v5974_v0 }
 0x452   :  { %v5908_v25 = vld [vmem:[#allocation19 + $0x6c] sm:$0xf]  ;;  %v5939_v41 = vld [vmem:[#allocation19 + $0xe8] sm:$0xf]  ;;  %v6115_v32 = vmul.bf16 %v6051_v36, %v5987_v18  ;;  %v6116_v21 = vmul.bf16 %v6052_v34, %v5988_v40  ;;  %7030 = vmatpush3.bf16.msra.mxu0 %v6994_v43  ;;  %7052 = vmatpush3.bf16.msra.mxu1 %v7010_v17  ;;  %v6006_v15 = vld [vmem:[#allocation20 + $0xf4] sm:$0xf] }
 0x453   :  { %v5940_v45 = vld [vmem:[#allocation19 + $0xec] sm:$0xf]  ;;  %v5891_v2 = vld [vmem:[#allocation19 + $0x28] sm:$0xf]  ;;  %v6164_v27 = vadd.bf16 %v6100_v57, %v5908_v25  ;;  %v6195_v30 = vadd.bf16 %v6131_v51, %v5939_v41  ;;  %7031 = vmatprep.subr.bf16.mxu0 %v7003_v46  ;;  %7053 = vmatprep.subr.bf16.mxu1 %v7019_v31  ;;  %v5909_v6 = vld [vmem:[#allocation19 + $0x70] sm:$0xf] }
 0x454   :  { %v6196_v16 = vadd.bf16 %v6132_v19, %v5940_v45  ;;  %v5892_v59 = vld [vmem:[#allocation19 + $0x2c] sm:$0xf]  ;;  %v5923_v61 = vld [vmem:[#allocation19 + $0xa8] sm:$0xf]  ;;  %v6147_v56 = vadd.bf16 %v6083_v10, %v5891_v2  ;;  %v5910_v12 = vld [vmem:[#allocation19 + $0x74] sm:$0xf]  ;;  %v6165_v4 = vadd.bf16 %v6101_v7, %v5909_v6 }
 0x455   :  { %v5924_v39 = vld [vmem:[#allocation19 + $0xac] sm:$0xf]  ;;  %v6148_v23 = vadd.bf16 %v6084_v26, %v5892_v59  ;;  %v6179_v38 = vadd.bf16 %v6115_v32, %v5923_v61  ;;  %v7004_v22 = vcombine.low %v6163_v48, %v6164_v27  ;;  %v5941_v1 = vld [vmem:[#allocation19 + $0xf0] sm:$0xf]  ;;  %v5942_v9 = vld [vmem:[#allocation19 + $0xf4] sm:$0xf]  ;;  %v6166_v3 = vadd.bf16 %v6102_v60, %v5910_v12 }
 0x456   :  { %v6180_v58 = vadd.bf16 %v6116_v21, %v5924_v39  ;;  %v7020_v20 = vcombine.low %v6195_v30, %v6196_v16  ;;  %7032 = vmatpush3.bf16.msra.mxu0 %v6995_v33  ;;  %7054 = vmatpush3.bf16.msra.mxu1 %v7011_v5  ;;  %v6069_v37 = vld [vmem:[#allocation22 + $0xf0] sm:$0xf]  ;;  %v6070_v50 = vld [vmem:[#allocation22 + $0xf4] sm:$0xf]  ;;  %v5911_v45 = vld [vmem:[#allocation19 + $0x78] sm:$0xf] }
 0x457   :  { %v6996_v29 = vcombine.low %v6147_v56, %v6148_v23  ;;  %7033 = vmatprep.subr.bf16.mxu0 %v7004_v22  ;;  %v6133_v35 = vmul.bf16 %v6069_v37, %v6005_v14  ;;  %v5893_v55 = vld [vmem:[#allocation19 + $0x30] sm:$0xf]  ;;  %v5894_v43 = vld [vmem:[#allocation19 + $0x34] sm:$0xf]  ;;  %v6134_v13 = vmul.bf16 %v6070_v50, %v6006_v15  ;;  %v7005_v47 = vcombine.low %v6165_v4, %v6166_v3  ;;  %v5912_v53 = vld [vmem:[#allocation19 + $0x7c] sm:$0xf] }
 0x458   :  { %v7012_v8 = vcombine.low %v6179_v38, %v6180_v58  ;;  %7055 = vmatprep.subr.bf16.mxu1 %v7020_v20  ;;  %v5957_v17 = vld [vmem:[#allocation20 + $0x30] sm:$0xf]  ;;  %v5958_v52 = vld [vmem:[#allocation20 + $0x34] sm:$0xf]  ;;  %v5975_v28 = vld [vmem:[#allocation20 + $0x78] sm:$0xf] }
 0x459   :  { %v6021_v18 = vld [vmem:[#allocation22 + $0x30] sm:$0xf]  ;;  %v6022_v42 = vld [vmem:[#allocation22 + $0x34] sm:$0xf]  ;;  %v6197_v57 = vadd.bf16 %v6133_v35, %v5941_v1  ;;  %v6198_v36 = vadd.bf16 %v6134_v13, %v5942_v9  ;;  %v5976_v2 = vld [vmem:[#allocation20 + $0x7c] sm:$0xf] }
 0x45a   :  { %7034 = vmatpush3.bf16.msra.mxu0 %v6996_v29  ;;  %7056 = vmatpush3.bf16.msra.mxu1 %v7012_v8  ;;  %v5925_v51 = vld [vmem:[#allocation19 + $0xb0] sm:$0xf]  ;;  %v5926_v19 = vld [vmem:[#allocation19 + $0xb4] sm:$0xf]  ;;  %v6085_v34 = vmul.bf16 %v6021_v18, %v5957_v17  ;;  %v6086_v46 = vmul.bf16 %v6022_v42, %v5958_v52  ;;  %v6039_v26 = vld [vmem:[#allocation22 + $0x78] sm:$0xf] }
 0x45b   :  { %v5989_v40 = vld [vmem:[#allocation20 + $0xb0] sm:$0xf]  ;;  %v5990_v31 = vld [vmem:[#allocation20 + $0xb4] sm:$0xf]  ;;  %7035 = vmatprep.subr.bf16.mxu0 %v7005_v47  ;;  %v7021_v48 = vcombine.low %v6197_v57, %v6198_v36  ;;  %v6040_v32 = vld [vmem:[#allocation22 + $0x7c] sm:$0xf]  ;;  %v6103_v30 = vmul.bf16 %v6039_v26, %v5975_v28 }
 0x45c   :  { %v6053_v54 = vld [vmem:[#allocation22 + $0xb0] sm:$0xf]  ;;  %v6054_v62 = vld [vmem:[#allocation22 + $0xb4] sm:$0xf]  ;;  %v6149_v10 = vadd.bf16 %v6085_v34, %v5893_v55  ;;  %v6150_v63 = vadd.bf16 %v6086_v46, %v5894_v43  ;;  %v6104_v16 = vmul.bf16 %v6040_v32, %v5976_v2  ;;  %v5943_v59 = vld [vmem:[#allocation19 + $0xf8] sm:$0xf] }
 0x45d   :  { %v6117_v25 = vmul.bf16 %v6053_v54, %v5989_v40  ;;  %v6118_v41 = vmul.bf16 %v6054_v62, %v5990_v31  ;;  %v5944_v61 = vld [vmem:[#allocation19 + $0xfc] sm:$0xf]  ;;  %v6007_v39 = vld [vmem:[#allocation20 + $0xf8] sm:$0xf]  ;;  %7057 = vmatprep.subr.bf16.mxu1 %v7021_v48  ;;  %v6167_v58 = vadd.bf16 %v6103_v30, %v5911_v45  ;;  %v5026_v57 = vld [vmem:[%s9131_s17] sm:$0xf] }
 0x45e   :  { %v6997_v33 = vcombine.low %v6149_v10, %v6150_v63  ;;  %v6008_v5 = vld [vmem:[#allocation20 + $0xfc] sm:$0xf]  ;;  %v6071_v56 = vld [vmem:[#allocation22 + $0xf8] sm:$0xf]  ;;  %v6168_v22 = vadd.bf16 %v6104_v16, %v5912_v53  ;;  %v5024_v36 = vld [vmem:[%s9130_s16] sm:$0xf] }
 0x45f   :  { %v6181_v21 = vadd.bf16 %v6117_v25, %v5925_v51  ;;  %v6182_v27 = vadd.bf16 %v6118_v41, %v5926_v19  ;;  %v6072_v23 = vld [vmem:[#allocation22 + $0xfc] sm:$0xf]  ;;  %v6135_v20 = vmul.bf16 %v6071_v56, %v6007_v39  ;;  %v5895_v29 = vld [vmem:[#allocation19 + $0x38] sm:$0xf]  ;;  %v5028_v51 = vld [vmem:[%s9132_s18] sm:$0xf]  ;;  %v5027_v19 = vunpack.c.l.bf16 %v5026_v57 }
 0x460   :  { %v5896_v8 = vld [vmem:[#allocation19 + $0x3c] sm:$0xf]  ;;  %v5959_v44 = vld [vmem:[#allocation20 + $0x38] sm:$0xf]  ;;  %7036 = vmatpush3.bf16.msra.mxu0 %v6997_v33  ;;  %v6136_v0 = vmul.bf16 %v6072_v23, %v6008_v5  ;;  %v7006_v14 = vcombine.low %v6167_v58, %v6168_v22  ;;  %v5029_v40 = vunpack.c.l.bf16 %v5028_v51  ;;  %v5025_v34 = vunpack.c.l.bf16 %v5024_v36  ;;  %v9211_v62 = vld [vmem:[#allocation33_spill] sm:$0xff] }
 0x461   :  { %v7013_v38 = vcombine.low %v6181_v21, %v6182_v27  ;;  %v5960_v24 = vld [vmem:[#allocation20 + $0x3c] sm:$0xf]  ;;  %v6023_v11 = vld [vmem:[#allocation22 + $0x38] sm:$0xf]  ;;  %v6199_v15 = vadd.bf16 %v6135_v20, %v5943_v59  ;;  %v9212_v41 = vld [vmem:[#allocation32_spill] sm:$0xff] }
 0x462   :  { %v6024_v7 = vld [vmem:[#allocation22 + $0x3c] sm:$0xf]  ;;  %v6087_v6 = vmul.bf16 %v6023_v11, %v5959_v44  ;;  %v5927_v60 = vld [vmem:[#allocation19 + $0xb8] sm:$0xf]  ;;  %v6200_v9 = vadd.bf16 %v6136_v0, %v5944_v61  ;;  %7037 = vmatprep.subr.bf16.mxu0 %v7006_v14  ;;  %v5030_v46 = vmul.f32 %v5029_v40, %v5027_v19  ;;  %v6203_v0 = vld [vmem:[%s9137_s23] sm:$0x1] }
 0x463   :  { %7058 = vmatpush3.bf16.msra.mxu1 %v7013_v38  ;;  %v6088_v12 = vmul.bf16 %v6024_v7, %v5960_v24  ;;  %v5928_v1 = vld [vmem:[#allocation19 + $0xbc] sm:$0xf]  ;;  %v5991_v4 = vld [vmem:[#allocation20 + $0xb8] sm:$0xf]  ;;  %v6205_v24 = vld [vmem:[%s9214_s26] sm:$0x1]  ;;  %v6204_v11 = vunpack.c.l.bf16 %v6203_v0 }
 0x464   :  { %v5992_v37 = vld [vmem:[#allocation20 + $0xbc] sm:$0xf]  ;;  %v6055_v50 = vld [vmem:[#allocation22 + $0xb8] sm:$0xf]  ;;  %v6151_v35 = vadd.bf16 %v6087_v6, %v5895_v29  ;;  %v7022_v13 = vcombine.low %v6199_v15, %v6200_v9  ;;  %v5031_v31 = vadd.f32 %v5030_v46, %v5025_v34  ;;  %v6206_v7 = vunpack.c.l.bf16 %v6205_v24  ;;  %v6201_v14 = vld [vmem:[%s9215_s19] sm:$0x1] }
 0x465   :  { %v6056_v3 = vld [vmem:[#allocation22 + $0xbc] sm:$0xf]  ;;  %v6152_v55 = vadd.bf16 %v6088_v12, %v5896_v8  ;;  %v6119_v43 = vmul.bf16 %v6055_v50, %v5991_v4  ;;  %v6202_v15 = vunpack.c.l.bf16 %v6201_v14  ;;  %s7480_s23 = smov [#allocation23]  }
 0x466   :  { %v6120_v17 = vmul.bf16 %v6056_v3, %v5992_v37  ;;  %7059 = vmatprep.subr.bf16.mxu1 %v7022_v13  ;;  %v5040_v54 = vrot.slane %v5031_v31, %v7828_v49  ;;  %v5048_v25 = vrot.slane %v5031_v31, %v9211_v62  ;;  %v5044_v45 = vrot.slane %v5031_v31, %v9212_v41  ;;  %v9213_v53 = vld [vmem:[#allocation34_spill] sm:$0xff]  ;;  %s6496_s1 = sshll.u32 %s7480_s23, 4  ;;  %s6497_s1 = int_to_ptr.vmem [resolvable:$true] %s6496_s1 }
 0x467   :  { %v6998_v52 = vcombine.low %v6151_v35, %v6152_v55  ;;  %v6183_v18 = vadd.bf16 %v6119_v43, %v5927_v60  ;;  %v5052_v28 = vrot.slane %v5031_v31, %v9213_v53  ;;  %v6207_v6 = vmul.f32 %v6206_v7, %v6204_v11  ;;  %s7424_s21 = scalar_lea.vmem %s6497_s1, 128  ;;  %p7429_p7 = scmp.lt.s32.totalorder %s6497_s1, %s6497_s1 }
 0x468   :  { %v6184_v42 = vadd.bf16 %v6120_v17, %v5928_v1  ;;  %v5060_v48 = vrot.slane %v5040_v54, %v7828_v49  ;;  %v5068_v10 = vrot.slane %v5048_v25, %v7828_v49  ;;  %v5064_v63 = vrot.slane %v5044_v45, %v7828_v49  ;;  %p7425_p6 = scmp.ne.s32.totalorder %s6497_s1, %s7424_s21  ;;  %p7430_p8 = scmp.lt.s32.totalorder %s7424_s21, %s7424_s21 }
 0x469   :  { %7038 = vmatpush3.bf16.msra.mxu0 %v6998_v52  ;;  %v5072_v2 = vrot.slane %v5052_v28, %v7828_v49  ;;  %v6208_v12 = vadd.f32 %v6207_v6, %v6202_v15 }
 0x46a   :  { %v7014_v47 = vcombine.low %v6183_v18, %v6184_v42  ;;  %p7431_p9 = por %p7430_p8, %p7429_p7 }
 0x46b   :  { %v6216_v4 = vrot.slane %v6208_v12, %v7828_v49 }
 0x46c   :  { %7060 = vmatpush3.bf16.msra.mxu1 %v7014_v47  ;;  %p7432_p10 = pnand %p7431_p9, %p7425_p6 }
 0x515   :  { %v5788_v26 = vpop.f32.mrb[8].mxu0  ;;  %v5870_v32 = vpop.f32.mrb[8].mxu1 }
 0x516   :  { %v7075_v21 = vadd.f32 %v5788_v26, %v5060_v48  ;;  %v7077_v27 = vadd.f32 %v5870_v32, %v5068_v10  ;;  %v5790_v30 = vpop.f32.mrb[9].mxu0  ;;  %v5872_v16 = vpop.f32.mrb[9].mxu1 }
 0x517   :  { %v7076_v59 = vadd.f32 %v5790_v30, %v5064_v63  ;;  %v7078_v61 = vadd.f32 %v5872_v16, %v5072_v2  ;;  %v5792_v39 = vpop.f32.mrb[10].mxu0  ;;  %v5874_v33 = vpop.f32.mrb[10].mxu1 }
 0x518   :  { %v5877_v5 = vmax.f32 %v7075_v21, 0.0  ;;  %v5879_v56 = vmax.f32 %v7077_v27, 0.0  ;;  %v5793_v23 = vpop.f32.mrb[11].mxu0  ;;  %v5875_v38 = vpop.f32.mrb[11].mxu1 }
 0x519   :  { %v5878_v58 = vmax.f32 %v7076_v59, 0.0  ;;  %v5880_v22 = vmax.f32 %v7078_v61, 0.0 }
 0x51a   :  { %v6209_v8 = vpack.c.bf16 %v5877_v5, %v5877_v5  ;;  %v6211_v44 = vpack.c.bf16 %v5879_v56, %v5879_v56 }
 0x51b   :  { %v6210_v20 = vpack.c.bf16 %v5878_v58, %v5878_v58  ;;  %v6212_v29 = vpack.c.bf16 %v5880_v22, %v5880_v22 }
 0x51d   :  { %6441 = vmatprep.mubr.bf16.mxu0 %v6210_v20  ;;  %6481 = vmatprep.mubr.bf16.mxu1 %v6212_v29 }
 0x51e   :  { %6442 = vmatmul.mubr.bf16.vlgmr.msra.gmra.mrb[12].mxu0 %v6209_v8  ;;  %6482 = vmatmul.mubr.bf16.vlgmr.msra.gmra.mrb[12].mxu1 %v6211_v44 }
 0x5f1   :  { %v7039_v60 = vpop.f32.mrb[12].mxu0  ;;  %v7061_v1 = vpop.f32.mrb[12].mxu1 }
 0x5f2   :  { %v7040_v9 = vpop.f32.mrb[13].mxu0  ;;  %v7062_v37 = vpop.f32.mrb[13].mxu1 }
 0x5f3   :  { %v7041_v50 = vadd.f32 %v7040_v9, %v7039_v60  ;;  %v7063_v3 = vadd.f32 %v7062_v37, %v7061_v1  ;;  %v7042_v35 = vpop.f32.mrb[14].mxu0  ;;  %v7064_v55 = vpop.f32.mrb[14].mxu1 }
 0x5f4   :  { %v7043_v43 = vpop.f32.mrb[15].mxu0  ;;  %v7065_v17 = vpop.f32.mrb[15].mxu1 }
 0x5f5   :  { %v6444_v13 = vadd.f32 %v7041_v50, %v6216_v4 }
 0x5f7   :  { %v6484_v52 = vadd.f32 %v7063_v3, %v6444_v13 }
 0x5f9   :  { %6489 = vst [vmem:[#allocation23] sm:$0xff] %v6484_v52 }
 0x5fa   :  { %7435 = shalt.err (!%p7432_p10)
}
 0x5fb   :  { %s9216_s0 = sld [smem:[#allocation47_spill]] }
 0x601   :  { %s7436_s7 = scalar_lea.hbm %s9216_s0, 128 }
 0x602   :  { %p7437_p11 = scmp.ne.s32.totalorder %s9216_s0, %s7436_s7  ;;  %p7440_p12 = scmp.lt.u32.totalorder %s7436_s7, %s9216_s0 }
 0x604   :  { %p7442_p13 = pnand %p7440_p12, %p7437_p11 }
 0x606   :  { %7445 = shalt.err (!%p7442_p13)
}
 0x607   :  { %6499 = dma.vmem_to_hbm [thread:$0]  %s6497_s1, 128, %s9216_s0, [#allocation4]  }
 0x608   :  { %7460 = dma.done.wait [#allocation4], 128  }
 0x609   :  { %7461 = vsyncadd [#allocation4], 4294967168 }
 0x60a   :  { %6503 = vsyncpa [#allocation3], 1 }
 0x60b   :  { %6504 = vsyncpa [#allocation6], 1 }
 0x60c   :  { %6505 = vsyncpa [#allocation9], 1 }
 0x60d   :  { %6506 = vsyncpa [#allocation12], 1 }
 0x60e   :  { %6507 = vsyncpa [#allocation15], 1 }
 0x60f   :  { %6508 = vsyncpa [#allocation18], 1 }
 0x610   :  { %6509 = vsyncpa [#allocation21], 1 }
 0x611   :  { %6510 = vsyncpa [#allocation4], 1 }

</bundles_post_ra>
